<compile_context>
chip_gen: v7x
topology: tpu7x:2x2x1
jax: 0.10.0
libtpu: 0.0.40
codegen_flags: <defaults>
</compile_context>

<pallas_src>
import jax
import jax.numpy as jnp
from jax import lax
from jax.experimental import pallas as pl
from jax.experimental.pallas import tpu as pltpu

_EPS = 1e-5
_SLOPE = 0.2                 # LeakyReLU negative slope
_VMEM_LIMIT = 32 << 20       # fits v7x's 64 MiB physical VMEM with headroom


def _round_up(x, m):
    return ((x + m - 1) // m) * m


# ----------------------------- Pallas kernels -----------------------------

def _mm_bn_lrelu_kernel(x_ref, w_ref, s_ref, b_ref, o_ref):
    """LeakyReLU((x @ w) * scale + bias) -- bf16 operands, f32 accumulate."""
    acc = jnp.dot(x_ref[...], w_ref[...], preferred_element_type=jnp.float32)
    y = acc * s_ref[...] + b_ref[...]
    o_ref[...] = jnp.where(y > 0, y, _SLOPE * y).astype(o_ref.dtype)


def _linear_kernel(x_ref, w_ref, b_ref, o_ref):
    """x @ w + bias (fused nn.Linear heads)."""
    acc = jnp.dot(x_ref[...], w_ref[...], preferred_element_type=jnp.float32)
    o_ref[...] = (acc + b_ref[...]).astype(o_ref.dtype)


def _pallas_matmul(kernel, x, w, vecs, out_dtype=jnp.bfloat16):
    """Row-tiled pallas_call driver. x:(M,K), w:(K,N), vecs: (N,) f32 vectors."""
    M, K = x.shape
    N = w.shape[1]

    # Row-tile choice: big enough to amortize per-step pipeline overhead,
    # small enough to keep >=2 blocks (megacore / pipelining) on large layers
    # and stay comfortably inside the scoped VMEM limit.
    if M >= 1024:
        tm = 256
    elif M >= 256:
        tm = 128
    else:
        tm = _round_up(M, 8)          # single sublane-aligned block

    Mp = _round_up(M, tm)
    if Mp != M:
        x = jnp.pad(x, ((0, Mp - M), (0, 0)))

    xb = x.astype(jnp.bfloat16)
    wb = w.astype(jnp.bfloat16)
    vec_args = [v.reshape(1, N).astype(jnp.float32) for v in vecs]

    out = pl.pallas_call(
        kernel,
        out_shape=jax.ShapeDtypeStruct((Mp, N), out_dtype),
        grid=(Mp // tm,),
        in_specs=[
            pl.BlockSpec((tm, K), lambda i: (i, 0)),
            pl.BlockSpec((K, N), lambda i: (0, 0)),
        ] + [pl.BlockSpec((1, N), lambda i: (0, 0)) for _ in vecs],
        out_specs=pl.BlockSpec((tm, N), lambda i: (i, 0)),
        compiler_params=pltpu.CompilerParams(
            dimension_semantics=("parallel",),
            vmem_limit_bytes=_VMEM_LIMIT,
        ),
    )(xb, wb, *vec_args)
    return out[:M] if Mp != M else out


# ------------------------------ JAX glue -----------------------------------

def _bn_fold(gamma, beta, mean, var):
    scale = gamma / jnp.sqrt(var + _EPS)
    bias = beta - mean * scale
    return scale, bias


def _im2col(x_nhwc, ksize, stride, pad):
    """Extract conv patches; returns ((N*Ho*Wo, k*k*C), (N, Ho, Wo))."""
    N, H, W, C = x_nhwc.shape
    xp = jnp.pad(x_nhwc, ((0, 0), (pad, pad), (pad, pad), (0, 0)))
    Hp, Wp = H + 2 * pad, W + 2 * pad
    Ho = (Hp - ksize) // stride + 1
    Wo = (Wp - ksize) // stride + 1
    cols = []
    for i in range(ksize):
        for j in range(ksize):
            cols.append(
                xp[:, i:i + stride * (Ho - 1) + 1:stride,
                      j:j + stride * (Wo - 1) + 1:stride, :]
            )
    patches = jnp.stack(cols, axis=3)            # (N, Ho, Wo, k*k, C)
    return patches.reshape(N * Ho * Wo, ksize * ksize * C), (N, Ho, Wo)


def _conv_bn_lrelu(x_nhwc, w_oihw, gamma, beta, mean, var, ksize, stride, pad):
    patches, (N, Ho, Wo) = _im2col(x_nhwc, ksize, stride, pad)
    Cout = w_oihw.shape[0]
    # (Cout, Cin, kH, kW) -> (kH, kW, Cin, Cout) -> (kH*kW*Cin, Cout)
    w_mat = jnp.transpose(w_oihw, (2, 3, 1, 0)).reshape(-1, Cout)
    scale, bias = _bn_fold(gamma, beta, mean, var)
    y = _pallas_matmul(_mm_bn_lrelu_kernel, patches, w_mat, (scale, bias))
    return y.reshape(N, Ho, Wo, Cout)


def _fc_bn_lrelu(x, w_oi, gamma, beta, mean, var):
    w_mat = jnp.transpose(w_oi)                  # (in, out)
    scale, bias = _bn_fold(gamma, beta, mean, var)
    return _pallas_matmul(_mm_bn_lrelu_kernel, x, w_mat, (scale, bias))


def _fused_heads(h, params):
    """All five nn.Linear heads as ONE lane-dense matmul; softmax on qz slice."""
    names = ("mu_x", "logvar_x", "mu_w", "logvar_w", "qz")
    ws = [jnp.transpose(params[f"{n}_w"]) for n in names]   # (hidden, out_i)
    bs = [params[f"{n}_b"] for n in names]
    sizes = [params[f"{n}_b"].shape[0] for n in names]

    w_cat = jnp.concatenate(ws, axis=1)
    b_cat = jnp.concatenate(bs, axis=0)
    total = w_cat.shape[1]
    Np = _round_up(total, 128)                   # lane-dense output block
    if Np != total:
        w_cat = jnp.pad(w_cat, ((0, 0), (0, Np - total)))
        b_cat = jnp.pad(b_cat, (0, Np - total))

    out = _pallas_matmul(_linear_kernel, h, w_cat, (b_cat,),
                         out_dtype=jnp.float32)

    pieces, off = [], 0
    for sz in sizes:
        pieces.append(out[:, off:off + sz])
        off += sz
    mu_x, logvar_x, mu_w, logvar_w, qz_logits = pieces
    qz = jax.nn.softmax(qz_logits, axis=-1)
    return qz, mu_x, logvar_x, mu_w, logvar_w


def _avg_pool_nhwc(x, k=3, s=2, p=1):
    # PyTorch AvgPool2d default: count_include_pad=True -> divide by k*k.
    summed = lax.reduce_window(
        x.astype(jnp.float32), 0.0, lax.add,
        window_dimensions=(1, k, k, 1),
        window_strides=(1, s, s, 1),
        padding=((0, 0), (p, p), (p, p), (0, 0)),
    )
    return summed / float(k * k)


# ------------------------------ Encoder ------------------------------------

_CONV_CHANNELS = (32, 64, 128, 256, 512)


def _conv_out(h, k, s, p):
    return (h + 2 * p - k) // s + 1


def _flattened_size(img_size):
    h = img_size
    for _ in range(5):
        h = _conv_out(h, 4, 2, 1)     # strided conv stack
    h = _conv_out(h, 3, 1, 1)         # global_pool conv
    h = _conv_out(h, 3, 2, 1)         # AvgPool2d(3, 2, 1)
    return 512 * h * h


def init_params(key, input_channels, img_size, hidden_size, x_size, w_size, K):
    keys = iter(jax.random.split(key, 64))
    nrm = lambda k, shp, sc=0.05: sc * jax.random.normal(k, shp, jnp.float32)
    p = {}

    def bn(prefix, n):
        p[f"{prefix}_gamma"] = 1.0 + 0.1 * jax.random.normal(next(keys), (n,), jnp.float32)
        p[f"{prefix}_beta"] = 0.1 * jax.random.normal(next(keys), (n,), jnp.float32)
        p[f"{prefix}_mean"] = jnp.zeros((n,), jnp.float32)   # running stats
        p[f"{prefix}_var"] = jnp.ones((n,), jnp.float32)

    cin = input_channels
    for li, cout in enumerate(_CONV_CHANNELS):
        p[f"conv{li}_w"] = nrm(next(keys), (cout, cin, 4, 4))
        bn(f"conv{li}", cout)
        cin = cout
    p["gconv_w"] = nrm(next(keys), (512, 512, 3, 3))
    bn("gconv", 512)

    flat = _flattened_size(img_size)
    p["fc1_w"] = nrm(next(keys), (hidden_size * 2, flat))
    bn("fc1", hidden_size * 2)
    p["fc2_w"] = nrm(next(keys), (hidden_size, hidden_size * 2))
    bn("fc2", hidden_size)

    for name, out in (("mu_x", x_size), ("logvar_x", x_size),
                      ("mu_w", w_size), ("logvar_w", w_size), ("qz", K)):
        p[f"{name}_w"] = nrm(next(keys), (out, hidden_size))
        p[f"{name}_b"] = nrm(next(keys), (out,), 0.01)
    return p


@jax.jit
def encoder_forward(params, x_nchw):
    """Returns (qz, mu_x, logvar_x, mu_w, logvar_w) — matches the torch module."""
    # NCHW -> NHWC; bf16 activations between layers (heads come out f32).
    x = jnp.transpose(x_nchw, (0, 2, 3, 1)).astype(jnp.bfloat16)

    # conv_features: 5 x (Conv 4x4/s2/p1, no bias) + BN + LeakyReLU(0.2)
    for li in range(5):
        x = _conv_bn_lrelu(
            x, params[f"conv{li}_w"],
            params[f"conv{li}_gamma"], params[f"conv{li}_beta"],
            params[f"conv{li}_mean"], params[f"conv{li}_var"],
            ksize=4, stride=2, pad=1)

    # global_pool: Conv 3x3/s1/p1 + BN + LeakyReLU, then AvgPool2d(3, 2, 1)
    x = _conv_bn_lrelu(
        x, params["gconv_w"],
        params["gconv_gamma"], params["gconv_beta"],
        params["gconv_mean"], params["gconv_var"],
        ksize=3, stride=1, pad=1)
    x = _avg_pool_nhwc(x, k=3, s=2, p=1)

    # flatten in PyTorch (C, H, W) order
    B = x.shape[0]
    x_flat = jnp.transpose(x, (0, 3, 1, 2)).reshape(B, -1)

    # adaptive_fc: Linear + BN1d + LeakyReLU, Dropout(identity), Linear + BN1d + LeakyReLU
    h = _fc_bn_lrelu(x_flat, params["fc1_w"], params["fc1_gamma"],
                     params["fc1_beta"], params["fc1_mean"], params["fc1_var"])
    h = _fc_bn_lrelu(h, params["fc2_w"], params["fc2_gamma"],
                     params["fc2_beta"], params["fc2_mean"], params["fc2_var"])

    # fused heads (single lane-dense matmul) + qz softmax
    return _fused_heads(h, params)


if __name__ == "__main__":
    # Small but valid shapes: 32x32 images survive the 5 stride-2 convs (-> 1x1).
    B, C, H, W = 2, 3, 32, 32
    hidden_size, x_size, w_size, K = 32, 16, 12, 10

    key = jax.random.PRNGKey(0)
    k_x, k_p = jax.random.split(key)
    x = jax.random.normal(k_x, (B, C, H, W), jnp.float32)
    params = init_params(k_p, C, H, hidden_size, x_size, w_size, K)

    qz, mu_x, logvar_x, mu_w, logvar_w = jax.block_until_ready(
        encoder_forward(params, x)
    )

    assert qz.shape == (B, K) and mu_x.shape == (B, x_size)
    assert logvar_x.shape == (B, x_size) and mu_w.shape == (B, w_size)
    assert logvar_w.shape == (B, w_size)
    assert qz.dtype == jnp.float32 and mu_x.dtype == jnp.float32
    assert bool(jnp.allclose(jnp.sum(qz, axis=1), 1.0, atol=1e-5))
    assert bool(jnp.all(jnp.isfinite(mu_x))) and bool(jnp.all(jnp.isfinite(logvar_w)))
    print("KERNEL_OK")
</pallas_src>

<mosaic_0001>
module attributes {stable_mosaic.version = 11 : i64} {
  func.func @_mm_bn_lrelu_kernel(%arg0: i32, %arg1: memref<128x48xbf16, #tpu.memory_space<vmem>>, %arg2: memref<48x32xbf16, #tpu.memory_space<vmem>>, %arg3: memref<1x32xf32, #tpu.memory_space<vmem>>, %arg4: memref<1x32xf32, #tpu.memory_space<vmem>>, %arg5: memref<128x32xbf16, #tpu.memory_space<vmem>>) attributes {dimension_semantics = [#tpu.dimension_semantics<parallel>], iteration_bounds = array<i64: 4>, scalar_prefetch = 0 : i64, scratch_operands = 0 : i64, tpu.core_type = #tpu.core_type<tc>, window_params = [{transform_indices = @transform_0, window_bounds = array<i64: 128, 48>}, {pipeline_mode = #tpu.pipeline_mode<synchronous>, transform_indices = @transform_1, window_bounds = array<i64: 48, 32>}, {pipeline_mode = #tpu.pipeline_mode<synchronous>, transform_indices = @transform_2, window_bounds = array<i64: 1, 32>}, {pipeline_mode = #tpu.pipeline_mode<synchronous>, transform_indices = @transform_3, window_bounds = array<i64: 1, 32>}, {transform_indices = @transform_4, window_bounds = array<i64: 128, 32>}]} {
    %c0 = arith.constant 0 : index
    %c0_0 = arith.constant 0 : index
    %0 = vector.load %arg1[%c0, %c0_0] : memref<128x48xbf16, #tpu.memory_space<vmem>>, vector<128x48xbf16>
    %c0_1 = arith.constant 0 : index
    %c0_2 = arith.constant 0 : index
    %1 = vector.load %arg2[%c0_1, %c0_2] : memref<48x32xbf16, #tpu.memory_space<vmem>>, vector<48x32xbf16>
    %cst = arith.constant dense<0.000000e+00> : vector<128x32xf32>
    %2 = tpu.matmul %0, %1, %cst {dimension_numbers = #tpu.dot_dimension_numbers<[1], [0], [0], [1], [0, 0, 1, 1], [], []>} : vector<128x48xbf16>, vector<48x32xbf16>, vector<128x32xf32> -> vector<128x32xf32>
    %c0_3 = arith.constant 0 : index
    %c0_4 = arith.constant 0 : index
    %3 = vector.load %arg3[%c0_3, %c0_4] : memref<1x32xf32, #tpu.memory_space<vmem>>, vector<1x32xf32>
    %4 = vector.broadcast %3 : vector<1x32xf32> to vector<128x32xf32>
    %5 = arith.mulf %2, %4 : vector<128x32xf32>
    %c0_5 = arith.constant 0 : index
    %c0_6 = arith.constant 0 : index
    %6 = vector.load %arg4[%c0_5, %c0_6] : memref<1x32xf32, #tpu.memory_space<vmem>>, vector<1x32xf32>
    %7 = vector.broadcast %6 : vector<1x32xf32> to vector<128x32xf32>
    %8 = arith.addf %5, %7 : vector<128x32xf32>
    %cst_7 = arith.constant 0.000000e+00 : f32
    %9 = vector.broadcast %cst_7 : f32 to vector<128x32xf32>
    %10 = arith.cmpf ogt, %8, %9 : vector<128x32xf32>
    %cst_8 = arith.constant 2.000000e-01 : f32
    %11 = vector.broadcast %cst_8 : f32 to vector<128x32xf32>
    %12 = arith.mulf %11, %8 : vector<128x32xf32>
    %13 = arith.select %10, %8, %12 : vector<128x32xi1>, vector<128x32xf32>
    %14 = arith.truncf %13 : vector<128x32xf32> to vector<128x32xbf16>
    %c0_9 = arith.constant 0 : index
    %c0_10 = arith.constant 0 : index
    %15 = vector.load %arg5[%c0_9, %c0_10] : memref<128x32xbf16, #tpu.memory_space<vmem>>, vector<128x32xbf16>
    tpu.vector_store %arg5[%c0_9, %c0_10], %14 {strides = array<i32>} : memref<128x32xbf16, #tpu.memory_space<vmem>>, vector<128x32xbf16>,
    return
  }
  func.func @transform_0(%arg0: i32) -> (i32, i32) {
    %c0_i32 = arith.constant 0 : i32
    %c0_i32_0 = arith.constant 0 : i32
    return %arg0, %c0_i32 : i32, i32
  }
  func.func @transform_1(%arg0: i32) -> (i32, i32) {
    %c0_i32 = arith.constant 0 : i32
    %c0_i32_0 = arith.constant 0 : i32
    %c0_i32_1 = arith.constant 0 : i32
    return %c0_i32, %c0_i32_0 : i32, i32
  }
  func.func @transform_2(%arg0: i32) -> (i32, i32) {
    %c0_i32 = arith.constant 0 : i32
    %c0_i32_0 = arith.constant 0 : i32
    %c0_i32_1 = arith.constant 0 : i32
    return %c0_i32, %c0_i32_0 : i32, i32
  }
  func.func @transform_3(%arg0: i32) -> (i32, i32) {
    %c0_i32 = arith.constant 0 : i32
    %c0_i32_0 = arith.constant 0 : i32
    %c0_i32_1 = arith.constant 0 : i32
    return %c0_i32, %c0_i32_0 : i32, i32
  }
  func.func @transform_4(%arg0: i32) -> (i32, i32) {
    %c0_i32 = arith.constant 0 : i32
    %c0_i32_0 = arith.constant 0 : i32
    return %arg0, %c0_i32 : i32, i32
  }
}

module attributes {stable_mosaic.version = 11 : i64} {
  func.func @_mm_bn_lrelu_kernel(%arg0: i32, %arg1: memref<128x512xbf16, #tpu.memory_space<vmem>>, %arg2: memref<512x64xbf16, #tpu.memory_space<vmem>>, %arg3: memref<1x64xf32, #tpu.memory_space<vmem>>, %arg4: memref<1x64xf32, #tpu.memory_space<vmem>>, %arg5: memref<128x64xbf16, #tpu.memory_space<vmem>>) attributes {dimension_semantics = [#tpu.dimension_semantics<parallel>], iteration_bounds = array<i64: 1>, scalar_prefetch = 0 : i64, scratch_operands = 0 : i64, tpu.core_type = #tpu.core_type<tc>, window_params = [{transform_indices = @transform_0, window_bounds = array<i64: 128, 512>}, {pipeline_mode = #tpu.pipeline_mode<synchronous>, transform_indices = @transform_1, window_bounds = array<i64: 512, 64>}, {pipeline_mode = #tpu.pipeline_mode<synchronous>, transform_indices = @transform_2, window_bounds = array<i64: 1, 64>}, {pipeline_mode = #tpu.pipeline_mode<synchronous>, transform_indices = @transform_3, window_bounds = array<i64: 1, 64>}, {transform_indices = @transform_4, window_bounds = array<i64: 128, 64>}]} {
    %c0 = arith.constant 0 : index
    %c0_0 = arith.constant 0 : index
    %0 = vector.load %arg1[%c0, %c0_0] : memref<128x512xbf16, #tpu.memory_space<vmem>>, vector<128x512xbf16>
    %c0_1 = arith.constant 0 : index
    %c0_2 = arith.constant 0 : index
    %1 = vector.load %arg2[%c0_1, %c0_2] : memref<512x64xbf16, #tpu.memory_space<vmem>>, vector<512x64xbf16>
    %cst = arith.constant dense<0.000000e+00> : vector<128x64xf32>
    %2 = tpu.matmul %0, %1, %cst {dimension_numbers = #tpu.dot_dimension_numbers<[1], [0], [0], [1], [0, 0, 1, 1], [], []>} : vector<128x512xbf16>, vector<512x64xbf16>, vector<128x64xf32> -> vector<128x64xf32>
    %c0_3 = arith.constant 0 : index
    %c0_4 = arith.constant 0 : index
    %3 = vector.load %arg3[%c0_3, %c0_4] : memref<1x64xf32, #tpu.memory_space<vmem>>, vector<1x64xf32>
    %4 = vector.broadcast %3 : vector<1x64xf32> to vector<128x64xf32>
    %5 = arith.mulf %2, %4 : vector<128x64xf32>
    %c0_5 = arith.constant 0 : index
    %c0_6 = arith.constant 0 : index
    %6 = vector.load %arg4[%c0_5, %c0_6] : memref<1x64xf32, #tpu.memory_space<vmem>>, vector<1x64xf32>
    %7 = vector.broadcast %6 : vector<1x64xf32> to vector<128x64xf32>
    %8 = arith.addf %5, %7 : vector<128x64xf32>
    %cst_7 = arith.constant 0.000000e+00 : f32
    %9 = vector.broadcast %cst_7 : f32 to vector<128x64xf32>
    %10 = arith.cmpf ogt, %8, %9 : vector<128x64xf32>
    %cst_8 = arith.constant 2.000000e-01 : f32
    %11 = vector.broadcast %cst_8 : f32 to vector<128x64xf32>
    %12 = arith.mulf %11, %8 : vector<128x64xf32>
    %13 = arith.select %10, %8, %12 : vector<128x64xi1>, vector<128x64xf32>
    %14 = arith.truncf %13 : vector<128x64xf32> to vector<128x64xbf16>
    %c0_9 = arith.constant 0 : index
    %c0_10 = arith.constant 0 : index
    %15 = vector.load %arg5[%c0_9, %c0_10] : memref<128x64xbf16, #tpu.memory_space<vmem>>, vector<128x64xbf16>
    tpu.vector_store %arg5[%c0_9, %c0_10], %14 {strides = array<i32>} : memref<128x64xbf16, #tpu.memory_space<vmem>>, vector<128x64xbf16>,
    return
  }
  func.func @transform_0(%arg0: i32) -> (i32, i32) {
    %c0_i32 = arith.constant 0 : i32
    %c0_i32_0 = arith.constant 0 : i32
    return %arg0, %c0_i32 : i32, i32
  }
  func.func @transform_1(%arg0: i32) -> (i32, i32) {
    %c0_i32 = arith.constant 0 : i32
    %c0_i32_0 = arith.constant 0 : i32
    %c0_i32_1 = arith.constant 0 : i32
    return %c0_i32, %c0_i32_0 : i32, i32
  }
  func.func @transform_2(%arg0: i32) -> (i32, i32) {
    %c0_i32 = arith.constant 0 : i32
    %c0_i32_0 = arith.constant 0 : i32
    %c0_i32_1 = arith.constant 0 : i32
    return %c0_i32, %c0_i32_0 : i32, i32
  }
  func.func @transform_3(%arg0: i32) -> (i32, i32) {
    %c0_i32 = arith.constant 0 : i32
    %c0_i32_0 = arith.constant 0 : i32
    %c0_i32_1 = arith.constant 0 : i32
    return %c0_i32, %c0_i32_0 : i32, i32
  }
  func.func @transform_4(%arg0: i32) -> (i32, i32) {
    %c0_i32 = arith.constant 0 : i32
    %c0_i32_0 = arith.constant 0 : i32
    return %arg0, %c0_i32 : i32, i32
  }
}

module attributes {stable_mosaic.version = 11 : i64} {
  func.func @_mm_bn_lrelu_kernel(%arg0: i32, %arg1: memref<32x1024xbf16, #tpu.memory_space<vmem>>, %arg2: memref<1024x128xbf16, #tpu.memory_space<vmem>>, %arg3: memref<1x128xf32, #tpu.memory_space<vmem>>, %arg4: memref<1x128xf32, #tpu.memory_space<vmem>>, %arg5: memref<32x128xbf16, #tpu.memory_space<vmem>>) attributes {dimension_semantics = [#tpu.dimension_semantics<parallel>], iteration_bounds = array<i64: 1>, scalar_prefetch = 0 : i64, scratch_operands = 0 : i64, tpu.core_type = #tpu.core_type<tc>, window_params = [{transform_indices = @transform_0, window_bounds = array<i64: 32, 1024>}, {pipeline_mode = #tpu.pipeline_mode<synchronous>, transform_indices = @transform_1, window_bounds = array<i64: 1024, 128>}, {pipeline_mode = #tpu.pipeline_mode<synchronous>, transform_indices = @transform_2, window_bounds = array<i64: 1, 128>}, {pipeline_mode = #tpu.pipeline_mode<synchronous>, transform_indices = @transform_3, window_bounds = array<i64: 1, 128>}, {transform_indices = @transform_4, window_bounds = array<i64: 32, 128>}]} {
    %c0 = arith.constant 0 : index
    %c0_0 = arith.constant 0 : index
    %0 = vector.load %arg1[%c0, %c0_0] : memref<32x1024xbf16, #tpu.memory_space<vmem>>, vector<32x1024xbf16>
    %c0_1 = arith.constant 0 : index
    %c0_2 = arith.constant 0 : index
    %1 = vector.load %arg2[%c0_1, %c0_2] : memref<1024x128xbf16, #tpu.memory_space<vmem>>, vector<1024x128xbf16>
    %cst = arith.constant dense<0.000000e+00> : vector<32x128xf32>
    %2 = tpu.matmul %0, %1, %cst {dimension_numbers = #tpu.dot_dimension_numbers<[1], [0], [0], [1], [0, 0, 1, 1], [], []>} : vector<32x1024xbf16>, vector<1024x128xbf16>, vector<32x128xf32> -> vector<32x128xf32>
    %c0_3 = arith.constant 0 : index
    %c0_4 = arith.constant 0 : index
    %3 = vector.load %arg3[%c0_3, %c0_4] : memref<1x128xf32, #tpu.memory_space<vmem>>, vector<1x128xf32>
    %4 = vector.broadcast %3 : vector<1x128xf32> to vector<32x128xf32>
    %5 = arith.mulf %2, %4 : vector<32x128xf32>
    %c0_5 = arith.constant 0 : index
    %c0_6 = arith.constant 0 : index
    %6 = vector.load %arg4[%c0_5, %c0_6] : memref<1x128xf32, #tpu.memory_space<vmem>>, vector<1x128xf32>
    %7 = vector.broadcast %6 : vector<1x128xf32> to vector<32x128xf32>
    %8 = arith.addf %5, %7 : vector<32x128xf32>
    %cst_7 = arith.constant 0.000000e+00 : f32
    %9 = vector.broadcast %cst_7 : f32 to vector<32x128xf32>
    %10 = arith.cmpf ogt, %8, %9 : vector<32x128xf32>
    %cst_8 = arith.constant 2.000000e-01 : f32
    %11 = vector.broadcast %cst_8 : f32 to vector<32x128xf32>
    %12 = arith.mulf %11, %8 : vector<32x128xf32>
    %13 = arith.select %10, %8, %12 : vector<32x128xi1>, vector<32x128xf32>
    %14 = arith.truncf %13 : vector<32x128xf32> to vector<32x128xbf16>
    %c0_9 = arith.constant 0 : index
    %c0_10 = arith.constant 0 : index
    %15 = vector.load %arg5[%c0_9, %c0_10] : memref<32x128xbf16, #tpu.memory_space<vmem>>, vector<32x128xbf16>
    tpu.vector_store %arg5[%c0_9, %c0_10], %14 {strides = array<i32>} : memref<32x128xbf16, #tpu.memory_space<vmem>>, vector<32x128xbf16>,
    return
  }
  func.func @transform_0(%arg0: i32) -> (i32, i32) {
    %c0_i32 = arith.constant 0 : i32
    %c0_i32_0 = arith.constant 0 : i32
    return %arg0, %c0_i32 : i32, i32
  }
  func.func @transform_1(%arg0: i32) -> (i32, i32) {
    %c0_i32 = arith.constant 0 : i32
    %c0_i32_0 = arith.constant 0 : i32
    %c0_i32_1 = arith.constant 0 : i32
    return %c0_i32, %c0_i32_0 : i32, i32
  }
  func.func @transform_2(%arg0: i32) -> (i32, i32) {
    %c0_i32 = arith.constant 0 : i32
    %c0_i32_0 = arith.constant 0 : i32
    %c0_i32_1 = arith.constant 0 : i32
    return %c0_i32, %c0_i32_0 : i32, i32
  }
  func.func @transform_3(%arg0: i32) -> (i32, i32) {
    %c0_i32 = arith.constant 0 : i32
    %c0_i32_0 = arith.constant 0 : i32
    %c0_i32_1 = arith.constant 0 : i32
    return %c0_i32, %c0_i32_0 : i32, i32
  }
  func.func @transform_4(%arg0: i32) -> (i32, i32) {
    %c0_i32 = arith.constant 0 : i32
    %c0_i32_0 = arith.constant 0 : i32
    return %arg0, %c0_i32 : i32, i32
  }
}

module attributes {stable_mosaic.version = 11 : i64} {
  func.func @_mm_bn_lrelu_kernel(%arg0: i32, %arg1: memref<8x2048xbf16, #tpu.memory_space<vmem>>, %arg2: memref<2048x256xbf16, #tpu.memory_space<vmem>>, %arg3: memref<1x256xf32, #tpu.memory_space<vmem>>, %arg4: memref<1x256xf32, #tpu.memory_space<vmem>>, %arg5: memref<8x256xbf16, #tpu.memory_space<vmem>>) attributes {dimension_semantics = [#tpu.dimension_semantics<parallel>], iteration_bounds = array<i64: 1>, scalar_prefetch = 0 : i64, scratch_operands = 0 : i64, tpu.core_type = #tpu.core_type<tc>, window_params = [{transform_indices = @transform_0, window_bounds = array<i64: 8, 2048>}, {pipeline_mode = #tpu.pipeline_mode<synchronous>, transform_indices = @transform_1, window_bounds = array<i64: 2048, 256>}, {pipeline_mode = #tpu.pipeline_mode<synchronous>, transform_indices = @transform_2, window_bounds = array<i64: 1, 256>}, {pipeline_mode = #tpu.pipeline_mode<synchronous>, transform_indices = @transform_3, window_bounds = array<i64: 1, 256>}, {transform_indices = @transform_4, window_bounds = array<i64: 8, 256>}]} {
    %c0 = arith.constant 0 : index
    %c0_0 = arith.constant 0 : index
    %0 = vector.load %arg1[%c0, %c0_0] : memref<8x2048xbf16, #tpu.memory_space<vmem>>, vector<8x2048xbf16>
    %c0_1 = arith.constant 0 : index
    %c0_2 = arith.constant 0 : index
    %1 = vector.load %arg2[%c0_1, %c0_2] : memref<2048x256xbf16, #tpu.memory_space<vmem>>, vector<2048x256xbf16>
    %cst = arith.constant dense<0.000000e+00> : vector<8x256xf32>
    %2 = tpu.matmul %0, %1, %cst {dimension_numbers = #tpu.dot_dimension_numbers<[1], [0], [0], [1], [0, 0, 1, 1], [], []>} : vector<8x2048xbf16>, vector<2048x256xbf16>, vector<8x256xf32> -> vector<8x256xf32>
    %c0_3 = arith.constant 0 : index
    %c0_4 = arith.constant 0 : index
    %3 = vector.load %arg3[%c0_3, %c0_4] : memref<1x256xf32, #tpu.memory_space<vmem>>, vector<1x256xf32>
    %4 = vector.broadcast %3 : vector<1x256xf32> to vector<8x256xf32>
    %5 = arith.mulf %2, %4 : vector<8x256xf32>
    %c0_5 = arith.constant 0 : index
    %c0_6 = arith.constant 0 : index
    %6 = vector.load %arg4[%c0_5, %c0_6] : memref<1x256xf32, #tpu.memory_space<vmem>>, vector<1x256xf32>
    %7 = vector.broadcast %6 : vector<1x256xf32> to vector<8x256xf32>
    %8 = arith.addf %5, %7 : vector<8x256xf32>
    %cst_7 = arith.constant 0.000000e+00 : f32
    %9 = vector.broadcast %cst_7 : f32 to vector<8x256xf32>
    %10 = arith.cmpf ogt, %8, %9 : vector<8x256xf32>
    %cst_8 = arith.constant 2.000000e-01 : f32
    %11 = vector.broadcast %cst_8 : f32 to vector<8x256xf32>
    %12 = arith.mulf %11, %8 : vector<8x256xf32>
    %13 = arith.select %10, %8, %12 : vector<8x256xi1>, vector<8x256xf32>
    %14 = arith.truncf %13 : vector<8x256xf32> to vector<8x256xbf16>
    %c0_9 = arith.constant 0 : index
    %c0_10 = arith.constant 0 : index
    %15 = vector.load %arg5[%c0_9, %c0_10] : memref<8x256xbf16, #tpu.memory_space<vmem>>, vector<8x256xbf16>
    tpu.vector_store %arg5[%c0_9, %c0_10], %14 {strides = array<i32>} : memref<8x256xbf16, #tpu.memory_space<vmem>>, vector<8x256xbf16>,
    return
  }
  func.func @transform_0(%arg0: i32) -> (i32, i32) {
    %c0_i32 = arith.constant 0 : i32
    %c0_i32_0 = arith.constant 0 : i32
    return %arg0, %c0_i32 : i32, i32
  }
  func.func @transform_1(%arg0: i32) -> (i32, i32) {
    %c0_i32 = arith.constant 0 : i32
    %c0_i32_0 = arith.constant 0 : i32
    %c0_i32_1 = arith.constant 0 : i32
    return %c0_i32, %c0_i32_0 : i32, i32
  }
  func.func @transform_2(%arg0: i32) -> (i32, i32) {
    %c0_i32 = arith.constant 0 : i32
    %c0_i32_0 = arith.constant 0 : i32
    %c0_i32_1 = arith.constant 0 : i32
    return %c0_i32, %c0_i32_0 : i32, i32
  }
  func.func @transform_3(%arg0: i32) -> (i32, i32) {
    %c0_i32 = arith.constant 0 : i32
    %c0_i32_0 = arith.constant 0 : i32
    %c0_i32_1 = arith.constant 0 : i32
    return %c0_i32, %c0_i32_0 : i32, i32
  }
  func.func @transform_4(%arg0: i32) -> (i32, i32) {
    %c0_i32 = arith.constant 0 : i32
    %c0_i32_0 = arith.constant 0 : i32
    return %arg0, %c0_i32 : i32, i32
  }
}

module attributes {stable_mosaic.version = 11 : i64} {
  func.func @_mm_bn_lrelu_kernel(%arg0: i32, %arg1: memref<8x4096xbf16, #tpu.memory_space<vmem>>, %arg2: memref<4096x512xbf16, #tpu.memory_space<vmem>>, %arg3: memref<1x512xf32, #tpu.memory_space<vmem>>, %arg4: memref<1x512xf32, #tpu.memory_space<vmem>>, %arg5: memref<8x512xbf16, #tpu.memory_space<vmem>>) attributes {dimension_semantics = [#tpu.dimension_semantics<parallel>], iteration_bounds = array<i64: 1>, scalar_prefetch = 0 : i64, scratch_operands = 0 : i64, tpu.core_type = #tpu.core_type<tc>, window_params = [{transform_indices = @transform_0, window_bounds = array<i64: 8, 4096>}, {pipeline_mode = #tpu.pipeline_mode<synchronous>, transform_indices = @transform_1, window_bounds = array<i64: 4096, 512>}, {pipeline_mode = #tpu.pipeline_mode<synchronous>, transform_indices = @transform_2, window_bounds = array<i64: 1, 512>}, {pipeline_mode = #tpu.pipeline_mode<synchronous>, transform_indices = @transform_3, window_bounds = array<i64: 1, 512>}, {transform_indices = @transform_4, window_bounds = array<i64: 8, 512>}]} {
    %c0 = arith.constant 0 : index
    %c0_0 = arith.constant 0 : index
    %0 = vector.load %arg1[%c0, %c0_0] : memref<8x4096xbf16, #tpu.memory_space<vmem>>, vector<8x4096xbf16>
    %c0_1 = arith.constant 0 : index
    %c0_2 = arith.constant 0 : index
    %1 = vector.load %arg2[%c0_1, %c0_2] : memref<4096x512xbf16, #tpu.memory_space<vmem>>, vector<4096x512xbf16>
    %cst = arith.constant dense<0.000000e+00> : vector<8x512xf32>
    %2 = tpu.matmul %0, %1, %cst {dimension_numbers = #tpu.dot_dimension_numbers<[1], [0], [0], [1], [0, 0, 1, 1], [], []>} : vector<8x4096xbf16>, vector<4096x512xbf16>, vector<8x512xf32> -> vector<8x512xf32>
    %c0_3 = arith.constant 0 : index
    %c0_4 = arith.constant 0 : index
    %3 = vector.load %arg3[%c0_3, %c0_4] : memref<1x512xf32, #tpu.memory_space<vmem>>, vector<1x512xf32>
    %4 = vector.broadcast %3 : vector<1x512xf32> to vector<8x512xf32>
    %5 = arith.mulf %2, %4 : vector<8x512xf32>
    %c0_5 = arith.constant 0 : index
    %c0_6 = arith.constant 0 : index
    %6 = vector.load %arg4[%c0_5, %c0_6] : memref<1x512xf32, #tpu.memory_space<vmem>>, vector<1x512xf32>
    %7 = vector.broadcast %6 : vector<1x512xf32> to vector<8x512xf32>
    %8 = arith.addf %5, %7 : vector<8x512xf32>
    %cst_7 = arith.constant 0.000000e+00 : f32
    %9 = vector.broadcast %cst_7 : f32 to vector<8x512xf32>
    %10 = arith.cmpf ogt, %8, %9 : vector<8x512xf32>
    %cst_8 = arith.constant 2.000000e-01 : f32
    %11 = vector.broadcast %cst_8 : f32 to vector<8x512xf32>
    %12 = arith.mulf %11, %8 : vector<8x512xf32>
    %13 = arith.select %10, %8, %12 : vector<8x512xi1>, vector<8x512xf32>
    %14 = arith.truncf %13 : vector<8x512xf32> to vector<8x512xbf16>
    %c0_9 = arith.constant 0 : index
    %c0_10 = arith.constant 0 : index
    %15 = vector.load %arg5[%c0_9, %c0_10] : memref<8x512xbf16, #tpu.memory_space<vmem>>, vector<8x512xbf16>
    tpu.vector_store %arg5[%c0_9, %c0_10], %14 {strides = array<i32>} : memref<8x512xbf16, #tpu.memory_space<vmem>>, vector<8x512xbf16>,
    return
  }
  func.func @transform_0(%arg0: i32) -> (i32, i32) {
    %c0_i32 = arith.constant 0 : i32
    %c0_i32_0 = arith.constant 0 : i32
    return %arg0, %c0_i32 : i32, i32
  }
  func.func @transform_1(%arg0: i32) -> (i32, i32) {
    %c0_i32 = arith.constant 0 : i32
    %c0_i32_0 = arith.constant 0 : i32
    %c0_i32_1 = arith.constant 0 : i32
    return %c0_i32, %c0_i32_0 : i32, i32
  }
  func.func @transform_2(%arg0: i32) -> (i32, i32) {
    %c0_i32 = arith.constant 0 : i32
    %c0_i32_0 = arith.constant 0 : i32
    %c0_i32_1 = arith.constant 0 : i32
    return %c0_i32, %c0_i32_0 : i32, i32
  }
  func.func @transform_3(%arg0: i32) -> (i32, i32) {
    %c0_i32 = arith.constant 0 : i32
    %c0_i32_0 = arith.constant 0 : i32
    %c0_i32_1 = arith.constant 0 : i32
    return %c0_i32, %c0_i32_0 : i32, i32
  }
  func.func @transform_4(%arg0: i32) -> (i32, i32) {
    %c0_i32 = arith.constant 0 : i32
    %c0_i32_0 = arith.constant 0 : i32
    return %arg0, %c0_i32 : i32, i32
  }
}

module attributes {stable_mosaic.version = 11 : i64} {
  func.func @_mm_bn_lrelu_kernel(%arg0: i32, %arg1: memref<8x4608xbf16, #tpu.memory_space<vmem>>, %arg2: memref<4608x512xbf16, #tpu.memory_space<vmem>>, %arg3: memref<1x512xf32, #tpu.memory_space<vmem>>, %arg4: memref<1x512xf32, #tpu.memory_space<vmem>>, %arg5: memref<8x512xbf16, #tpu.memory_space<vmem>>) attributes {dimension_semantics = [#tpu.dimension_semantics<parallel>], iteration_bounds = array<i64: 1>, scalar_prefetch = 0 : i64, scratch_operands = 0 : i64, tpu.core_type = #tpu.core_type<tc>, window_params = [{transform_indices = @transform_0, window_bounds = array<i64: 8, 4608>}, {pipeline_mode = #tpu.pipeline_mode<synchronous>, transform_indices = @transform_1, window_bounds = array<i64: 4608, 512>}, {pipeline_mode = #tpu.pipeline_mode<synchronous>, transform_indices = @transform_2, window_bounds = array<i64: 1, 512>}, {pipeline_mode = #tpu.pipeline_mode<synchronous>, transform_indices = @transform_3, window_bounds = array<i64: 1, 512>}, {transform_indices = @transform_4, window_bounds = array<i64: 8, 512>}]} {
    %c0 = arith.constant 0 : index
    %c0_0 = arith.constant 0 : index
    %0 = vector.load %arg1[%c0, %c0_0] : memref<8x4608xbf16, #tpu.memory_space<vmem>>, vector<8x4608xbf16>
    %c0_1 = arith.constant 0 : index
    %c0_2 = arith.constant 0 : index
    %1 = vector.load %arg2[%c0_1, %c0_2] : memref<4608x512xbf16, #tpu.memory_space<vmem>>, vector<4608x512xbf16>
    %cst = arith.constant dense<0.000000e+00> : vector<8x512xf32>
    %2 = tpu.matmul %0, %1, %cst {dimension_numbers = #tpu.dot_dimension_numbers<[1], [0], [0], [1], [0, 0, 1, 1], [], []>} : vector<8x4608xbf16>, vector<4608x512xbf16>, vector<8x512xf32> -> vector<8x512xf32>
    %c0_3 = arith.constant 0 : index
    %c0_4 = arith.constant 0 : index
    %3 = vector.load %arg3[%c0_3, %c0_4] : memref<1x512xf32, #tpu.memory_space<vmem>>, vector<1x512xf32>
    %4 = vector.broadcast %3 : vector<1x512xf32> to vector<8x512xf32>
    %5 = arith.mulf %2, %4 : vector<8x512xf32>
    %c0_5 = arith.constant 0 : index
    %c0_6 = arith.constant 0 : index
    %6 = vector.load %arg4[%c0_5, %c0_6] : memref<1x512xf32, #tpu.memory_space<vmem>>, vector<1x512xf32>
    %7 = vector.broadcast %6 : vector<1x512xf32> to vector<8x512xf32>
    %8 = arith.addf %5, %7 : vector<8x512xf32>
    %cst_7 = arith.constant 0.000000e+00 : f32
    %9 = vector.broadcast %cst_7 : f32 to vector<8x512xf32>
    %10 = arith.cmpf ogt, %8, %9 : vector<8x512xf32>
    %cst_8 = arith.constant 2.000000e-01 : f32
    %11 = vector.broadcast %cst_8 : f32 to vector<8x512xf32>
    %12 = arith.mulf %11, %8 : vector<8x512xf32>
    %13 = arith.select %10, %8, %12 : vector<8x512xi1>, vector<8x512xf32>
    %14 = arith.truncf %13 : vector<8x512xf32> to vector<8x512xbf16>
    %c0_9 = arith.constant 0 : index
    %c0_10 = arith.constant 0 : index
    %15 = vector.load %arg5[%c0_9, %c0_10] : memref<8x512xbf16, #tpu.memory_space<vmem>>, vector<8x512xbf16>
    tpu.vector_store %arg5[%c0_9, %c0_10], %14 {strides = array<i32>} : memref<8x512xbf16, #tpu.memory_space<vmem>>, vector<8x512xbf16>,
    return
  }
  func.func @transform_0(%arg0: i32) -> (i32, i32) {
    %c0_i32 = arith.constant 0 : i32
    %c0_i32_0 = arith.constant 0 : i32
    return %arg0, %c0_i32 : i32, i32
  }
  func.func @transform_1(%arg0: i32) -> (i32, i32) {
    %c0_i32 = arith.constant 0 : i32
    %c0_i32_0 = arith.constant 0 : i32
    %c0_i32_1 = arith.constant 0 : i32
    return %c0_i32, %c0_i32_0 : i32, i32
  }
  func.func @transform_2(%arg0: i32) -> (i32, i32) {
    %c0_i32 = arith.constant 0 : i32
    %c0_i32_0 = arith.constant 0 : i32
    %c0_i32_1 = arith.constant 0 : i32
    return %c0_i32, %c0_i32_0 : i32, i32
  }
  func.func @transform_3(%arg0: i32) -> (i32, i32) {
    %c0_i32 = arith.constant 0 : i32
    %c0_i32_0 = arith.constant 0 : i32
    %c0_i32_1 = arith.constant 0 : i32
    return %c0_i32, %c0_i32_0 : i32, i32
  }
  func.func @transform_4(%arg0: i32) -> (i32, i32) {
    %c0_i32 = arith.constant 0 : i32
    %c0_i32_0 = arith.constant 0 : i32
    return %arg0, %c0_i32 : i32, i32
  }
}

module attributes {stable_mosaic.version = 11 : i64} {
  func.func @_mm_bn_lrelu_kernel(%arg0: i32, %arg1: memref<8x512xbf16, #tpu.memory_space<vmem>>, %arg2: memref<512x64xbf16, #tpu.memory_space<vmem>>, %arg3: memref<1x64xf32, #tpu.memory_space<vmem>>, %arg4: memref<1x64xf32, #tpu.memory_space<vmem>>, %arg5: memref<8x64xbf16, #tpu.memory_space<vmem>>) attributes {dimension_semantics = [#tpu.dimension_semantics<parallel>], iteration_bounds = array<i64: 1>, scalar_prefetch = 0 : i64, scratch_operands = 0 : i64, tpu.core_type = #tpu.core_type<tc>, window_params = [{transform_indices = @transform_0, window_bounds = array<i64: 8, 512>}, {pipeline_mode = #tpu.pipeline_mode<synchronous>, transform_indices = @transform_1, window_bounds = array<i64: 512, 64>}, {pipeline_mode = #tpu.pipeline_mode<synchronous>, transform_indices = @transform_2, window_bounds = array<i64: 1, 64>}, {pipeline_mode = #tpu.pipeline_mode<synchronous>, transform_indices = @transform_3, window_bounds = array<i64: 1, 64>}, {transform_indices = @transform_4, window_bounds = array<i64: 8, 64>}]} {
    %c0 = arith.constant 0 : index
    %c0_0 = arith.constant 0 : index
    %0 = vector.load %arg1[%c0, %c0_0] : memref<8x512xbf16, #tpu.memory_space<vmem>>, vector<8x512xbf16>
    %c0_1 = arith.constant 0 : index
    %c0_2 = arith.constant 0 : index
    %1 = vector.load %arg2[%c0_1, %c0_2] : memref<512x64xbf16, #tpu.memory_space<vmem>>, vector<512x64xbf16>
    %cst = arith.constant dense<0.000000e+00> : vector<8x64xf32>
    %2 = tpu.matmul %0, %1, %cst {dimension_numbers = #tpu.dot_dimension_numbers<[1], [0], [0], [1], [0, 0, 1, 1], [], []>} : vector<8x512xbf16>, vector<512x64xbf16>, vector<8x64xf32> -> vector<8x64xf32>
    %c0_3 = arith.constant 0 : index
    %c0_4 = arith.constant 0 : index
    %3 = vector.load %arg3[%c0_3, %c0_4] : memref<1x64xf32, #tpu.memory_space<vmem>>, vector<1x64xf32>
    %4 = vector.broadcast %3 : vector<1x64xf32> to vector<8x64xf32>
    %5 = arith.mulf %2, %4 : vector<8x64xf32>
    %c0_5 = arith.constant 0 : index
    %c0_6 = arith.constant 0 : index
    %6 = vector.load %arg4[%c0_5, %c0_6] : memref<1x64xf32, #tpu.memory_space<vmem>>, vector<1x64xf32>
    %7 = vector.broadcast %6 : vector<1x64xf32> to vector<8x64xf32>
    %8 = arith.addf %5, %7 : vector<8x64xf32>
    %cst_7 = arith.constant 0.000000e+00 : f32
    %9 = vector.broadcast %cst_7 : f32 to vector<8x64xf32>
    %10 = arith.cmpf ogt, %8, %9 : vector<8x64xf32>
    %cst_8 = arith.constant 2.000000e-01 : f32
    %11 = vector.broadcast %cst_8 : f32 to vector<8x64xf32>
    %12 = arith.mulf %11, %8 : vector<8x64xf32>
    %13 = arith.select %10, %8, %12 : vector<8x64xi1>, vector<8x64xf32>
    %14 = arith.truncf %13 : vector<8x64xf32> to vector<8x64xbf16>
    %c0_9 = arith.constant 0 : index
    %c0_10 = arith.constant 0 : index
    %15 = vector.load %arg5[%c0_9, %c0_10] : memref<8x64xbf16, #tpu.memory_space<vmem>>, vector<8x64xbf16>
    tpu.vector_store %arg5[%c0_9, %c0_10], %14 {strides = array<i32>} : memref<8x64xbf16, #tpu.memory_space<vmem>>, vector<8x64xbf16>,
    return
  }
  func.func @transform_0(%arg0: i32) -> (i32, i32) {
    %c0_i32 = arith.constant 0 : i32
    %c0_i32_0 = arith.constant 0 : i32
    return %arg0, %c0_i32 : i32, i32
  }
  func.func @transform_1(%arg0: i32) -> (i32, i32) {
    %c0_i32 = arith.constant 0 : i32
    %c0_i32_0 = arith.constant 0 : i32
    %c0_i32_1 = arith.constant 0 : i32
    return %c0_i32, %c0_i32_0 : i32, i32
  }
  func.func @transform_2(%arg0: i32) -> (i32, i32) {
    %c0_i32 = arith.constant 0 : i32
    %c0_i32_0 = arith.constant 0 : i32
    %c0_i32_1 = arith.constant 0 : i32
    return %c0_i32, %c0_i32_0 : i32, i32
  }
  func.func @transform_3(%arg0: i32) -> (i32, i32) {
    %c0_i32 = arith.constant 0 : i32
    %c0_i32_0 = arith.constant 0 : i32
    %c0_i32_1 = arith.constant 0 : i32
    return %c0_i32, %c0_i32_0 : i32, i32
  }
  func.func @transform_4(%arg0: i32) -> (i32, i32) {
    %c0_i32 = arith.constant 0 : i32
    %c0_i32_0 = arith.constant 0 : i32
    return %arg0, %c0_i32 : i32, i32
  }
}

module attributes {stable_mosaic.version = 11 : i64} {
  func.func @_mm_bn_lrelu_kernel(%arg0: i32, %arg1: memref<8x64xbf16, #tpu.memory_space<vmem>>, %arg2: memref<64x32xbf16, #tpu.memory_space<vmem>>, %arg3: memref<1x32xf32, #tpu.memory_space<vmem>>, %arg4: memref<1x32xf32, #tpu.memory_space<vmem>>, %arg5: memref<8x32xbf16, #tpu.memory_space<vmem>>) attributes {dimension_semantics = [#tpu.dimension_semantics<parallel>], iteration_bounds = array<i64: 1>, scalar_prefetch = 0 : i64, scratch_operands = 0 : i64, tpu.core_type = #tpu.core_type<tc>, window_params = [{transform_indices = @transform_0, window_bounds = array<i64: 8, 64>}, {pipeline_mode = #tpu.pipeline_mode<synchronous>, transform_indices = @transform_1, window_bounds = array<i64: 64, 32>}, {pipeline_mode = #tpu.pipeline_mode<synchronous>, transform_indices = @transform_2, window_bounds = array<i64: 1, 32>}, {pipeline_mode = #tpu.pipeline_mode<synchronous>, transform_indices = @transform_3, window_bounds = array<i64: 1, 32>}, {transform_indices = @transform_4, window_bounds = array<i64: 8, 32>}]} {
    %c0 = arith.constant 0 : index
    %c0_0 = arith.constant 0 : index
    %0 = vector.load %arg1[%c0, %c0_0] : memref<8x64xbf16, #tpu.memory_space<vmem>>, vector<8x64xbf16>
    %c0_1 = arith.constant 0 : index
    %c0_2 = arith.constant 0 : index
    %1 = vector.load %arg2[%c0_1, %c0_2] : memref<64x32xbf16, #tpu.memory_space<vmem>>, vector<64x32xbf16>
    %cst = arith.constant dense<0.000000e+00> : vector<8x32xf32>
    %2 = tpu.matmul %0, %1, %cst {dimension_numbers = #tpu.dot_dimension_numbers<[1], [0], [0], [1], [0, 0, 1, 1], [], []>} : vector<8x64xbf16>, vector<64x32xbf16>, vector<8x32xf32> -> vector<8x32xf32>
    %c0_3 = arith.constant 0 : index
    %c0_4 = arith.constant 0 : index
    %3 = vector.load %arg3[%c0_3, %c0_4] : memref<1x32xf32, #tpu.memory_space<vmem>>, vector<1x32xf32>
    %4 = vector.broadcast %3 : vector<1x32xf32> to vector<8x32xf32>
    %5 = arith.mulf %2, %4 : vector<8x32xf32>
    %c0_5 = arith.constant 0 : index
    %c0_6 = arith.constant 0 : index
    %6 = vector.load %arg4[%c0_5, %c0_6] : memref<1x32xf32, #tpu.memory_space<vmem>>, vector<1x32xf32>
    %7 = vector.broadcast %6 : vector<1x32xf32> to vector<8x32xf32>
    %8 = arith.addf %5, %7 : vector<8x32xf32>
    %cst_7 = arith.constant 0.000000e+00 : f32
    %9 = vector.broadcast %cst_7 : f32 to vector<8x32xf32>
    %10 = arith.cmpf ogt, %8, %9 : vector<8x32xf32>
    %cst_8 = arith.constant 2.000000e-01 : f32
    %11 = vector.broadcast %cst_8 : f32 to vector<8x32xf32>
    %12 = arith.mulf %11, %8 : vector<8x32xf32>
    %13 = arith.select %10, %8, %12 : vector<8x32xi1>, vector<8x32xf32>
    %14 = arith.truncf %13 : vector<8x32xf32> to vector<8x32xbf16>
    %c0_9 = arith.constant 0 : index
    %c0_10 = arith.constant 0 : index
    %15 = vector.load %arg5[%c0_9, %c0_10] : memref<8x32xbf16, #tpu.memory_space<vmem>>, vector<8x32xbf16>
    tpu.vector_store %arg5[%c0_9, %c0_10], %14 {strides = array<i32>} : memref<8x32xbf16, #tpu.memory_space<vmem>>, vector<8x32xbf16>,
    return
  }
  func.func @transform_0(%arg0: i32) -> (i32, i32) {
    %c0_i32 = arith.constant 0 : i32
    %c0_i32_0 = arith.constant 0 : i32
    return %arg0, %c0_i32 : i32, i32
  }
  func.func @transform_1(%arg0: i32) -> (i32, i32) {
    %c0_i32 = arith.constant 0 : i32
    %c0_i32_0 = arith.constant 0 : i32
    %c0_i32_1 = arith.constant 0 : i32
    return %c0_i32, %c0_i32_0 : i32, i32
  }
  func.func @transform_2(%arg0: i32) -> (i32, i32) {
    %c0_i32 = arith.constant 0 : i32
    %c0_i32_0 = arith.constant 0 : i32
    %c0_i32_1 = arith.constant 0 : i32
    return %c0_i32, %c0_i32_0 : i32, i32
  }
  func.func @transform_3(%arg0: i32) -> (i32, i32) {
    %c0_i32 = arith.constant 0 : i32
    %c0_i32_0 = arith.constant 0 : i32
    %c0_i32_1 = arith.constant 0 : i32
    return %c0_i32, %c0_i32_0 : i32, i32
  }
  func.func @transform_4(%arg0: i32) -> (i32, i32) {
    %c0_i32 = arith.constant 0 : i32
    %c0_i32_0 = arith.constant 0 : i32
    return %arg0, %c0_i32 : i32, i32
  }
}

module attributes {stable_mosaic.version = 11 : i64} {
  func.func @_linear_kernel(%arg0: i32, %arg1: memref<8x32xbf16, #tpu.memory_space<vmem>>, %arg2: memref<32x128xbf16, #tpu.memory_space<vmem>>, %arg3: memref<1x128xf32, #tpu.memory_space<vmem>>, %arg4: memref<8x128xf32, #tpu.memory_space<vmem>>) attributes {dimension_semantics = [#tpu.dimension_semantics<parallel>], iteration_bounds = array<i64: 1>, scalar_prefetch = 0 : i64, scratch_operands = 0 : i64, tpu.core_type = #tpu.core_type<tc>, window_params = [{transform_indices = @transform_0, window_bounds = array<i64: 8, 32>}, {pipeline_mode = #tpu.pipeline_mode<synchronous>, transform_indices = @transform_1, window_bounds = array<i64: 32, 128>}, {pipeline_mode = #tpu.pipeline_mode<synchronous>, transform_indices = @transform_2, window_bounds = array<i64: 1, 128>}, {transform_indices = @transform_3, window_bounds = array<i64: 8, 128>}]} {
    %c0 = arith.constant 0 : index
    %c0_0 = arith.constant 0 : index
    %0 = vector.load %arg1[%c0, %c0_0] : memref<8x32xbf16, #tpu.memory_space<vmem>>, vector<8x32xbf16>
    %c0_1 = arith.constant 0 : index
    %c0_2 = arith.constant 0 : index
    %1 = vector.load %arg2[%c0_1, %c0_2] : memref<32x128xbf16, #tpu.memory_space<vmem>>, vector<32x128xbf16>
    %cst = arith.constant dense<0.000000e+00> : vector<8x128xf32>
    %2 = tpu.matmul %0, %1, %cst {dimension_numbers = #tpu.dot_dimension_numbers<[1], [0], [0], [1], [0, 0, 1, 1], [], []>} : vector<8x32xbf16>, vector<32x128xbf16>, vector<8x128xf32> -> vector<8x128xf32>
    %c0_3 = arith.constant 0 : index
    %c0_4 = arith.constant 0 : index
    %3 = vector.load %arg3[%c0_3, %c0_4] : memref<1x128xf32, #tpu.memory_space<vmem>>, vector<1x128xf32>
    %4 = vector.broadcast %3 : vector<1x128xf32> to vector<8x128xf32>
    %5 = arith.addf %2, %4 : vector<8x128xf32>
    %c0_5 = arith.constant 0 : index
    %c0_6 = arith.constant 0 : index
    %6 = vector.load %arg4[%c0_5, %c0_6] : memref<8x128xf32, #tpu.memory_space<vmem>>, vector<8x128xf32>
    tpu.vector_store %arg4[%c0_5, %c0_6], %5 {strides = array<i32>} : memref<8x128xf32, #tpu.memory_space<vmem>>, vector<8x128xf32>,
    return
  }
  func.func @transform_0(%arg0: i32) -> (i32, i32) {
    %c0_i32 = arith.constant 0 : i32
    %c0_i32_0 = arith.constant 0 : i32
    return %arg0, %c0_i32 : i32, i32
  }
  func.func @transform_1(%arg0: i32) -> (i32, i32) {
    %c0_i32 = arith.constant 0 : i32
    %c0_i32_0 = arith.constant 0 : i32
    %c0_i32_1 = arith.constant 0 : i32
    return %c0_i32, %c0_i32_0 : i32, i32
  }
  func.func @transform_2(%arg0: i32) -> (i32, i32) {
    %c0_i32 = arith.constant 0 : i32
    %c0_i32_0 = arith.constant 0 : i32
    %c0_i32_1 = arith.constant 0 : i32
    return %c0_i32, %c0_i32_0 : i32, i32
  }
  func.func @transform_3(%arg0: i32) -> (i32, i32) {
    %c0_i32 = arith.constant 0 : i32
    %c0_i32_0 = arith.constant 0 : i32
    return %arg0, %c0_i32 : i32, i32
  }
}

</mosaic_0001>

<bundles_post_ra>
// kernel: encoder_forward.9
= control target key start
LH: loop header
LB: loop body
LE: loop exit
PB: predicated region body
PF: predicated region fallthrough
CT: control target
= control target key end

     0   :  { %s790_s15 = smov 0   ;;  %s907_s0 = inlined_call_operand.vmem [shape: bf16[512,48], index: 0, kind: input, shape index: {}]   ;;  %s908_s1 = inlined_call_operand.vmem [shape: bf16[48,32], index: 1, kind: input, shape index: {}]   ;;  %s909_s2 = inlined_call_operand.vmem [shape: f32[1,32], index: 2, kind: input, shape index: {}]   ;;  %s910_s3 = inlined_call_operand.vmem [shape: f32[1,32], index: 3, kind: input, shape index: {}]   ;;  %s911_s4 = inlined_call_operand.vmem [shape: bf16[512,32], index: 4, kind: output, shape index: {}]  }
   0x1 LB: > { %s635_s16 = sadd.s32 4294967295, %s763_s15   ;;  %p639_p0 = scmp.ge.s32.totalorder %s763_s15, 1  ;;  %s763_s15 = sphi %s790_s15, %s14_s15  }
   0x2   : > { %p163_p1 = scmp.lt.s32.totalorder %s763_s15, 5 }
   0x4   : > { %p164_p2 = pnand %p639_p0, %p163_p1 }
   0x5   : > { %v746_v0 = vld [vmem:[%s908_s1] sm:$0xff] (!%p164_p2)   ;;  %s640_s19 = sshll.u32 (!%p164_p2), %s635_s16, 4  ;;  %v747_v1 = vld [vmem:[%s908_s1 + $0x8] sm:$0xff] (!%p164_p2)   ;;  %v748_v2 = vld [vmem:[%s908_s1 + $0x10] sm:$0xff] (!%p164_p2)   ;;  %vm282_vm0 = vcmask (!%p164_p2), 392192   ;;  %vm562_vm1 = vcmask (!%p164_p2), 257024  }
   0x6   : > { %167 = sbr.rel (%p164_p2) target bundleno = 261 (0x105), region = 36  ;;  %p190_p3 = scmp.lt.s32.totalorder (!%p164_p2), %s640_s19, 63  ;;  %710 = vmatprep.subr.bf16.mxu0 (!%p164_p2), %v746_v0  ;;  %732 = vmatprep.subr.bf16.mxu1 (!%p164_p2), %v746_v0  ;;  %v826_v11 = vld [vmem:[%s909_s2] ss:$0 sm:$0xff] (!%p164_p2) }
   0x7   : > { %711 = vmatpush3.bf16.msra.mxu0 (!%p164_p2), %v746_v0  ;;  %735 = vmatpush3.bf16.msra.mxu1 (!%p164_p2), %v746_v0  ;;  %v831_v13 = vld [vmem:[%s910_s3] ss:$0 sm:$0xff] (!%p164_p2) }
   0x8   : > { %712 = vmatprep.subr.bf16.mxu0 (!%p164_p2), %v747_v1  ;;  %733 = vmatprep.subr.bf16.mxu1 (!%p164_p2), %v747_v1 }
   0xb   : > { %713 = vmatpush3.bf16.msra.mxu0 (!%p164_p2), %v747_v1  ;;  %736 = vmatpush3.bf16.msra.mxu1 (!%p164_p2), %v747_v1 }
   0xc   : > { %714 = vmatprep.subr.bf16.mxu0 (!%p164_p2), %v748_v2  ;;  %734 = vmatprep.subr.bf16.mxu1 (!%p164_p2), %v748_v2 }
   0xd   : > { %s913_s19 = smov (!%p190_p3, %s640_s19), 63 }
   0xe   : > { %s641_s24 = sshll.u32 %s913_s19, 2 }
   0xf   : > { %s193_s27 = scalar_lea.vmem %s907_s0, %s641_s24  ;;  %715 = vmatpush3.bf16.msra.mxu0 %v748_v2  ;;  %737 = vmatpush3.bf16.msra.mxu1 %v748_v2  ;;  %s850_s8 = scalar_lea.vmem %s911_s4, %s641_s24 }
  0x10   : > { %v749_v3 = vld [vmem:[%s193_s27] sm:$0xff]   ;;  %v751_v5 = vld [vmem:[%s193_s27 + $0x8] sm:$0xff]   ;;  %v753_v7 = vld [vmem:[%s193_s27 + $0x10] sm:$0xff]  }
  0x11   : > { %v750_v4 = vld [vmem:[%s193_s27 + $0x20] sm:$0xff]   ;;  %716 = vmatprep.mubr.msk.bf16.mxu0 %vm282_vm0, %v749_v3  ;;  %v752_v6 = vld [vmem:[%s193_s27 + $0x28] sm:$0xff]   ;;  %v754_v8 = vld [vmem:[%s193_s27 + $0x30] sm:$0xff]  }
  0x12   : > { %724 = vmatprep.mubr.msk.bf16.mxu1 %vm282_vm0, %v750_v4  ;;  %717 = vmatmul.mubr.msk.bf16.vlgmr.msra.gmra.mrb[0].mxu0 %vm282_vm0, %v751_v5  ;;  %v755_v9 = vld [vmem:[%s193_s27 + $0x18] sm:$0xff]  }
  0x13   : > { %725 = vmatmul.mubr.msk.bf16.vlgmr.msra.gmra.mrb[0].mxu1 %vm282_vm0, %v752_v6  ;;  %720 = vmatprep.mubr.msk.bf16.mxu0 %vm282_vm0, %v753_v7  ;;  %v756_v10 = vld [vmem:[%s193_s27 + $0x38] sm:$0xff]  }
  0x14   : > { %728 = vmatprep.mubr.msk.bf16.mxu1 %vm282_vm0, %v754_v8 }
  0x1a   : > { %721 = vmatmul.mubr.msk.bf16.gmra.mrb[4].mxu0 %vm282_vm0, %v755_v9 }
  0x1b   : > { %729 = vmatmul.mubr.msk.bf16.gmra.mrb[4].mxu1 %vm282_vm0, %v756_v10 }
  0xe5   : > { %v718_v12 = vpop.f32.mrb[0].mxu0 }
  0xe6   : > { %v726_v14 = vpop.f32.mrb[0].mxu1  ;;  %v413_v15 = vmul.f32 %v718_v12, %v826_v11  ;;  %v341_v17 = vpop.f32.mrb[1].mxu0 }
  0xe7   : > { %v421_v16 = vmul.f32 %v726_v14, %v826_v11  ;;  %v373_v18 = vpop.f32.mrb[1].mxu1  ;;  %v411_v19 = vmul.f32 %v826_v11, %v341_v17  ;;  %v719_v21 = vpop.f32.mrb[2].mxu0 }
  0xe8   : > { %v419_v20 = vmul.f32 %v826_v11, %v373_v18  ;;  %v727_v22 = vpop.f32.mrb[2].mxu1  ;;  %v436_v23 = vadd.f32 %v831_v13, %v413_v15  ;;  %v414_v25 = vmul.f32 %v719_v21, %v826_v11  ;;  %v344_v27 = vpop.f32.mrb[3].mxu0 }
  0xe9   : > { %v444_v24 = vadd.f32 %v831_v13, %v421_v16  ;;  %v422_v26 = vmul.f32 %v727_v22, %v826_v11  ;;  %v376_v28 = vpop.f32.mrb[3].mxu1  ;;  %v434_v29 = vadd.f32 %v831_v13, %v411_v19  ;;  %v412_v31 = vmul.f32 %v826_v11, %v344_v27 }
  0xea   : > { %v442_v30 = vadd.f32 %v831_v13, %v419_v20  ;;  %v420_v32 = vmul.f32 %v826_v11, %v376_v28  ;;  %vm452_vm2 = vcmp.gt.f32.partialorder %v436_v23, 0.0  ;;  %v468_v33 = vmul.f32 0.2, %v436_v23 }
  0xeb   : > { %vm460_vm3 = vcmp.gt.f32.partialorder %v444_v24, 0.0  ;;  %v476_v34 = vmul.f32 0.2, %v444_v24  ;;  %vm450_vm4 = vcmp.gt.f32.partialorder %v434_v29, 0.0  ;;  %v466_v35 = vmul.f32 0.2, %v434_v29 }
  0xec   : > { %vm458_vm5 = vcmp.gt.f32.partialorder %v442_v30, 0.0  ;;  %v474_v36 = vmul.f32 0.2, %v442_v30  ;;  %v484_v37 = vsel %vm452_vm2, %v436_v23, %v468_v33  ;;  %v437_v39 = vadd.f32 %v831_v13, %v414_v25 }
  0xed   : > { %v492_v38 = vsel %vm460_vm3, %v444_v24, %v476_v34  ;;  %v445_v40 = vadd.f32 %v831_v13, %v422_v26  ;;  %v685_v41 = vpack.c.bf16 %v484_v37, %v484_v37  ;;  %v482_v43 = vsel %vm450_vm4, %v434_v29, %v466_v35  ;;  %v722_v45 = vpop.f32.mrb[4].mxu0 }
  0xee   : > { %v693_v42 = vpack.c.bf16 %v492_v38, %v492_v38  ;;  %v490_v44 = vsel %vm458_vm5, %v442_v30, %v474_v36  ;;  %v730_v46 = vpop.f32.mrb[4].mxu1  ;;  %v683_v47 = vpack.c.bf16 %v482_v43, %v482_v43  ;;  %vm453_vm6 = vcmp.gt.f32.partialorder %v437_v39, 0.0  ;;  %v357_v50 = vpop.f32.mrb[5].mxu0 }
  0xef   : > { %v691_v48 = vpack.c.bf16 %v490_v44, %v490_v44  ;;  %v469_v49 = vmul.f32 0.2, %v437_v39  ;;  %v389_v51 = vpop.f32.mrb[5].mxu1  ;;  %565 = vst.msk [vmem:[%s850_s8 + $0x8] sm:$0xf] %vm562_vm1, %v685_v41  ;;  %vm461_vm7 = vcmp.gt.f32.partialorder %v445_v40, 0.0  ;;  %v435_v53 = vadd.f32 %v831_v13, %v412_v31 }
  0xf0   : > { %573 = vst.msk [vmem:[%s850_s8 + $0x28] sm:$0xf] %vm562_vm1, %v693_v42  ;;  %v477_v52 = vmul.f32 0.2, %v445_v40  ;;  %v443_v54 = vadd.f32 %v831_v13, %v420_v32  ;;  %v723_v55 = vpop.f32.mrb[6].mxu0  ;;  %v731_v56 = vpop.f32.mrb[6].mxu1  ;;  %v417_v58 = vmul.f32 %v722_v45, %v826_v11  ;;  %v425_v59 = vmul.f32 %v730_v46, %v826_v11 }
  0xf1   : > { %563 = vst.msk [vmem:[%s850_s8] sm:$0xf] %vm562_vm1, %v683_v47  ;;  %571 = vst.msk [vmem:[%s850_s8 + $0x20] sm:$0xf] %vm562_vm1, %v691_v48  ;;  %v485_v57 = vsel %vm453_vm6, %v437_v39, %v469_v49  ;;  %v415_v60 = vmul.f32 %v826_v11, %v357_v50  ;;  %v360_v61 = vpop.f32.mrb[7].mxu0  ;;  %v392_v62 = vpop.f32.mrb[7].mxu1  ;;  %v423_v8 = vmul.f32 %v826_v11, %v389_v51 }
  0xf2   : > { %v686_v63 = vpack.c.bf16 %v485_v57, %v485_v57  ;;  %v493_v0 = vsel %vm461_vm7, %v445_v40, %v477_v52  ;;  %vm451_vm8 = vcmp.gt.f32.partialorder %v435_v53, 0.0  ;;  %v467_v1 = vmul.f32 0.2, %v435_v53 }
  0xf3   : > { %v694_v2 = vpack.c.bf16 %v493_v0, %v493_v0  ;;  %vm459_vm9 = vcmp.gt.f32.partialorder %v443_v54, 0.0  ;;  %v475_v3 = vmul.f32 0.2, %v443_v54  ;;  %v440_v4 = vadd.f32 %v831_v13, %v417_v58 }
  0xf4   : > { %566 = vst.msk [vmem:[%s850_s8 + $0xc] sm:$0xf] %vm562_vm1, %v686_v63  ;;  %v483_v5 = vsel %vm451_vm8, %v435_v53, %v467_v1  ;;  %v448_v6 = vadd.f32 %v831_v13, %v425_v59  ;;  %v438_v7 = vadd.f32 %v831_v13, %v415_v60  ;;  %v446_v18 = vadd.f32 %v831_v13, %v423_v8 }
  0xf5   : > { %574 = vst.msk [vmem:[%s850_s8 + $0x2c] sm:$0xf] %vm562_vm1, %v694_v2  ;;  %v684_v9 = vpack.c.bf16 %v483_v5, %v483_v5  ;;  %v491_v10 = vsel %vm459_vm9, %v443_v54, %v475_v3  ;;  %vm456_vm10 = vcmp.gt.f32.partialorder %v440_v4, 0.0  ;;  %v472_v12 = vmul.f32 0.2, %v440_v4 }
  0xf6   : > { %v692_v14 = vpack.c.bf16 %v491_v10, %v491_v10  ;;  %vm464_vm11 = vcmp.gt.f32.partialorder %v448_v6, 0.0  ;;  %v480_v15 = vmul.f32 0.2, %v448_v6  ;;  %vm454_vm12 = vcmp.gt.f32.partialorder %v438_v7, 0.0 }
  0xf7   : > { %564 = vst.msk [vmem:[%s850_s8 + $0x4] sm:$0xf] %vm562_vm1, %v684_v9  ;;  %v488_v16 = vsel %vm456_vm10, %v440_v4, %v472_v12  ;;  %v470_v17 = vmul.f32 0.2, %v438_v7  ;;  %v418_v19 = vmul.f32 %v723_v55, %v826_v11  ;;  %v426_v22 = vmul.f32 %v731_v56, %v826_v11 }
  0xf8   : > { %572 = vst.msk [vmem:[%s850_s8 + $0x24] sm:$0xf] %vm562_vm1, %v692_v14  ;;  %v689_v20 = vpack.c.bf16 %v488_v16, %v488_v16  ;;  %v496_v21 = vsel %vm464_vm11, %v448_v6, %v480_v15  ;;  %v416_v23 = vmul.f32 %v826_v11, %v360_v61  ;;  %vm462_vm13 = vcmp.gt.f32.partialorder %v446_v18, 0.0 }
  0xf9   : > { %v697_v24 = vpack.c.bf16 %v496_v21, %v496_v21  ;;  %v486_v25 = vsel %vm454_vm12, %v438_v7, %v470_v17  ;;  %v478_v26 = vmul.f32 0.2, %v446_v18  ;;  %v441_v28 = vadd.f32 %v831_v13, %v418_v19 }
  0xfa   : > { %569 = vst.msk [vmem:[%s850_s8 + $0x18] sm:$0xf] %vm562_vm1, %v689_v20  ;;  %v687_v27 = vpack.c.bf16 %v486_v25, %v486_v25  ;;  %v449_v29 = vadd.f32 %v831_v13, %v426_v22  ;;  %v439_v30 = vadd.f32 %v831_v13, %v416_v23  ;;  %v424_v32 = vmul.f32 %v826_v11, %v392_v62 }
  0xfb   : > { %577 = vst.msk [vmem:[%s850_s8 + $0x38] sm:$0xf] %vm562_vm1, %v697_v24  ;;  %v494_v31 = vsel %vm462_vm13, %v446_v18, %v478_v26  ;;  %vm457_vm14 = vcmp.gt.f32.partialorder %v441_v28, 0.0  ;;  %v473_v34 = vmul.f32 0.2, %v441_v28 }
  0xfc   : > { %567 = vst.msk [vmem:[%s850_s8 + $0x10] sm:$0xf] %vm562_vm1, %v687_v27  ;;  %v695_v33 = vpack.c.bf16 %v494_v31, %v494_v31  ;;  %vm465_vm15 = vcmp.gt.f32.partialorder %v449_v29, 0.0  ;;  %v481_v35 = vmul.f32 0.2, %v449_v29  ;;  %vm455_vm0 = vcmp.gt.f32.partialorder %v439_v30, 0.0 }
  0xfd   : > { %v471_v36 = vmul.f32 0.2, %v439_v30  ;;  %v447_v37 = vadd.f32 %v831_v13, %v424_v32  ;;  %v489_v38 = vsel %vm457_vm14, %v441_v28, %v473_v34 }
  0xfe   : > { %575 = vst.msk [vmem:[%s850_s8 + $0x30] sm:$0xf] %vm562_vm1, %v695_v33  ;;  %v690_v39 = vpack.c.bf16 %v489_v38, %v489_v38  ;;  %v497_v11 = vsel %vm465_vm15, %v449_v29, %v481_v35 }
  0xff   : > { %v487_v40 = vsel %vm455_vm0, %v439_v30, %v471_v36  ;;  %vm463_vm2 = vcmp.gt.f32.partialorder %v447_v37, 0.0  ;;  %v698_v41 = vpack.c.bf16 %v497_v11, %v497_v11  ;;  %v479_v43 = vmul.f32 0.2, %v447_v37 }
 0x100   : > { %v688_v42 = vpack.c.bf16 %v487_v40, %v487_v40  ;;  %570 = vst.msk [vmem:[%s850_s8 + $0x1c] sm:$0xf] %vm562_vm1, %v690_v39 }
 0x101   : > { %578 = vst.msk [vmem:[%s850_s8 + $0x3c] sm:$0xf] %vm562_vm1, %v698_v41  ;;  %v495_v44 = vsel %vm463_vm2, %v447_v37, %v479_v43 }
 0x102   : > { %568 = vst.msk [vmem:[%s850_s8 + $0x14] sm:$0xf] %vm562_vm1, %v688_v42  ;;  %v696_v45 = vpack.c.bf16 %v495_v44, %v495_v44 }
 0x104   : > { %576 = vst.msk [vmem:[%s850_s8 + $0x34] sm:$0xf] %vm562_vm1, %v696_v45 }
 0x105 PF: > { %s14_s15 = sadd.s32 1, %s763_s15  }
 0x106   : > { %p11_p4 = scmp.ge.s32.totalorder %s14_s15, 6  }
 0x108   :  { %13 = sbr.rel (!%p11_p4) target bundleno = 1 (0x1), region = 66 }

// kernel: encoder_forward.10
= control target key start
LH: loop header
LB: loop body
LE: loop exit
PB: predicated region body
PF: predicated region fallthrough
CT: control target
= control target key end

     0   :  { %vm818_vm1 = vcmask 519168   ;;  %s1468_s1 = inlined_call_operand.vmem [shape: bf16[512,64], index: 1, kind: input, shape index: {}]   ;;  %s1469_s0 = inlined_call_operand.vmem [shape: bf16[128,512], index: 0, kind: input, shape index: {}]   ;;  %s1470_s2 = inlined_call_operand.vmem [shape: f32[1,64], index: 2, kind: input, shape index: {}]   ;;  %s1471_s3 = inlined_call_operand.vmem [shape: f32[1,64], index: 3, kind: input, shape index: {}]   ;;  %s1472_s4 = inlined_call_operand.vmem [shape: bf16[128,64], index: 4, kind: output, shape index: {}]  }
   0x1   :  { %v1065_v0 = vld [vmem:[%s1468_s1 + $0x40] sm:$0xff]   ;;  %v1069_v4 = vld [vmem:[%s1468_s1 + $0x48] sm:$0xff]   ;;  %v1073_v8 = vld [vmem:[%s1468_s1 + $0x50] sm:$0xff]  }
   0x2   :  { %v1066_v1 = vld [vmem:[%s1468_s1 + $0xc0] sm:$0xff]   ;;  %937 = vmatprep.subr.bf16.mxu0 %v1065_v0  ;;  %v1070_v5 = vld [vmem:[%s1468_s1 + $0xc8] sm:$0xff]   ;;  %v1074_v9 = vld [vmem:[%s1468_s1 + $0xd0] sm:$0xff]  }
   0x3   :  { %v1067_v2 = vld [vmem:[%s1468_s1] sm:$0xff]   ;;  %1001 = vmatprep.subr.bf16.mxu1 %v1066_v1  ;;  %v1071_v6 = vld [vmem:[%s1468_s1 + $0x8] sm:$0xff]   ;;  %v1075_v10 = vld [vmem:[%s1468_s1 + $0x10] sm:$0xff]  }
   0x4   :  { %v1068_v3 = vld [vmem:[%s1468_s1 + $0x80] sm:$0xff]   ;;  %938 = vmatpush3.bf16.msra.mxu0 %v1067_v2  ;;  %v1072_v7 = vld [vmem:[%s1468_s1 + $0x88] sm:$0xff]   ;;  %v1076_v11 = vld [vmem:[%s1468_s1 + $0x90] sm:$0xff]  }
   0x5   :  { %1002 = vmatpush3.bf16.msra.mxu1 %v1068_v3  ;;  %939 = vmatprep.subr.bf16.mxu0 %v1069_v4  ;;  %v1077_v12 = vld [vmem:[%s1468_s1 + $0x58] sm:$0xff]   ;;  %v1081_v16 = vld [vmem:[%s1468_s1 + $0x60] sm:$0xff]   ;;  %v1085_v20 = vld [vmem:[%s1468_s1 + $0x68] sm:$0xff]  }
   0x6   :  { %1003 = vmatprep.subr.bf16.mxu1 %v1070_v5  ;;  %v1078_v13 = vld [vmem:[%s1468_s1 + $0xd8] sm:$0xff]   ;;  %v1082_v17 = vld [vmem:[%s1468_s1 + $0xe0] sm:$0xff]   ;;  %v1086_v21 = vld [vmem:[%s1468_s1 + $0xe8] sm:$0xff]  }
   0x7   :  { %v1079_v14 = vld [vmem:[%s1468_s1 + $0x18] sm:$0xff]   ;;  %v1083_v18 = vld [vmem:[%s1468_s1 + $0x20] sm:$0xff]   ;;  %v1087_v22 = vld [vmem:[%s1468_s1 + $0x28] sm:$0xff]  }
   0x8   :  { %940 = vmatpush3.bf16.msra.mxu0 %v1071_v6  ;;  %v1080_v15 = vld [vmem:[%s1468_s1 + $0x98] sm:$0xff]   ;;  %v1084_v19 = vld [vmem:[%s1468_s1 + $0xa0] sm:$0xff]   ;;  %v1088_v23 = vld [vmem:[%s1468_s1 + $0xa8] sm:$0xff]  }
   0x9   :  { %1004 = vmatpush3.bf16.msra.mxu1 %v1072_v7  ;;  %941 = vmatprep.subr.bf16.mxu0 %v1073_v8  ;;  %v1089_v24 = vld [vmem:[%s1468_s1 + $0x70] sm:$0xff]   ;;  %v1093_v28 = vld [vmem:[%s1468_s1 + $0x78] sm:$0xff]  }
   0xa   :  { %1005 = vmatprep.subr.bf16.mxu1 %v1074_v9  ;;  %v1090_v25 = vld [vmem:[%s1468_s1 + $0xf0] sm:$0xff]   ;;  %v1094_v29 = vld [vmem:[%s1468_s1 + $0xf8] sm:$0xff]   ;;  %v1365_v9 = vld [vmem:[%s1470_s2] ss:$0 sm:$0xff] }
   0xb   :  { %v1091_v26 = vld [vmem:[%s1468_s1 + $0x30] sm:$0xff]   ;;  %v1095_v30 = vld [vmem:[%s1468_s1 + $0x38] sm:$0xff]  }
   0xc   :  { %942 = vmatpush3.bf16.msra.mxu0 %v1075_v10  ;;  %v1092_v27 = vld [vmem:[%s1468_s1 + $0xb0] sm:$0xff]   ;;  %v1096_v31 = vld [vmem:[%s1468_s1 + $0xb8] sm:$0xff]  }
   0xd   :  { %1006 = vmatpush3.bf16.msra.mxu1 %v1076_v11  ;;  %943 = vmatprep.subr.bf16.mxu0 %v1077_v12  ;;  %v1097_v32 = vld [vmem:[%s1469_s0] ss:$16 sps:$4 sm:$0xff]   ;;  %v1099_v33 = vld [vmem:[%s1469_s0 + $0x4] ss:$16 sps:$4 sm:$0xff]   ;;  %v1100_v34 = vld [vmem:[%s1469_s0 + $0x8] ss:$16 sps:$4 sm:$0xff]  }
   0xe   :  { %1007 = vmatprep.subr.bf16.mxu1 %v1078_v13  ;;  %v1102_v35 = vld [vmem:[%s1469_s0 + $0xc] ss:$16 sps:$4 sm:$0xff]   ;;  %498 = vmatprep.mubr.bf16.mxu0 %v1099_v33  ;;  %v1103_v36 = vld [vmem:[%s1469_s0 + $0x24] ss:$16 sps:$4 sm:$0xff]   ;;  %v1107_v38 = vld [vmem:[%s1469_s0 + $0x20] ss:$16 sps:$4 sm:$0xff]  }
   0xf   :  { %595 = vmatprep.mubr.bf16.mxu1 %v1102_v35  ;;  %v1105_v37 = vld [vmem:[%s1469_s0 + $0x2c] ss:$16 sps:$4 sm:$0xff]   ;;  %v1108_v39 = vld [vmem:[%s1469_s0 + $0x28] ss:$16 sps:$4 sm:$0xff]   ;;  %v1109_v40 = vld [vmem:[%s1469_s0 + $0x44] ss:$16 sps:$4 sm:$0xff]  }
  0x10   :  { %944 = vmatpush3.bf16.msra.mxu0 %v1079_v14  ;;  %v1111_v41 = vld [vmem:[%s1469_s0 + $0x4c] ss:$16 sps:$4 sm:$0xff]   ;;  %v1113_v42 = vld [vmem:[%s1469_s0 + $0x40] ss:$16 sps:$4 sm:$0xff]   ;;  %v1114_v43 = vld [vmem:[%s1469_s0 + $0x48] ss:$16 sps:$4 sm:$0xff]  }
  0x11   :  { %1008 = vmatpush3.bf16.msra.mxu1 %v1080_v15  ;;  %945 = vmatprep.subr.bf16.mxu0 %v1081_v16  ;;  %v1115_v44 = vld [vmem:[%s1469_s0 + $0x64] ss:$16 sps:$4 sm:$0xff]   ;;  %v1117_v45 = vld [vmem:[%s1469_s0 + $0x6c] ss:$16 sps:$4 sm:$0xff]   ;;  %v1119_v46 = vld [vmem:[%s1469_s0 + $0x60] ss:$16 sps:$4 sm:$0xff]  }
  0x12   :  { %1009 = vmatprep.subr.bf16.mxu1 %v1082_v17  ;;  %v1120_v47 = vld [vmem:[%s1469_s0 + $0x68] ss:$16 sps:$4 sm:$0xff]   ;;  %v1121_v48 = vld [vmem:[%s1469_s0 + $0x84] ss:$16 sps:$4 sm:$0xff]   ;;  %v1123_v49 = vld [vmem:[%s1469_s0 + $0x8c] ss:$16 sps:$4 sm:$0xff]  }
  0x13   :  { %v1125_v50 = vld [vmem:[%s1469_s0 + $0x80] ss:$16 sps:$4 sm:$0xff]   ;;  %v1126_v51 = vld [vmem:[%s1469_s0 + $0x88] ss:$16 sps:$4 sm:$0xff]   ;;  %v1127_v52 = vld [vmem:[%s1469_s0 + $0xa4] ss:$16 sps:$4 sm:$0xff]  }
  0x14   :  { %946 = vmatpush3.bf16.msra.mxu0 %v1083_v18  ;;  %v1129_v53 = vld [vmem:[%s1469_s0 + $0xac] ss:$16 sps:$4 sm:$0xff]   ;;  %v1131_v54 = vld [vmem:[%s1469_s0 + $0xa0] ss:$16 sps:$4 sm:$0xff]   ;;  %v1132_v55 = vld [vmem:[%s1469_s0 + $0xa8] ss:$16 sps:$4 sm:$0xff]  }
  0x15   :  { %1010 = vmatpush3.bf16.msra.mxu1 %v1084_v19  ;;  %947 = vmatprep.subr.bf16.mxu0 %v1085_v20  ;;  %v1133_v56 = vld [vmem:[%s1469_s0 + $0xc4] ss:$16 sps:$4 sm:$0xff]   ;;  %v1135_v57 = vld [vmem:[%s1469_s0 + $0xcc] ss:$16 sps:$4 sm:$0xff]   ;;  %v1137_v58 = vld [vmem:[%s1469_s0 + $0xc0] ss:$16 sps:$4 sm:$0xff]  }
  0x16   :  { %1011 = vmatprep.subr.bf16.mxu1 %v1086_v21  ;;  %v1138_v59 = vld [vmem:[%s1469_s0 + $0xc8] ss:$16 sps:$4 sm:$0xff]   ;;  %v1139_v60 = vld [vmem:[%s1469_s0 + $0xe4] ss:$16 sps:$4 sm:$0xff]   ;;  %v1141_v61 = vld [vmem:[%s1469_s0 + $0xec] ss:$16 sps:$4 sm:$0xff]  }
  0x17   :  { %v1143_v62 = vld [vmem:[%s1469_s0 + $0xe0] ss:$16 sps:$4 sm:$0xff]   ;;  %v1144_v63 = vld [vmem:[%s1469_s0 + $0xe8] ss:$16 sps:$4 sm:$0xff]  }
  0x18   :  { %948 = vmatpush3.bf16.msra.mxu0 %v1087_v22  ;;  %v1370_v14 = vld [vmem:[%s1471_s3] ss:$0 sm:$0xff] }
  0x19   :  { %1012 = vmatpush3.bf16.msra.mxu1 %v1088_v23  ;;  %949 = vmatprep.subr.bf16.mxu0 %v1089_v24 }
  0x1a   :  { %1013 = vmatprep.subr.bf16.mxu1 %v1090_v25 }
  0x1c   :  { %950 = vmatpush3.bf16.msra.mxu0 %v1091_v26 }
  0x1d   :  { %1014 = vmatpush3.bf16.msra.mxu1 %v1092_v27  ;;  %951 = vmatprep.subr.bf16.mxu0 %v1093_v28 }
  0x1e   :  { %1015 = vmatprep.subr.bf16.mxu1 %v1094_v29 }
  0x20   :  { %952 = vmatpush3.bf16.msra.mxu0 %v1095_v30 }
  0x21   :  { %1016 = vmatpush3.bf16.msra.mxu1 %v1096_v31 }
  0x23   :  { %499 = vmatmul.mubr.bf16.vlgmr.msra.gmra.mrb[0].mxu0 %v1097_v32 }
  0x24   :  { %596 = vmatmul.mubr.bf16.vlgmr.msra.gmra.mrb[0].mxu1 %v1100_v34  ;;  %506 = vmatprep.mubr.bf16.mxu0 %v1103_v36 }
  0x25   :  { %603 = vmatprep.mubr.bf16.mxu1 %v1105_v37 }
  0x2b   :  { %507 = vmatmul.mubr.bf16.gmra.mrb[4].mxu0 %v1107_v38 }
  0x2c   :  { %604 = vmatmul.mubr.bf16.gmra.mrb[4].mxu1 %v1108_v39  ;;  %514 = vmatprep.mubr.bf16.mxu0 %v1109_v40 }
  0x2d   :  { %611 = vmatprep.mubr.bf16.mxu1 %v1111_v41 }
  0x33   :  { %515 = vmatmul.mubr.bf16.gmra.mrb[8].mxu0 %v1113_v42 }
  0x34   :  { %612 = vmatmul.mubr.bf16.gmra.mrb[8].mxu1 %v1114_v43  ;;  %522 = vmatprep.mubr.bf16.mxu0 %v1115_v44 }
  0x35   :  { %619 = vmatprep.mubr.bf16.mxu1 %v1117_v45 }
  0x3b   :  { %523 = vmatmul.mubr.bf16.gmra.mrb[12].mxu0 %v1119_v46 }
  0x3c   :  { %620 = vmatmul.mubr.bf16.gmra.mrb[12].mxu1 %v1120_v47  ;;  %530 = vmatprep.mubr.bf16.mxu0 %v1121_v48 }
  0x3d   :  { %627 = vmatprep.mubr.bf16.mxu1 %v1123_v49 }
  0x43   :  { %531 = vmatmul.mubr.bf16.gmra.mrb[16].mxu0 %v1125_v50 }
  0x44   :  { %628 = vmatmul.mubr.bf16.gmra.mrb[16].mxu1 %v1126_v51  ;;  %538 = vmatprep.mubr.bf16.mxu0 %v1127_v52 }
  0x45   :  { %635 = vmatprep.mubr.bf16.mxu1 %v1129_v53 }
  0x4b   :  { %539 = vmatmul.mubr.bf16.gmra.mrb[20].mxu0 %v1131_v54 }
  0x4c   :  { %636 = vmatmul.mubr.bf16.gmra.mrb[20].mxu1 %v1132_v55  ;;  %546 = vmatprep.mubr.bf16.mxu0 %v1133_v56 }
  0x4d   :  { %643 = vmatprep.mubr.bf16.mxu1 %v1135_v57 }
  0x53   :  { %547 = vmatmul.mubr.bf16.gmra.mrb[24].mxu0 %v1137_v58 }
  0x54   :  { %644 = vmatmul.mubr.bf16.gmra.mrb[24].mxu1 %v1138_v59  ;;  %554 = vmatprep.mubr.bf16.mxu0 %v1139_v60 }
  0x55   :  { %651 = vmatprep.mubr.bf16.mxu1 %v1141_v61 }
  0x5b   :  { %555 = vmatmul.mubr.bf16.gmra.mrb[28].mxu0 %v1143_v62 }
  0x5c   :  { %652 = vmatmul.mubr.bf16.gmra.mrb[28].mxu1 %v1144_v63 }
  0xf6   :  { %v953_v0 = vpop.f32.mrb[0].mxu0 }
  0xf7   :  { %v1017_v1 = vpop.f32.mrb[0].mxu1  ;;  %v954_v2 = vpop.f32.mrb[1].mxu0 }
  0xf8   :  { %v955_v3 = vadd.f32 %v954_v2, %v953_v0  ;;  %v1018_v4 = vpop.f32.mrb[1].mxu1  ;;  %v956_v5 = vpop.f32.mrb[2].mxu0 }
  0xf9   :  { %v1019_v6 = vadd.f32 %v1018_v4, %v1017_v1  ;;  %v1020_v7 = vpop.f32.mrb[2].mxu1  ;;  %v957_v8 = vpop.f32.mrb[3].mxu0 }
  0xfa   :  { %v958_v10 = vadd.f32 %v957_v8, %v956_v5  ;;  %v1021_v11 = vpop.f32.mrb[3].mxu1 }
  0xfb   :  { %v598_v12 = vadd.f32 %v1019_v6, %v955_v3  ;;  %v1022_v13 = vadd.f32 %v1021_v11, %v1020_v7 }
  0xfd   :  { %v667_v15 = vmul.f32 %v1365_v9, %v598_v12  ;;  %v601_v16 = vadd.f32 %v1022_v13, %v958_v10 }
  0xfe   :  { %v959_v17 = vpop.f32.mrb[4].mxu0 }
  0xff   :  { %v690_v18 = vadd.f32 %v1370_v14, %v667_v15  ;;  %v668_v19 = vmul.f32 %v1365_v9, %v601_v16  ;;  %v1023_v20 = vpop.f32.mrb[4].mxu1  ;;  %v960_v21 = vpop.f32.mrb[5].mxu0 }
 0x100   :  { %v961_v22 = vadd.f32 %v960_v21, %v959_v17  ;;  %v1024_v23 = vpop.f32.mrb[5].mxu1  ;;  %v962_v24 = vpop.f32.mrb[6].mxu0 }
 0x101   :  { %vm706_vm0 = vcmp.gt.f32.partialorder %v690_v18, 0.0  ;;  %v722_v25 = vmul.f32 0.2, %v690_v18  ;;  %v691_v26 = vadd.f32 %v1370_v14, %v668_v19  ;;  %v1025_v27 = vadd.f32 %v1024_v23, %v1023_v20  ;;  %v1026_v28 = vpop.f32.mrb[6].mxu1  ;;  %v963_v29 = vpop.f32.mrb[7].mxu0 }
 0x102   :  { %v964_v30 = vadd.f32 %v963_v29, %v962_v24  ;;  %v1027_v31 = vpop.f32.mrb[7].mxu1 }
 0x103   :  { %v738_v32 = vsel %vm706_vm0, %v690_v18, %v722_v25  ;;  %vm707_vm2 = vcmp.gt.f32.partialorder %v691_v26, 0.0  ;;  %v723_v33 = vmul.f32 0.2, %v691_v26  ;;  %v606_v34 = vadd.f32 %v1025_v27, %v961_v22 }
 0x104   :  { %v921_v35 = vpack.c.bf16 %v738_v32, %v738_v32  ;;  %v1028_v36 = vadd.f32 %v1027_v31, %v1026_v28 }
 0x105   :  { %v739_v37 = vsel %vm707_vm2, %v691_v26, %v723_v33  ;;  %v669_v38 = vmul.f32 %v1365_v9, %v606_v34 }
 0x106   :  { %819 = vst.msk [vmem:[%s1472_s4] sm:$0xf] %vm818_vm1, %v921_v35  ;;  %v922_v39 = vpack.c.bf16 %v739_v37, %v739_v37  ;;  %v609_v40 = vadd.f32 %v1028_v36, %v964_v30  ;;  %v965_v41 = vpop.f32.mrb[8].mxu0 }
 0x107   :  { %v692_v42 = vadd.f32 %v1370_v14, %v669_v38  ;;  %v1029_v43 = vpop.f32.mrb[8].mxu1  ;;  %v966_v44 = vpop.f32.mrb[9].mxu0 }
 0x108   :  { %820 = vst.msk [vmem:[%s1472_s4 + $0x4] sm:$0xf] %vm818_vm1, %v922_v39  ;;  %v670_v45 = vmul.f32 %v1365_v9, %v609_v40  ;;  %v967_v46 = vadd.f32 %v966_v44, %v965_v41  ;;  %v1030_v47 = vpop.f32.mrb[9].mxu1  ;;  %v968_v48 = vpop.f32.mrb[10].mxu0 }
 0x109   :  { %vm708_vm3 = vcmp.gt.f32.partialorder %v692_v42, 0.0  ;;  %v724_v49 = vmul.f32 0.2, %v692_v42  ;;  %v1031_v50 = vadd.f32 %v1030_v47, %v1029_v43  ;;  %v1032_v51 = vpop.f32.mrb[10].mxu1  ;;  %v969_v52 = vpop.f32.mrb[11].mxu0 }
 0x10a   :  { %v693_v53 = vadd.f32 %v1370_v14, %v670_v45  ;;  %v970_v54 = vadd.f32 %v969_v52, %v968_v48  ;;  %v1033_v55 = vpop.f32.mrb[11].mxu1 }
 0x10b   :  { %v740_v56 = vsel %vm708_vm3, %v692_v42, %v724_v49  ;;  %v614_v57 = vadd.f32 %v1031_v50, %v967_v46  ;;  %v1034_v58 = vadd.f32 %v1033_v55, %v1032_v51 }
 0x10c   :  { %v923_v59 = vpack.c.bf16 %v740_v56, %v740_v56  ;;  %vm709_vm4 = vcmp.gt.f32.partialorder %v693_v53, 0.0  ;;  %v725_v60 = vmul.f32 0.2, %v693_v53 }
 0x10d   :  { %v671_v61 = vmul.f32 %v1365_v9, %v614_v57  ;;  %v617_v62 = vadd.f32 %v1034_v58, %v970_v54 }
 0x10e   :  { %821 = vst.msk [vmem:[%s1472_s4 + $0x8] sm:$0xf] %vm818_vm1, %v923_v59  ;;  %v741_v63 = vsel %vm709_vm4, %v693_v53, %v725_v60  ;;  %v971_v0 = vpop.f32.mrb[12].mxu0 }
 0x10f   :  { %v924_v1 = vpack.c.bf16 %v741_v63, %v741_v63  ;;  %v694_v2 = vadd.f32 %v1370_v14, %v671_v61  ;;  %v672_v3 = vmul.f32 %v1365_v9, %v617_v62  ;;  %v1035_v4 = vpop.f32.mrb[12].mxu1  ;;  %v972_v5 = vpop.f32.mrb[13].mxu0 }
 0x110   :  { %v973_v6 = vadd.f32 %v972_v5, %v971_v0  ;;  %v1036_v7 = vpop.f32.mrb[13].mxu1  ;;  %v974_v8 = vpop.f32.mrb[14].mxu0 }
 0x111   :  { %822 = vst.msk [vmem:[%s1472_s4 + $0xc] sm:$0xf] %vm818_vm1, %v924_v1  ;;  %vm710_vm5 = vcmp.gt.f32.partialorder %v694_v2, 0.0  ;;  %v726_v10 = vmul.f32 0.2, %v694_v2  ;;  %v695_v11 = vadd.f32 %v1370_v14, %v672_v3  ;;  %v1037_v12 = vadd.f32 %v1036_v7, %v1035_v4  ;;  %v1038_v13 = vpop.f32.mrb[14].mxu1 }
 0x112   :  { %v975_v15 = vpop.f32.mrb[15].mxu0  ;;  %v1039_v17 = vpop.f32.mrb[15].mxu1 }
 0x113   :  { %v976_v16 = vadd.f32 %v975_v15, %v974_v8  ;;  %v742_v18 = vsel %vm710_vm5, %v694_v2, %v726_v10  ;;  %vm711_vm6 = vcmp.gt.f32.partialorder %v695_v11, 0.0  ;;  %v727_v19 = vmul.f32 0.2, %v695_v11 }
 0x114   :  { %v622_v20 = vadd.f32 %v1037_v12, %v973_v6  ;;  %v925_v21 = vpack.c.bf16 %v742_v18, %v742_v18  ;;  %v1040_v22 = vadd.f32 %v1039_v17, %v1038_v13 }
 0x115   :  { %v743_v23 = vsel %vm711_vm6, %v695_v11, %v727_v19 }
 0x116   :  { %v673_v24 = vmul.f32 %v1365_v9, %v622_v20  ;;  %823 = vst.msk [vmem:[%s1472_s4 + $0x10] sm:$0xf] %vm818_vm1, %v925_v21  ;;  %v926_v25 = vpack.c.bf16 %v743_v23, %v743_v23  ;;  %v625_v26 = vadd.f32 %v1040_v22, %v976_v16  ;;  %v977_v27 = vpop.f32.mrb[16].mxu0 }
 0x117   :  { %v1041_v29 = vpop.f32.mrb[16].mxu1  ;;  %v978_v30 = vpop.f32.mrb[17].mxu0 }
 0x118   :  { %v696_v28 = vadd.f32 %v1370_v14, %v673_v24  ;;  %824 = vst.msk [vmem:[%s1472_s4 + $0x14] sm:$0xf] %vm818_vm1, %v926_v25  ;;  %v674_v31 = vmul.f32 %v1365_v9, %v625_v26  ;;  %v979_v32 = vadd.f32 %v978_v30, %v977_v27  ;;  %v1042_v33 = vpop.f32.mrb[17].mxu1  ;;  %v980_v34 = vpop.f32.mrb[18].mxu0 }
 0x119   :  { %v1043_v36 = vadd.f32 %v1042_v33, %v1041_v29  ;;  %v1044_v37 = vpop.f32.mrb[18].mxu1  ;;  %v981_v38 = vpop.f32.mrb[19].mxu0 }
 0x11a   :  { %vm712_vm7 = vcmp.gt.f32.partialorder %v696_v28, 0.0  ;;  %v728_v35 = vmul.f32 0.2, %v696_v28  ;;  %v697_v39 = vadd.f32 %v1370_v14, %v674_v31  ;;  %v982_v40 = vadd.f32 %v981_v38, %v980_v34  ;;  %v1045_v41 = vpop.f32.mrb[19].mxu1 }
 0x11b   :  { %v630_v43 = vadd.f32 %v1043_v36, %v979_v32  ;;  %v1046_v44 = vadd.f32 %v1045_v41, %v1044_v37 }
 0x11c   :  { %v744_v42 = vsel %vm712_vm7, %v696_v28, %v728_v35  ;;  %vm713_vm8 = vcmp.gt.f32.partialorder %v697_v39, 0.0  ;;  %v729_v46 = vmul.f32 0.2, %v697_v39 }
 0x11d   :  { %v927_v45 = vpack.c.bf16 %v744_v42, %v744_v42  ;;  %v675_v47 = vmul.f32 %v1365_v9, %v630_v43  ;;  %v633_v48 = vadd.f32 %v1046_v44, %v982_v40 }
 0x11e   :  { %v745_v49 = vsel %vm713_vm8, %v697_v39, %v729_v46  ;;  %v983_v50 = vpop.f32.mrb[20].mxu0 }
 0x11f   :  { %825 = vst.msk [vmem:[%s1472_s4 + $0x18] sm:$0xf] %vm818_vm1, %v927_v45  ;;  %v928_v51 = vpack.c.bf16 %v745_v49, %v745_v49  ;;  %v698_v52 = vadd.f32 %v1370_v14, %v675_v47  ;;  %v676_v53 = vmul.f32 %v1365_v9, %v633_v48  ;;  %v1047_v54 = vpop.f32.mrb[20].mxu1  ;;  %v984_v55 = vpop.f32.mrb[21].mxu0 }
 0x120   :  { %v985_v56 = vadd.f32 %v984_v55, %v983_v50  ;;  %v1048_v57 = vpop.f32.mrb[21].mxu1  ;;  %v986_v58 = vpop.f32.mrb[22].mxu0 }
 0x121   :  { %826 = vst.msk [vmem:[%s1472_s4 + $0x1c] sm:$0xf] %vm818_vm1, %v928_v51  ;;  %vm714_vm9 = vcmp.gt.f32.partialorder %v698_v52, 0.0  ;;  %v730_v59 = vmul.f32 0.2, %v698_v52  ;;  %v699_v60 = vadd.f32 %v1370_v14, %v676_v53  ;;  %v1049_v61 = vadd.f32 %v1048_v57, %v1047_v54  ;;  %v1050_v62 = vpop.f32.mrb[22].mxu1 }
 0x122   :  { %v987_v63 = vpop.f32.mrb[23].mxu0  ;;  %v1051_v1 = vpop.f32.mrb[23].mxu1 }
 0x123   :  { %v988_v0 = vadd.f32 %v987_v63, %v986_v58  ;;  %v746_v2 = vsel %vm714_vm9, %v698_v52, %v730_v59  ;;  %vm715_vm10 = vcmp.gt.f32.partialorder %v699_v60, 0.0  ;;  %v731_v3 = vmul.f32 0.2, %v699_v60 }
 0x124   :  { %v638_v4 = vadd.f32 %v1049_v61, %v985_v56  ;;  %v929_v5 = vpack.c.bf16 %v746_v2, %v746_v2  ;;  %v1052_v6 = vadd.f32 %v1051_v1, %v1050_v62 }
 0x125   :  { %v747_v7 = vsel %vm715_vm10, %v699_v60, %v731_v3 }
 0x126   :  { %v677_v8 = vmul.f32 %v1365_v9, %v638_v4  ;;  %827 = vst.msk [vmem:[%s1472_s4 + $0x20] sm:$0xf] %vm818_vm1, %v929_v5  ;;  %v930_v10 = vpack.c.bf16 %v747_v7, %v747_v7  ;;  %v641_v11 = vadd.f32 %v1052_v6, %v988_v0  ;;  %v989_v12 = vpop.f32.mrb[24].mxu0 }
 0x127   :  { %v1053_v15 = vpop.f32.mrb[24].mxu1  ;;  %v990_v16 = vpop.f32.mrb[25].mxu0 }
 0x128   :  { %v700_v13 = vadd.f32 %v1370_v14, %v677_v8  ;;  %828 = vst.msk [vmem:[%s1472_s4 + $0x24] sm:$0xf] %vm818_vm1, %v930_v10  ;;  %v678_v17 = vmul.f32 %v1365_v9, %v641_v11  ;;  %v991_v18 = vadd.f32 %v990_v16, %v989_v12  ;;  %v1054_v19 = vpop.f32.mrb[25].mxu1  ;;  %v992_v20 = vpop.f32.mrb[26].mxu0 }
 0x129   :  { %v1055_v22 = vadd.f32 %v1054_v19, %v1053_v15  ;;  %v1056_v23 = vpop.f32.mrb[26].mxu1  ;;  %v993_v24 = vpop.f32.mrb[27].mxu0 }
 0x12a   :  { %vm716_vm11 = vcmp.gt.f32.partialorder %v700_v13, 0.0  ;;  %v732_v21 = vmul.f32 0.2, %v700_v13  ;;  %v701_v25 = vadd.f32 %v1370_v14, %v678_v17  ;;  %v994_v26 = vadd.f32 %v993_v24, %v992_v20  ;;  %v1057_v27 = vpop.f32.mrb[27].mxu1 }
 0x12b   :  { %v646_v29 = vadd.f32 %v1055_v22, %v991_v18  ;;  %v1058_v30 = vadd.f32 %v1057_v27, %v1056_v23 }
 0x12c   :  { %v748_v28 = vsel %vm716_vm11, %v700_v13, %v732_v21  ;;  %vm717_vm12 = vcmp.gt.f32.partialorder %v701_v25, 0.0  ;;  %v733_v32 = vmul.f32 0.2, %v701_v25 }
 0x12d   :  { %v931_v31 = vpack.c.bf16 %v748_v28, %v748_v28  ;;  %v679_v33 = vmul.f32 %v1365_v9, %v646_v29  ;;  %v649_v34 = vadd.f32 %v1058_v30, %v994_v26 }
 0x12e   :  { %v749_v35 = vsel %vm717_vm12, %v701_v25, %v733_v32  ;;  %v995_v36 = vpop.f32.mrb[28].mxu0 }
 0x12f   :  { %829 = vst.msk [vmem:[%s1472_s4 + $0x28] sm:$0xf] %vm818_vm1, %v931_v31  ;;  %v932_v37 = vpack.c.bf16 %v749_v35, %v749_v35  ;;  %v702_v38 = vadd.f32 %v1370_v14, %v679_v33  ;;  %v680_v39 = vmul.f32 %v1365_v9, %v649_v34  ;;  %v1059_v40 = vpop.f32.mrb[28].mxu1  ;;  %v996_v41 = vpop.f32.mrb[29].mxu0 }
 0x130   :  { %v997_v42 = vadd.f32 %v996_v41, %v995_v36  ;;  %v1060_v43 = vpop.f32.mrb[29].mxu1  ;;  %v998_v44 = vpop.f32.mrb[30].mxu0 }
 0x131   :  { %830 = vst.msk [vmem:[%s1472_s4 + $0x2c] sm:$0xf] %vm818_vm1, %v932_v37  ;;  %vm718_vm13 = vcmp.gt.f32.partialorder %v702_v38, 0.0  ;;  %v734_v45 = vmul.f32 0.2, %v702_v38  ;;  %v703_v46 = vadd.f32 %v1370_v14, %v680_v39  ;;  %v1061_v47 = vadd.f32 %v1060_v43, %v1059_v40  ;;  %v1062_v48 = vpop.f32.mrb[30].mxu1 }
 0x132   :  { %v999_v49 = vpop.f32.mrb[31].mxu0  ;;  %v1063_v51 = vpop.f32.mrb[31].mxu1 }
 0x133   :  { %v1000_v50 = vadd.f32 %v999_v49, %v998_v44  ;;  %v750_v52 = vsel %vm718_vm13, %v702_v38, %v734_v45  ;;  %vm719_vm14 = vcmp.gt.f32.partialorder %v703_v46, 0.0  ;;  %v735_v53 = vmul.f32 0.2, %v703_v46 }
 0x134   :  { %v654_v54 = vadd.f32 %v1061_v47, %v997_v42  ;;  %v933_v55 = vpack.c.bf16 %v750_v52, %v750_v52  ;;  %v1064_v56 = vadd.f32 %v1063_v51, %v1062_v48 }
 0x135   :  { %v751_v57 = vsel %vm719_vm14, %v703_v46, %v735_v53 }
 0x136   :  { %v681_v58 = vmul.f32 %v1365_v9, %v654_v54  ;;  %831 = vst.msk [vmem:[%s1472_s4 + $0x30] sm:$0xf] %vm818_vm1, %v933_v55  ;;  %v934_v59 = vpack.c.bf16 %v751_v57, %v751_v57  ;;  %v657_v60 = vadd.f32 %v1064_v56, %v1000_v50 }
 0x138   :  { %v704_v61 = vadd.f32 %v1370_v14, %v681_v58  ;;  %832 = vst.msk [vmem:[%s1472_s4 + $0x34] sm:$0xf] %vm818_vm1, %v934_v59  ;;  %v682_v62 = vmul.f32 %v1365_v9, %v657_v60 }
 0x13a   :  { %vm720_vm15 = vcmp.gt.f32.partialorder %v704_v61, 0.0  ;;  %v736_v63 = vmul.f32 0.2, %v704_v61  ;;  %v705_v0 = vadd.f32 %v1370_v14, %v682_v62 }
 0x13c   :  { %v752_v1 = vsel %vm720_vm15, %v704_v61, %v736_v63  ;;  %vm721_vm0 = vcmp.gt.f32.partialorder %v705_v0, 0.0  ;;  %v737_v3 = vmul.f32 0.2, %v705_v0 }
 0x13d   :  { %v935_v2 = vpack.c.bf16 %v752_v1, %v752_v1 }
 0x13e   :  { %v753_v4 = vsel %vm721_vm0, %v705_v0, %v737_v3 }
 0x13f   :  { %833 = vst.msk [vmem:[%s1472_s4 + $0x38] sm:$0xf] %vm818_vm1, %v935_v2  ;;  %v936_v5 = vpack.c.bf16 %v753_v4, %v753_v4 }
 0x141   :  { %834 = vst.msk [vmem:[%s1472_s4 + $0x3c] sm:$0xf] %vm818_vm1, %v936_v5 }

// kernel: encoder_forward.11
= control target key start
LH: loop header
LB: loop body
LE: loop exit
PB: predicated region body
PF: predicated region fallthrough
CT: control target
= control target key end

     0   :  { %s1434_s1 = inlined_call_operand.vmem [shape: bf16[1024,128], index: 1, kind: input, shape index: {}]   ;;  %s1435_s0 = inlined_call_operand.vmem [shape: bf16[32,1024], index: 0, kind: input, shape index: {}]   ;;  %s1436_s2 = inlined_call_operand.vmem [shape: f32[1,128], index: 2, kind: input, shape index: {}]   ;;  %s1437_s3 = inlined_call_operand.vmem [shape: f32[1,128], index: 3, kind: input, shape index: {}]   ;;  %s1438_s4 = inlined_call_operand.vmem [shape: bf16[32,128], index: 4, kind: output, shape index: {}]  }
   0x1   :  { %v1093_v0 = vld [vmem:[%s1434_s1 + $0x40] sm:$0xff]   ;;  %v1097_v4 = vld [vmem:[%s1434_s1 + $0x48] sm:$0xff]   ;;  %v1101_v8 = vld [vmem:[%s1434_s1 + $0x50] sm:$0xff]  }
   0x2   :  { %v1094_v1 = vld [vmem:[%s1434_s1 + $0xc0] sm:$0xff]   ;;  %981 = vmatprep.subr.bf16.mxu0 %v1093_v0  ;;  %v1098_v5 = vld [vmem:[%s1434_s1 + $0xc8] sm:$0xff]   ;;  %v1102_v9 = vld [vmem:[%s1434_s1 + $0xd0] sm:$0xff]  }
   0x3   :  { %v1095_v2 = vld [vmem:[%s1434_s1] sm:$0xff]   ;;  %1009 = vmatprep.subr.bf16.mxu1 %v1094_v1  ;;  %v1099_v6 = vld [vmem:[%s1434_s1 + $0x8] sm:$0xff]   ;;  %v1103_v10 = vld [vmem:[%s1434_s1 + $0x10] sm:$0xff]  }
   0x4   :  { %v1096_v3 = vld [vmem:[%s1434_s1 + $0x80] sm:$0xff]   ;;  %982 = vmatpush3.bf16.msra.mxu0 %v1095_v2  ;;  %v1100_v7 = vld [vmem:[%s1434_s1 + $0x88] sm:$0xff]   ;;  %v1104_v11 = vld [vmem:[%s1434_s1 + $0x90] sm:$0xff]  }
   0x5   :  { %1010 = vmatpush3.bf16.msra.mxu1 %v1096_v3  ;;  %983 = vmatprep.subr.bf16.mxu0 %v1097_v4  ;;  %v1105_v12 = vld [vmem:[%s1434_s1 + $0x58] sm:$0xff]   ;;  %v1109_v16 = vld [vmem:[%s1434_s1 + $0x60] sm:$0xff]   ;;  %v1113_v20 = vld [vmem:[%s1434_s1 + $0x68] sm:$0xff]  }
   0x6   :  { %1011 = vmatprep.subr.bf16.mxu1 %v1098_v5  ;;  %v1106_v13 = vld [vmem:[%s1434_s1 + $0xd8] sm:$0xff]   ;;  %v1110_v17 = vld [vmem:[%s1434_s1 + $0xe0] sm:$0xff]   ;;  %v1114_v21 = vld [vmem:[%s1434_s1 + $0xe8] sm:$0xff]  }
   0x7   :  { %v1107_v14 = vld [vmem:[%s1434_s1 + $0x18] sm:$0xff]   ;;  %v1111_v18 = vld [vmem:[%s1434_s1 + $0x20] sm:$0xff]   ;;  %v1115_v22 = vld [vmem:[%s1434_s1 + $0x28] sm:$0xff]  }
   0x8   :  { %984 = vmatpush3.bf16.msra.mxu0 %v1099_v6  ;;  %v1108_v15 = vld [vmem:[%s1434_s1 + $0x98] sm:$0xff]   ;;  %v1112_v19 = vld [vmem:[%s1434_s1 + $0xa0] sm:$0xff]   ;;  %v1116_v23 = vld [vmem:[%s1434_s1 + $0xa8] sm:$0xff]  }
   0x9   :  { %1012 = vmatpush3.bf16.msra.mxu1 %v1100_v7  ;;  %985 = vmatprep.subr.bf16.mxu0 %v1101_v8  ;;  %v1117_v24 = vld [vmem:[%s1434_s1 + $0x70] sm:$0xff]   ;;  %v1121_v28 = vld [vmem:[%s1434_s1 + $0x78] sm:$0xff]   ;;  %v18_v32 = vld [vmem:[%s1435_s0] sm:$0xff] }
   0xa   :  { %1013 = vmatprep.subr.bf16.mxu1 %v1102_v9  ;;  %v1118_v25 = vld [vmem:[%s1434_s1 + $0xf0] sm:$0xff]   ;;  %v1122_v29 = vld [vmem:[%s1434_s1 + $0xf8] sm:$0xff]   ;;  %v22_v33 = vld [vmem:[%s1435_s0 + $0x20] sm:$0xff] }
   0xb   :  { %v1119_v26 = vld [vmem:[%s1434_s1 + $0x30] sm:$0xff]   ;;  %v1123_v30 = vld [vmem:[%s1434_s1 + $0x38] sm:$0xff]   ;;  %v19_v34 = vld [vmem:[%s1435_s0 + $0x8] sm:$0xff]  ;;  %v880_v35 = vcombine.low %v18_v32, %v22_v33  ;;  %v881_v36 = vcombine.high %v18_v32, %v22_v33 }
   0xc   :  { %986 = vmatpush3.bf16.msra.mxu0 %v1103_v10  ;;  %v1120_v27 = vld [vmem:[%s1434_s1 + $0xb0] sm:$0xff]   ;;  %v1124_v31 = vld [vmem:[%s1434_s1 + $0xb8] sm:$0xff]   ;;  %v23_v37 = vld [vmem:[%s1435_s0 + $0x28] sm:$0xff] }
   0xd   :  { %1014 = vmatpush3.bf16.msra.mxu1 %v1104_v11  ;;  %987 = vmatprep.subr.bf16.mxu0 %v1105_v12  ;;  %v882_v38 = vcombine.low %v19_v34, %v23_v37  ;;  %v883_v39 = vcombine.high %v19_v34, %v23_v37  ;;  %v1125_v40 = vld [vmem:[%s1434_s1 + $0x140] sm:$0xff]   ;;  %v1129_v44 = vld [vmem:[%s1434_s1 + $0x148] sm:$0xff]   ;;  %v1133_v48 = vld [vmem:[%s1434_s1 + $0x150] sm:$0xff]  }
   0xe   :  { %1015 = vmatprep.subr.bf16.mxu1 %v1106_v13  ;;  %658 = vmatprep.mubr.bf16.mxu0 %v881_v36  ;;  %v1126_v41 = vld [vmem:[%s1434_s1 + $0x1c0] sm:$0xff]   ;;  %v1130_v45 = vld [vmem:[%s1434_s1 + $0x1c8] sm:$0xff]   ;;  %v1134_v49 = vld [vmem:[%s1434_s1 + $0x1d0] sm:$0xff]  }
   0xf   :  { %707 = vmatprep.mubr.bf16.mxu1 %v883_v39  ;;  %v1127_v42 = vld [vmem:[%s1434_s1 + $0x100] sm:$0xff]   ;;  %v1131_v46 = vld [vmem:[%s1434_s1 + $0x108] sm:$0xff]   ;;  %v1135_v50 = vld [vmem:[%s1434_s1 + $0x110] sm:$0xff]  }
  0x10   :  { %988 = vmatpush3.bf16.msra.mxu0 %v1107_v14  ;;  %v1128_v43 = vld [vmem:[%s1434_s1 + $0x180] sm:$0xff]   ;;  %v1132_v47 = vld [vmem:[%s1434_s1 + $0x188] sm:$0xff]   ;;  %v1136_v51 = vld [vmem:[%s1434_s1 + $0x190] sm:$0xff]  }
  0x11   :  { %1016 = vmatpush3.bf16.msra.mxu1 %v1108_v15  ;;  %989 = vmatprep.subr.bf16.mxu0 %v1109_v16  ;;  %v1137_v52 = vld [vmem:[%s1434_s1 + $0x158] sm:$0xff]   ;;  %v1141_v56 = vld [vmem:[%s1434_s1 + $0x160] sm:$0xff]   ;;  %v27_v63 = vld [vmem:[%s1435_s0 + $0x48] sm:$0xff] }
  0x12   :  { %1017 = vmatprep.subr.bf16.mxu1 %v1110_v17  ;;  %v1138_v53 = vld [vmem:[%s1434_s1 + $0x1d8] sm:$0xff]   ;;  %v1142_v57 = vld [vmem:[%s1434_s1 + $0x1e0] sm:$0xff]   ;;  %v31_v0 = vld [vmem:[%s1435_s0 + $0x68] sm:$0xff] }
  0x13   :  { %v1139_v54 = vld [vmem:[%s1434_s1 + $0x118] sm:$0xff]   ;;  %v1143_v58 = vld [vmem:[%s1434_s1 + $0x120] sm:$0xff]   ;;  %v891_v2 = vcombine.high %v27_v63, %v31_v0  ;;  %v1145_v3 = vld [vmem:[%s1434_s1 + $0x168] sm:$0xff]   ;;  %v890_v4 = vcombine.low %v27_v63, %v31_v0 }
  0x14   :  { %990 = vmatpush3.bf16.msra.mxu0 %v1111_v18  ;;  %v1140_v55 = vld [vmem:[%s1434_s1 + $0x198] sm:$0xff]   ;;  %v1144_v59 = vld [vmem:[%s1434_s1 + $0x1a0] sm:$0xff]   ;;  %v1146_v5 = vld [vmem:[%s1434_s1 + $0x1e8] sm:$0xff]  }
  0x15   :  { %1018 = vmatpush3.bf16.msra.mxu1 %v1112_v19  ;;  %991 = vmatprep.subr.bf16.mxu0 %v1113_v20  ;;  %v26_v60 = vld [vmem:[%s1435_s0 + $0x40] sm:$0xff]  ;;  %v1147_v6 = vld [vmem:[%s1434_s1 + $0x128] sm:$0xff]   ;;  %v1149_v8 = vld [vmem:[%s1434_s1 + $0x170] sm:$0xff]  }
  0x16   :  { %1019 = vmatprep.subr.bf16.mxu1 %v1114_v21  ;;  %v30_v61 = vld [vmem:[%s1435_s0 + $0x60] sm:$0xff]  ;;  %v1148_v7 = vld [vmem:[%s1434_s1 + $0x1a8] sm:$0xff]   ;;  %v1150_v9 = vld [vmem:[%s1434_s1 + $0x1f0] sm:$0xff]  }
  0x17   :  { %v889_v62 = vcombine.high %v26_v60, %v30_v61  ;;  %v888_v1 = vcombine.low %v26_v60, %v30_v61  ;;  %v1151_v10 = vld [vmem:[%s1434_s1 + $0x130] sm:$0xff]   ;;  %v1153_v12 = vld [vmem:[%s1434_s1 + $0x178] sm:$0xff]  }
  0x18   :  { %992 = vmatpush3.bf16.msra.mxu0 %v1115_v22  ;;  %v1152_v11 = vld [vmem:[%s1434_s1 + $0x1b0] sm:$0xff]   ;;  %v1154_v13 = vld [vmem:[%s1434_s1 + $0x1f8] sm:$0xff]  }
  0x19   :  { %1020 = vmatpush3.bf16.msra.mxu1 %v1116_v23  ;;  %993 = vmatprep.subr.bf16.mxu0 %v1117_v24  ;;  %v1155_v14 = vld [vmem:[%s1434_s1 + $0x138] sm:$0xff]   ;;  %v20_v16 = vld [vmem:[%s1435_s0 + $0x10] sm:$0xff] }
  0x1a   :  { %1021 = vmatprep.subr.bf16.mxu1 %v1118_v25  ;;  %v1156_v15 = vld [vmem:[%s1434_s1 + $0x1b8] sm:$0xff]   ;;  %v24_v17 = vld [vmem:[%s1435_s0 + $0x30] sm:$0xff] }
  0x1b   :  { %v21_v18 = vld [vmem:[%s1435_s0 + $0x18] sm:$0xff]  ;;  %v884_v20 = vcombine.low %v20_v16, %v24_v17  ;;  %v885_v21 = vcombine.high %v20_v16, %v24_v17  ;;  %v28_v24 = vld [vmem:[%s1435_s0 + $0x50] sm:$0xff] }
  0x1c   :  { %994 = vmatpush3.bf16.msra.mxu0 %v1119_v26  ;;  %v25_v19 = vld [vmem:[%s1435_s0 + $0x38] sm:$0xff]  ;;  %v32_v25 = vld [vmem:[%s1435_s0 + $0x70] sm:$0xff] }
  0x1d   :  { %1022 = vmatpush3.bf16.msra.mxu1 %v1120_v27  ;;  %995 = vmatprep.subr.bf16.mxu0 %v1121_v28  ;;  %v886_v22 = vcombine.low %v21_v18, %v25_v19  ;;  %v887_v23 = vcombine.high %v21_v18, %v25_v19  ;;  %v29_v26 = vld [vmem:[%s1435_s0 + $0x58] sm:$0xff]  ;;  %v893_v27 = vcombine.high %v28_v24, %v32_v25 }
  0x1e   :  { %1023 = vmatprep.subr.bf16.mxu1 %v1122_v29  ;;  %v33_v28 = vld [vmem:[%s1435_s0 + $0x78] sm:$0xff] }
  0x1f   :  { %v895_v29 = vcombine.high %v29_v26, %v33_v28 }
  0x20   :  { %996 = vmatpush3.bf16.msra.mxu0 %v1123_v30  ;;  %v892_v30 = vcombine.low %v28_v24, %v32_v25 }
  0x21   :  { %1024 = vmatpush3.bf16.msra.mxu1 %v1124_v31  ;;  %1037 = vmatprep.subr.bf16.mxu0 %v1125_v40  ;;  %v894_v31 = vcombine.low %v29_v26, %v33_v28 }
  0x22   :  { %1065 = vmatprep.subr.bf16.mxu1 %v1126_v41 }
  0x23   :  { %659 = vmatmul.mubr.bf16.vlgmr.msra.gmra.mrb[0].mxu0 %v880_v35 }
  0x24   :  { %708 = vmatmul.mubr.bf16.vlgmr.msra.gmra.mrb[0].mxu1 %v882_v38  ;;  %1038 = vmatpush3.bf16.msra.mxu0 %v1127_v42 }
  0x25   :  { %1066 = vmatpush3.bf16.msra.mxu1 %v1128_v43  ;;  %1039 = vmatprep.subr.bf16.mxu0 %v1129_v44 }
  0x26   :  { %1067 = vmatprep.subr.bf16.mxu1 %v1130_v45  ;;  %666 = vmatprep.mubr.bf16.mxu0 %v889_v62 }
  0x27   :  { %715 = vmatprep.mubr.bf16.mxu1 %v891_v2 }
  0x28   :  { %1040 = vmatpush3.bf16.msra.mxu0 %v1131_v46 }
  0x29   :  { %1068 = vmatpush3.bf16.msra.mxu1 %v1132_v47  ;;  %1041 = vmatprep.subr.bf16.mxu0 %v1133_v48 }
  0x2a   :  { %1069 = vmatprep.subr.bf16.mxu1 %v1134_v49 }
  0x2b   :  { %667 = vmatmul.mubr.bf16.gmra.mrb[4].mxu0 %v888_v1 }
  0x2c   :  { %1042 = vmatpush3.bf16.msra.mxu0 %v1135_v50  ;;  %716 = vmatmul.mubr.bf16.gmra.mrb[4].mxu1 %v890_v4 }
  0x2d   :  { %1070 = vmatpush3.bf16.msra.mxu1 %v1136_v51  ;;  %1043 = vmatprep.subr.bf16.mxu0 %v1137_v52 }
  0x2e   :  { %1071 = vmatprep.subr.bf16.mxu1 %v1138_v53  ;;  %756 = vmatprep.mubr.bf16.mxu0 %v885_v21 }
  0x2f   :  { %805 = vmatprep.mubr.bf16.mxu1 %v887_v23 }
  0x30   :  { %1044 = vmatpush3.bf16.msra.mxu0 %v1139_v54 }
  0x31   :  { %1072 = vmatpush3.bf16.msra.mxu1 %v1140_v55  ;;  %1045 = vmatprep.subr.bf16.mxu0 %v1141_v56 }
  0x32   :  { %1073 = vmatprep.subr.bf16.mxu1 %v1142_v57 }
  0x34   :  { %1046 = vmatpush3.bf16.msra.mxu0 %v1143_v58 }
  0x35   :  { %1074 = vmatpush3.bf16.msra.mxu1 %v1144_v59  ;;  %1047 = vmatprep.subr.bf16.mxu0 %v1145_v3 }
  0x36   :  { %1075 = vmatprep.subr.bf16.mxu1 %v1146_v5 }
  0x38   :  { %1048 = vmatpush3.bf16.msra.mxu0 %v1147_v6 }
  0x39   :  { %1076 = vmatpush3.bf16.msra.mxu1 %v1148_v7  ;;  %1049 = vmatprep.subr.bf16.mxu0 %v1149_v8 }
  0x3a   :  { %1077 = vmatprep.subr.bf16.mxu1 %v1150_v9  ;;  %v960_v9 = vld [vmem:[%s1436_s2] ss:$0 sm:$0xff] }
  0x3c   :  { %1050 = vmatpush3.bf16.msra.mxu0 %v1151_v10 }
  0x3d   :  { %1078 = vmatpush3.bf16.msra.mxu1 %v1152_v11  ;;  %1051 = vmatprep.subr.bf16.mxu0 %v1153_v12  ;;  %v961_v12 = vld [vmem:[%s1437_s3] ss:$0 sm:$0xff] }
  0x3e   :  { %1079 = vmatprep.subr.bf16.mxu1 %v1154_v13 }
  0x40   :  { %1052 = vmatpush3.bf16.msra.mxu0 %v1155_v14 }
  0x41   :  { %1080 = vmatpush3.bf16.msra.mxu1 %v1156_v15 }
  0x43   :  { %757 = vmatmul.mubr.bf16.vlgmr.msra.gmra.mrb[8].mxu0 %v884_v20 }
  0x44   :  { %806 = vmatmul.mubr.bf16.vlgmr.msra.gmra.mrb[8].mxu1 %v886_v22  ;;  %764 = vmatprep.mubr.bf16.mxu0 %v893_v27 }
  0x45   :  { %813 = vmatprep.mubr.bf16.mxu1 %v895_v29 }
  0x4b   :  { %765 = vmatmul.mubr.bf16.gmra.mrb[12].mxu0 %v892_v30 }
  0x4c   :  { %814 = vmatmul.mubr.bf16.gmra.mrb[12].mxu1 %v894_v31 }
  0xf6   :  { %v997_v32 = vpop.f32.mrb[0].mxu0 }
  0xf7   :  { %v1025_v33 = vpop.f32.mrb[0].mxu1  ;;  %v998_v34 = vpop.f32.mrb[1].mxu0 }
  0xf8   :  { %v999_v35 = vadd.f32 %v998_v34, %v997_v32  ;;  %v1026_v36 = vpop.f32.mrb[1].mxu1  ;;  %v1000_v37 = vpop.f32.mrb[2].mxu0 }
  0xf9   :  { %v1027_v38 = vadd.f32 %v1026_v36, %v1025_v33  ;;  %v1028_v39 = vpop.f32.mrb[2].mxu1  ;;  %v1001_v40 = vpop.f32.mrb[3].mxu0 }
  0xfa   :  { %v1002_v41 = vadd.f32 %v1001_v40, %v1000_v37  ;;  %v1029_v42 = vpop.f32.mrb[3].mxu1 }
  0xfb   :  { %v710_v43 = vadd.f32 %v1027_v38, %v999_v35  ;;  %v1030_v44 = vadd.f32 %v1029_v42, %v1028_v39 }
  0xfd   :  { %v713_v45 = vadd.f32 %v1030_v44, %v1002_v41 }
  0xfe   :  { %v1003_v46 = vpop.f32.mrb[4].mxu0 }
  0xff   :  { %v1031_v47 = vpop.f32.mrb[4].mxu1  ;;  %v1004_v48 = vpop.f32.mrb[5].mxu0 }
 0x100   :  { %v1005_v49 = vadd.f32 %v1004_v48, %v1003_v46  ;;  %v1032_v50 = vpop.f32.mrb[5].mxu1  ;;  %v1006_v51 = vpop.f32.mrb[6].mxu0 }
 0x101   :  { %v1033_v52 = vadd.f32 %v1032_v50, %v1031_v47  ;;  %v1034_v53 = vpop.f32.mrb[6].mxu1  ;;  %v1007_v54 = vpop.f32.mrb[7].mxu0 }
 0x102   :  { %v1008_v55 = vadd.f32 %v1007_v54, %v1006_v51  ;;  %v1035_v56 = vpop.f32.mrb[7].mxu1 }
 0x103   :  { %v718_v57 = vadd.f32 %v1033_v52, %v1005_v49  ;;  %v1036_v58 = vadd.f32 %v1035_v56, %v1034_v53 }
 0x105   :  { %v721_v59 = vadd.f32 %v1036_v58, %v1008_v55 }
 0x116   :  { %v1053_v60 = vpop.f32.mrb[8].mxu0 }
 0x117   :  { %v1081_v61 = vpop.f32.mrb[8].mxu1  ;;  %v1054_v62 = vpop.f32.mrb[9].mxu0 }
 0x118   :  { %v1082_v63 = vpop.f32.mrb[9].mxu1  ;;  %v1055_v0 = vadd.f32 %v1054_v62, %v1053_v60  ;;  %v1056_v2 = vpop.f32.mrb[10].mxu0 }
 0x119   :  { %v1083_v1 = vadd.f32 %v1082_v63, %v1081_v61  ;;  %v1084_v3 = vpop.f32.mrb[10].mxu1  ;;  %v1057_v4 = vpop.f32.mrb[11].mxu0 }
 0x11a   :  { %v1085_v5 = vpop.f32.mrb[11].mxu1  ;;  %v759_v6 = vadd.f32 %v1055_v0, %v710_v43  ;;  %v1058_v7 = vadd.f32 %v1057_v4, %v1056_v2 }
 0x11b   :  { %v1086_v8 = vadd.f32 %v1085_v5, %v1084_v3 }
 0x11c   :  { %v808_v10 = vadd.f32 %v1083_v1, %v759_v6  ;;  %v762_v11 = vadd.f32 %v1058_v7, %v713_v45 }
 0x11e   :  { %v829_v13 = vmul.f32 %v960_v9, %v808_v10  ;;  %v811_v14 = vadd.f32 %v1086_v8, %v762_v11  ;;  %v1059_v15 = vpop.f32.mrb[12].mxu0 }
 0x11f   :  { %v1087_v16 = vpop.f32.mrb[12].mxu1  ;;  %v1060_v17 = vpop.f32.mrb[13].mxu0 }
 0x120   :  { %v1088_v18 = vpop.f32.mrb[13].mxu1  ;;  %v840_v19 = vadd.f32 %v961_v12, %v829_v13  ;;  %v830_v20 = vmul.f32 %v960_v9, %v811_v14  ;;  %v1061_v21 = vadd.f32 %v1060_v17, %v1059_v15  ;;  %v1062_v23 = vpop.f32.mrb[14].mxu0 }
 0x121   :  { %v1089_v22 = vadd.f32 %v1088_v18, %v1087_v16  ;;  %v1090_v24 = vpop.f32.mrb[14].mxu1  ;;  %v1063_v25 = vpop.f32.mrb[15].mxu0 }
 0x122   :  { %v1091_v26 = vpop.f32.mrb[15].mxu1  ;;  %v848_v27 = vmul.f32 0.2, %v840_v19  ;;  %v841_v28 = vadd.f32 %v961_v12, %v830_v20  ;;  %v767_v29 = vadd.f32 %v1061_v21, %v718_v57  ;;  %vm844_vm0 = vcmp.gt.f32.partialorder %v840_v19, 0.0 }
 0x123   :  { %v1064_v30 = vadd.f32 %v1063_v25, %v1062_v23  ;;  %v1092_v31 = vadd.f32 %v1091_v26, %v1090_v24 }
 0x124   :  { %vm845_vm1 = vcmp.gt.f32.partialorder %v841_v28, 0.0  ;;  %v849_v32 = vmul.f32 0.2, %v841_v28  ;;  %v816_v33 = vadd.f32 %v1089_v22, %v767_v29  ;;  %v852_v35 = vsel %vm844_vm0, %v840_v19, %v848_v27 }
 0x125   :  { %v770_v34 = vadd.f32 %v1064_v30, %v721_v59 }
 0x126   :  { %v853_v36 = vsel %vm845_vm1, %v841_v28, %v849_v32  ;;  %v831_v37 = vmul.f32 %v960_v9, %v816_v33 }
 0x127   :  { %v973_v38 = vpack.c.bf16 %v853_v36, %v852_v35  ;;  %v819_v39 = vadd.f32 %v1092_v31, %v770_v34 }
 0x128   :  { %v842_v40 = vadd.f32 %v961_v12, %v831_v37 }
 0x129   :  { %974 = vst [vmem:[%s1438_s4] sm:$0xff] %v973_v38   ;;  %v832_v41 = vmul.f32 %v960_v9, %v819_v39 }
 0x12a   :  { %v850_v42 = vmul.f32 0.2, %v842_v40  ;;  %vm846_vm2 = vcmp.gt.f32.partialorder %v842_v40, 0.0 }
 0x12b   :  { %v843_v43 = vadd.f32 %v961_v12, %v832_v41 }
 0x12c   :  { %v854_v45 = vsel %vm846_vm2, %v842_v40, %v850_v42 }
 0x12d   :  { %vm847_vm3 = vcmp.gt.f32.partialorder %v843_v43, 0.0  ;;  %v851_v44 = vmul.f32 0.2, %v843_v43 }
 0x12f   :  { %v855_v46 = vsel %vm847_vm3, %v843_v43, %v851_v44 }
 0x130   :  { %v978_v47 = vpack.c.bf16 %v855_v46, %v854_v45 }
 0x132   :  { %980 = vst [vmem:[%s1438_s4 + $0x8] sm:$0xff] %v978_v47  }

// kernel: encoder_forward.12
= control target key start
LH: loop header
LB: loop body
LE: loop exit
PB: predicated region body
PF: predicated region fallthrough
CT: control target
= control target key end

     0   :  { %s3554_s1 = inlined_call_operand.vmem [shape: bf16[2048,256], index: 1, kind: input, shape index: {}]   ;;  %s3555_s0 = inlined_call_operand.vmem [shape: bf16[8,2048], index: 0, kind: input, shape index: {}]   ;;  %s3556_s2 = inlined_call_operand.vmem [shape: f32[1,256], index: 2, kind: input, shape index: {}]   ;;  %s3557_s3 = inlined_call_operand.vmem [shape: f32[1,256], index: 3, kind: input, shape index: {}]   ;;  %s3558_s4 = inlined_call_operand.vmem [shape: bf16[8,256], index: 4, kind: output, shape index: {}]  }
   0x1   :  { %v2292_v0 = vld [vmem:[%s3554_s1 + $0x4] ss:$8 sps:$4 sm:$0xff]   ;;  %v2296_v2 = vld [vmem:[%s3554_s1] ss:$8 sps:$4 sm:$0xff]   ;;  %v2298_v4 = vld [vmem:[%s3554_s1 + $0x14] ss:$8 sps:$4 sm:$0xff]  }
   0x2   :  { %v2294_v1 = vld [vmem:[%s3554_s1 + $0x404] ss:$8 sps:$4 sm:$0xff]   ;;  %1617 = vmatprep.subr.bf16.mxu1 %v2292_v0  ;;  %v2297_v3 = vld [vmem:[%s3554_s1 + $0x400] ss:$8 sps:$4 sm:$0xff]   ;;  %v2300_v5 = vld [vmem:[%s3554_s1 + $0x414] ss:$8 sps:$4 sm:$0xff]  }
   0x3   :  { %1781 = vmatprep.subr.bf16.mxu0 %v2294_v1  ;;  %1618 = vmatpush1.bf16.msra.mxu1 %v2296_v2  ;;  %v2302_v6 = vld [vmem:[%s3554_s1 + $0x10] ss:$8 sps:$4 sm:$0xff]   ;;  %v2304_v8 = vld [vmem:[%s3554_s1 + $0x24] ss:$8 sps:$4 sm:$0xff]   ;;  %v2308_v10 = vld [vmem:[%s3554_s1 + $0x20] ss:$8 sps:$4 sm:$0xff]  }
   0x4   :  { %1782 = vmatpush1.bf16.msra.mxu0 %v2297_v3  ;;  %1619 = vmatprep.subr.bf16.mxu1 %v2298_v4  ;;  %v2303_v7 = vld [vmem:[%s3554_s1 + $0x410] ss:$8 sps:$4 sm:$0xff]   ;;  %v2306_v9 = vld [vmem:[%s3554_s1 + $0x424] ss:$8 sps:$4 sm:$0xff]   ;;  %v2309_v11 = vld [vmem:[%s3554_s1 + $0x420] ss:$8 sps:$4 sm:$0xff]  }
   0x5   :  { %1783 = vmatprep.subr.bf16.mxu0 %v2300_v5  ;;  %v2310_v12 = vld [vmem:[%s3554_s1 + $0x34] ss:$8 sps:$4 sm:$0xff]   ;;  %v2314_v14 = vld [vmem:[%s3554_s1 + $0x30] ss:$8 sps:$4 sm:$0xff]   ;;  %v2316_v16 = vld [vmem:[%s3554_s1 + $0x44] ss:$8 sps:$4 sm:$0xff]  }
   0x6   :  { %v2312_v13 = vld [vmem:[%s3554_s1 + $0x434] ss:$8 sps:$4 sm:$0xff]   ;;  %v2315_v15 = vld [vmem:[%s3554_s1 + $0x430] ss:$8 sps:$4 sm:$0xff]   ;;  %v2318_v17 = vld [vmem:[%s3554_s1 + $0x444] ss:$8 sps:$4 sm:$0xff]  }
   0x7   :  { %1620 = vmatpush1.bf16.msra.mxu1 %v2302_v6  ;;  %v2320_v18 = vld [vmem:[%s3554_s1 + $0x40] ss:$8 sps:$4 sm:$0xff]   ;;  %v2322_v20 = vld [vmem:[%s3554_s1 + $0x54] ss:$8 sps:$4 sm:$0xff]   ;;  %v2326_v22 = vld [vmem:[%s3554_s1 + $0x50] ss:$8 sps:$4 sm:$0xff]  }
   0x8   :  { %1784 = vmatpush1.bf16.msra.mxu0 %v2303_v7  ;;  %1621 = vmatprep.subr.bf16.mxu1 %v2304_v8  ;;  %v2321_v19 = vld [vmem:[%s3554_s1 + $0x440] ss:$8 sps:$4 sm:$0xff]   ;;  %v2324_v21 = vld [vmem:[%s3554_s1 + $0x454] ss:$8 sps:$4 sm:$0xff]   ;;  %v2327_v23 = vld [vmem:[%s3554_s1 + $0x450] ss:$8 sps:$4 sm:$0xff]  }
   0x9   :  { %1785 = vmatprep.subr.bf16.mxu0 %v2306_v9  ;;  %v2328_v24 = vld [vmem:[%s3554_s1 + $0x64] ss:$8 sps:$4 sm:$0xff]   ;;  %v2332_v26 = vld [vmem:[%s3554_s1 + $0x60] ss:$8 sps:$4 sm:$0xff]   ;;  %v2334_v28 = vld [vmem:[%s3554_s1 + $0x74] ss:$8 sps:$4 sm:$0xff]  }
   0xa   :  { %v2330_v25 = vld [vmem:[%s3554_s1 + $0x464] ss:$8 sps:$4 sm:$0xff]   ;;  %v2333_v27 = vld [vmem:[%s3554_s1 + $0x460] ss:$8 sps:$4 sm:$0xff]   ;;  %v2336_v29 = vld [vmem:[%s3554_s1 + $0x474] ss:$8 sps:$4 sm:$0xff]  }
   0xb   :  { %1622 = vmatpush1.bf16.msra.mxu1 %v2308_v10  ;;  %v2338_v30 = vld [vmem:[%s3554_s1 + $0x70] ss:$8 sps:$4 sm:$0xff]   ;;  %v2340_v32 = vld [vmem:[%s3554_s1 + $0x84] ss:$8 sps:$4 sm:$0xff]   ;;  %v2344_v34 = vld [vmem:[%s3554_s1 + $0x80] ss:$8 sps:$4 sm:$0xff]  }
   0xc   :  { %1786 = vmatpush1.bf16.msra.mxu0 %v2309_v11  ;;  %1623 = vmatprep.subr.bf16.mxu1 %v2310_v12  ;;  %v2339_v31 = vld [vmem:[%s3554_s1 + $0x470] ss:$8 sps:$4 sm:$0xff]   ;;  %v2342_v33 = vld [vmem:[%s3554_s1 + $0x484] ss:$8 sps:$4 sm:$0xff]   ;;  %v2345_v35 = vld [vmem:[%s3554_s1 + $0x480] ss:$8 sps:$4 sm:$0xff]  }
   0xd   :  { %1787 = vmatprep.subr.bf16.mxu0 %v2312_v13  ;;  %v2346_v36 = vld [vmem:[%s3554_s1 + $0x94] ss:$8 sps:$4 sm:$0xff]   ;;  %v2350_v38 = vld [vmem:[%s3554_s1 + $0x90] ss:$8 sps:$4 sm:$0xff]   ;;  %v2352_v40 = vld [vmem:[%s3554_s1 + $0xa4] ss:$8 sps:$4 sm:$0xff]  }
   0xe   :  { %v2348_v37 = vld [vmem:[%s3554_s1 + $0x494] ss:$8 sps:$4 sm:$0xff]   ;;  %v2351_v39 = vld [vmem:[%s3554_s1 + $0x490] ss:$8 sps:$4 sm:$0xff]   ;;  %v2354_v41 = vld [vmem:[%s3554_s1 + $0x4a4] ss:$8 sps:$4 sm:$0xff]  }
   0xf   :  { %1624 = vmatpush1.bf16.msra.mxu1 %v2314_v14  ;;  %v2356_v42 = vld [vmem:[%s3554_s1 + $0xa0] ss:$8 sps:$4 sm:$0xff]   ;;  %v2358_v44 = vld [vmem:[%s3554_s1 + $0xb4] ss:$8 sps:$4 sm:$0xff]   ;;  %v2362_v47 = vld [vmem:[%s3554_s1 + $0xb0] ss:$8 sps:$4 sm:$0xff]  }
  0x10   :  { %1788 = vmatpush1.bf16.msra.mxu0 %v2315_v15  ;;  %1625 = vmatprep.subr.bf16.mxu1 %v2316_v16  ;;  %v2357_v43 = vld [vmem:[%s3554_s1 + $0x4a0] ss:$8 sps:$4 sm:$0xff]   ;;  %v2360_v45 = vld [vmem:[%s3554_s1 + $0x4b4] ss:$8 sps:$4 sm:$0xff]   ;;  %v2363_v49 = vld [vmem:[%s3554_s1 + $0x4b0] ss:$8 sps:$4 sm:$0xff]  }
  0x11   :  { %1789 = vmatprep.subr.bf16.mxu0 %v2318_v17  ;;  %v17_v46 = vld [vmem:[%s3555_s0] sm:$0xff]  ;;  %v2370_v56 = vld [vmem:[%s3554_s1 + $0xd4] ss:$8 sps:$4 sm:$0xff]   ;;  %v2374_v58 = vld [vmem:[%s3554_s1 + $0xd0] ss:$8 sps:$4 sm:$0xff]  }
  0x12   :  { %v1993_v48 = vcombine.high %v17_v46, %v17_v46  ;;  %v21_v50 = vld [vmem:[%s3555_s0 + $0x20] sm:$0xff]  ;;  %v2372_v57 = vld [vmem:[%s3554_s1 + $0x4d4] ss:$8 sps:$4 sm:$0xff]   ;;  %v2375_v59 = vld [vmem:[%s3554_s1 + $0x4d0] ss:$8 sps:$4 sm:$0xff]   ;;  %v1992_v6 = vcombine.low %v17_v46, %v17_v46 }
  0x13   :  { %1626 = vmatpush1.bf16.msra.mxu1 %v2320_v18  ;;  %v2364_v51 = vld [vmem:[%s3554_s1 + $0xc4] ss:$8 sps:$4 sm:$0xff]   ;;  %v2001_v53 = vcombine.high %v21_v50, %v21_v50  ;;  %v2368_v54 = vld [vmem:[%s3554_s1 + $0xc0] ss:$8 sps:$4 sm:$0xff]   ;;  %v2382_v0 = vld [vmem:[%s3554_s1 + $0xf4] ss:$8 sps:$4 sm:$0xff]   ;;  %v2000_v7 = vcombine.low %v21_v50, %v21_v50 }
  0x14   :  { %1790 = vmatpush1.bf16.msra.mxu0 %v2321_v19  ;;  %1627 = vmatprep.subr.bf16.mxu1 %v2322_v20  ;;  %v2366_v52 = vld [vmem:[%s3554_s1 + $0x4c4] ss:$8 sps:$4 sm:$0xff]   ;;  %v2369_v55 = vld [vmem:[%s3554_s1 + $0x4c0] ss:$8 sps:$4 sm:$0xff]   ;;  %v2384_v1 = vld [vmem:[%s3554_s1 + $0x4f4] ss:$8 sps:$4 sm:$0xff]  }
  0x15   :  { %1791 = vmatprep.subr.bf16.mxu0 %v2324_v21  ;;  %1649 = vmatprep.mubr.bf16.mxu1 %v1993_v48  ;;  %v2376_v60 = vld [vmem:[%s3554_s1 + $0xe4] ss:$8 sps:$4 sm:$0xff]   ;;  %v2380_v62 = vld [vmem:[%s3554_s1 + $0xe0] ss:$8 sps:$4 sm:$0xff]   ;;  %v2386_v2 = vld [vmem:[%s3554_s1 + $0xf0] ss:$8 sps:$4 sm:$0xff]  }
  0x16   :  { %1813 = vmatprep.mubr.bf16.mxu0 %v2001_v53  ;;  %v2378_v61 = vld [vmem:[%s3554_s1 + $0x4e4] ss:$8 sps:$4 sm:$0xff]   ;;  %v2381_v63 = vld [vmem:[%s3554_s1 + $0x4e0] ss:$8 sps:$4 sm:$0xff]   ;;  %v2387_v3 = vld [vmem:[%s3554_s1 + $0x4f0] ss:$8 sps:$4 sm:$0xff]  }
  0x17   :  { %1628 = vmatpush1.bf16.msra.mxu1 %v2326_v22  ;;  %v2392_v4 = vld [vmem:[%s3554_s1 + $0x104] ss:$8 sps:$4 sm:$0xff]   ;;  %v2390_v8 = vld [vmem:[%s3554_s1 + $0x100] ss:$8 sps:$4 sm:$0xff]   ;;  %v2400_v10 = vld [vmem:[%s3554_s1 + $0x114] ss:$8 sps:$4 sm:$0xff]  }
  0x18   :  { %1792 = vmatpush1.bf16.msra.mxu0 %v2327_v23  ;;  %1629 = vmatprep.subr.bf16.mxu1 %v2328_v24  ;;  %v2397_v5 = vld [vmem:[%s3554_s1 + $0x504] ss:$8 sps:$4 sm:$0xff]   ;;  %v2395_v9 = vld [vmem:[%s3554_s1 + $0x500] ss:$8 sps:$4 sm:$0xff]   ;;  %v2403_v11 = vld [vmem:[%s3554_s1 + $0x514] ss:$8 sps:$4 sm:$0xff]  }
  0x19   :  { %1793 = vmatprep.subr.bf16.mxu0 %v2330_v25  ;;  %v2398_v12 = vld [vmem:[%s3554_s1 + $0x110] ss:$8 sps:$4 sm:$0xff]   ;;  %v2406_v14 = vld [vmem:[%s3554_s1 + $0x124] ss:$8 sps:$4 sm:$0xff]   ;;  %v2404_v16 = vld [vmem:[%s3554_s1 + $0x120] ss:$8 sps:$4 sm:$0xff]  }
  0x1a   :  { %v2401_v13 = vld [vmem:[%s3554_s1 + $0x510] ss:$8 sps:$4 sm:$0xff]   ;;  %v2409_v15 = vld [vmem:[%s3554_s1 + $0x524] ss:$8 sps:$4 sm:$0xff]   ;;  %v2407_v17 = vld [vmem:[%s3554_s1 + $0x520] ss:$8 sps:$4 sm:$0xff]  }
  0x1b   :  { %1630 = vmatpush1.bf16.msra.mxu1 %v2332_v26  ;;  %v2412_v18 = vld [vmem:[%s3554_s1 + $0x134] ss:$8 sps:$4 sm:$0xff]   ;;  %v2410_v20 = vld [vmem:[%s3554_s1 + $0x130] ss:$8 sps:$4 sm:$0xff]   ;;  %v2418_v22 = vld [vmem:[%s3554_s1 + $0x144] ss:$8 sps:$4 sm:$0xff]  }
  0x1c   :  { %1794 = vmatpush1.bf16.msra.mxu0 %v2333_v27  ;;  %1631 = vmatprep.subr.bf16.mxu1 %v2334_v28  ;;  %v2415_v19 = vld [vmem:[%s3554_s1 + $0x534] ss:$8 sps:$4 sm:$0xff]   ;;  %v2413_v21 = vld [vmem:[%s3554_s1 + $0x530] ss:$8 sps:$4 sm:$0xff]   ;;  %v2421_v23 = vld [vmem:[%s3554_s1 + $0x544] ss:$8 sps:$4 sm:$0xff]  }
  0x1d   :  { %1795 = vmatprep.subr.bf16.mxu0 %v2336_v29  ;;  %v2416_v24 = vld [vmem:[%s3554_s1 + $0x140] ss:$8 sps:$4 sm:$0xff]   ;;  %v2424_v26 = vld [vmem:[%s3554_s1 + $0x154] ss:$8 sps:$4 sm:$0xff]   ;;  %v2422_v28 = vld [vmem:[%s3554_s1 + $0x150] ss:$8 sps:$4 sm:$0xff]  }
  0x1e   :  { %v2419_v25 = vld [vmem:[%s3554_s1 + $0x540] ss:$8 sps:$4 sm:$0xff]   ;;  %v2427_v27 = vld [vmem:[%s3554_s1 + $0x554] ss:$8 sps:$4 sm:$0xff]   ;;  %v2425_v29 = vld [vmem:[%s3554_s1 + $0x550] ss:$8 sps:$4 sm:$0xff]  }
  0x1f   :  { %1632 = vmatpush1.bf16.msra.mxu1 %v2338_v30  ;;  %v2430_v30 = vld [vmem:[%s3554_s1 + $0x164] ss:$8 sps:$4 sm:$0xff]   ;;  %v2448_v46 = vld [vmem:[%s3554_s1 + $0x194] ss:$8 sps:$4 sm:$0xff]   ;;  %v2446_v48 = vld [vmem:[%s3554_s1 + $0x190] ss:$8 sps:$4 sm:$0xff]  }
  0x20   :  { %1796 = vmatpush1.bf16.msra.mxu0 %v2339_v31  ;;  %1633 = vmatprep.subr.bf16.mxu1 %v2340_v32  ;;  %v2433_v31 = vld [vmem:[%s3554_s1 + $0x564] ss:$8 sps:$4 sm:$0xff]   ;;  %v2455_v53 = vld [vmem:[%s3554_s1 + $0x5a0] ss:$8 sps:$4 sm:$0xff]  }
  0x21   :  { %1797 = vmatprep.subr.bf16.mxu0 %v2342_v33  ;;  %v2996_v32 = vld [vmem:[%s3555_s0 + $0x8] sm:$0xff] }
  0x22   :  { %v2428_v33 = vld [vmem:[%s3554_s1 + $0x160] ss:$8 sps:$4 sm:$0xff]   ;;  %v2454_v50 = vld [vmem:[%s3554_s1 + $0x1a4] ss:$8 sps:$4 sm:$0xff]  }
  0x23   :  { %1634 = vmatpush1.bf16.msra.mxu1 %v2344_v34  ;;  %v2431_v34 = vld [vmem:[%s3554_s1 + $0x560] ss:$8 sps:$4 sm:$0xff]  }
  0x24   :  { %1798 = vmatpush1.bf16.msra.mxu0 %v2345_v35  ;;  %1635 = vmatprep.subr.bf16.mxu1 %v2346_v36  ;;  %v1995_v35 = vcombine.high %v2996_v32, %v2996_v32  ;;  %v3009_v36 = vld [vmem:[%s3555_s0 + $0x28] sm:$0xff] }
  0x25   :  { %1799 = vmatprep.subr.bf16.mxu0 %v2348_v37  ;;  %v2436_v37 = vld [vmem:[%s3554_s1 + $0x174] ss:$8 sps:$4 sm:$0xff]  }
  0x27   :  { %1636 = vmatpush1.bf16.msra.mxu1 %v2350_v38  ;;  %v2003_v38 = vcombine.high %v3009_v36, %v3009_v36 }
  0x28   :  { %1800 = vmatpush1.bf16.msra.mxu0 %v2351_v39  ;;  %1637 = vmatprep.subr.bf16.mxu1 %v2352_v40  ;;  %v2439_v39 = vld [vmem:[%s3554_s1 + $0x574] ss:$8 sps:$4 sm:$0xff]   ;;  %v2434_v40 = vld [vmem:[%s3554_s1 + $0x170] ss:$8 sps:$4 sm:$0xff]  }
  0x29   :  { %1801 = vmatprep.subr.bf16.mxu0 %v2354_v41  ;;  %v2437_v41 = vld [vmem:[%s3554_s1 + $0x570] ss:$8 sps:$4 sm:$0xff]  }
  0x2b   :  { %1638 = vmatpush1.bf16.msra.mxu1 %v2356_v42  ;;  %v2442_v42 = vld [vmem:[%s3554_s1 + $0x184] ss:$8 sps:$4 sm:$0xff]  }
  0x2c   :  { %1802 = vmatpush1.bf16.msra.mxu0 %v2357_v43  ;;  %1639 = vmatprep.subr.bf16.mxu1 %v2358_v44  ;;  %v2445_v43 = vld [vmem:[%s3554_s1 + $0x584] ss:$8 sps:$4 sm:$0xff]   ;;  %v2440_v44 = vld [vmem:[%s3554_s1 + $0x180] ss:$8 sps:$4 sm:$0xff]  }
  0x2d   :  { %1803 = vmatprep.subr.bf16.mxu0 %v2360_v45  ;;  %v2443_v45 = vld [vmem:[%s3554_s1 + $0x580] ss:$8 sps:$4 sm:$0xff]  }
  0x2f   :  { %1640 = vmatpush1.bf16.msra.mxu1 %v2362_v47  ;;  %v2451_v47 = vld [vmem:[%s3554_s1 + $0x594] ss:$8 sps:$4 sm:$0xff]  }
  0x30   :  { %1804 = vmatpush1.bf16.msra.mxu0 %v2363_v49  ;;  %1641 = vmatprep.subr.bf16.mxu1 %v2364_v51  ;;  %v2449_v49 = vld [vmem:[%s3554_s1 + $0x590] ss:$8 sps:$4 sm:$0xff]   ;;  %v2457_v51 = vld [vmem:[%s3554_s1 + $0x5a4] ss:$8 sps:$4 sm:$0xff]  }
  0x31   :  { %1805 = vmatprep.subr.bf16.mxu0 %v2366_v52  ;;  %v2452_v52 = vld [vmem:[%s3554_s1 + $0x1a0] ss:$8 sps:$4 sm:$0xff]  }
  0x33   :  { %1642 = vmatpush1.bf16.msra.mxu1 %v2368_v54  ;;  %v2460_v54 = vld [vmem:[%s3554_s1 + $0x1b4] ss:$8 sps:$4 sm:$0xff]  }
  0x34   :  { %1806 = vmatpush1.bf16.msra.mxu0 %v2369_v55  ;;  %1643 = vmatprep.subr.bf16.mxu1 %v2370_v56  ;;  %v2463_v55 = vld [vmem:[%s3554_s1 + $0x5b4] ss:$8 sps:$4 sm:$0xff]   ;;  %v2458_v56 = vld [vmem:[%s3554_s1 + $0x1b0] ss:$8 sps:$4 sm:$0xff]  }
  0x35   :  { %1807 = vmatprep.subr.bf16.mxu0 %v2372_v57  ;;  %v2461_v57 = vld [vmem:[%s3554_s1 + $0x5b0] ss:$8 sps:$4 sm:$0xff]  }
  0x37   :  { %1644 = vmatpush1.bf16.msra.mxu1 %v2374_v58  ;;  %v2466_v58 = vld [vmem:[%s3554_s1 + $0x1c4] ss:$8 sps:$4 sm:$0xff]  }
  0x38   :  { %1808 = vmatpush1.bf16.msra.mxu0 %v2375_v59  ;;  %1645 = vmatprep.subr.bf16.mxu1 %v2376_v60  ;;  %v2469_v59 = vld [vmem:[%s3554_s1 + $0x5c4] ss:$8 sps:$4 sm:$0xff]   ;;  %v2464_v60 = vld [vmem:[%s3554_s1 + $0x1c0] ss:$8 sps:$4 sm:$0xff]  }
  0x39   :  { %1809 = vmatprep.subr.bf16.mxu0 %v2378_v61  ;;  %v2467_v61 = vld [vmem:[%s3554_s1 + $0x5c0] ss:$8 sps:$4 sm:$0xff]  }
  0x3b   :  { %1646 = vmatpush1.bf16.msra.mxu1 %v2380_v62  ;;  %v2472_v62 = vld [vmem:[%s3554_s1 + $0x1d4] ss:$8 sps:$4 sm:$0xff]  }
  0x3c   :  { %1810 = vmatpush1.bf16.msra.mxu0 %v2381_v63  ;;  %1647 = vmatprep.subr.bf16.mxu1 %v2382_v0  ;;  %v2475_v63 = vld [vmem:[%s3554_s1 + $0x5d4] ss:$8 sps:$4 sm:$0xff]   ;;  %v2470_v0 = vld [vmem:[%s3554_s1 + $0x1d0] ss:$8 sps:$4 sm:$0xff]  }
  0x3d   :  { %1811 = vmatprep.subr.bf16.mxu0 %v2384_v1  ;;  %v2473_v1 = vld [vmem:[%s3554_s1 + $0x5d0] ss:$8 sps:$4 sm:$0xff]  }
  0x3f   :  { %1648 = vmatpush1.bf16.msra.mxu1 %v2386_v2  ;;  %v2478_v2 = vld [vmem:[%s3554_s1 + $0x1e4] ss:$8 sps:$4 sm:$0xff]  }
  0x40   :  { %1812 = vmatpush1.bf16.msra.mxu0 %v2387_v3  ;;  %1658 = vmatprep.subr.bf16.mxu1 %v2392_v4  ;;  %v2481_v3 = vld [vmem:[%s3554_s1 + $0x5e4] ss:$8 sps:$4 sm:$0xff]   ;;  %v2476_v4 = vld [vmem:[%s3554_s1 + $0x1e0] ss:$8 sps:$4 sm:$0xff]  }
  0x41   :  { %1822 = vmatprep.subr.bf16.mxu0 %v2397_v5  ;;  %v2479_v5 = vld [vmem:[%s3554_s1 + $0x5e0] ss:$8 sps:$4 sm:$0xff]  }
  0x42   :  { %1650 = vmatmul.mubr.bf16.vlgmr.msra.gmra.mrb[0].mxu1 %v1992_v6  ;;  %v2484_v6 = vld [vmem:[%s3554_s1 + $0x1f4] ss:$8 sps:$4 sm:$0xff]  }
  0x43   :  { %1814 = vmatmul.mubr.bf16.vlgmr.msra.gmra.mrb[0].mxu0 %v2000_v7  ;;  %1659 = vmatpush1.bf16.msra.mxu1 %v2390_v8  ;;  %v2487_v7 = vld [vmem:[%s3554_s1 + $0x5f4] ss:$8 sps:$4 sm:$0xff]   ;;  %v2482_v8 = vld [vmem:[%s3554_s1 + $0x1f0] ss:$8 sps:$4 sm:$0xff]  }
  0x44   :  { %1823 = vmatpush1.bf16.msra.mxu0 %v2395_v9  ;;  %1660 = vmatprep.subr.bf16.mxu1 %v2400_v10  ;;  %v2485_v9 = vld [vmem:[%s3554_s1 + $0x5f0] ss:$8 sps:$4 sm:$0xff]   ;;  %v2492_v10 = vld [vmem:[%s3554_s1 + $0x204] ss:$8 sps:$4 sm:$0xff]  }
  0x45   :  { %1824 = vmatprep.subr.bf16.mxu0 %v2403_v11  ;;  %1690 = vmatprep.mubr.bf16.mxu1 %v1995_v35  ;;  %v2497_v11 = vld [vmem:[%s3554_s1 + $0x604] ss:$8 sps:$4 sm:$0xff]   ;;  %v2519_v35 = vld [vmem:[%s3554_s1 + $0x640] ss:$8 sps:$4 sm:$0xff]  }
  0x46   :  { %1854 = vmatprep.mubr.bf16.mxu0 %v2003_v38  ;;  %v2522_v38 = vld [vmem:[%s3554_s1 + $0x250] ss:$8 sps:$4 sm:$0xff]  }
  0x47   :  { %1661 = vmatpush1.bf16.msra.mxu1 %v2398_v12  ;;  %v1994_v12 = vcombine.low %v2996_v32, %v2996_v32  ;;  %v2518_v32 = vld [vmem:[%s3554_s1 + $0x244] ss:$8 sps:$4 sm:$0xff]  }
  0x48   :  { %1825 = vmatpush1.bf16.msra.mxu0 %v2401_v13  ;;  %1662 = vmatprep.subr.bf16.mxu1 %v2406_v14  ;;  %v2490_v13 = vld [vmem:[%s3554_s1 + $0x200] ss:$8 sps:$4 sm:$0xff]   ;;  %v2002_v14 = vcombine.low %v3009_v36, %v3009_v36  ;;  %v2524_v36 = vld [vmem:[%s3554_s1 + $0x254] ss:$8 sps:$4 sm:$0xff]  }
  0x49   :  { %1826 = vmatprep.subr.bf16.mxu0 %v2409_v15  ;;  %v2495_v15 = vld [vmem:[%s3554_s1 + $0x600] ss:$8 sps:$4 sm:$0xff]  }
  0x4b   :  { %1663 = vmatpush1.bf16.msra.mxu1 %v2404_v16  ;;  %v2500_v16 = vld [vmem:[%s3554_s1 + $0x214] ss:$8 sps:$4 sm:$0xff]  }
  0x4c   :  { %1827 = vmatpush1.bf16.msra.mxu0 %v2407_v17  ;;  %1664 = vmatprep.subr.bf16.mxu1 %v2412_v18  ;;  %v2503_v17 = vld [vmem:[%s3554_s1 + $0x614] ss:$8 sps:$4 sm:$0xff]  }
  0x4d   :  { %1828 = vmatprep.subr.bf16.mxu0 %v2415_v19  ;;  %v3146_v18 = vld [vmem:[%s3555_s0 + $0x10] sm:$0xff] }
  0x4e   :  { %v1997_v19 = vcombine.high %v3146_v18, %v3146_v18 }
  0x4f   :  { %1665 = vmatpush1.bf16.msra.mxu1 %v2410_v20  ;;  %v3153_v20 = vld [vmem:[%s3555_s0 + $0x30] sm:$0xff] }
  0x50   :  { %1829 = vmatpush1.bf16.msra.mxu0 %v2413_v21  ;;  %1666 = vmatprep.subr.bf16.mxu1 %v2418_v22  ;;  %v2498_v21 = vld [vmem:[%s3554_s1 + $0x210] ss:$8 sps:$4 sm:$0xff]  }
  0x51   :  { %1830 = vmatprep.subr.bf16.mxu0 %v2421_v23  ;;  %v2501_v22 = vld [vmem:[%s3554_s1 + $0x610] ss:$8 sps:$4 sm:$0xff]   ;;  %v2005_v23 = vcombine.high %v3153_v20, %v3153_v20 }
  0x53   :  { %1667 = vmatpush1.bf16.msra.mxu1 %v2416_v24  ;;  %v2506_v24 = vld [vmem:[%s3554_s1 + $0x224] ss:$8 sps:$4 sm:$0xff]  }
  0x54   :  { %1831 = vmatpush1.bf16.msra.mxu0 %v2419_v25  ;;  %1668 = vmatprep.subr.bf16.mxu1 %v2424_v26  ;;  %v2509_v25 = vld [vmem:[%s3554_s1 + $0x624] ss:$8 sps:$4 sm:$0xff]   ;;  %v2504_v26 = vld [vmem:[%s3554_s1 + $0x220] ss:$8 sps:$4 sm:$0xff]  }
  0x55   :  { %1832 = vmatprep.subr.bf16.mxu0 %v2427_v27  ;;  %v2507_v27 = vld [vmem:[%s3554_s1 + $0x620] ss:$8 sps:$4 sm:$0xff]  }
  0x57   :  { %1669 = vmatpush1.bf16.msra.mxu1 %v2422_v28  ;;  %v2512_v28 = vld [vmem:[%s3554_s1 + $0x234] ss:$8 sps:$4 sm:$0xff]  }
  0x58   :  { %1833 = vmatpush1.bf16.msra.mxu0 %v2425_v29  ;;  %1670 = vmatprep.subr.bf16.mxu1 %v2430_v30  ;;  %v2515_v29 = vld [vmem:[%s3554_s1 + $0x634] ss:$8 sps:$4 sm:$0xff]   ;;  %v2510_v30 = vld [vmem:[%s3554_s1 + $0x230] ss:$8 sps:$4 sm:$0xff]  }
  0x59   :  { %1834 = vmatprep.subr.bf16.mxu0 %v2433_v31  ;;  %v2513_v31 = vld [vmem:[%s3554_s1 + $0x630] ss:$8 sps:$4 sm:$0xff]  }
  0x5b   :  { %1671 = vmatpush1.bf16.msra.mxu1 %v2428_v33  ;;  %v2521_v33 = vld [vmem:[%s3554_s1 + $0x644] ss:$8 sps:$4 sm:$0xff]  }
  0x5c   :  { %1835 = vmatpush1.bf16.msra.mxu0 %v2431_v34  ;;  %1672 = vmatprep.subr.bf16.mxu1 %v2436_v37  ;;  %v2516_v34 = vld [vmem:[%s3554_s1 + $0x240] ss:$8 sps:$4 sm:$0xff]   ;;  %v2527_v37 = vld [vmem:[%s3554_s1 + $0x654] ss:$8 sps:$4 sm:$0xff]  }
  0x5d   :  { %1836 = vmatprep.subr.bf16.mxu0 %v2439_v39  ;;  %v2525_v39 = vld [vmem:[%s3554_s1 + $0x650] ss:$8 sps:$4 sm:$0xff]  }
  0x5f   :  { %1673 = vmatpush1.bf16.msra.mxu1 %v2434_v40  ;;  %v2530_v40 = vld [vmem:[%s3554_s1 + $0x264] ss:$8 sps:$4 sm:$0xff]  }
  0x60   :  { %1837 = vmatpush1.bf16.msra.mxu0 %v2437_v41  ;;  %1674 = vmatprep.subr.bf16.mxu1 %v2442_v42  ;;  %v2533_v41 = vld [vmem:[%s3554_s1 + $0x664] ss:$8 sps:$4 sm:$0xff]   ;;  %v2528_v42 = vld [vmem:[%s3554_s1 + $0x260] ss:$8 sps:$4 sm:$0xff]  }
  0x61   :  { %1838 = vmatprep.subr.bf16.mxu0 %v2445_v43  ;;  %v2531_v43 = vld [vmem:[%s3554_s1 + $0x660] ss:$8 sps:$4 sm:$0xff]  }
  0x63   :  { %1675 = vmatpush1.bf16.msra.mxu1 %v2440_v44  ;;  %v2536_v44 = vld [vmem:[%s3554_s1 + $0x274] ss:$8 sps:$4 sm:$0xff]  }
  0x64   :  { %1839 = vmatpush1.bf16.msra.mxu0 %v2443_v45  ;;  %1676 = vmatprep.subr.bf16.mxu1 %v2448_v46  ;;  %v2539_v45 = vld [vmem:[%s3554_s1 + $0x674] ss:$8 sps:$4 sm:$0xff]   ;;  %v2534_v46 = vld [vmem:[%s3554_s1 + $0x270] ss:$8 sps:$4 sm:$0xff]  }
  0x65   :  { %1840 = vmatprep.subr.bf16.mxu0 %v2451_v47  ;;  %v2537_v47 = vld [vmem:[%s3554_s1 + $0x670] ss:$8 sps:$4 sm:$0xff]  }
  0x67   :  { %1677 = vmatpush1.bf16.msra.mxu1 %v2446_v48  ;;  %v2542_v48 = vld [vmem:[%s3554_s1 + $0x284] ss:$8 sps:$4 sm:$0xff]  }
  0x68   :  { %1841 = vmatpush1.bf16.msra.mxu0 %v2449_v49  ;;  %1678 = vmatprep.subr.bf16.mxu1 %v2454_v50  ;;  %v2545_v49 = vld [vmem:[%s3554_s1 + $0x684] ss:$8 sps:$4 sm:$0xff]   ;;  %v2540_v50 = vld [vmem:[%s3554_s1 + $0x280] ss:$8 sps:$4 sm:$0xff]  }
  0x69   :  { %1842 = vmatprep.subr.bf16.mxu0 %v2457_v51  ;;  %v2543_v51 = vld [vmem:[%s3554_s1 + $0x680] ss:$8 sps:$4 sm:$0xff]  }
  0x6b   :  { %1679 = vmatpush1.bf16.msra.mxu1 %v2452_v52  ;;  %v2548_v52 = vld [vmem:[%s3554_s1 + $0x294] ss:$8 sps:$4 sm:$0xff]  }
  0x6c   :  { %1843 = vmatpush1.bf16.msra.mxu0 %v2455_v53  ;;  %1680 = vmatprep.subr.bf16.mxu1 %v2460_v54  ;;  %v2551_v53 = vld [vmem:[%s3554_s1 + $0x694] ss:$8 sps:$4 sm:$0xff]   ;;  %v2546_v54 = vld [vmem:[%s3554_s1 + $0x290] ss:$8 sps:$4 sm:$0xff]  }
  0x6d   :  { %1844 = vmatprep.subr.bf16.mxu0 %v2463_v55  ;;  %v2549_v55 = vld [vmem:[%s3554_s1 + $0x690] ss:$8 sps:$4 sm:$0xff]  }
  0x6f   :  { %1681 = vmatpush1.bf16.msra.mxu1 %v2458_v56  ;;  %v2554_v56 = vld [vmem:[%s3554_s1 + $0x2a4] ss:$8 sps:$4 sm:$0xff]  }
  0x70   :  { %1845 = vmatpush1.bf16.msra.mxu0 %v2461_v57  ;;  %1682 = vmatprep.subr.bf16.mxu1 %v2466_v58  ;;  %v2557_v57 = vld [vmem:[%s3554_s1 + $0x6a4] ss:$8 sps:$4 sm:$0xff]   ;;  %v2552_v58 = vld [vmem:[%s3554_s1 + $0x2a0] ss:$8 sps:$4 sm:$0xff]  }
  0x71   :  { %1846 = vmatprep.subr.bf16.mxu0 %v2469_v59  ;;  %v2555_v59 = vld [vmem:[%s3554_s1 + $0x6a0] ss:$8 sps:$4 sm:$0xff]  }
  0x73   :  { %1683 = vmatpush1.bf16.msra.mxu1 %v2464_v60  ;;  %v2560_v60 = vld [vmem:[%s3554_s1 + $0x2b4] ss:$8 sps:$4 sm:$0xff]  }
  0x74   :  { %1847 = vmatpush1.bf16.msra.mxu0 %v2467_v61  ;;  %1684 = vmatprep.subr.bf16.mxu1 %v2472_v62  ;;  %v2563_v61 = vld [vmem:[%s3554_s1 + $0x6b4] ss:$8 sps:$4 sm:$0xff]   ;;  %v2558_v62 = vld [vmem:[%s3554_s1 + $0x2b0] ss:$8 sps:$4 sm:$0xff]  }
  0x75   :  { %1848 = vmatprep.subr.bf16.mxu0 %v2475_v63  ;;  %v2561_v63 = vld [vmem:[%s3554_s1 + $0x6b0] ss:$8 sps:$4 sm:$0xff]  }
  0x77   :  { %1685 = vmatpush1.bf16.msra.mxu1 %v2470_v0  ;;  %v2566_v0 = vld [vmem:[%s3554_s1 + $0x2c4] ss:$8 sps:$4 sm:$0xff]  }
  0x78   :  { %1849 = vmatpush1.bf16.msra.mxu0 %v2473_v1  ;;  %1686 = vmatprep.subr.bf16.mxu1 %v2478_v2  ;;  %v2569_v1 = vld [vmem:[%s3554_s1 + $0x6c4] ss:$8 sps:$4 sm:$0xff]   ;;  %v2564_v2 = vld [vmem:[%s3554_s1 + $0x2c0] ss:$8 sps:$4 sm:$0xff]  }
  0x79   :  { %1850 = vmatprep.subr.bf16.mxu0 %v2481_v3  ;;  %v2567_v3 = vld [vmem:[%s3554_s1 + $0x6c0] ss:$8 sps:$4 sm:$0xff]  }
  0x7b   :  { %1687 = vmatpush1.bf16.msra.mxu1 %v2476_v4  ;;  %v2572_v4 = vld [vmem:[%s3554_s1 + $0x2d4] ss:$8 sps:$4 sm:$0xff]  }
  0x7c   :  { %1851 = vmatpush1.bf16.msra.mxu0 %v2479_v5  ;;  %1688 = vmatprep.subr.bf16.mxu1 %v2484_v6  ;;  %v2575_v5 = vld [vmem:[%s3554_s1 + $0x6d4] ss:$8 sps:$4 sm:$0xff]   ;;  %v2570_v6 = vld [vmem:[%s3554_s1 + $0x2d0] ss:$8 sps:$4 sm:$0xff]  }
  0x7d   :  { %1852 = vmatprep.subr.bf16.mxu0 %v2487_v7  ;;  %v2573_v7 = vld [vmem:[%s3554_s1 + $0x6d0] ss:$8 sps:$4 sm:$0xff]  }
  0x7f   :  { %1689 = vmatpush1.bf16.msra.mxu1 %v2482_v8  ;;  %v2578_v8 = vld [vmem:[%s3554_s1 + $0x2e4] ss:$8 sps:$4 sm:$0xff]  }
  0x80   :  { %1853 = vmatpush1.bf16.msra.mxu0 %v2485_v9  ;;  %1699 = vmatprep.subr.bf16.mxu1 %v2492_v10  ;;  %v2581_v9 = vld [vmem:[%s3554_s1 + $0x6e4] ss:$8 sps:$4 sm:$0xff]   ;;  %v2576_v10 = vld [vmem:[%s3554_s1 + $0x2e0] ss:$8 sps:$4 sm:$0xff]  }
  0x81   :  { %1863 = vmatprep.subr.bf16.mxu0 %v2497_v11  ;;  %v2579_v11 = vld [vmem:[%s3554_s1 + $0x6e0] ss:$8 sps:$4 sm:$0xff]  }
  0x82   :  { %1691 = vmatmul.mubr.bf16.vlgmr.msra.gmra.mrb[0].mxu1 %v1994_v12  ;;  %v2584_v12 = vld [vmem:[%s3554_s1 + $0x2f4] ss:$8 sps:$4 sm:$0xff]  }
  0x83   :  { %1855 = vmatmul.mubr.bf16.vlgmr.msra.gmra.mrb[0].mxu0 %v2002_v14  ;;  %1700 = vmatpush1.bf16.msra.mxu1 %v2490_v13  ;;  %v2587_v13 = vld [vmem:[%s3554_s1 + $0x6f4] ss:$8 sps:$4 sm:$0xff]   ;;  %v2582_v14 = vld [vmem:[%s3554_s1 + $0x2f0] ss:$8 sps:$4 sm:$0xff]  }
  0x84   :  { %1864 = vmatpush1.bf16.msra.mxu0 %v2495_v15  ;;  %1701 = vmatprep.subr.bf16.mxu1 %v2500_v16  ;;  %v2585_v15 = vld [vmem:[%s3554_s1 + $0x6f0] ss:$8 sps:$4 sm:$0xff]   ;;  %v2592_v16 = vld [vmem:[%s3554_s1 + $0x304] ss:$8 sps:$4 sm:$0xff]  }
  0x85   :  { %1865 = vmatprep.subr.bf16.mxu0 %v2503_v17  ;;  %1731 = vmatprep.mubr.bf16.mxu1 %v1997_v19  ;;  %v2597_v17 = vld [vmem:[%s3554_s1 + $0x704] ss:$8 sps:$4 sm:$0xff]   ;;  %v1996_v19 = vcombine.low %v3146_v18, %v3146_v18  ;;  %v2595_v18 = vld [vmem:[%s3554_s1 + $0x700] ss:$8 sps:$4 sm:$0xff]  }
  0x86   :  { %1895 = vmatprep.mubr.bf16.mxu0 %v2005_v23  ;;  %v3349_v23 = vld [vmem:[%s3555_s0 + $0x38] sm:$0xff] }
  0x87   :  { %1702 = vmatpush1.bf16.msra.mxu1 %v2498_v21  ;;  %v2004_v21 = vcombine.low %v3153_v20, %v3153_v20  ;;  %v2600_v20 = vld [vmem:[%s3554_s1 + $0x314] ss:$8 sps:$4 sm:$0xff]  }
  0x88   :  { %1866 = vmatpush1.bf16.msra.mxu0 %v2501_v22  ;;  %1703 = vmatprep.subr.bf16.mxu1 %v2506_v24  ;;  %v3344_v22 = vld [vmem:[%s3555_s0 + $0x18] sm:$0xff]  ;;  %v2590_v24 = vld [vmem:[%s3554_s1 + $0x300] ss:$8 sps:$4 sm:$0xff]  }
  0x89   :  { %1867 = vmatprep.subr.bf16.mxu0 %v2509_v25  ;;  %v2603_v25 = vld [vmem:[%s3554_s1 + $0x714] ss:$8 sps:$4 sm:$0xff]  }
  0x8b   :  { %1704 = vmatpush1.bf16.msra.mxu1 %v2504_v26  ;;  %v1999_v26 = vcombine.high %v3344_v22, %v3344_v22 }
  0x8c   :  { %1868 = vmatpush1.bf16.msra.mxu0 %v2507_v27  ;;  %1705 = vmatprep.subr.bf16.mxu1 %v2512_v28  ;;  %v2007_v27 = vcombine.high %v3349_v23, %v3349_v23  ;;  %v2598_v28 = vld [vmem:[%s3554_s1 + $0x310] ss:$8 sps:$4 sm:$0xff]  }
  0x8d   :  { %1869 = vmatprep.subr.bf16.mxu0 %v2515_v29  ;;  %v2601_v29 = vld [vmem:[%s3554_s1 + $0x710] ss:$8 sps:$4 sm:$0xff]  }
  0x8f   :  { %1706 = vmatpush1.bf16.msra.mxu1 %v2510_v30  ;;  %v2606_v30 = vld [vmem:[%s3554_s1 + $0x324] ss:$8 sps:$4 sm:$0xff]  }
  0x90   :  { %1870 = vmatpush1.bf16.msra.mxu0 %v2513_v31  ;;  %1707 = vmatprep.subr.bf16.mxu1 %v2518_v32  ;;  %v2609_v31 = vld [vmem:[%s3554_s1 + $0x724] ss:$8 sps:$4 sm:$0xff]   ;;  %v2604_v32 = vld [vmem:[%s3554_s1 + $0x320] ss:$8 sps:$4 sm:$0xff]  }
  0x91   :  { %1871 = vmatprep.subr.bf16.mxu0 %v2521_v33  ;;  %v2607_v33 = vld [vmem:[%s3554_s1 + $0x720] ss:$8 sps:$4 sm:$0xff]  }
  0x93   :  { %1708 = vmatpush1.bf16.msra.mxu1 %v2516_v34  ;;  %v2612_v34 = vld [vmem:[%s3554_s1 + $0x334] ss:$8 sps:$4 sm:$0xff]  }
  0x94   :  { %1872 = vmatpush1.bf16.msra.mxu0 %v2519_v35  ;;  %1709 = vmatprep.subr.bf16.mxu1 %v2524_v36  ;;  %v2615_v35 = vld [vmem:[%s3554_s1 + $0x734] ss:$8 sps:$4 sm:$0xff]   ;;  %v2610_v36 = vld [vmem:[%s3554_s1 + $0x330] ss:$8 sps:$4 sm:$0xff]  }
  0x95   :  { %1873 = vmatprep.subr.bf16.mxu0 %v2527_v37  ;;  %v2613_v37 = vld [vmem:[%s3554_s1 + $0x730] ss:$8 sps:$4 sm:$0xff]  }
  0x97   :  { %1710 = vmatpush1.bf16.msra.mxu1 %v2522_v38  ;;  %v2618_v38 = vld [vmem:[%s3554_s1 + $0x344] ss:$8 sps:$4 sm:$0xff]  }
  0x98   :  { %1874 = vmatpush1.bf16.msra.mxu0 %v2525_v39  ;;  %1711 = vmatprep.subr.bf16.mxu1 %v2530_v40  ;;  %v2621_v39 = vld [vmem:[%s3554_s1 + $0x744] ss:$8 sps:$4 sm:$0xff]   ;;  %v2616_v40 = vld [vmem:[%s3554_s1 + $0x340] ss:$8 sps:$4 sm:$0xff]  }
  0x99   :  { %1875 = vmatprep.subr.bf16.mxu0 %v2533_v41  ;;  %v2619_v41 = vld [vmem:[%s3554_s1 + $0x740] ss:$8 sps:$4 sm:$0xff]  }
  0x9b   :  { %1712 = vmatpush1.bf16.msra.mxu1 %v2528_v42  ;;  %v2624_v42 = vld [vmem:[%s3554_s1 + $0x354] ss:$8 sps:$4 sm:$0xff]  }
  0x9c   :  { %1876 = vmatpush1.bf16.msra.mxu0 %v2531_v43  ;;  %1713 = vmatprep.subr.bf16.mxu1 %v2536_v44  ;;  %v2627_v43 = vld [vmem:[%s3554_s1 + $0x754] ss:$8 sps:$4 sm:$0xff]   ;;  %v2622_v44 = vld [vmem:[%s3554_s1 + $0x350] ss:$8 sps:$4 sm:$0xff]  }
  0x9d   :  { %1877 = vmatprep.subr.bf16.mxu0 %v2539_v45  ;;  %v2625_v45 = vld [vmem:[%s3554_s1 + $0x750] ss:$8 sps:$4 sm:$0xff]  }
  0x9f   :  { %1714 = vmatpush1.bf16.msra.mxu1 %v2534_v46  ;;  %v2630_v46 = vld [vmem:[%s3554_s1 + $0x364] ss:$8 sps:$4 sm:$0xff]  }
  0xa0   :  { %1878 = vmatpush1.bf16.msra.mxu0 %v2537_v47  ;;  %1715 = vmatprep.subr.bf16.mxu1 %v2542_v48  ;;  %v2633_v47 = vld [vmem:[%s3554_s1 + $0x764] ss:$8 sps:$4 sm:$0xff]   ;;  %v2628_v48 = vld [vmem:[%s3554_s1 + $0x360] ss:$8 sps:$4 sm:$0xff]  }
  0xa1   :  { %1879 = vmatprep.subr.bf16.mxu0 %v2545_v49  ;;  %v2631_v49 = vld [vmem:[%s3554_s1 + $0x760] ss:$8 sps:$4 sm:$0xff]  }
  0xa3   :  { %1716 = vmatpush1.bf16.msra.mxu1 %v2540_v50  ;;  %v2636_v50 = vld [vmem:[%s3554_s1 + $0x374] ss:$8 sps:$4 sm:$0xff]  }
  0xa4   :  { %1880 = vmatpush1.bf16.msra.mxu0 %v2543_v51  ;;  %1717 = vmatprep.subr.bf16.mxu1 %v2548_v52  ;;  %v2639_v51 = vld [vmem:[%s3554_s1 + $0x774] ss:$8 sps:$4 sm:$0xff]   ;;  %v2634_v52 = vld [vmem:[%s3554_s1 + $0x370] ss:$8 sps:$4 sm:$0xff]  }
  0xa5   :  { %1881 = vmatprep.subr.bf16.mxu0 %v2551_v53  ;;  %v2637_v53 = vld [vmem:[%s3554_s1 + $0x770] ss:$8 sps:$4 sm:$0xff]  }
  0xa7   :  { %1718 = vmatpush1.bf16.msra.mxu1 %v2546_v54  ;;  %v2642_v54 = vld [vmem:[%s3554_s1 + $0x384] ss:$8 sps:$4 sm:$0xff]  }
  0xa8   :  { %1882 = vmatpush1.bf16.msra.mxu0 %v2549_v55  ;;  %1719 = vmatprep.subr.bf16.mxu1 %v2554_v56  ;;  %v2645_v55 = vld [vmem:[%s3554_s1 + $0x784] ss:$8 sps:$4 sm:$0xff]   ;;  %v2640_v56 = vld [vmem:[%s3554_s1 + $0x380] ss:$8 sps:$4 sm:$0xff]  }
  0xa9   :  { %1883 = vmatprep.subr.bf16.mxu0 %v2557_v57  ;;  %v2643_v57 = vld [vmem:[%s3554_s1 + $0x780] ss:$8 sps:$4 sm:$0xff]  }
  0xab   :  { %1720 = vmatpush1.bf16.msra.mxu1 %v2552_v58  ;;  %v2648_v58 = vld [vmem:[%s3554_s1 + $0x394] ss:$8 sps:$4 sm:$0xff]  }
  0xac   :  { %1884 = vmatpush1.bf16.msra.mxu0 %v2555_v59  ;;  %1721 = vmatprep.subr.bf16.mxu1 %v2560_v60  ;;  %v2651_v59 = vld [vmem:[%s3554_s1 + $0x794] ss:$8 sps:$4 sm:$0xff]   ;;  %v2646_v60 = vld [vmem:[%s3554_s1 + $0x390] ss:$8 sps:$4 sm:$0xff]  }
  0xad   :  { %1885 = vmatprep.subr.bf16.mxu0 %v2563_v61  ;;  %v2649_v61 = vld [vmem:[%s3554_s1 + $0x790] ss:$8 sps:$4 sm:$0xff]  }
  0xaf   :  { %1722 = vmatpush1.bf16.msra.mxu1 %v2558_v62  ;;  %v2654_v62 = vld [vmem:[%s3554_s1 + $0x3a4] ss:$8 sps:$4 sm:$0xff]  }
  0xb0   :  { %1886 = vmatpush1.bf16.msra.mxu0 %v2561_v63  ;;  %1723 = vmatprep.subr.bf16.mxu1 %v2566_v0  ;;  %v2657_v63 = vld [vmem:[%s3554_s1 + $0x7a4] ss:$8 sps:$4 sm:$0xff]   ;;  %v2652_v0 = vld [vmem:[%s3554_s1 + $0x3a0] ss:$8 sps:$4 sm:$0xff]  }
  0xb1   :  { %1887 = vmatprep.subr.bf16.mxu0 %v2569_v1  ;;  %v2655_v1 = vld [vmem:[%s3554_s1 + $0x7a0] ss:$8 sps:$4 sm:$0xff]  }
  0xb3   :  { %1724 = vmatpush1.bf16.msra.mxu1 %v2564_v2  ;;  %v2660_v2 = vld [vmem:[%s3554_s1 + $0x3b4] ss:$8 sps:$4 sm:$0xff]  }
  0xb4   :  { %1888 = vmatpush1.bf16.msra.mxu0 %v2567_v3  ;;  %1725 = vmatprep.subr.bf16.mxu1 %v2572_v4  ;;  %v2663_v3 = vld [vmem:[%s3554_s1 + $0x7b4] ss:$8 sps:$4 sm:$0xff]   ;;  %v2658_v4 = vld [vmem:[%s3554_s1 + $0x3b0] ss:$8 sps:$4 sm:$0xff]  }
  0xb5   :  { %1889 = vmatprep.subr.bf16.mxu0 %v2575_v5  ;;  %v2661_v5 = vld [vmem:[%s3554_s1 + $0x7b0] ss:$8 sps:$4 sm:$0xff]  }
  0xb7   :  { %1726 = vmatpush1.bf16.msra.mxu1 %v2570_v6  ;;  %v2666_v6 = vld [vmem:[%s3554_s1 + $0x3c4] ss:$8 sps:$4 sm:$0xff]  }
  0xb8   :  { %1890 = vmatpush1.bf16.msra.mxu0 %v2573_v7  ;;  %1727 = vmatprep.subr.bf16.mxu1 %v2578_v8  ;;  %v2669_v7 = vld [vmem:[%s3554_s1 + $0x7c4] ss:$8 sps:$4 sm:$0xff]   ;;  %v2664_v8 = vld [vmem:[%s3554_s1 + $0x3c0] ss:$8 sps:$4 sm:$0xff]  }
  0xb9   :  { %1891 = vmatprep.subr.bf16.mxu0 %v2581_v9  ;;  %v2667_v9 = vld [vmem:[%s3554_s1 + $0x7c0] ss:$8 sps:$4 sm:$0xff]  }
  0xbb   :  { %1728 = vmatpush1.bf16.msra.mxu1 %v2576_v10  ;;  %v2672_v10 = vld [vmem:[%s3554_s1 + $0x3d4] ss:$8 sps:$4 sm:$0xff]  }
  0xbc   :  { %1892 = vmatpush1.bf16.msra.mxu0 %v2579_v11  ;;  %1729 = vmatprep.subr.bf16.mxu1 %v2584_v12  ;;  %v2675_v11 = vld [vmem:[%s3554_s1 + $0x7d4] ss:$8 sps:$4 sm:$0xff]   ;;  %v2670_v12 = vld [vmem:[%s3554_s1 + $0x3d0] ss:$8 sps:$4 sm:$0xff]  }
  0xbd   :  { %1893 = vmatprep.subr.bf16.mxu0 %v2587_v13  ;;  %v2673_v13 = vld [vmem:[%s3554_s1 + $0x7d0] ss:$8 sps:$4 sm:$0xff]  }
  0xbf   :  { %1730 = vmatpush1.bf16.msra.mxu1 %v2582_v14  ;;  %v2678_v14 = vld [vmem:[%s3554_s1 + $0x3e4] ss:$8 sps:$4 sm:$0xff]  }
  0xc0   :  { %1894 = vmatpush1.bf16.msra.mxu0 %v2585_v15  ;;  %1740 = vmatprep.subr.bf16.mxu1 %v2592_v16  ;;  %v2681_v15 = vld [vmem:[%s3554_s1 + $0x7e4] ss:$8 sps:$4 sm:$0xff]   ;;  %v2676_v16 = vld [vmem:[%s3554_s1 + $0x3e0] ss:$8 sps:$4 sm:$0xff]  }
  0xc1   :  { %1904 = vmatprep.subr.bf16.mxu0 %v2597_v17  ;;  %v2679_v17 = vld [vmem:[%s3554_s1 + $0x7e0] ss:$8 sps:$4 sm:$0xff]  }
  0xc2   :  { %1732 = vmatmul.mubr.bf16.vlgmr.msra.gmra.mrb[0].mxu1 %v1996_v19  ;;  %v2684_v19 = vld [vmem:[%s3554_s1 + $0x3f4] ss:$8 sps:$4 sm:$0xff]  }
  0xc3   :  { %1896 = vmatmul.mubr.bf16.vlgmr.msra.gmra.mrb[0].mxu0 %v2004_v21  ;;  %1741 = vmatpush1.bf16.msra.mxu1 %v2590_v24  ;;  %v2687_v21 = vld [vmem:[%s3554_s1 + $0x7f4] ss:$8 sps:$4 sm:$0xff]   ;;  %v2682_v24 = vld [vmem:[%s3554_s1 + $0x3f0] ss:$8 sps:$4 sm:$0xff]  }
  0xc4   :  { %1905 = vmatpush1.bf16.msra.mxu0 %v2595_v18  ;;  %1742 = vmatprep.subr.bf16.mxu1 %v2600_v20  ;;  %v2685_v18 = vld [vmem:[%s3554_s1 + $0x7f0] ss:$8 sps:$4 sm:$0xff]   ;;  %v1998_v20 = vcombine.low %v3344_v22, %v3344_v22 }
  0xc5   :  { %1906 = vmatprep.subr.bf16.mxu0 %v2603_v25  ;;  %1772 = vmatprep.mubr.bf16.mxu1 %v1999_v26  ;;  %v2006_v25 = vcombine.low %v3349_v23, %v3349_v23  ;;  %v1947_v26 = vlaneseq }
  0xc6   :  { %1936 = vmatprep.mubr.bf16.mxu0 %v2007_v27 }
  0xc7   :  { %1743 = vmatpush1.bf16.msra.mxu1 %v2598_v28  ;;  %v1948_v27 = vshrl.u32 %v1947_v26, 7 }
  0xc8   :  { %1907 = vmatpush1.bf16.msra.mxu0 %v2601_v29  ;;  %1744 = vmatprep.subr.bf16.mxu1 %v2606_v30  ;;  %v1945_v29 = vld [vmem:[%s3556_s2] sm:$0x3] }
  0xc9   :  { %1908 = vmatprep.subr.bf16.mxu0 %v2609_v31  ;;  %v1949_v28 = vsub.s32 0, %v1948_v27  ;;  %v1953_v30 = vsub.s32 1, %v1948_v27  ;;  %v1959_v31 = vld [vmem:[%s3557_s3] sm:$0x3] }
  0xcb   :  { %1745 = vmatpush1.bf16.msra.mxu1 %v2604_v32  ;;  %v1950_v22 = vrot.slane %v1945_v29, %v1949_v28  ;;  %v1954_v23 = vrot.slane %v1945_v29, %v1953_v30 }
  0xcc   :  { %1909 = vmatpush1.bf16.msra.mxu0 %v2607_v33  ;;  %1746 = vmatprep.subr.bf16.mxu1 %v2612_v34 }
  0xcd   :  { %1910 = vmatprep.subr.bf16.mxu0 %v2615_v35  ;;  %v1964_v35 = vrot.slane %v1959_v31, %v1949_v28 }
  0xcf   :  { %1747 = vmatpush1.bf16.msra.mxu1 %v2610_v36 }
  0xd0   :  { %1911 = vmatpush1.bf16.msra.mxu0 %v2613_v37  ;;  %1748 = vmatprep.subr.bf16.mxu1 %v2618_v38 }
  0xd1   :  { %1912 = vmatprep.subr.bf16.mxu0 %v2621_v39  ;;  %v1968_v39 = vrot.slane %v1959_v31, %v1953_v30 }
  0xd3   :  { %1749 = vmatpush1.bf16.msra.mxu1 %v2616_v40 }
  0xd4   :  { %1913 = vmatpush1.bf16.msra.mxu0 %v2619_v41  ;;  %1750 = vmatprep.subr.bf16.mxu1 %v2624_v42 }
  0xd5   :  { %1914 = vmatprep.subr.bf16.mxu0 %v2627_v43 }
  0xd7   :  { %1751 = vmatpush1.bf16.msra.mxu1 %v2622_v44 }
  0xd8   :  { %1915 = vmatpush1.bf16.msra.mxu0 %v2625_v45  ;;  %1752 = vmatprep.subr.bf16.mxu1 %v2630_v46 }
  0xd9   :  { %1916 = vmatprep.subr.bf16.mxu0 %v2633_v47 }
  0xdb   :  { %1753 = vmatpush1.bf16.msra.mxu1 %v2628_v48 }
  0xdc   :  { %1917 = vmatpush1.bf16.msra.mxu0 %v2631_v49  ;;  %1754 = vmatprep.subr.bf16.mxu1 %v2636_v50 }
  0xdd   :  { %1918 = vmatprep.subr.bf16.mxu0 %v2639_v51 }
  0xdf   :  { %1755 = vmatpush1.bf16.msra.mxu1 %v2634_v52 }
  0xe0   :  { %1919 = vmatpush1.bf16.msra.mxu0 %v2637_v53  ;;  %1756 = vmatprep.subr.bf16.mxu1 %v2642_v54 }
  0xe1   :  { %1920 = vmatprep.subr.bf16.mxu0 %v2645_v55 }
  0xe3   :  { %1757 = vmatpush1.bf16.msra.mxu1 %v2640_v56 }
  0xe4   :  { %1921 = vmatpush1.bf16.msra.mxu0 %v2643_v57  ;;  %1758 = vmatprep.subr.bf16.mxu1 %v2648_v58 }
  0xe5   :  { %1922 = vmatprep.subr.bf16.mxu0 %v2651_v59 }
  0xe7   :  { %1759 = vmatpush1.bf16.msra.mxu1 %v2646_v60 }
  0xe8   :  { %1923 = vmatpush1.bf16.msra.mxu0 %v2649_v61  ;;  %1760 = vmatprep.subr.bf16.mxu1 %v2654_v62 }
  0xe9   :  { %1924 = vmatprep.subr.bf16.mxu0 %v2657_v63 }
  0xeb   :  { %1761 = vmatpush1.bf16.msra.mxu1 %v2652_v0 }
  0xec   :  { %1925 = vmatpush1.bf16.msra.mxu0 %v2655_v1  ;;  %1762 = vmatprep.subr.bf16.mxu1 %v2660_v2 }
  0xed   :  { %1926 = vmatprep.subr.bf16.mxu0 %v2663_v3 }
  0xef   :  { %1763 = vmatpush1.bf16.msra.mxu1 %v2658_v4 }
  0xf0   :  { %1927 = vmatpush1.bf16.msra.mxu0 %v2661_v5  ;;  %1764 = vmatprep.subr.bf16.mxu1 %v2666_v6 }
  0xf1   :  { %1928 = vmatprep.subr.bf16.mxu0 %v2669_v7 }
  0xf3   :  { %1765 = vmatpush1.bf16.msra.mxu1 %v2664_v8 }
  0xf4   :  { %1929 = vmatpush1.bf16.msra.mxu0 %v2667_v9  ;;  %1766 = vmatprep.subr.bf16.mxu1 %v2672_v10 }
  0xf5   :  { %1930 = vmatprep.subr.bf16.mxu0 %v2675_v11 }
  0xf7   :  { %1767 = vmatpush1.bf16.msra.mxu1 %v2670_v12 }
  0xf8   :  { %1931 = vmatpush1.bf16.msra.mxu0 %v2673_v13  ;;  %1768 = vmatprep.subr.bf16.mxu1 %v2678_v14 }
  0xf9   :  { %1932 = vmatprep.subr.bf16.mxu0 %v2681_v15 }
  0xfb   :  { %1769 = vmatpush1.bf16.msra.mxu1 %v2676_v16 }
  0xfc   :  { %1933 = vmatpush1.bf16.msra.mxu0 %v2679_v17  ;;  %1770 = vmatprep.subr.bf16.mxu1 %v2684_v19 }
  0xfd   :  { %1934 = vmatprep.subr.bf16.mxu0 %v2687_v21 }
  0xff   :  { %1771 = vmatpush1.bf16.msra.mxu1 %v2682_v24 }
 0x100   :  { %1935 = vmatpush1.bf16.msra.mxu0 %v2685_v18 }
 0x102   :  { %1773 = vmatmul.mubr.bf16.vlgmr.msra.gmra.mrb[0].mxu1 %v1998_v20 }
 0x103   :  { %1937 = vmatmul.mubr.bf16.vlgmr.msra.gmra.mrb[0].mxu0 %v2006_v25 }
 0x1d5   :  { %v1774_v32 = vpop.f32.mrb[0].mxu1 }
 0x1d6   :  { %v1938_v33 = vpop.f32.mrb[0].mxu0  ;;  %v1776_v36 = vpop.f32.mrb[1].mxu1 }
 0x1d7   :  { %v2266_v34 = vadd.f32 %v1938_v33, %v1774_v32  ;;  %v1940_v37 = vpop.f32.mrb[1].mxu0  ;;  %v1778_v40 = vpop.f32.mrb[2].mxu1 }
 0x1d8   :  { %v2267_v38 = vadd.f32 %v1940_v37, %v1776_v36  ;;  %v1942_v41 = vpop.f32.mrb[2].mxu0  ;;  %v1779_v43 = vpop.f32.mrb[3].mxu1 }
 0x1d9   :  { %v1957_v42 = vmul.f32 %v2266_v34, %v1950_v22  ;;  %v1943_v44 = vpop.f32.mrb[3].mxu0 }
 0x1da   :  { %v1958_v45 = vmul.f32 %v2267_v38, %v1954_v23 }
 0x1db   :  { %v1971_v46 = vadd.f32 %v1964_v35, %v1957_v42 }
 0x1dc   :  { %v1972_v47 = vadd.f32 %v1968_v39, %v1958_v45 }
 0x1dd   :  { %vm1973_vm0 = vcmp.gt.f32.partialorder %v1971_v46, 0.0  ;;  %v1975_v48 = vmul.f32 0.2, %v1971_v46 }
 0x1de   :  { %vm1974_vm1 = vcmp.gt.f32.partialorder %v1972_v47, 0.0  ;;  %v1976_v49 = vmul.f32 0.2, %v1972_v47 }
 0x1df   :  { %v1977_v50 = vsel %vm1973_vm0, %v1971_v46, %v1975_v48 }
 0x1e0   :  { %v1978_v51 = vsel %vm1974_vm1, %v1972_v47, %v1976_v49 }
 0x1e1   :  { %v2265_v52 = vpack.c.bf16 %v1978_v51, %v1977_v50 }
 0x1e3   :  { %1987 = vst [vmem:[%s3558_s4] sm:$0xff] %v2265_v52 }

// kernel: encoder_forward.15
= control target key start
LH: loop header
LB: loop body
LE: loop exit
PB: predicated region body
PF: predicated region fallthrough
CT: control target
= control target key end

     0   :  { %vm390_vm1 = vcmask 519168   ;;  %s650_s1 = inlined_call_operand.vmem [shape: bf16[512,64], index: 1, kind: input, shape index: {}]   ;;  %s651_s0 = inlined_call_operand.vmem [shape: bf16[8,512], index: 0, kind: input, shape index: {}]   ;;  %s652_s2 = inlined_call_operand.vmem [shape: f32[1,64], index: 2, kind: input, shape index: {}]   ;;  %s653_s3 = inlined_call_operand.vmem [shape: f32[1,64], index: 3, kind: input, shape index: {}]   ;;  %s654_s4 = inlined_call_operand.vmem [shape: bf16[8,64], index: 4, kind: output, shape index: {}]  }
   0x1   :  { %v478_v0 = vld [vmem:[%s650_s1 + $0x40] sm:$0xff]   ;;  %v482_v4 = vld [vmem:[%s650_s1 + $0x48] sm:$0xff]   ;;  %v486_v8 = vld [vmem:[%s650_s1 + $0x50] sm:$0xff]  }
   0x2   :  { %v479_v1 = vld [vmem:[%s650_s1 + $0xc0] sm:$0xff]   ;;  %434 = vmatprep.subr.bf16.mxu0 %v478_v0  ;;  %v483_v5 = vld [vmem:[%s650_s1 + $0xc8] sm:$0xff]   ;;  %v487_v9 = vld [vmem:[%s650_s1 + $0xd0] sm:$0xff]  }
   0x3   :  { %v480_v2 = vld [vmem:[%s650_s1] sm:$0xff]   ;;  %456 = vmatprep.subr.bf16.mxu1 %v479_v1  ;;  %v484_v6 = vld [vmem:[%s650_s1 + $0x8] sm:$0xff]   ;;  %v488_v10 = vld [vmem:[%s650_s1 + $0x10] sm:$0xff]  }
   0x4   :  { %v481_v3 = vld [vmem:[%s650_s1 + $0x80] sm:$0xff]   ;;  %435 = vmatpush3.bf16.msra.mxu0 %v480_v2  ;;  %v485_v7 = vld [vmem:[%s650_s1 + $0x88] sm:$0xff]   ;;  %v489_v11 = vld [vmem:[%s650_s1 + $0x90] sm:$0xff]  }
   0x5   :  { %457 = vmatpush3.bf16.msra.mxu1 %v481_v3  ;;  %436 = vmatprep.subr.bf16.mxu0 %v482_v4  ;;  %v490_v12 = vld [vmem:[%s650_s1 + $0x58] sm:$0xff]   ;;  %v494_v16 = vld [vmem:[%s650_s1 + $0x60] sm:$0xff]   ;;  %v498_v20 = vld [vmem:[%s650_s1 + $0x68] sm:$0xff]  }
   0x6   :  { %458 = vmatprep.subr.bf16.mxu1 %v483_v5  ;;  %v491_v13 = vld [vmem:[%s650_s1 + $0xd8] sm:$0xff]   ;;  %v495_v17 = vld [vmem:[%s650_s1 + $0xe0] sm:$0xff]   ;;  %v499_v21 = vld [vmem:[%s650_s1 + $0xe8] sm:$0xff]  }
   0x7   :  { %v492_v14 = vld [vmem:[%s650_s1 + $0x18] sm:$0xff]   ;;  %v496_v18 = vld [vmem:[%s650_s1 + $0x20] sm:$0xff]   ;;  %v500_v22 = vld [vmem:[%s650_s1 + $0x28] sm:$0xff]  }
   0x8   :  { %437 = vmatpush3.bf16.msra.mxu0 %v484_v6  ;;  %v493_v15 = vld [vmem:[%s650_s1 + $0x98] sm:$0xff]   ;;  %v497_v19 = vld [vmem:[%s650_s1 + $0xa0] sm:$0xff]   ;;  %v501_v23 = vld [vmem:[%s650_s1 + $0xa8] sm:$0xff]  }
   0x9   :  { %459 = vmatpush3.bf16.msra.mxu1 %v485_v7  ;;  %438 = vmatprep.subr.bf16.mxu0 %v486_v8  ;;  %v502_v24 = vld [vmem:[%s650_s1 + $0x70] sm:$0xff]   ;;  %v506_v28 = vld [vmem:[%s650_s1 + $0x78] sm:$0xff]   ;;  %v18_v32 = vld [vmem:[%s651_s0] sm:$0xff] }
   0xa   :  { %460 = vmatprep.subr.bf16.mxu1 %v487_v9  ;;  %v503_v25 = vld [vmem:[%s650_s1 + $0xf0] sm:$0xff]   ;;  %v507_v29 = vld [vmem:[%s650_s1 + $0xf8] sm:$0xff]   ;;  %v19_v33 = vld [vmem:[%s651_s0 + $0x8] sm:$0xff]  ;;  %v396_v34 = vcombine.low %v18_v32, %v18_v32  ;;  %v397_v35 = vcombine.high %v18_v32, %v18_v32 }
   0xb   :  { %v504_v26 = vld [vmem:[%s650_s1 + $0x30] sm:$0xff]   ;;  %v508_v30 = vld [vmem:[%s650_s1 + $0x38] sm:$0xff]   ;;  %v398_v36 = vcombine.low %v19_v33, %v19_v33  ;;  %v399_v37 = vcombine.high %v19_v33, %v19_v33  ;;  %v432_v46 = vld [vmem:[%s652_s2] ss:$0 sm:$0xff] }
   0xc   :  { %439 = vmatpush3.bf16.msra.mxu0 %v488_v10  ;;  %v505_v27 = vld [vmem:[%s650_s1 + $0xb0] sm:$0xff]   ;;  %v509_v31 = vld [vmem:[%s650_s1 + $0xb8] sm:$0xff]   ;;  %322 = vmatprep.mubr.bf16.mxu0 %v397_v35  ;;  %v433_v50 = vld [vmem:[%s653_s3] ss:$0 sm:$0xff] }
   0xd   :  { %461 = vmatpush3.bf16.msra.mxu1 %v489_v11  ;;  %440 = vmatprep.subr.bf16.mxu0 %v490_v12 }
   0xe   :  { %462 = vmatprep.subr.bf16.mxu1 %v491_v13  ;;  %362 = vmatprep.mubr.bf16.mxu1 %v399_v37 }
  0x10   :  { %441 = vmatpush3.bf16.msra.mxu0 %v492_v14 }
  0x11   :  { %463 = vmatpush3.bf16.msra.mxu1 %v493_v15  ;;  %442 = vmatprep.subr.bf16.mxu0 %v494_v16 }
  0x12   :  { %464 = vmatprep.subr.bf16.mxu1 %v495_v17 }
  0x14   :  { %443 = vmatpush3.bf16.msra.mxu0 %v496_v18 }
  0x15   :  { %465 = vmatpush3.bf16.msra.mxu1 %v497_v19  ;;  %444 = vmatprep.subr.bf16.mxu0 %v498_v20 }
  0x16   :  { %466 = vmatprep.subr.bf16.mxu1 %v499_v21 }
  0x18   :  { %445 = vmatpush3.bf16.msra.mxu0 %v500_v22 }
  0x19   :  { %467 = vmatpush3.bf16.msra.mxu1 %v501_v23  ;;  %446 = vmatprep.subr.bf16.mxu0 %v502_v24 }
  0x1a   :  { %468 = vmatprep.subr.bf16.mxu1 %v503_v25 }
  0x1c   :  { %447 = vmatpush3.bf16.msra.mxu0 %v504_v26 }
  0x1d   :  { %469 = vmatpush3.bf16.msra.mxu1 %v505_v27  ;;  %448 = vmatprep.subr.bf16.mxu0 %v506_v28 }
  0x1e   :  { %470 = vmatprep.subr.bf16.mxu1 %v507_v29 }
  0x20   :  { %449 = vmatpush3.bf16.msra.mxu0 %v508_v30 }
  0x21   :  { %471 = vmatpush3.bf16.msra.mxu1 %v509_v31 }
  0x23   :  { %323 = vmatmul.mubr.bf16.vlgmr.msra.gmra.mrb[0].mxu0 %v396_v34 }
  0x24   :  { %363 = vmatmul.mubr.bf16.vlgmr.msra.gmra.mrb[0].mxu1 %v398_v36 }
  0xf6   :  { %v450_v38 = vpop.f32.mrb[0].mxu0 }
  0xf7   :  { %v472_v39 = vpop.f32.mrb[0].mxu1  ;;  %v451_v40 = vpop.f32.mrb[1].mxu0 }
  0xf8   :  { %v473_v41 = vpop.f32.mrb[1].mxu1  ;;  %v452_v42 = vadd.f32 %v451_v40, %v450_v38  ;;  %v453_v44 = vpop.f32.mrb[2].mxu0 }
  0xf9   :  { %v474_v43 = vadd.f32 %v473_v41, %v472_v39  ;;  %v475_v45 = vpop.f32.mrb[2].mxu1  ;;  %v454_v47 = vpop.f32.mrb[3].mxu0 }
  0xfa   :  { %v476_v48 = vpop.f32.mrb[3].mxu1 }
  0xfb   :  { %v365_v49 = vadd.f32 %v474_v43, %v452_v42 }
  0xfd   :  { %v377_v51 = vmul.f32 %v432_v46, %v365_v49 }
  0xff   :  { %v385_v52 = vadd.f32 %v433_v50, %v377_v51 }
 0x101   :  { %vm386_vm0 = vcmp.gt.f32.partialorder %v385_v52, 0.0  ;;  %v387_v53 = vmul.f32 0.2, %v385_v52 }
 0x103   :  { %v388_v54 = vsel %vm386_vm0, %v385_v52, %v387_v53 }
 0x104   :  { %v389_v55 = vpack.c.bf16 %v388_v54, %v388_v54 }
 0x106   :  { %391 = vst.msk [vmem:[%s654_s4] sm:$0xf] %vm390_vm1, %v389_v55 }

// kernel: encoder_forward.16
= control target key start
LH: loop header
LB: loop body
LE: loop exit
PB: predicated region body
PF: predicated region fallthrough
CT: control target
= control target key end

     0   :  { %v151_v0 = vmov 0.0   ;;  %vm152_vm0 = vmmov 0   ;;  %vm51_vm1 = vcmask 523264   ;;  %vm115_vm3 = vcmask 257024   ;;  %s202_s1 = inlined_call_operand.vmem [shape: bf16[64,32], index: 1, kind: input, shape index: {}]   ;;  %s203_s0 = inlined_call_operand.vmem [shape: bf16[8,64], index: 0, kind: input, shape index: {}]   ;;  %s204_s2 = inlined_call_operand.vmem [shape: f32[1,32], index: 2, kind: input, shape index: {}]   ;;  %s205_s3 = inlined_call_operand.vmem [shape: f32[1,32], index: 3, kind: input, shape index: {}]   ;;  %s206_s4 = inlined_call_operand.vmem [shape: bf16[8,32], index: 4, kind: output, shape index: {}]  }
   0x1   :  { %133 = vmatprep.subr.bf16.mxu0 %v151_v0  ;;  %v147_v1 = vld [vmem:[%s202_s1] sm:$0xff]   ;;  %141 = vmatprep.mubr.msk.bf16.mxu0 %vm152_vm0, %v151_v0  ;;  %v148_v2 = vld [vmem:[%s202_s1 + $0x8] sm:$0xff]   ;;  %v149_v3 = vld [vmem:[%s202_s1 + $0x10] sm:$0xff]  }
   0x2   :  { %134 = vmatpush3.bf16.msra.mxu0 %v147_v1  ;;  %v150_v4 = vld [vmem:[%s202_s1 + $0x18] sm:$0xff]   ;;  %v18_v5 = vld [vmem:[%s203_s0] sm:$0xf] }
   0x3   :  { %135 = vmatprep.subr.bf16.mxu0 %v151_v0  ;;  %v126_v6 = vld [vmem:[%s204_s2] ss:$0 sm:$0xff] }
   0x4   :  { %v127_v8 = vld [vmem:[%s205_s3] ss:$0 sm:$0xff] }
   0x6   :  { %136 = vmatpush3.bf16.msra.mxu0 %v148_v2 }
   0x7   :  { %137 = vmatprep.subr.bf16.mxu0 %v151_v0 }
   0xa   :  { %138 = vmatpush3.bf16.msra.mxu0 %v149_v3 }
   0xb   :  { %139 = vmatprep.subr.bf16.mxu0 %v151_v0 }
   0xe   :  { %140 = vmatpush3.bf16.msra.mxu0 %v150_v4 }
  0x11   :  { %142 = vmatmul.mubr.msk.bf16.vlgmr.msra.gmra.mrb[0].mxu0 %vm51_vm1, %v18_v5 }
  0xe4   :  { %v89_v7 = vpop.f32.mrb[0].mxu0 }
  0xe5   :  { %v102_v9 = vmul.f32 %v126_v6, %v89_v7  ;;  %v143_v10 = vpop.f32.mrb[1].mxu0 }
  0xe6   :  { %v92_v11 = vpop.f32.mrb[2].mxu0 }
  0xe7   :  { %v110_v12 = vadd.f32 %v127_v8, %v102_v9  ;;  %v144_v13 = vpop.f32.mrb[3].mxu0 }
  0xe9   :  { %vm111_vm2 = vcmp.gt.f32.partialorder %v110_v12, 0.0  ;;  %v112_v14 = vmul.f32 0.2, %v110_v12 }
  0xeb   :  { %v113_v15 = vsel %vm111_vm2, %v110_v12, %v112_v14 }
  0xec   :  { %v114_v16 = vpack.c.bf16 %v113_v15, %v113_v15 }
  0xee   :  { %116 = vst.msk [vmem:[%s206_s4] sm:$0xf] %vm115_vm3, %v114_v16 }

// kernel: encoder_forward.17
= control target key start
LH: loop header
LB: loop body
LE: loop exit
PB: predicated region body
PF: predicated region fallthrough
CT: control target
= control target key end

     0   :  { %v107_v0 = vmov 0.0   ;;  %vm108_vm0 = vmmov 0   ;;  %vm39_vm1 = vcmask 261120   ;;  %s144_s1 = inlined_call_operand.vmem [shape: bf16[32,128], index: 1, kind: input, shape index: {}]   ;;  %s145_s0 = inlined_call_operand.vmem [shape: bf16[8,32], index: 0, kind: input, shape index: {}]   ;;  %s146_s2 = inlined_call_operand.vmem [shape: f32[1,128], index: 2, kind: input, shape index: {}]   ;;  %s147_s3 = inlined_call_operand.vmem [shape: f32[8,128], index: 3, kind: output, shape index: {}]  }
   0x1   :  { %95 = vmatprep.subr.bf16.mxu0 %v107_v0  ;;  %v105_v1 = vld [vmem:[%s144_s1] sm:$0xff]   ;;  %99 = vmatprep.mubr.msk.bf16.mxu0 %vm108_vm0, %v107_v0  ;;  %v106_v2 = vld [vmem:[%s144_s1 + $0x8] sm:$0xff]  }
   0x2   :  { %96 = vmatpush3.bf16.msra.mxu0 %v105_v1  ;;  %v15_v3 = vld [vmem:[%s145_s0] sm:$0xf] }
   0x3   :  { %97 = vmatprep.subr.bf16.mxu0 %v107_v0  ;;  %v88_v4 = vld [vmem:[%s146_s2] ss:$0 sm:$0xff] }
   0x6   :  { %98 = vmatpush3.bf16.msra.mxu0 %v106_v2 }
   0x9   :  { %100 = vmatmul.mubr.msk.bf16.vlgmr.msra.gmra.mrb[0].mxu0 %vm39_vm1, %v15_v3 }
  0xdc   :  { %v77_v5 = vpop.f32.mrb[0].mxu0 }
  0xdd   :  { %v78_v6 = vadd.f32 %v88_v4, %v77_v5  ;;  %v101_v7 = vpop.f32.mrb[1].mxu0 }
  0xde   :  { %v80_v8 = vpop.f32.mrb[2].mxu0 }
  0xdf   :  { %83 = vst [vmem:[%s147_s3] sm:$0xff] %v78_v6  ;;  %v102_v9 = vpop.f32.mrb[3].mxu0 }

// kernel: encoder_forward.13
= control target key start
LH: loop header
LB: loop body
LE: loop exit
PB: predicated region body
PF: predicated region fallthrough
CT: control target
= control target key end

     0   :  { %s13682_s1 = inlined_call_operand.vmem [shape: bf16[4096,512], index: 1, kind: input, shape index: {}]   ;;  %s13683_s0 = inlined_call_operand.vmem [shape: bf16[8,4096], index: 0, kind: input, shape index: {}]   ;;  %s13684_s2 = inlined_call_operand.vmem [shape: f32[1,512], index: 2, kind: input, shape index: {}]   ;;  %s13685_s3 = inlined_call_operand.vmem [shape: f32[1,512], index: 3, kind: input, shape index: {}]   ;;  %s13686_s4 = inlined_call_operand.vmem [shape: bf16[8,512], index: 4, kind: output, shape index: {}]  }
   0x1   :  { %v8867_v0 = vld [vmem:[%s13682_s1 + $0x4] ss:$16 sps:$4 sm:$0xff]   ;;  %v8869_v1 = vld [vmem:[%s13682_s1 + $0xc] ss:$16 sps:$4 sm:$0xff]   ;;  %v8871_v2 = vld [vmem:[%s13682_s1] ss:$16 sps:$4 sm:$0xff]  }
   0x2   :  { %6289 = vmatprep.subr.bf16.mxu0 %v8867_v0  ;;  %v8872_v3 = vld [vmem:[%s13682_s1 + $0x8] ss:$16 sps:$4 sm:$0xff]   ;;  %6945 = vmatprep.subr.bf16.mxu1 %v8869_v1  ;;  %v8873_v4 = vld [vmem:[%s13682_s1 + $0x24] ss:$16 sps:$4 sm:$0xff]   ;;  %v8875_v5 = vld [vmem:[%s13682_s1 + $0x2c] ss:$16 sps:$4 sm:$0xff]  }
   0x3   :  { %6290 = vmatpush1.bf16.msra.mxu0 %v8871_v2  ;;  %6946 = vmatpush1.bf16.msra.mxu1 %v8872_v3  ;;  %v8877_v6 = vld [vmem:[%s13682_s1 + $0x20] ss:$16 sps:$4 sm:$0xff]   ;;  %v8878_v7 = vld [vmem:[%s13682_s1 + $0x28] ss:$16 sps:$4 sm:$0xff]   ;;  %v8879_v8 = vld [vmem:[%s13682_s1 + $0x44] ss:$16 sps:$4 sm:$0xff]  }
   0x4   :  { %6291 = vmatprep.subr.bf16.mxu0 %v8873_v4  ;;  %6947 = vmatprep.subr.bf16.mxu1 %v8875_v5  ;;  %v8881_v9 = vld [vmem:[%s13682_s1 + $0x4c] ss:$16 sps:$4 sm:$0xff]   ;;  %v8883_v10 = vld [vmem:[%s13682_s1 + $0x40] ss:$16 sps:$4 sm:$0xff]   ;;  %v8884_v11 = vld [vmem:[%s13682_s1 + $0x48] ss:$16 sps:$4 sm:$0xff]  }
   0x5   :  { %v8885_v12 = vld [vmem:[%s13682_s1 + $0x64] ss:$16 sps:$4 sm:$0xff]   ;;  %v8887_v13 = vld [vmem:[%s13682_s1 + $0x6c] ss:$16 sps:$4 sm:$0xff]   ;;  %v8889_v14 = vld [vmem:[%s13682_s1 + $0x60] ss:$16 sps:$4 sm:$0xff]  }
   0x6   :  { %v8890_v15 = vld [vmem:[%s13682_s1 + $0x68] ss:$16 sps:$4 sm:$0xff]   ;;  %v8891_v16 = vld [vmem:[%s13682_s1 + $0x84] ss:$16 sps:$4 sm:$0xff]   ;;  %v8893_v17 = vld [vmem:[%s13682_s1 + $0x8c] ss:$16 sps:$4 sm:$0xff]  }
   0x7   :  { %6292 = vmatpush1.bf16.msra.mxu0 %v8877_v6  ;;  %6948 = vmatpush1.bf16.msra.mxu1 %v8878_v7  ;;  %v8895_v18 = vld [vmem:[%s13682_s1 + $0x80] ss:$16 sps:$4 sm:$0xff]   ;;  %v8896_v19 = vld [vmem:[%s13682_s1 + $0x88] ss:$16 sps:$4 sm:$0xff]   ;;  %v8897_v20 = vld [vmem:[%s13682_s1 + $0xa4] ss:$16 sps:$4 sm:$0xff]  }
   0x8   :  { %6293 = vmatprep.subr.bf16.mxu0 %v8879_v8  ;;  %6949 = vmatprep.subr.bf16.mxu1 %v8881_v9  ;;  %v8899_v21 = vld [vmem:[%s13682_s1 + $0xac] ss:$16 sps:$4 sm:$0xff]   ;;  %v8901_v22 = vld [vmem:[%s13682_s1 + $0xa0] ss:$16 sps:$4 sm:$0xff]   ;;  %v8902_v23 = vld [vmem:[%s13682_s1 + $0xa8] ss:$16 sps:$4 sm:$0xff]  }
   0x9   :  { %v8903_v24 = vld [vmem:[%s13682_s1 + $0xc4] ss:$16 sps:$4 sm:$0xff]   ;;  %v8905_v25 = vld [vmem:[%s13682_s1 + $0xcc] ss:$16 sps:$4 sm:$0xff]   ;;  %v8907_v26 = vld [vmem:[%s13682_s1 + $0xc0] ss:$16 sps:$4 sm:$0xff]  }
   0xa   :  { %v8908_v27 = vld [vmem:[%s13682_s1 + $0xc8] ss:$16 sps:$4 sm:$0xff]   ;;  %v8909_v28 = vld [vmem:[%s13682_s1 + $0xe4] ss:$16 sps:$4 sm:$0xff]   ;;  %v8911_v29 = vld [vmem:[%s13682_s1 + $0xec] ss:$16 sps:$4 sm:$0xff]  }
   0xb   :  { %6294 = vmatpush1.bf16.msra.mxu0 %v8883_v10  ;;  %6950 = vmatpush1.bf16.msra.mxu1 %v8884_v11  ;;  %v8913_v30 = vld [vmem:[%s13682_s1 + $0xe0] ss:$16 sps:$4 sm:$0xff]   ;;  %v8914_v31 = vld [vmem:[%s13682_s1 + $0xe8] ss:$16 sps:$4 sm:$0xff]   ;;  %v8915_v32 = vld [vmem:[%s13682_s1 + $0x104] ss:$16 sps:$4 sm:$0xff]  }
   0xc   :  { %6295 = vmatprep.subr.bf16.mxu0 %v8885_v12  ;;  %6951 = vmatprep.subr.bf16.mxu1 %v8887_v13  ;;  %v8917_v33 = vld [vmem:[%s13682_s1 + $0x10c] ss:$16 sps:$4 sm:$0xff]   ;;  %v8919_v34 = vld [vmem:[%s13682_s1 + $0x100] ss:$16 sps:$4 sm:$0xff]   ;;  %v8920_v35 = vld [vmem:[%s13682_s1 + $0x108] ss:$16 sps:$4 sm:$0xff]  }
   0xd   :  { %v8921_v36 = vld [vmem:[%s13682_s1 + $0x124] ss:$16 sps:$4 sm:$0xff]   ;;  %v8923_v37 = vld [vmem:[%s13682_s1 + $0x12c] ss:$16 sps:$4 sm:$0xff]   ;;  %v8925_v38 = vld [vmem:[%s13682_s1 + $0x120] ss:$16 sps:$4 sm:$0xff]  }
   0xe   :  { %v8926_v39 = vld [vmem:[%s13682_s1 + $0x128] ss:$16 sps:$4 sm:$0xff]   ;;  %v8927_v40 = vld [vmem:[%s13682_s1 + $0x144] ss:$16 sps:$4 sm:$0xff]   ;;  %v8929_v41 = vld [vmem:[%s13682_s1 + $0x14c] ss:$16 sps:$4 sm:$0xff]  }
   0xf   :  { %6296 = vmatpush1.bf16.msra.mxu0 %v8889_v14  ;;  %6952 = vmatpush1.bf16.msra.mxu1 %v8890_v15  ;;  %v8931_v42 = vld [vmem:[%s13682_s1 + $0x140] ss:$16 sps:$4 sm:$0xff]   ;;  %v8932_v43 = vld [vmem:[%s13682_s1 + $0x148] ss:$16 sps:$4 sm:$0xff]   ;;  %v8933_v44 = vld [vmem:[%s13682_s1 + $0x164] ss:$16 sps:$4 sm:$0xff]  }
  0x10   :  { %6297 = vmatprep.subr.bf16.mxu0 %v8891_v16  ;;  %6953 = vmatprep.subr.bf16.mxu1 %v8893_v17  ;;  %v8935_v45 = vld [vmem:[%s13682_s1 + $0x16c] ss:$16 sps:$4 sm:$0xff]   ;;  %v17_v46 = vld [vmem:[%s13683_s0] sm:$0xff]  ;;  %v8938_v49 = vld [vmem:[%s13682_s1 + $0x168] ss:$16 sps:$4 sm:$0xff]  }
  0x11   :  { %v8937_v47 = vld [vmem:[%s13682_s1 + $0x160] ss:$16 sps:$4 sm:$0xff]   ;;  %v7688_v48 = vcombine.high %v17_v46, %v17_v46  ;;  %v8939_v50 = vld [vmem:[%s13682_s1 + $0x184] ss:$16 sps:$4 sm:$0xff]   ;;  %v8941_v51 = vld [vmem:[%s13682_s1 + $0x18c] ss:$16 sps:$4 sm:$0xff]   ;;  %v7687_v4 = vcombine.low %v17_v46, %v17_v46 }
  0x12   :  { %v8943_v52 = vld [vmem:[%s13682_s1 + $0x180] ss:$16 sps:$4 sm:$0xff]   ;;  %v8944_v53 = vld [vmem:[%s13682_s1 + $0x188] ss:$16 sps:$4 sm:$0xff]   ;;  %v8945_v54 = vld [vmem:[%s13682_s1 + $0x1a4] ss:$16 sps:$4 sm:$0xff]  }
  0x13   :  { %6298 = vmatpush1.bf16.msra.mxu0 %v8895_v18  ;;  %6954 = vmatpush1.bf16.msra.mxu1 %v8896_v19  ;;  %v8947_v55 = vld [vmem:[%s13682_s1 + $0x1ac] ss:$16 sps:$4 sm:$0xff]   ;;  %v8949_v56 = vld [vmem:[%s13682_s1 + $0x1a0] ss:$16 sps:$4 sm:$0xff]   ;;  %v8950_v57 = vld [vmem:[%s13682_s1 + $0x1a8] ss:$16 sps:$4 sm:$0xff]  }
  0x14   :  { %6299 = vmatprep.subr.bf16.mxu0 %v8897_v20  ;;  %6955 = vmatprep.subr.bf16.mxu1 %v8899_v21  ;;  %v8951_v58 = vld [vmem:[%s13682_s1 + $0x1c4] ss:$16 sps:$4 sm:$0xff]   ;;  %v8953_v59 = vld [vmem:[%s13682_s1 + $0x1cc] ss:$16 sps:$4 sm:$0xff]   ;;  %v8955_v60 = vld [vmem:[%s13682_s1 + $0x1c0] ss:$16 sps:$4 sm:$0xff]  }
  0x15   :  { %6321 = vmatprep.mubr.bf16.mxu0 %v7688_v48  ;;  %6977 = vmatprep.mubr.bf16.mxu1 %v7688_v48  ;;  %v8956_v61 = vld [vmem:[%s13682_s1 + $0x1c8] ss:$16 sps:$4 sm:$0xff]   ;;  %v8957_v62 = vld [vmem:[%s13682_s1 + $0x1e4] ss:$16 sps:$4 sm:$0xff]   ;;  %v8959_v63 = vld [vmem:[%s13682_s1 + $0x1ec] ss:$16 sps:$4 sm:$0xff]  }
  0x16   :  { %v8961_v0 = vld [vmem:[%s13682_s1 + $0x1e0] ss:$16 sps:$4 sm:$0xff]   ;;  %v8962_v1 = vld [vmem:[%s13682_s1 + $0x1e8] ss:$16 sps:$4 sm:$0xff]   ;;  %v8967_v2 = vld [vmem:[%s13682_s1 + $0x204] ss:$16 sps:$4 sm:$0xff]  }
  0x17   :  { %6300 = vmatpush1.bf16.msra.mxu0 %v8901_v22  ;;  %6956 = vmatpush1.bf16.msra.mxu1 %v8902_v23  ;;  %v8970_v3 = vld [vmem:[%s13682_s1 + $0x20c] ss:$16 sps:$4 sm:$0xff]   ;;  %v8965_v5 = vld [vmem:[%s13682_s1 + $0x200] ss:$16 sps:$4 sm:$0xff]   ;;  %v8968_v6 = vld [vmem:[%s13682_s1 + $0x208] ss:$16 sps:$4 sm:$0xff]  }
  0x18   :  { %6301 = vmatprep.subr.bf16.mxu0 %v8903_v24  ;;  %6957 = vmatprep.subr.bf16.mxu1 %v8905_v25  ;;  %v8973_v7 = vld [vmem:[%s13682_s1 + $0x224] ss:$16 sps:$4 sm:$0xff]   ;;  %v8976_v8 = vld [vmem:[%s13682_s1 + $0x22c] ss:$16 sps:$4 sm:$0xff]   ;;  %v8971_v9 = vld [vmem:[%s13682_s1 + $0x220] ss:$16 sps:$4 sm:$0xff]  }
  0x19   :  { %v8974_v10 = vld [vmem:[%s13682_s1 + $0x228] ss:$16 sps:$4 sm:$0xff]   ;;  %v8979_v11 = vld [vmem:[%s13682_s1 + $0x244] ss:$16 sps:$4 sm:$0xff]   ;;  %v8982_v12 = vld [vmem:[%s13682_s1 + $0x24c] ss:$16 sps:$4 sm:$0xff]  }
  0x1a   :  { %v8977_v13 = vld [vmem:[%s13682_s1 + $0x240] ss:$16 sps:$4 sm:$0xff]   ;;  %v8980_v14 = vld [vmem:[%s13682_s1 + $0x248] ss:$16 sps:$4 sm:$0xff]   ;;  %v8985_v15 = vld [vmem:[%s13682_s1 + $0x264] ss:$16 sps:$4 sm:$0xff]  }
  0x1b   :  { %6302 = vmatpush1.bf16.msra.mxu0 %v8907_v26  ;;  %6958 = vmatpush1.bf16.msra.mxu1 %v8908_v27  ;;  %v8988_v16 = vld [vmem:[%s13682_s1 + $0x26c] ss:$16 sps:$4 sm:$0xff]   ;;  %v8983_v17 = vld [vmem:[%s13682_s1 + $0x260] ss:$16 sps:$4 sm:$0xff]   ;;  %v8986_v18 = vld [vmem:[%s13682_s1 + $0x268] ss:$16 sps:$4 sm:$0xff]  }
  0x1c   :  { %6303 = vmatprep.subr.bf16.mxu0 %v8909_v28  ;;  %6959 = vmatprep.subr.bf16.mxu1 %v8911_v29  ;;  %v8991_v19 = vld [vmem:[%s13682_s1 + $0x284] ss:$16 sps:$4 sm:$0xff]   ;;  %v8994_v20 = vld [vmem:[%s13682_s1 + $0x28c] ss:$16 sps:$4 sm:$0xff]   ;;  %v8989_v21 = vld [vmem:[%s13682_s1 + $0x280] ss:$16 sps:$4 sm:$0xff]  }
  0x1d   :  { %v8992_v22 = vld [vmem:[%s13682_s1 + $0x288] ss:$16 sps:$4 sm:$0xff]   ;;  %v8997_v23 = vld [vmem:[%s13682_s1 + $0x2a4] ss:$16 sps:$4 sm:$0xff]   ;;  %v9000_v24 = vld [vmem:[%s13682_s1 + $0x2ac] ss:$16 sps:$4 sm:$0xff]  }
  0x1e   :  { %v8995_v25 = vld [vmem:[%s13682_s1 + $0x2a0] ss:$16 sps:$4 sm:$0xff]   ;;  %v8998_v26 = vld [vmem:[%s13682_s1 + $0x2a8] ss:$16 sps:$4 sm:$0xff]   ;;  %v9003_v27 = vld [vmem:[%s13682_s1 + $0x2c4] ss:$16 sps:$4 sm:$0xff]  }
  0x1f   :  { %6304 = vmatpush1.bf16.msra.mxu0 %v8913_v30  ;;  %6960 = vmatpush1.bf16.msra.mxu1 %v8914_v31  ;;  %v9006_v28 = vld [vmem:[%s13682_s1 + $0x2cc] ss:$16 sps:$4 sm:$0xff]   ;;  %v9001_v31 = vld [vmem:[%s13682_s1 + $0x2c0] ss:$16 sps:$4 sm:$0xff]   ;;  %v9028_v48 = vld [vmem:[%s13682_s1 + $0x348] ss:$16 sps:$4 sm:$0xff]  }
  0x20   :  { %6305 = vmatprep.subr.bf16.mxu0 %v8915_v32  ;;  %6961 = vmatprep.subr.bf16.mxu1 %v8917_v33  ;;  %v10736_v29 = vld [vmem:[%s13683_s0 + $0x8] sm:$0xff]  ;;  %v9009_v33 = vld [vmem:[%s13682_s1 + $0x2e4] ss:$16 sps:$4 sm:$0xff]  }
  0x21   :  { %v7690_v30 = vcombine.high %v10736_v29, %v10736_v29  ;;  %v9004_v32 = vld [vmem:[%s13682_s1 + $0x2c8] ss:$16 sps:$4 sm:$0xff]   ;;  %v9030_v46 = vld [vmem:[%s13682_s1 + $0x34c] ss:$16 sps:$4 sm:$0xff]  }
  0x23   :  { %6306 = vmatpush1.bf16.msra.mxu0 %v8919_v34  ;;  %6962 = vmatpush1.bf16.msra.mxu1 %v8920_v35  ;;  %v9012_v34 = vld [vmem:[%s13682_s1 + $0x2ec] ss:$16 sps:$4 sm:$0xff]   ;;  %v9007_v35 = vld [vmem:[%s13682_s1 + $0x2e0] ss:$16 sps:$4 sm:$0xff]  }
  0x24   :  { %6307 = vmatprep.subr.bf16.mxu0 %v8921_v36  ;;  %6963 = vmatprep.subr.bf16.mxu1 %v8923_v37  ;;  %v9010_v36 = vld [vmem:[%s13682_s1 + $0x2e8] ss:$16 sps:$4 sm:$0xff]   ;;  %v9015_v37 = vld [vmem:[%s13682_s1 + $0x304] ss:$16 sps:$4 sm:$0xff]  }
  0x27   :  { %6308 = vmatpush1.bf16.msra.mxu0 %v8925_v38  ;;  %6964 = vmatpush1.bf16.msra.mxu1 %v8926_v39  ;;  %v9018_v38 = vld [vmem:[%s13682_s1 + $0x30c] ss:$16 sps:$4 sm:$0xff]   ;;  %v9013_v39 = vld [vmem:[%s13682_s1 + $0x300] ss:$16 sps:$4 sm:$0xff]  }
  0x28   :  { %6309 = vmatprep.subr.bf16.mxu0 %v8927_v40  ;;  %6965 = vmatprep.subr.bf16.mxu1 %v8929_v41  ;;  %v9016_v40 = vld [vmem:[%s13682_s1 + $0x308] ss:$16 sps:$4 sm:$0xff]   ;;  %v9021_v41 = vld [vmem:[%s13682_s1 + $0x324] ss:$16 sps:$4 sm:$0xff]  }
  0x2b   :  { %6310 = vmatpush1.bf16.msra.mxu0 %v8931_v42  ;;  %6966 = vmatpush1.bf16.msra.mxu1 %v8932_v43  ;;  %v9024_v42 = vld [vmem:[%s13682_s1 + $0x32c] ss:$16 sps:$4 sm:$0xff]   ;;  %v9019_v43 = vld [vmem:[%s13682_s1 + $0x320] ss:$16 sps:$4 sm:$0xff]  }
  0x2c   :  { %6311 = vmatprep.subr.bf16.mxu0 %v8933_v44  ;;  %6967 = vmatprep.subr.bf16.mxu1 %v8935_v45  ;;  %v9022_v44 = vld [vmem:[%s13682_s1 + $0x328] ss:$16 sps:$4 sm:$0xff]   ;;  %v9027_v45 = vld [vmem:[%s13682_s1 + $0x344] ss:$16 sps:$4 sm:$0xff]  }
  0x2f   :  { %6312 = vmatpush1.bf16.msra.mxu0 %v8937_v47  ;;  %6968 = vmatpush1.bf16.msra.mxu1 %v8938_v49  ;;  %v9025_v47 = vld [vmem:[%s13682_s1 + $0x340] ss:$16 sps:$4 sm:$0xff]   ;;  %v9033_v49 = vld [vmem:[%s13682_s1 + $0x364] ss:$16 sps:$4 sm:$0xff]  }
  0x30   :  { %6313 = vmatprep.subr.bf16.mxu0 %v8939_v50  ;;  %6969 = vmatprep.subr.bf16.mxu1 %v8941_v51  ;;  %v9036_v50 = vld [vmem:[%s13682_s1 + $0x36c] ss:$16 sps:$4 sm:$0xff]   ;;  %v9031_v51 = vld [vmem:[%s13682_s1 + $0x360] ss:$16 sps:$4 sm:$0xff]  }
  0x33   :  { %6314 = vmatpush1.bf16.msra.mxu0 %v8943_v52  ;;  %6970 = vmatpush1.bf16.msra.mxu1 %v8944_v53  ;;  %v9034_v52 = vld [vmem:[%s13682_s1 + $0x368] ss:$16 sps:$4 sm:$0xff]   ;;  %v9039_v53 = vld [vmem:[%s13682_s1 + $0x384] ss:$16 sps:$4 sm:$0xff]  }
  0x34   :  { %6315 = vmatprep.subr.bf16.mxu0 %v8945_v54  ;;  %6971 = vmatprep.subr.bf16.mxu1 %v8947_v55  ;;  %v9042_v54 = vld [vmem:[%s13682_s1 + $0x38c] ss:$16 sps:$4 sm:$0xff]   ;;  %v9037_v55 = vld [vmem:[%s13682_s1 + $0x380] ss:$16 sps:$4 sm:$0xff]  }
  0x37   :  { %6316 = vmatpush1.bf16.msra.mxu0 %v8949_v56  ;;  %6972 = vmatpush1.bf16.msra.mxu1 %v8950_v57  ;;  %v9040_v56 = vld [vmem:[%s13682_s1 + $0x388] ss:$16 sps:$4 sm:$0xff]   ;;  %v9045_v57 = vld [vmem:[%s13682_s1 + $0x3a4] ss:$16 sps:$4 sm:$0xff]  }
  0x38   :  { %6317 = vmatprep.subr.bf16.mxu0 %v8951_v58  ;;  %6973 = vmatprep.subr.bf16.mxu1 %v8953_v59  ;;  %v9048_v58 = vld [vmem:[%s13682_s1 + $0x3ac] ss:$16 sps:$4 sm:$0xff]   ;;  %v9043_v59 = vld [vmem:[%s13682_s1 + $0x3a0] ss:$16 sps:$4 sm:$0xff]  }
  0x3b   :  { %6318 = vmatpush1.bf16.msra.mxu0 %v8955_v60  ;;  %6974 = vmatpush1.bf16.msra.mxu1 %v8956_v61  ;;  %v9046_v60 = vld [vmem:[%s13682_s1 + $0x3a8] ss:$16 sps:$4 sm:$0xff]   ;;  %v9051_v61 = vld [vmem:[%s13682_s1 + $0x3c4] ss:$16 sps:$4 sm:$0xff]  }
  0x3c   :  { %6319 = vmatprep.subr.bf16.mxu0 %v8957_v62  ;;  %6975 = vmatprep.subr.bf16.mxu1 %v8959_v63  ;;  %v9054_v62 = vld [vmem:[%s13682_s1 + $0x3cc] ss:$16 sps:$4 sm:$0xff]   ;;  %v9049_v63 = vld [vmem:[%s13682_s1 + $0x3c0] ss:$16 sps:$4 sm:$0xff]  }
  0x3f   :  { %6320 = vmatpush1.bf16.msra.mxu0 %v8961_v0  ;;  %6976 = vmatpush1.bf16.msra.mxu1 %v8962_v1  ;;  %v9052_v0 = vld [vmem:[%s13682_s1 + $0x3c8] ss:$16 sps:$4 sm:$0xff]   ;;  %v9057_v1 = vld [vmem:[%s13682_s1 + $0x3e4] ss:$16 sps:$4 sm:$0xff]  }
  0x40   :  { %6330 = vmatprep.subr.bf16.mxu0 %v8967_v2  ;;  %6986 = vmatprep.subr.bf16.mxu1 %v8970_v3  ;;  %v9060_v2 = vld [vmem:[%s13682_s1 + $0x3ec] ss:$16 sps:$4 sm:$0xff]   ;;  %v9055_v3 = vld [vmem:[%s13682_s1 + $0x3e0] ss:$16 sps:$4 sm:$0xff]  }
  0x42   :  { %6322 = vmatmul.mubr.bf16.vlgmr.msra.gmra.mrb[0].mxu0 %v7687_v4  ;;  %6978 = vmatmul.mubr.bf16.vlgmr.msra.gmra.mrb[0].mxu1 %v7687_v4  ;;  %v9058_v4 = vld [vmem:[%s13682_s1 + $0x3e8] ss:$16 sps:$4 sm:$0xff]  }
  0x43   :  { %6331 = vmatpush1.bf16.msra.mxu0 %v8965_v5  ;;  %6987 = vmatpush1.bf16.msra.mxu1 %v8968_v6  ;;  %v9065_v5 = vld [vmem:[%s13682_s1 + $0x404] ss:$16 sps:$4 sm:$0xff]   ;;  %v9068_v6 = vld [vmem:[%s13682_s1 + $0x40c] ss:$16 sps:$4 sm:$0xff]  }
  0x44   :  { %6332 = vmatprep.subr.bf16.mxu0 %v8973_v7  ;;  %6988 = vmatprep.subr.bf16.mxu1 %v8976_v8  ;;  %v7689_v7 = vcombine.low %v10736_v29, %v10736_v29  ;;  %v9063_v8 = vld [vmem:[%s13682_s1 + $0x400] ss:$16 sps:$4 sm:$0xff]   ;;  %v9098_v29 = vld [vmem:[%s13682_s1 + $0x4ac] ss:$16 sps:$4 sm:$0xff]  }
  0x45   :  { %6362 = vmatprep.mubr.bf16.mxu0 %v7690_v30  ;;  %7018 = vmatprep.mubr.bf16.mxu1 %v7690_v30  ;;  %v9093_v30 = vld [vmem:[%s13682_s1 + $0x4a0] ss:$16 sps:$4 sm:$0xff]  }
  0x47   :  { %6333 = vmatpush1.bf16.msra.mxu0 %v8971_v9  ;;  %6989 = vmatpush1.bf16.msra.mxu1 %v8974_v10  ;;  %v9066_v9 = vld [vmem:[%s13682_s1 + $0x408] ss:$16 sps:$4 sm:$0xff]   ;;  %v9071_v10 = vld [vmem:[%s13682_s1 + $0x424] ss:$16 sps:$4 sm:$0xff]  }
  0x48   :  { %6334 = vmatprep.subr.bf16.mxu0 %v8979_v11  ;;  %6990 = vmatprep.subr.bf16.mxu1 %v8982_v12  ;;  %v10874_v11 = vld [vmem:[%s13683_s0 + $0x10] sm:$0xff]  ;;  %v9074_v12 = vld [vmem:[%s13682_s1 + $0x42c] ss:$16 sps:$4 sm:$0xff]  }
  0x4b   :  { %6335 = vmatpush1.bf16.msra.mxu0 %v8977_v13  ;;  %6991 = vmatpush1.bf16.msra.mxu1 %v8980_v14  ;;  %v7692_v13 = vcombine.high %v10874_v11, %v10874_v11  ;;  %v9069_v14 = vld [vmem:[%s13682_s1 + $0x420] ss:$16 sps:$4 sm:$0xff]  }
  0x4c   :  { %6336 = vmatprep.subr.bf16.mxu0 %v8985_v15  ;;  %6992 = vmatprep.subr.bf16.mxu1 %v8988_v16  ;;  %v9072_v15 = vld [vmem:[%s13682_s1 + $0x428] ss:$16 sps:$4 sm:$0xff]   ;;  %v9077_v16 = vld [vmem:[%s13682_s1 + $0x444] ss:$16 sps:$4 sm:$0xff]  }
  0x4f   :  { %6337 = vmatpush1.bf16.msra.mxu0 %v8983_v17  ;;  %6993 = vmatpush1.bf16.msra.mxu1 %v8986_v18  ;;  %v9080_v17 = vld [vmem:[%s13682_s1 + $0x44c] ss:$16 sps:$4 sm:$0xff]   ;;  %v9075_v18 = vld [vmem:[%s13682_s1 + $0x440] ss:$16 sps:$4 sm:$0xff]  }
  0x50   :  { %6338 = vmatprep.subr.bf16.mxu0 %v8991_v19  ;;  %6994 = vmatprep.subr.bf16.mxu1 %v8994_v20  ;;  %v9078_v19 = vld [vmem:[%s13682_s1 + $0x448] ss:$16 sps:$4 sm:$0xff]   ;;  %v9083_v20 = vld [vmem:[%s13682_s1 + $0x464] ss:$16 sps:$4 sm:$0xff]  }
  0x53   :  { %6339 = vmatpush1.bf16.msra.mxu0 %v8989_v21  ;;  %6995 = vmatpush1.bf16.msra.mxu1 %v8992_v22  ;;  %v9086_v21 = vld [vmem:[%s13682_s1 + $0x46c] ss:$16 sps:$4 sm:$0xff]   ;;  %v9081_v22 = vld [vmem:[%s13682_s1 + $0x460] ss:$16 sps:$4 sm:$0xff]  }
  0x54   :  { %6340 = vmatprep.subr.bf16.mxu0 %v8997_v23  ;;  %6996 = vmatprep.subr.bf16.mxu1 %v9000_v24  ;;  %v9084_v23 = vld [vmem:[%s13682_s1 + $0x468] ss:$16 sps:$4 sm:$0xff]   ;;  %v9089_v24 = vld [vmem:[%s13682_s1 + $0x484] ss:$16 sps:$4 sm:$0xff]  }
  0x57   :  { %6341 = vmatpush1.bf16.msra.mxu0 %v8995_v25  ;;  %6997 = vmatpush1.bf16.msra.mxu1 %v8998_v26  ;;  %v9092_v25 = vld [vmem:[%s13682_s1 + $0x48c] ss:$16 sps:$4 sm:$0xff]   ;;  %v9087_v26 = vld [vmem:[%s13682_s1 + $0x480] ss:$16 sps:$4 sm:$0xff]  }
  0x58   :  { %6342 = vmatprep.subr.bf16.mxu0 %v9003_v27  ;;  %6998 = vmatprep.subr.bf16.mxu1 %v9006_v28  ;;  %v9090_v27 = vld [vmem:[%s13682_s1 + $0x488] ss:$16 sps:$4 sm:$0xff]   ;;  %v9095_v28 = vld [vmem:[%s13682_s1 + $0x4a4] ss:$16 sps:$4 sm:$0xff]  }
  0x5b   :  { %6343 = vmatpush1.bf16.msra.mxu0 %v9001_v31  ;;  %6999 = vmatpush1.bf16.msra.mxu1 %v9004_v32  ;;  %v9096_v31 = vld [vmem:[%s13682_s1 + $0x4a8] ss:$16 sps:$4 sm:$0xff]   ;;  %v9101_v32 = vld [vmem:[%s13682_s1 + $0x4c4] ss:$16 sps:$4 sm:$0xff]  }
  0x5c   :  { %6344 = vmatprep.subr.bf16.mxu0 %v9009_v33  ;;  %7000 = vmatprep.subr.bf16.mxu1 %v9012_v34  ;;  %v9104_v33 = vld [vmem:[%s13682_s1 + $0x4cc] ss:$16 sps:$4 sm:$0xff]   ;;  %v9099_v34 = vld [vmem:[%s13682_s1 + $0x4c0] ss:$16 sps:$4 sm:$0xff]  }
  0x5f   :  { %6345 = vmatpush1.bf16.msra.mxu0 %v9007_v35  ;;  %7001 = vmatpush1.bf16.msra.mxu1 %v9010_v36  ;;  %v9102_v35 = vld [vmem:[%s13682_s1 + $0x4c8] ss:$16 sps:$4 sm:$0xff]   ;;  %v9107_v36 = vld [vmem:[%s13682_s1 + $0x4e4] ss:$16 sps:$4 sm:$0xff]  }
  0x60   :  { %6346 = vmatprep.subr.bf16.mxu0 %v9015_v37  ;;  %7002 = vmatprep.subr.bf16.mxu1 %v9018_v38  ;;  %v9110_v37 = vld [vmem:[%s13682_s1 + $0x4ec] ss:$16 sps:$4 sm:$0xff]   ;;  %v9105_v38 = vld [vmem:[%s13682_s1 + $0x4e0] ss:$16 sps:$4 sm:$0xff]  }
  0x63   :  { %6347 = vmatpush1.bf16.msra.mxu0 %v9013_v39  ;;  %7003 = vmatpush1.bf16.msra.mxu1 %v9016_v40  ;;  %v9108_v39 = vld [vmem:[%s13682_s1 + $0x4e8] ss:$16 sps:$4 sm:$0xff]   ;;  %v9113_v40 = vld [vmem:[%s13682_s1 + $0x504] ss:$16 sps:$4 sm:$0xff]  }
  0x64   :  { %6348 = vmatprep.subr.bf16.mxu0 %v9021_v41  ;;  %7004 = vmatprep.subr.bf16.mxu1 %v9024_v42  ;;  %v9116_v41 = vld [vmem:[%s13682_s1 + $0x50c] ss:$16 sps:$4 sm:$0xff]   ;;  %v9111_v42 = vld [vmem:[%s13682_s1 + $0x500] ss:$16 sps:$4 sm:$0xff]  }
  0x67   :  { %6349 = vmatpush1.bf16.msra.mxu0 %v9019_v43  ;;  %7005 = vmatpush1.bf16.msra.mxu1 %v9022_v44  ;;  %v9114_v43 = vld [vmem:[%s13682_s1 + $0x508] ss:$16 sps:$4 sm:$0xff]   ;;  %v9119_v44 = vld [vmem:[%s13682_s1 + $0x524] ss:$16 sps:$4 sm:$0xff]  }
  0x68   :  { %6350 = vmatprep.subr.bf16.mxu0 %v9027_v45  ;;  %7006 = vmatprep.subr.bf16.mxu1 %v9030_v46  ;;  %v9122_v45 = vld [vmem:[%s13682_s1 + $0x52c] ss:$16 sps:$4 sm:$0xff]   ;;  %v9117_v46 = vld [vmem:[%s13682_s1 + $0x520] ss:$16 sps:$4 sm:$0xff]  }
  0x6b   :  { %6351 = vmatpush1.bf16.msra.mxu0 %v9025_v47  ;;  %7007 = vmatpush1.bf16.msra.mxu1 %v9028_v48  ;;  %v9120_v47 = vld [vmem:[%s13682_s1 + $0x528] ss:$16 sps:$4 sm:$0xff]   ;;  %v9125_v48 = vld [vmem:[%s13682_s1 + $0x544] ss:$16 sps:$4 sm:$0xff]  }
  0x6c   :  { %6352 = vmatprep.subr.bf16.mxu0 %v9033_v49  ;;  %7008 = vmatprep.subr.bf16.mxu1 %v9036_v50  ;;  %v9128_v49 = vld [vmem:[%s13682_s1 + $0x54c] ss:$16 sps:$4 sm:$0xff]   ;;  %v9123_v50 = vld [vmem:[%s13682_s1 + $0x540] ss:$16 sps:$4 sm:$0xff]  }
  0x6f   :  { %6353 = vmatpush1.bf16.msra.mxu0 %v9031_v51  ;;  %7009 = vmatpush1.bf16.msra.mxu1 %v9034_v52  ;;  %v9126_v51 = vld [vmem:[%s13682_s1 + $0x548] ss:$16 sps:$4 sm:$0xff]   ;;  %v9131_v52 = vld [vmem:[%s13682_s1 + $0x564] ss:$16 sps:$4 sm:$0xff]  }
  0x70   :  { %6354 = vmatprep.subr.bf16.mxu0 %v9039_v53  ;;  %7010 = vmatprep.subr.bf16.mxu1 %v9042_v54  ;;  %v9134_v53 = vld [vmem:[%s13682_s1 + $0x56c] ss:$16 sps:$4 sm:$0xff]   ;;  %v9129_v54 = vld [vmem:[%s13682_s1 + $0x560] ss:$16 sps:$4 sm:$0xff]  }
  0x73   :  { %6355 = vmatpush1.bf16.msra.mxu0 %v9037_v55  ;;  %7011 = vmatpush1.bf16.msra.mxu1 %v9040_v56  ;;  %v9132_v55 = vld [vmem:[%s13682_s1 + $0x568] ss:$16 sps:$4 sm:$0xff]   ;;  %v9137_v56 = vld [vmem:[%s13682_s1 + $0x584] ss:$16 sps:$4 sm:$0xff]  }
  0x74   :  { %6356 = vmatprep.subr.bf16.mxu0 %v9045_v57  ;;  %7012 = vmatprep.subr.bf16.mxu1 %v9048_v58  ;;  %v9140_v57 = vld [vmem:[%s13682_s1 + $0x58c] ss:$16 sps:$4 sm:$0xff]   ;;  %v9135_v58 = vld [vmem:[%s13682_s1 + $0x580] ss:$16 sps:$4 sm:$0xff]  }
  0x77   :  { %6357 = vmatpush1.bf16.msra.mxu0 %v9043_v59  ;;  %7013 = vmatpush1.bf16.msra.mxu1 %v9046_v60  ;;  %v9138_v59 = vld [vmem:[%s13682_s1 + $0x588] ss:$16 sps:$4 sm:$0xff]   ;;  %v9143_v60 = vld [vmem:[%s13682_s1 + $0x5a4] ss:$16 sps:$4 sm:$0xff]  }
  0x78   :  { %6358 = vmatprep.subr.bf16.mxu0 %v9051_v61  ;;  %7014 = vmatprep.subr.bf16.mxu1 %v9054_v62  ;;  %v9146_v61 = vld [vmem:[%s13682_s1 + $0x5ac] ss:$16 sps:$4 sm:$0xff]   ;;  %v9141_v62 = vld [vmem:[%s13682_s1 + $0x5a0] ss:$16 sps:$4 sm:$0xff]  }
  0x7b   :  { %6359 = vmatpush1.bf16.msra.mxu0 %v9049_v63  ;;  %7015 = vmatpush1.bf16.msra.mxu1 %v9052_v0  ;;  %v9144_v63 = vld [vmem:[%s13682_s1 + $0x5a8] ss:$16 sps:$4 sm:$0xff]   ;;  %v9149_v0 = vld [vmem:[%s13682_s1 + $0x5c4] ss:$16 sps:$4 sm:$0xff]  }
  0x7c   :  { %6360 = vmatprep.subr.bf16.mxu0 %v9057_v1  ;;  %7016 = vmatprep.subr.bf16.mxu1 %v9060_v2  ;;  %v9152_v1 = vld [vmem:[%s13682_s1 + $0x5cc] ss:$16 sps:$4 sm:$0xff]   ;;  %v9147_v2 = vld [vmem:[%s13682_s1 + $0x5c0] ss:$16 sps:$4 sm:$0xff]  }
  0x7f   :  { %6361 = vmatpush1.bf16.msra.mxu0 %v9055_v3  ;;  %7017 = vmatpush1.bf16.msra.mxu1 %v9058_v4  ;;  %v9150_v3 = vld [vmem:[%s13682_s1 + $0x5c8] ss:$16 sps:$4 sm:$0xff]   ;;  %v9155_v4 = vld [vmem:[%s13682_s1 + $0x5e4] ss:$16 sps:$4 sm:$0xff]  }
  0x80   :  { %6371 = vmatprep.subr.bf16.mxu0 %v9065_v5  ;;  %7027 = vmatprep.subr.bf16.mxu1 %v9068_v6  ;;  %v9158_v5 = vld [vmem:[%s13682_s1 + $0x5ec] ss:$16 sps:$4 sm:$0xff]   ;;  %v9153_v6 = vld [vmem:[%s13682_s1 + $0x5e0] ss:$16 sps:$4 sm:$0xff]  }
  0x82   :  { %6363 = vmatmul.mubr.bf16.vlgmr.msra.gmra.mrb[0].mxu0 %v7689_v7  ;;  %7019 = vmatmul.mubr.bf16.vlgmr.msra.gmra.mrb[0].mxu1 %v7689_v7  ;;  %v9156_v7 = vld [vmem:[%s13682_s1 + $0x5e8] ss:$16 sps:$4 sm:$0xff]  }
  0x83   :  { %6372 = vmatpush1.bf16.msra.mxu0 %v9063_v8  ;;  %7028 = vmatpush1.bf16.msra.mxu1 %v9066_v9  ;;  %v9163_v8 = vld [vmem:[%s13682_s1 + $0x604] ss:$16 sps:$4 sm:$0xff]   ;;  %v9166_v9 = vld [vmem:[%s13682_s1 + $0x60c] ss:$16 sps:$4 sm:$0xff]  }
  0x84   :  { %6373 = vmatprep.subr.bf16.mxu0 %v9071_v10  ;;  %7029 = vmatprep.subr.bf16.mxu1 %v9074_v12  ;;  %v9161_v10 = vld [vmem:[%s13682_s1 + $0x600] ss:$16 sps:$4 sm:$0xff]   ;;  %v7691_v12 = vcombine.low %v10874_v11, %v10874_v11  ;;  %v9172_v11 = vld [vmem:[%s13682_s1 + $0x62c] ss:$16 sps:$4 sm:$0xff]  }
  0x85   :  { %6403 = vmatprep.mubr.bf16.mxu0 %v7692_v13  ;;  %7059 = vmatprep.mubr.bf16.mxu1 %v7692_v13  ;;  %v9164_v13 = vld [vmem:[%s13682_s1 + $0x608] ss:$16 sps:$4 sm:$0xff]  }
  0x87   :  { %6374 = vmatpush1.bf16.msra.mxu0 %v9069_v14  ;;  %7030 = vmatpush1.bf16.msra.mxu1 %v9072_v15  ;;  %v11072_v14 = vld [vmem:[%s13683_s0 + $0x18] sm:$0xff]  ;;  %v9169_v15 = vld [vmem:[%s13682_s1 + $0x624] ss:$16 sps:$4 sm:$0xff]  }
  0x88   :  { %6375 = vmatprep.subr.bf16.mxu0 %v9077_v16  ;;  %7031 = vmatprep.subr.bf16.mxu1 %v9080_v17  ;;  %v7694_v16 = vcombine.high %v11072_v14, %v11072_v14  ;;  %v9167_v17 = vld [vmem:[%s13682_s1 + $0x620] ss:$16 sps:$4 sm:$0xff]  }
  0x8b   :  { %6376 = vmatpush1.bf16.msra.mxu0 %v9075_v18  ;;  %7032 = vmatpush1.bf16.msra.mxu1 %v9078_v19  ;;  %v9170_v18 = vld [vmem:[%s13682_s1 + $0x628] ss:$16 sps:$4 sm:$0xff]   ;;  %v9175_v19 = vld [vmem:[%s13682_s1 + $0x644] ss:$16 sps:$4 sm:$0xff]  }
  0x8c   :  { %6377 = vmatprep.subr.bf16.mxu0 %v9083_v20  ;;  %7033 = vmatprep.subr.bf16.mxu1 %v9086_v21  ;;  %v9178_v20 = vld [vmem:[%s13682_s1 + $0x64c] ss:$16 sps:$4 sm:$0xff]   ;;  %v9173_v21 = vld [vmem:[%s13682_s1 + $0x640] ss:$16 sps:$4 sm:$0xff]  }
  0x8f   :  { %6378 = vmatpush1.bf16.msra.mxu0 %v9081_v22  ;;  %7034 = vmatpush1.bf16.msra.mxu1 %v9084_v23  ;;  %v9176_v22 = vld [vmem:[%s13682_s1 + $0x648] ss:$16 sps:$4 sm:$0xff]   ;;  %v9181_v23 = vld [vmem:[%s13682_s1 + $0x664] ss:$16 sps:$4 sm:$0xff]  }
  0x90   :  { %6379 = vmatprep.subr.bf16.mxu0 %v9089_v24  ;;  %7035 = vmatprep.subr.bf16.mxu1 %v9092_v25  ;;  %v9184_v24 = vld [vmem:[%s13682_s1 + $0x66c] ss:$16 sps:$4 sm:$0xff]   ;;  %v9179_v25 = vld [vmem:[%s13682_s1 + $0x660] ss:$16 sps:$4 sm:$0xff]  }
  0x93   :  { %6380 = vmatpush1.bf16.msra.mxu0 %v9087_v26  ;;  %7036 = vmatpush1.bf16.msra.mxu1 %v9090_v27  ;;  %v9182_v26 = vld [vmem:[%s13682_s1 + $0x668] ss:$16 sps:$4 sm:$0xff]   ;;  %v9187_v27 = vld [vmem:[%s13682_s1 + $0x684] ss:$16 sps:$4 sm:$0xff]  }
  0x94   :  { %6381 = vmatprep.subr.bf16.mxu0 %v9095_v28  ;;  %7037 = vmatprep.subr.bf16.mxu1 %v9098_v29  ;;  %v9190_v28 = vld [vmem:[%s13682_s1 + $0x68c] ss:$16 sps:$4 sm:$0xff]   ;;  %v9185_v29 = vld [vmem:[%s13682_s1 + $0x680] ss:$16 sps:$4 sm:$0xff]  }
  0x97   :  { %6382 = vmatpush1.bf16.msra.mxu0 %v9093_v30  ;;  %7038 = vmatpush1.bf16.msra.mxu1 %v9096_v31  ;;  %v9188_v30 = vld [vmem:[%s13682_s1 + $0x688] ss:$16 sps:$4 sm:$0xff]   ;;  %v9193_v31 = vld [vmem:[%s13682_s1 + $0x6a4] ss:$16 sps:$4 sm:$0xff]  }
  0x98   :  { %6383 = vmatprep.subr.bf16.mxu0 %v9101_v32  ;;  %7039 = vmatprep.subr.bf16.mxu1 %v9104_v33  ;;  %v9196_v32 = vld [vmem:[%s13682_s1 + $0x6ac] ss:$16 sps:$4 sm:$0xff]   ;;  %v9191_v33 = vld [vmem:[%s13682_s1 + $0x6a0] ss:$16 sps:$4 sm:$0xff]  }
  0x9b   :  { %6384 = vmatpush1.bf16.msra.mxu0 %v9099_v34  ;;  %7040 = vmatpush1.bf16.msra.mxu1 %v9102_v35  ;;  %v9194_v34 = vld [vmem:[%s13682_s1 + $0x6a8] ss:$16 sps:$4 sm:$0xff]   ;;  %v9199_v35 = vld [vmem:[%s13682_s1 + $0x6c4] ss:$16 sps:$4 sm:$0xff]  }
  0x9c   :  { %6385 = vmatprep.subr.bf16.mxu0 %v9107_v36  ;;  %7041 = vmatprep.subr.bf16.mxu1 %v9110_v37  ;;  %v9202_v36 = vld [vmem:[%s13682_s1 + $0x6cc] ss:$16 sps:$4 sm:$0xff]   ;;  %v9197_v37 = vld [vmem:[%s13682_s1 + $0x6c0] ss:$16 sps:$4 sm:$0xff]  }
  0x9f   :  { %6386 = vmatpush1.bf16.msra.mxu0 %v9105_v38  ;;  %7042 = vmatpush1.bf16.msra.mxu1 %v9108_v39  ;;  %v9200_v38 = vld [vmem:[%s13682_s1 + $0x6c8] ss:$16 sps:$4 sm:$0xff]   ;;  %v9205_v39 = vld [vmem:[%s13682_s1 + $0x6e4] ss:$16 sps:$4 sm:$0xff]  }
  0xa0   :  { %6387 = vmatprep.subr.bf16.mxu0 %v9113_v40  ;;  %7043 = vmatprep.subr.bf16.mxu1 %v9116_v41  ;;  %v9208_v40 = vld [vmem:[%s13682_s1 + $0x6ec] ss:$16 sps:$4 sm:$0xff]   ;;  %v9203_v41 = vld [vmem:[%s13682_s1 + $0x6e0] ss:$16 sps:$4 sm:$0xff]  }
  0xa3   :  { %6388 = vmatpush1.bf16.msra.mxu0 %v9111_v42  ;;  %7044 = vmatpush1.bf16.msra.mxu1 %v9114_v43  ;;  %v9206_v42 = vld [vmem:[%s13682_s1 + $0x6e8] ss:$16 sps:$4 sm:$0xff]   ;;  %v9211_v43 = vld [vmem:[%s13682_s1 + $0x704] ss:$16 sps:$4 sm:$0xff]  }
  0xa4   :  { %6389 = vmatprep.subr.bf16.mxu0 %v9119_v44  ;;  %7045 = vmatprep.subr.bf16.mxu1 %v9122_v45  ;;  %v9214_v44 = vld [vmem:[%s13682_s1 + $0x70c] ss:$16 sps:$4 sm:$0xff]   ;;  %v9209_v45 = vld [vmem:[%s13682_s1 + $0x700] ss:$16 sps:$4 sm:$0xff]  }
  0xa7   :  { %6390 = vmatpush1.bf16.msra.mxu0 %v9117_v46  ;;  %7046 = vmatpush1.bf16.msra.mxu1 %v9120_v47  ;;  %v9212_v46 = vld [vmem:[%s13682_s1 + $0x708] ss:$16 sps:$4 sm:$0xff]   ;;  %v9217_v47 = vld [vmem:[%s13682_s1 + $0x724] ss:$16 sps:$4 sm:$0xff]  }
  0xa8   :  { %6391 = vmatprep.subr.bf16.mxu0 %v9125_v48  ;;  %7047 = vmatprep.subr.bf16.mxu1 %v9128_v49  ;;  %v9220_v48 = vld [vmem:[%s13682_s1 + $0x72c] ss:$16 sps:$4 sm:$0xff]   ;;  %v9215_v49 = vld [vmem:[%s13682_s1 + $0x720] ss:$16 sps:$4 sm:$0xff]  }
  0xab   :  { %6392 = vmatpush1.bf16.msra.mxu0 %v9123_v50  ;;  %7048 = vmatpush1.bf16.msra.mxu1 %v9126_v51  ;;  %v9218_v50 = vld [vmem:[%s13682_s1 + $0x728] ss:$16 sps:$4 sm:$0xff]   ;;  %v9223_v51 = vld [vmem:[%s13682_s1 + $0x744] ss:$16 sps:$4 sm:$0xff]  }
  0xac   :  { %6393 = vmatprep.subr.bf16.mxu0 %v9131_v52  ;;  %7049 = vmatprep.subr.bf16.mxu1 %v9134_v53  ;;  %v9226_v52 = vld [vmem:[%s13682_s1 + $0x74c] ss:$16 sps:$4 sm:$0xff]   ;;  %v9221_v53 = vld [vmem:[%s13682_s1 + $0x740] ss:$16 sps:$4 sm:$0xff]  }
  0xaf   :  { %6394 = vmatpush1.bf16.msra.mxu0 %v9129_v54  ;;  %7050 = vmatpush1.bf16.msra.mxu1 %v9132_v55  ;;  %v9224_v54 = vld [vmem:[%s13682_s1 + $0x748] ss:$16 sps:$4 sm:$0xff]   ;;  %v9229_v55 = vld [vmem:[%s13682_s1 + $0x764] ss:$16 sps:$4 sm:$0xff]  }
  0xb0   :  { %6395 = vmatprep.subr.bf16.mxu0 %v9137_v56  ;;  %7051 = vmatprep.subr.bf16.mxu1 %v9140_v57  ;;  %v9232_v56 = vld [vmem:[%s13682_s1 + $0x76c] ss:$16 sps:$4 sm:$0xff]   ;;  %v9227_v57 = vld [vmem:[%s13682_s1 + $0x760] ss:$16 sps:$4 sm:$0xff]  }
  0xb3   :  { %6396 = vmatpush1.bf16.msra.mxu0 %v9135_v58  ;;  %7052 = vmatpush1.bf16.msra.mxu1 %v9138_v59  ;;  %v9230_v58 = vld [vmem:[%s13682_s1 + $0x768] ss:$16 sps:$4 sm:$0xff]   ;;  %v9235_v59 = vld [vmem:[%s13682_s1 + $0x784] ss:$16 sps:$4 sm:$0xff]  }
  0xb4   :  { %6397 = vmatprep.subr.bf16.mxu0 %v9143_v60  ;;  %7053 = vmatprep.subr.bf16.mxu1 %v9146_v61  ;;  %v9238_v60 = vld [vmem:[%s13682_s1 + $0x78c] ss:$16 sps:$4 sm:$0xff]   ;;  %v9233_v61 = vld [vmem:[%s13682_s1 + $0x780] ss:$16 sps:$4 sm:$0xff]  }
  0xb7   :  { %6398 = vmatpush1.bf16.msra.mxu0 %v9141_v62  ;;  %7054 = vmatpush1.bf16.msra.mxu1 %v9144_v63  ;;  %v9236_v62 = vld [vmem:[%s13682_s1 + $0x788] ss:$16 sps:$4 sm:$0xff]   ;;  %v9241_v63 = vld [vmem:[%s13682_s1 + $0x7a4] ss:$16 sps:$4 sm:$0xff]  }
  0xb8   :  { %6399 = vmatprep.subr.bf16.mxu0 %v9149_v0  ;;  %7055 = vmatprep.subr.bf16.mxu1 %v9152_v1  ;;  %v9244_v0 = vld [vmem:[%s13682_s1 + $0x7ac] ss:$16 sps:$4 sm:$0xff]   ;;  %v9239_v1 = vld [vmem:[%s13682_s1 + $0x7a0] ss:$16 sps:$4 sm:$0xff]  }
  0xbb   :  { %6400 = vmatpush1.bf16.msra.mxu0 %v9147_v2  ;;  %7056 = vmatpush1.bf16.msra.mxu1 %v9150_v3  ;;  %v9242_v2 = vld [vmem:[%s13682_s1 + $0x7a8] ss:$16 sps:$4 sm:$0xff]   ;;  %v9247_v3 = vld [vmem:[%s13682_s1 + $0x7c4] ss:$16 sps:$4 sm:$0xff]  }
  0xbc   :  { %6401 = vmatprep.subr.bf16.mxu0 %v9155_v4  ;;  %7057 = vmatprep.subr.bf16.mxu1 %v9158_v5  ;;  %v9250_v4 = vld [vmem:[%s13682_s1 + $0x7cc] ss:$16 sps:$4 sm:$0xff]   ;;  %v9245_v5 = vld [vmem:[%s13682_s1 + $0x7c0] ss:$16 sps:$4 sm:$0xff]  }
  0xbf   :  { %6402 = vmatpush1.bf16.msra.mxu0 %v9153_v6  ;;  %7058 = vmatpush1.bf16.msra.mxu1 %v9156_v7  ;;  %v9248_v6 = vld [vmem:[%s13682_s1 + $0x7c8] ss:$16 sps:$4 sm:$0xff]   ;;  %v9253_v7 = vld [vmem:[%s13682_s1 + $0x7e4] ss:$16 sps:$4 sm:$0xff]  }
  0xc0   :  { %6412 = vmatprep.subr.bf16.mxu0 %v9163_v8  ;;  %7068 = vmatprep.subr.bf16.mxu1 %v9166_v9  ;;  %v9256_v8 = vld [vmem:[%s13682_s1 + $0x7ec] ss:$16 sps:$4 sm:$0xff]   ;;  %v9251_v9 = vld [vmem:[%s13682_s1 + $0x7e0] ss:$16 sps:$4 sm:$0xff]  }
  0xc2   :  { %6404 = vmatmul.mubr.bf16.vlgmr.msra.gmra.mrb[0].mxu0 %v7691_v12  ;;  %7060 = vmatmul.mubr.bf16.vlgmr.msra.gmra.mrb[0].mxu1 %v7691_v12  ;;  %v9261_v12 = vld [vmem:[%s13682_s1 + $0x804] ss:$16 sps:$4 sm:$0xff]  }
  0xc3   :  { %6413 = vmatpush1.bf16.msra.mxu0 %v9161_v10  ;;  %7069 = vmatpush1.bf16.msra.mxu1 %v9164_v13  ;;  %v9254_v10 = vld [vmem:[%s13682_s1 + $0x7e8] ss:$16 sps:$4 sm:$0xff]   ;;  %v9264_v13 = vld [vmem:[%s13682_s1 + $0x80c] ss:$16 sps:$4 sm:$0xff]  }
  0xc4   :  { %6414 = vmatprep.subr.bf16.mxu0 %v9169_v15  ;;  %7070 = vmatprep.subr.bf16.mxu1 %v9172_v11  ;;  %v9259_v15 = vld [vmem:[%s13682_s1 + $0x800] ss:$16 sps:$4 sm:$0xff]   ;;  %v7693_v11 = vcombine.low %v11072_v14, %v11072_v14  ;;  %v9270_v14 = vld [vmem:[%s13682_s1 + $0x82c] ss:$16 sps:$4 sm:$0xff]  }
  0xc5   :  { %6444 = vmatprep.mubr.bf16.mxu0 %v7694_v16  ;;  %7100 = vmatprep.mubr.bf16.mxu1 %v7694_v16  ;;  %v11270_v16 = vld [vmem:[%s13683_s0 + $0x20] sm:$0xff] }
  0xc7   :  { %6415 = vmatpush1.bf16.msra.mxu0 %v9167_v17  ;;  %7071 = vmatpush1.bf16.msra.mxu1 %v9170_v18  ;;  %v9262_v17 = vld [vmem:[%s13682_s1 + $0x808] ss:$16 sps:$4 sm:$0xff]   ;;  %v9267_v18 = vld [vmem:[%s13682_s1 + $0x824] ss:$16 sps:$4 sm:$0xff]  }
  0xc8   :  { %6416 = vmatprep.subr.bf16.mxu0 %v9175_v19  ;;  %7072 = vmatprep.subr.bf16.mxu1 %v9178_v20  ;;  %v7696_v19 = vcombine.high %v11270_v16, %v11270_v16  ;;  %v9265_v20 = vld [vmem:[%s13682_s1 + $0x820] ss:$16 sps:$4 sm:$0xff]  }
  0xcb   :  { %6417 = vmatpush1.bf16.msra.mxu0 %v9173_v21  ;;  %7073 = vmatpush1.bf16.msra.mxu1 %v9176_v22  ;;  %v9268_v21 = vld [vmem:[%s13682_s1 + $0x828] ss:$16 sps:$4 sm:$0xff]   ;;  %v9273_v22 = vld [vmem:[%s13682_s1 + $0x844] ss:$16 sps:$4 sm:$0xff]  }
  0xcc   :  { %6418 = vmatprep.subr.bf16.mxu0 %v9181_v23  ;;  %7074 = vmatprep.subr.bf16.mxu1 %v9184_v24  ;;  %v9276_v23 = vld [vmem:[%s13682_s1 + $0x84c] ss:$16 sps:$4 sm:$0xff]   ;;  %v9271_v24 = vld [vmem:[%s13682_s1 + $0x840] ss:$16 sps:$4 sm:$0xff]  }
  0xcf   :  { %6419 = vmatpush1.bf16.msra.mxu0 %v9179_v25  ;;  %7075 = vmatpush1.bf16.msra.mxu1 %v9182_v26  ;;  %v9274_v25 = vld [vmem:[%s13682_s1 + $0x848] ss:$16 sps:$4 sm:$0xff]   ;;  %v9279_v26 = vld [vmem:[%s13682_s1 + $0x864] ss:$16 sps:$4 sm:$0xff]  }
  0xd0   :  { %6420 = vmatprep.subr.bf16.mxu0 %v9187_v27  ;;  %7076 = vmatprep.subr.bf16.mxu1 %v9190_v28  ;;  %v9282_v27 = vld [vmem:[%s13682_s1 + $0x86c] ss:$16 sps:$4 sm:$0xff]   ;;  %v9277_v28 = vld [vmem:[%s13682_s1 + $0x860] ss:$16 sps:$4 sm:$0xff]  }
  0xd3   :  { %6421 = vmatpush1.bf16.msra.mxu0 %v9185_v29  ;;  %7077 = vmatpush1.bf16.msra.mxu1 %v9188_v30  ;;  %v9280_v29 = vld [vmem:[%s13682_s1 + $0x868] ss:$16 sps:$4 sm:$0xff]   ;;  %v9285_v30 = vld [vmem:[%s13682_s1 + $0x884] ss:$16 sps:$4 sm:$0xff]  }
  0xd4   :  { %6422 = vmatprep.subr.bf16.mxu0 %v9193_v31  ;;  %7078 = vmatprep.subr.bf16.mxu1 %v9196_v32  ;;  %v9288_v31 = vld [vmem:[%s13682_s1 + $0x88c] ss:$16 sps:$4 sm:$0xff]   ;;  %v9283_v32 = vld [vmem:[%s13682_s1 + $0x880] ss:$16 sps:$4 sm:$0xff]  }
  0xd7   :  { %6423 = vmatpush1.bf16.msra.mxu0 %v9191_v33  ;;  %7079 = vmatpush1.bf16.msra.mxu1 %v9194_v34  ;;  %v9286_v33 = vld [vmem:[%s13682_s1 + $0x888] ss:$16 sps:$4 sm:$0xff]   ;;  %v9291_v34 = vld [vmem:[%s13682_s1 + $0x8a4] ss:$16 sps:$4 sm:$0xff]  }
  0xd8   :  { %6424 = vmatprep.subr.bf16.mxu0 %v9199_v35  ;;  %7080 = vmatprep.subr.bf16.mxu1 %v9202_v36  ;;  %v9294_v35 = vld [vmem:[%s13682_s1 + $0x8ac] ss:$16 sps:$4 sm:$0xff]   ;;  %v9289_v36 = vld [vmem:[%s13682_s1 + $0x8a0] ss:$16 sps:$4 sm:$0xff]  }
  0xdb   :  { %6425 = vmatpush1.bf16.msra.mxu0 %v9197_v37  ;;  %7081 = vmatpush1.bf16.msra.mxu1 %v9200_v38  ;;  %v9292_v37 = vld [vmem:[%s13682_s1 + $0x8a8] ss:$16 sps:$4 sm:$0xff]   ;;  %v9297_v38 = vld [vmem:[%s13682_s1 + $0x8c4] ss:$16 sps:$4 sm:$0xff]  }
  0xdc   :  { %6426 = vmatprep.subr.bf16.mxu0 %v9205_v39  ;;  %7082 = vmatprep.subr.bf16.mxu1 %v9208_v40  ;;  %v9300_v39 = vld [vmem:[%s13682_s1 + $0x8cc] ss:$16 sps:$4 sm:$0xff]   ;;  %v9295_v40 = vld [vmem:[%s13682_s1 + $0x8c0] ss:$16 sps:$4 sm:$0xff]  }
  0xdf   :  { %6427 = vmatpush1.bf16.msra.mxu0 %v9203_v41  ;;  %7083 = vmatpush1.bf16.msra.mxu1 %v9206_v42  ;;  %v9298_v41 = vld [vmem:[%s13682_s1 + $0x8c8] ss:$16 sps:$4 sm:$0xff]   ;;  %v9303_v42 = vld [vmem:[%s13682_s1 + $0x8e4] ss:$16 sps:$4 sm:$0xff]  }
  0xe0   :  { %6428 = vmatprep.subr.bf16.mxu0 %v9211_v43  ;;  %7084 = vmatprep.subr.bf16.mxu1 %v9214_v44  ;;  %v9306_v43 = vld [vmem:[%s13682_s1 + $0x8ec] ss:$16 sps:$4 sm:$0xff]   ;;  %v9301_v44 = vld [vmem:[%s13682_s1 + $0x8e0] ss:$16 sps:$4 sm:$0xff]  }
  0xe3   :  { %6429 = vmatpush1.bf16.msra.mxu0 %v9209_v45  ;;  %7085 = vmatpush1.bf16.msra.mxu1 %v9212_v46  ;;  %v9304_v45 = vld [vmem:[%s13682_s1 + $0x8e8] ss:$16 sps:$4 sm:$0xff]   ;;  %v9309_v46 = vld [vmem:[%s13682_s1 + $0x904] ss:$16 sps:$4 sm:$0xff]  }
  0xe4   :  { %6430 = vmatprep.subr.bf16.mxu0 %v9217_v47  ;;  %7086 = vmatprep.subr.bf16.mxu1 %v9220_v48  ;;  %v9312_v47 = vld [vmem:[%s13682_s1 + $0x90c] ss:$16 sps:$4 sm:$0xff]   ;;  %v9307_v48 = vld [vmem:[%s13682_s1 + $0x900] ss:$16 sps:$4 sm:$0xff]  }
  0xe7   :  { %6431 = vmatpush1.bf16.msra.mxu0 %v9215_v49  ;;  %7087 = vmatpush1.bf16.msra.mxu1 %v9218_v50  ;;  %v9310_v49 = vld [vmem:[%s13682_s1 + $0x908] ss:$16 sps:$4 sm:$0xff]   ;;  %v9315_v50 = vld [vmem:[%s13682_s1 + $0x924] ss:$16 sps:$4 sm:$0xff]  }
  0xe8   :  { %6432 = vmatprep.subr.bf16.mxu0 %v9223_v51  ;;  %7088 = vmatprep.subr.bf16.mxu1 %v9226_v52  ;;  %v9318_v51 = vld [vmem:[%s13682_s1 + $0x92c] ss:$16 sps:$4 sm:$0xff]   ;;  %v9313_v52 = vld [vmem:[%s13682_s1 + $0x920] ss:$16 sps:$4 sm:$0xff]  }
  0xeb   :  { %6433 = vmatpush1.bf16.msra.mxu0 %v9221_v53  ;;  %7089 = vmatpush1.bf16.msra.mxu1 %v9224_v54  ;;  %v9316_v53 = vld [vmem:[%s13682_s1 + $0x928] ss:$16 sps:$4 sm:$0xff]   ;;  %v9321_v54 = vld [vmem:[%s13682_s1 + $0x944] ss:$16 sps:$4 sm:$0xff]  }
  0xec   :  { %6434 = vmatprep.subr.bf16.mxu0 %v9229_v55  ;;  %7090 = vmatprep.subr.bf16.mxu1 %v9232_v56  ;;  %v9324_v55 = vld [vmem:[%s13682_s1 + $0x94c] ss:$16 sps:$4 sm:$0xff]   ;;  %v9319_v56 = vld [vmem:[%s13682_s1 + $0x940] ss:$16 sps:$4 sm:$0xff]  }
  0xef   :  { %6435 = vmatpush1.bf16.msra.mxu0 %v9227_v57  ;;  %7091 = vmatpush1.bf16.msra.mxu1 %v9230_v58  ;;  %v9322_v57 = vld [vmem:[%s13682_s1 + $0x948] ss:$16 sps:$4 sm:$0xff]   ;;  %v9327_v58 = vld [vmem:[%s13682_s1 + $0x964] ss:$16 sps:$4 sm:$0xff]  }
  0xf0   :  { %6436 = vmatprep.subr.bf16.mxu0 %v9235_v59  ;;  %7092 = vmatprep.subr.bf16.mxu1 %v9238_v60  ;;  %v9330_v59 = vld [vmem:[%s13682_s1 + $0x96c] ss:$16 sps:$4 sm:$0xff]   ;;  %v9325_v60 = vld [vmem:[%s13682_s1 + $0x960] ss:$16 sps:$4 sm:$0xff]  }
  0xf3   :  { %6437 = vmatpush1.bf16.msra.mxu0 %v9233_v61  ;;  %7093 = vmatpush1.bf16.msra.mxu1 %v9236_v62  ;;  %v9328_v61 = vld [vmem:[%s13682_s1 + $0x968] ss:$16 sps:$4 sm:$0xff]   ;;  %v9333_v62 = vld [vmem:[%s13682_s1 + $0x984] ss:$16 sps:$4 sm:$0xff]  }
  0xf4   :  { %6438 = vmatprep.subr.bf16.mxu0 %v9241_v63  ;;  %7094 = vmatprep.subr.bf16.mxu1 %v9244_v0  ;;  %v9336_v63 = vld [vmem:[%s13682_s1 + $0x98c] ss:$16 sps:$4 sm:$0xff]   ;;  %v9331_v0 = vld [vmem:[%s13682_s1 + $0x980] ss:$16 sps:$4 sm:$0xff]  }
  0xf7   :  { %6439 = vmatpush1.bf16.msra.mxu0 %v9239_v1  ;;  %7095 = vmatpush1.bf16.msra.mxu1 %v9242_v2  ;;  %v9334_v1 = vld [vmem:[%s13682_s1 + $0x988] ss:$16 sps:$4 sm:$0xff]   ;;  %v9339_v2 = vld [vmem:[%s13682_s1 + $0x9a4] ss:$16 sps:$4 sm:$0xff]  }
  0xf8   :  { %6440 = vmatprep.subr.bf16.mxu0 %v9247_v3  ;;  %7096 = vmatprep.subr.bf16.mxu1 %v9250_v4  ;;  %v9342_v3 = vld [vmem:[%s13682_s1 + $0x9ac] ss:$16 sps:$4 sm:$0xff]   ;;  %v9337_v4 = vld [vmem:[%s13682_s1 + $0x9a0] ss:$16 sps:$4 sm:$0xff]  }
  0xfb   :  { %6441 = vmatpush1.bf16.msra.mxu0 %v9245_v5  ;;  %7097 = vmatpush1.bf16.msra.mxu1 %v9248_v6  ;;  %v9340_v5 = vld [vmem:[%s13682_s1 + $0x9a8] ss:$16 sps:$4 sm:$0xff]   ;;  %v9345_v6 = vld [vmem:[%s13682_s1 + $0x9c4] ss:$16 sps:$4 sm:$0xff]  }
  0xfc   :  { %6442 = vmatprep.subr.bf16.mxu0 %v9253_v7  ;;  %7098 = vmatprep.subr.bf16.mxu1 %v9256_v8  ;;  %v9348_v7 = vld [vmem:[%s13682_s1 + $0x9cc] ss:$16 sps:$4 sm:$0xff]   ;;  %v9343_v8 = vld [vmem:[%s13682_s1 + $0x9c0] ss:$16 sps:$4 sm:$0xff]  }
  0xff   :  { %6443 = vmatpush1.bf16.msra.mxu0 %v9251_v9  ;;  %7099 = vmatpush1.bf16.msra.mxu1 %v9254_v10  ;;  %v9346_v9 = vld [vmem:[%s13682_s1 + $0x9c8] ss:$16 sps:$4 sm:$0xff]   ;;  %v9351_v10 = vld [vmem:[%s13682_s1 + $0x9e4] ss:$16 sps:$4 sm:$0xff]  }
 0x100   :  { %6453 = vmatprep.subr.bf16.mxu0 %v9261_v12  ;;  %7109 = vmatprep.subr.bf16.mxu1 %v9264_v13  ;;  %v9354_v12 = vld [vmem:[%s13682_s1 + $0x9ec] ss:$16 sps:$4 sm:$0xff]   ;;  %v9349_v13 = vld [vmem:[%s13682_s1 + $0x9e0] ss:$16 sps:$4 sm:$0xff]  }
 0x102   :  { %6445 = vmatmul.mubr.bf16.vlgmr.msra.gmra.mrb[0].mxu0 %v7693_v11  ;;  %7101 = vmatmul.mubr.bf16.vlgmr.msra.gmra.mrb[0].mxu1 %v7693_v11  ;;  %v9359_v11 = vld [vmem:[%s13682_s1 + $0xa04] ss:$16 sps:$4 sm:$0xff]  }
 0x103   :  { %6454 = vmatpush1.bf16.msra.mxu0 %v9259_v15  ;;  %7110 = vmatpush1.bf16.msra.mxu1 %v9262_v17  ;;  %v9352_v15 = vld [vmem:[%s13682_s1 + $0x9e8] ss:$16 sps:$4 sm:$0xff]   ;;  %v9362_v17 = vld [vmem:[%s13682_s1 + $0xa0c] ss:$16 sps:$4 sm:$0xff]  }
 0x104   :  { %6455 = vmatprep.subr.bf16.mxu0 %v9267_v18  ;;  %7111 = vmatprep.subr.bf16.mxu1 %v9270_v14  ;;  %v11466_v18 = vld [vmem:[%s13683_s0 + $0x28] sm:$0xff]  ;;  %v7695_v14 = vcombine.low %v11270_v16, %v11270_v16 }
 0x105   :  { %6485 = vmatprep.mubr.bf16.mxu0 %v7696_v19  ;;  %7141 = vmatprep.mubr.bf16.mxu1 %v7696_v19  ;;  %v9357_v19 = vld [vmem:[%s13682_s1 + $0xa00] ss:$16 sps:$4 sm:$0xff]   ;;  %v9368_v16 = vld [vmem:[%s13682_s1 + $0xa2c] ss:$16 sps:$4 sm:$0xff]  }
 0x107   :  { %6456 = vmatpush1.bf16.msra.mxu0 %v9265_v20  ;;  %7112 = vmatpush1.bf16.msra.mxu1 %v9268_v21  ;;  %v9360_v20 = vld [vmem:[%s13682_s1 + $0xa08] ss:$16 sps:$4 sm:$0xff]   ;;  %v9365_v21 = vld [vmem:[%s13682_s1 + $0xa24] ss:$16 sps:$4 sm:$0xff]  }
 0x108   :  { %6457 = vmatprep.subr.bf16.mxu0 %v9273_v22  ;;  %7113 = vmatprep.subr.bf16.mxu1 %v9276_v23  ;;  %v7698_v22 = vcombine.high %v11466_v18, %v11466_v18  ;;  %v9363_v23 = vld [vmem:[%s13682_s1 + $0xa20] ss:$16 sps:$4 sm:$0xff]  }
 0x10b   :  { %6458 = vmatpush1.bf16.msra.mxu0 %v9271_v24  ;;  %7114 = vmatpush1.bf16.msra.mxu1 %v9274_v25  ;;  %v9366_v24 = vld [vmem:[%s13682_s1 + $0xa28] ss:$16 sps:$4 sm:$0xff]   ;;  %v9371_v25 = vld [vmem:[%s13682_s1 + $0xa44] ss:$16 sps:$4 sm:$0xff]  }
 0x10c   :  { %6459 = vmatprep.subr.bf16.mxu0 %v9279_v26  ;;  %7115 = vmatprep.subr.bf16.mxu1 %v9282_v27  ;;  %v9374_v26 = vld [vmem:[%s13682_s1 + $0xa4c] ss:$16 sps:$4 sm:$0xff]   ;;  %v9369_v27 = vld [vmem:[%s13682_s1 + $0xa40] ss:$16 sps:$4 sm:$0xff]  }
 0x10f   :  { %6460 = vmatpush1.bf16.msra.mxu0 %v9277_v28  ;;  %7116 = vmatpush1.bf16.msra.mxu1 %v9280_v29  ;;  %v9372_v28 = vld [vmem:[%s13682_s1 + $0xa48] ss:$16 sps:$4 sm:$0xff]   ;;  %v9377_v29 = vld [vmem:[%s13682_s1 + $0xa64] ss:$16 sps:$4 sm:$0xff]  }
 0x110   :  { %6461 = vmatprep.subr.bf16.mxu0 %v9285_v30  ;;  %7117 = vmatprep.subr.bf16.mxu1 %v9288_v31  ;;  %v9380_v30 = vld [vmem:[%s13682_s1 + $0xa6c] ss:$16 sps:$4 sm:$0xff]   ;;  %v9375_v31 = vld [vmem:[%s13682_s1 + $0xa60] ss:$16 sps:$4 sm:$0xff]  }
 0x113   :  { %6462 = vmatpush1.bf16.msra.mxu0 %v9283_v32  ;;  %7118 = vmatpush1.bf16.msra.mxu1 %v9286_v33  ;;  %v9378_v32 = vld [vmem:[%s13682_s1 + $0xa68] ss:$16 sps:$4 sm:$0xff]   ;;  %v9383_v33 = vld [vmem:[%s13682_s1 + $0xa84] ss:$16 sps:$4 sm:$0xff]  }
 0x114   :  { %6463 = vmatprep.subr.bf16.mxu0 %v9291_v34  ;;  %7119 = vmatprep.subr.bf16.mxu1 %v9294_v35  ;;  %v9386_v34 = vld [vmem:[%s13682_s1 + $0xa8c] ss:$16 sps:$4 sm:$0xff]   ;;  %v9381_v35 = vld [vmem:[%s13682_s1 + $0xa80] ss:$16 sps:$4 sm:$0xff]  }
 0x117   :  { %6464 = vmatpush1.bf16.msra.mxu0 %v9289_v36  ;;  %7120 = vmatpush1.bf16.msra.mxu1 %v9292_v37  ;;  %v9384_v36 = vld [vmem:[%s13682_s1 + $0xa88] ss:$16 sps:$4 sm:$0xff]   ;;  %v9389_v37 = vld [vmem:[%s13682_s1 + $0xaa4] ss:$16 sps:$4 sm:$0xff]  }
 0x118   :  { %6465 = vmatprep.subr.bf16.mxu0 %v9297_v38  ;;  %7121 = vmatprep.subr.bf16.mxu1 %v9300_v39  ;;  %v9392_v38 = vld [vmem:[%s13682_s1 + $0xaac] ss:$16 sps:$4 sm:$0xff]   ;;  %v9387_v39 = vld [vmem:[%s13682_s1 + $0xaa0] ss:$16 sps:$4 sm:$0xff]  }
 0x11b   :  { %6466 = vmatpush1.bf16.msra.mxu0 %v9295_v40  ;;  %7122 = vmatpush1.bf16.msra.mxu1 %v9298_v41  ;;  %v9390_v40 = vld [vmem:[%s13682_s1 + $0xaa8] ss:$16 sps:$4 sm:$0xff]   ;;  %v9395_v41 = vld [vmem:[%s13682_s1 + $0xac4] ss:$16 sps:$4 sm:$0xff]  }
 0x11c   :  { %6467 = vmatprep.subr.bf16.mxu0 %v9303_v42  ;;  %7123 = vmatprep.subr.bf16.mxu1 %v9306_v43  ;;  %v9398_v42 = vld [vmem:[%s13682_s1 + $0xacc] ss:$16 sps:$4 sm:$0xff]   ;;  %v9393_v43 = vld [vmem:[%s13682_s1 + $0xac0] ss:$16 sps:$4 sm:$0xff]  }
 0x11f   :  { %6468 = vmatpush1.bf16.msra.mxu0 %v9301_v44  ;;  %7124 = vmatpush1.bf16.msra.mxu1 %v9304_v45  ;;  %v9396_v44 = vld [vmem:[%s13682_s1 + $0xac8] ss:$16 sps:$4 sm:$0xff]   ;;  %v9401_v45 = vld [vmem:[%s13682_s1 + $0xae4] ss:$16 sps:$4 sm:$0xff]  }
 0x120   :  { %6469 = vmatprep.subr.bf16.mxu0 %v9309_v46  ;;  %7125 = vmatprep.subr.bf16.mxu1 %v9312_v47  ;;  %v9404_v46 = vld [vmem:[%s13682_s1 + $0xaec] ss:$16 sps:$4 sm:$0xff]   ;;  %v9399_v47 = vld [vmem:[%s13682_s1 + $0xae0] ss:$16 sps:$4 sm:$0xff]  }
 0x123   :  { %6470 = vmatpush1.bf16.msra.mxu0 %v9307_v48  ;;  %7126 = vmatpush1.bf16.msra.mxu1 %v9310_v49  ;;  %v9402_v48 = vld [vmem:[%s13682_s1 + $0xae8] ss:$16 sps:$4 sm:$0xff]   ;;  %v9407_v49 = vld [vmem:[%s13682_s1 + $0xb04] ss:$16 sps:$4 sm:$0xff]  }
 0x124   :  { %6471 = vmatprep.subr.bf16.mxu0 %v9315_v50  ;;  %7127 = vmatprep.subr.bf16.mxu1 %v9318_v51  ;;  %v9410_v50 = vld [vmem:[%s13682_s1 + $0xb0c] ss:$16 sps:$4 sm:$0xff]   ;;  %v9405_v51 = vld [vmem:[%s13682_s1 + $0xb00] ss:$16 sps:$4 sm:$0xff]  }
 0x127   :  { %6472 = vmatpush1.bf16.msra.mxu0 %v9313_v52  ;;  %7128 = vmatpush1.bf16.msra.mxu1 %v9316_v53  ;;  %v9408_v52 = vld [vmem:[%s13682_s1 + $0xb08] ss:$16 sps:$4 sm:$0xff]   ;;  %v9413_v53 = vld [vmem:[%s13682_s1 + $0xb24] ss:$16 sps:$4 sm:$0xff]  }
 0x128   :  { %6473 = vmatprep.subr.bf16.mxu0 %v9321_v54  ;;  %7129 = vmatprep.subr.bf16.mxu1 %v9324_v55  ;;  %v9416_v54 = vld [vmem:[%s13682_s1 + $0xb2c] ss:$16 sps:$4 sm:$0xff]   ;;  %v9411_v55 = vld [vmem:[%s13682_s1 + $0xb20] ss:$16 sps:$4 sm:$0xff]  }
 0x12b   :  { %6474 = vmatpush1.bf16.msra.mxu0 %v9319_v56  ;;  %7130 = vmatpush1.bf16.msra.mxu1 %v9322_v57  ;;  %v9414_v56 = vld [vmem:[%s13682_s1 + $0xb28] ss:$16 sps:$4 sm:$0xff]   ;;  %v9419_v57 = vld [vmem:[%s13682_s1 + $0xb44] ss:$16 sps:$4 sm:$0xff]  }
 0x12c   :  { %6475 = vmatprep.subr.bf16.mxu0 %v9327_v58  ;;  %7131 = vmatprep.subr.bf16.mxu1 %v9330_v59  ;;  %v9422_v58 = vld [vmem:[%s13682_s1 + $0xb4c] ss:$16 sps:$4 sm:$0xff]   ;;  %v9417_v59 = vld [vmem:[%s13682_s1 + $0xb40] ss:$16 sps:$4 sm:$0xff]  }
 0x12f   :  { %6476 = vmatpush1.bf16.msra.mxu0 %v9325_v60  ;;  %7132 = vmatpush1.bf16.msra.mxu1 %v9328_v61  ;;  %v9420_v60 = vld [vmem:[%s13682_s1 + $0xb48] ss:$16 sps:$4 sm:$0xff]   ;;  %v9425_v61 = vld [vmem:[%s13682_s1 + $0xb64] ss:$16 sps:$4 sm:$0xff]  }
 0x130   :  { %6477 = vmatprep.subr.bf16.mxu0 %v9333_v62  ;;  %7133 = vmatprep.subr.bf16.mxu1 %v9336_v63  ;;  %v9428_v62 = vld [vmem:[%s13682_s1 + $0xb6c] ss:$16 sps:$4 sm:$0xff]   ;;  %v9423_v63 = vld [vmem:[%s13682_s1 + $0xb60] ss:$16 sps:$4 sm:$0xff]  }
 0x133   :  { %6478 = vmatpush1.bf16.msra.mxu0 %v9331_v0  ;;  %7134 = vmatpush1.bf16.msra.mxu1 %v9334_v1  ;;  %v9426_v0 = vld [vmem:[%s13682_s1 + $0xb68] ss:$16 sps:$4 sm:$0xff]   ;;  %v9431_v1 = vld [vmem:[%s13682_s1 + $0xb84] ss:$16 sps:$4 sm:$0xff]  }
 0x134   :  { %6479 = vmatprep.subr.bf16.mxu0 %v9339_v2  ;;  %7135 = vmatprep.subr.bf16.mxu1 %v9342_v3  ;;  %v9434_v2 = vld [vmem:[%s13682_s1 + $0xb8c] ss:$16 sps:$4 sm:$0xff]   ;;  %v9429_v3 = vld [vmem:[%s13682_s1 + $0xb80] ss:$16 sps:$4 sm:$0xff]  }
 0x137   :  { %6480 = vmatpush1.bf16.msra.mxu0 %v9337_v4  ;;  %7136 = vmatpush1.bf16.msra.mxu1 %v9340_v5  ;;  %v9432_v4 = vld [vmem:[%s13682_s1 + $0xb88] ss:$16 sps:$4 sm:$0xff]   ;;  %v9437_v5 = vld [vmem:[%s13682_s1 + $0xba4] ss:$16 sps:$4 sm:$0xff]  }
 0x138   :  { %6481 = vmatprep.subr.bf16.mxu0 %v9345_v6  ;;  %7137 = vmatprep.subr.bf16.mxu1 %v9348_v7  ;;  %v9440_v6 = vld [vmem:[%s13682_s1 + $0xbac] ss:$16 sps:$4 sm:$0xff]   ;;  %v9435_v7 = vld [vmem:[%s13682_s1 + $0xba0] ss:$16 sps:$4 sm:$0xff]  }
 0x13b   :  { %6482 = vmatpush1.bf16.msra.mxu0 %v9343_v8  ;;  %7138 = vmatpush1.bf16.msra.mxu1 %v9346_v9  ;;  %v9438_v8 = vld [vmem:[%s13682_s1 + $0xba8] ss:$16 sps:$4 sm:$0xff]   ;;  %v9443_v9 = vld [vmem:[%s13682_s1 + $0xbc4] ss:$16 sps:$4 sm:$0xff]  }
 0x13c   :  { %6483 = vmatprep.subr.bf16.mxu0 %v9351_v10  ;;  %7139 = vmatprep.subr.bf16.mxu1 %v9354_v12  ;;  %v9446_v10 = vld [vmem:[%s13682_s1 + $0xbcc] ss:$16 sps:$4 sm:$0xff]   ;;  %v9441_v12 = vld [vmem:[%s13682_s1 + $0xbc0] ss:$16 sps:$4 sm:$0xff]  }
 0x13f   :  { %6484 = vmatpush1.bf16.msra.mxu0 %v9349_v13  ;;  %7140 = vmatpush1.bf16.msra.mxu1 %v9352_v15  ;;  %v9444_v13 = vld [vmem:[%s13682_s1 + $0xbc8] ss:$16 sps:$4 sm:$0xff]   ;;  %v9449_v15 = vld [vmem:[%s13682_s1 + $0xbe4] ss:$16 sps:$4 sm:$0xff]  }
 0x140   :  { %6494 = vmatprep.subr.bf16.mxu0 %v9359_v11  ;;  %7150 = vmatprep.subr.bf16.mxu1 %v9362_v17  ;;  %v9452_v11 = vld [vmem:[%s13682_s1 + $0xbec] ss:$16 sps:$4 sm:$0xff]   ;;  %v9447_v17 = vld [vmem:[%s13682_s1 + $0xbe0] ss:$16 sps:$4 sm:$0xff]  }
 0x142   :  { %6486 = vmatmul.mubr.bf16.vlgmr.msra.gmra.mrb[0].mxu0 %v7695_v14  ;;  %7142 = vmatmul.mubr.bf16.vlgmr.msra.gmra.mrb[0].mxu1 %v7695_v14  ;;  %v9450_v14 = vld [vmem:[%s13682_s1 + $0xbe8] ss:$16 sps:$4 sm:$0xff]  }
 0x143   :  { %6495 = vmatpush1.bf16.msra.mxu0 %v9357_v19  ;;  %7151 = vmatpush1.bf16.msra.mxu1 %v9360_v20  ;;  %v9457_v19 = vld [vmem:[%s13682_s1 + $0xc04] ss:$16 sps:$4 sm:$0xff]   ;;  %v9460_v20 = vld [vmem:[%s13682_s1 + $0xc0c] ss:$16 sps:$4 sm:$0xff]  }
 0x144   :  { %6496 = vmatprep.subr.bf16.mxu0 %v9365_v21  ;;  %7152 = vmatprep.subr.bf16.mxu1 %v9368_v16  ;;  %v11667_v21 = vld [vmem:[%s13683_s0 + $0x30] sm:$0xff]  ;;  %v7697_v16 = vcombine.low %v11466_v18, %v11466_v18  ;;  %v9466_v18 = vld [vmem:[%s13682_s1 + $0xc2c] ss:$16 sps:$4 sm:$0xff]  }
 0x145   :  { %6526 = vmatprep.mubr.bf16.mxu0 %v7698_v22  ;;  %7182 = vmatprep.mubr.bf16.mxu1 %v7698_v22  ;;  %v9455_v22 = vld [vmem:[%s13682_s1 + $0xc00] ss:$16 sps:$4 sm:$0xff]  }
 0x147   :  { %6497 = vmatpush1.bf16.msra.mxu0 %v9363_v23  ;;  %7153 = vmatpush1.bf16.msra.mxu1 %v9366_v24  ;;  %v9458_v23 = vld [vmem:[%s13682_s1 + $0xc08] ss:$16 sps:$4 sm:$0xff]   ;;  %v9463_v24 = vld [vmem:[%s13682_s1 + $0xc24] ss:$16 sps:$4 sm:$0xff]  }
 0x148   :  { %6498 = vmatprep.subr.bf16.mxu0 %v9371_v25  ;;  %7154 = vmatprep.subr.bf16.mxu1 %v9374_v26  ;;  %v7700_v25 = vcombine.high %v11667_v21, %v11667_v21  ;;  %v9461_v26 = vld [vmem:[%s13682_s1 + $0xc20] ss:$16 sps:$4 sm:$0xff]  }
 0x14b   :  { %6499 = vmatpush1.bf16.msra.mxu0 %v9369_v27  ;;  %7155 = vmatpush1.bf16.msra.mxu1 %v9372_v28  ;;  %v9464_v27 = vld [vmem:[%s13682_s1 + $0xc28] ss:$16 sps:$4 sm:$0xff]   ;;  %v9469_v28 = vld [vmem:[%s13682_s1 + $0xc44] ss:$16 sps:$4 sm:$0xff]  }
 0x14c   :  { %6500 = vmatprep.subr.bf16.mxu0 %v9377_v29  ;;  %7156 = vmatprep.subr.bf16.mxu1 %v9380_v30  ;;  %v9472_v29 = vld [vmem:[%s13682_s1 + $0xc4c] ss:$16 sps:$4 sm:$0xff]   ;;  %v9467_v30 = vld [vmem:[%s13682_s1 + $0xc40] ss:$16 sps:$4 sm:$0xff]  }
 0x14f   :  { %6501 = vmatpush1.bf16.msra.mxu0 %v9375_v31  ;;  %7157 = vmatpush1.bf16.msra.mxu1 %v9378_v32  ;;  %v9470_v31 = vld [vmem:[%s13682_s1 + $0xc48] ss:$16 sps:$4 sm:$0xff]   ;;  %v9475_v32 = vld [vmem:[%s13682_s1 + $0xc64] ss:$16 sps:$4 sm:$0xff]  }
 0x150   :  { %6502 = vmatprep.subr.bf16.mxu0 %v9383_v33  ;;  %7158 = vmatprep.subr.bf16.mxu1 %v9386_v34  ;;  %v9478_v33 = vld [vmem:[%s13682_s1 + $0xc6c] ss:$16 sps:$4 sm:$0xff]   ;;  %v9473_v34 = vld [vmem:[%s13682_s1 + $0xc60] ss:$16 sps:$4 sm:$0xff]  }
 0x153   :  { %6503 = vmatpush1.bf16.msra.mxu0 %v9381_v35  ;;  %7159 = vmatpush1.bf16.msra.mxu1 %v9384_v36  ;;  %v9476_v35 = vld [vmem:[%s13682_s1 + $0xc68] ss:$16 sps:$4 sm:$0xff]   ;;  %v9481_v36 = vld [vmem:[%s13682_s1 + $0xc84] ss:$16 sps:$4 sm:$0xff]  }
 0x154   :  { %6504 = vmatprep.subr.bf16.mxu0 %v9389_v37  ;;  %7160 = vmatprep.subr.bf16.mxu1 %v9392_v38  ;;  %v9484_v37 = vld [vmem:[%s13682_s1 + $0xc8c] ss:$16 sps:$4 sm:$0xff]   ;;  %v9479_v38 = vld [vmem:[%s13682_s1 + $0xc80] ss:$16 sps:$4 sm:$0xff]  }
 0x157   :  { %6505 = vmatpush1.bf16.msra.mxu0 %v9387_v39  ;;  %7161 = vmatpush1.bf16.msra.mxu1 %v9390_v40  ;;  %v9482_v39 = vld [vmem:[%s13682_s1 + $0xc88] ss:$16 sps:$4 sm:$0xff]   ;;  %v9487_v40 = vld [vmem:[%s13682_s1 + $0xca4] ss:$16 sps:$4 sm:$0xff]  }
 0x158   :  { %6506 = vmatprep.subr.bf16.mxu0 %v9395_v41  ;;  %7162 = vmatprep.subr.bf16.mxu1 %v9398_v42  ;;  %v9490_v41 = vld [vmem:[%s13682_s1 + $0xcac] ss:$16 sps:$4 sm:$0xff]   ;;  %v9485_v42 = vld [vmem:[%s13682_s1 + $0xca0] ss:$16 sps:$4 sm:$0xff]  }
 0x15b   :  { %6507 = vmatpush1.bf16.msra.mxu0 %v9393_v43  ;;  %7163 = vmatpush1.bf16.msra.mxu1 %v9396_v44  ;;  %v9488_v43 = vld [vmem:[%s13682_s1 + $0xca8] ss:$16 sps:$4 sm:$0xff]   ;;  %v9493_v44 = vld [vmem:[%s13682_s1 + $0xcc4] ss:$16 sps:$4 sm:$0xff]  }
 0x15c   :  { %6508 = vmatprep.subr.bf16.mxu0 %v9401_v45  ;;  %7164 = vmatprep.subr.bf16.mxu1 %v9404_v46  ;;  %v9496_v45 = vld [vmem:[%s13682_s1 + $0xccc] ss:$16 sps:$4 sm:$0xff]   ;;  %v9491_v46 = vld [vmem:[%s13682_s1 + $0xcc0] ss:$16 sps:$4 sm:$0xff]  }
 0x15f   :  { %6509 = vmatpush1.bf16.msra.mxu0 %v9399_v47  ;;  %7165 = vmatpush1.bf16.msra.mxu1 %v9402_v48  ;;  %v9494_v47 = vld [vmem:[%s13682_s1 + $0xcc8] ss:$16 sps:$4 sm:$0xff]   ;;  %v9499_v48 = vld [vmem:[%s13682_s1 + $0xce4] ss:$16 sps:$4 sm:$0xff]  }
 0x160   :  { %6510 = vmatprep.subr.bf16.mxu0 %v9407_v49  ;;  %7166 = vmatprep.subr.bf16.mxu1 %v9410_v50  ;;  %v9502_v49 = vld [vmem:[%s13682_s1 + $0xcec] ss:$16 sps:$4 sm:$0xff]   ;;  %v9497_v50 = vld [vmem:[%s13682_s1 + $0xce0] ss:$16 sps:$4 sm:$0xff]  }
 0x163   :  { %6511 = vmatpush1.bf16.msra.mxu0 %v9405_v51  ;;  %7167 = vmatpush1.bf16.msra.mxu1 %v9408_v52  ;;  %v9500_v51 = vld [vmem:[%s13682_s1 + $0xce8] ss:$16 sps:$4 sm:$0xff]   ;;  %v9505_v52 = vld [vmem:[%s13682_s1 + $0xd04] ss:$16 sps:$4 sm:$0xff]  }
 0x164   :  { %6512 = vmatprep.subr.bf16.mxu0 %v9413_v53  ;;  %7168 = vmatprep.subr.bf16.mxu1 %v9416_v54  ;;  %v9508_v53 = vld [vmem:[%s13682_s1 + $0xd0c] ss:$16 sps:$4 sm:$0xff]   ;;  %v9503_v54 = vld [vmem:[%s13682_s1 + $0xd00] ss:$16 sps:$4 sm:$0xff]  }
 0x167   :  { %6513 = vmatpush1.bf16.msra.mxu0 %v9411_v55  ;;  %7169 = vmatpush1.bf16.msra.mxu1 %v9414_v56  ;;  %v9506_v55 = vld [vmem:[%s13682_s1 + $0xd08] ss:$16 sps:$4 sm:$0xff]   ;;  %v9511_v56 = vld [vmem:[%s13682_s1 + $0xd24] ss:$16 sps:$4 sm:$0xff]  }
 0x168   :  { %6514 = vmatprep.subr.bf16.mxu0 %v9419_v57  ;;  %7170 = vmatprep.subr.bf16.mxu1 %v9422_v58  ;;  %v9514_v57 = vld [vmem:[%s13682_s1 + $0xd2c] ss:$16 sps:$4 sm:$0xff]   ;;  %v9509_v58 = vld [vmem:[%s13682_s1 + $0xd20] ss:$16 sps:$4 sm:$0xff]  }
 0x16b   :  { %6515 = vmatpush1.bf16.msra.mxu0 %v9417_v59  ;;  %7171 = vmatpush1.bf16.msra.mxu1 %v9420_v60  ;;  %v9512_v59 = vld [vmem:[%s13682_s1 + $0xd28] ss:$16 sps:$4 sm:$0xff]   ;;  %v9517_v60 = vld [vmem:[%s13682_s1 + $0xd44] ss:$16 sps:$4 sm:$0xff]  }
 0x16c   :  { %6516 = vmatprep.subr.bf16.mxu0 %v9425_v61  ;;  %7172 = vmatprep.subr.bf16.mxu1 %v9428_v62  ;;  %v9520_v61 = vld [vmem:[%s13682_s1 + $0xd4c] ss:$16 sps:$4 sm:$0xff]   ;;  %v9515_v62 = vld [vmem:[%s13682_s1 + $0xd40] ss:$16 sps:$4 sm:$0xff]  }
 0x16f   :  { %6517 = vmatpush1.bf16.msra.mxu0 %v9423_v63  ;;  %7173 = vmatpush1.bf16.msra.mxu1 %v9426_v0  ;;  %v9518_v63 = vld [vmem:[%s13682_s1 + $0xd48] ss:$16 sps:$4 sm:$0xff]   ;;  %v9523_v0 = vld [vmem:[%s13682_s1 + $0xd64] ss:$16 sps:$4 sm:$0xff]  }
 0x170   :  { %6518 = vmatprep.subr.bf16.mxu0 %v9431_v1  ;;  %7174 = vmatprep.subr.bf16.mxu1 %v9434_v2  ;;  %v9526_v1 = vld [vmem:[%s13682_s1 + $0xd6c] ss:$16 sps:$4 sm:$0xff]   ;;  %v9521_v2 = vld [vmem:[%s13682_s1 + $0xd60] ss:$16 sps:$4 sm:$0xff]  }
 0x173   :  { %6519 = vmatpush1.bf16.msra.mxu0 %v9429_v3  ;;  %7175 = vmatpush1.bf16.msra.mxu1 %v9432_v4  ;;  %v9524_v3 = vld [vmem:[%s13682_s1 + $0xd68] ss:$16 sps:$4 sm:$0xff]   ;;  %v9529_v4 = vld [vmem:[%s13682_s1 + $0xd84] ss:$16 sps:$4 sm:$0xff]  }
 0x174   :  { %6520 = vmatprep.subr.bf16.mxu0 %v9437_v5  ;;  %7176 = vmatprep.subr.bf16.mxu1 %v9440_v6  ;;  %v9532_v5 = vld [vmem:[%s13682_s1 + $0xd8c] ss:$16 sps:$4 sm:$0xff]   ;;  %v9527_v6 = vld [vmem:[%s13682_s1 + $0xd80] ss:$16 sps:$4 sm:$0xff]  }
 0x177   :  { %6521 = vmatpush1.bf16.msra.mxu0 %v9435_v7  ;;  %7177 = vmatpush1.bf16.msra.mxu1 %v9438_v8  ;;  %v9530_v7 = vld [vmem:[%s13682_s1 + $0xd88] ss:$16 sps:$4 sm:$0xff]   ;;  %v9535_v8 = vld [vmem:[%s13682_s1 + $0xda4] ss:$16 sps:$4 sm:$0xff]  }
 0x178   :  { %6522 = vmatprep.subr.bf16.mxu0 %v9443_v9  ;;  %7178 = vmatprep.subr.bf16.mxu1 %v9446_v10  ;;  %v9538_v9 = vld [vmem:[%s13682_s1 + $0xdac] ss:$16 sps:$4 sm:$0xff]   ;;  %v9533_v10 = vld [vmem:[%s13682_s1 + $0xda0] ss:$16 sps:$4 sm:$0xff]  }
 0x17b   :  { %6523 = vmatpush1.bf16.msra.mxu0 %v9441_v12  ;;  %7179 = vmatpush1.bf16.msra.mxu1 %v9444_v13  ;;  %v9536_v12 = vld [vmem:[%s13682_s1 + $0xda8] ss:$16 sps:$4 sm:$0xff]   ;;  %v9541_v13 = vld [vmem:[%s13682_s1 + $0xdc4] ss:$16 sps:$4 sm:$0xff]  }
 0x17c   :  { %6524 = vmatprep.subr.bf16.mxu0 %v9449_v15  ;;  %7180 = vmatprep.subr.bf16.mxu1 %v9452_v11  ;;  %v9544_v15 = vld [vmem:[%s13682_s1 + $0xdcc] ss:$16 sps:$4 sm:$0xff]   ;;  %v9539_v11 = vld [vmem:[%s13682_s1 + $0xdc0] ss:$16 sps:$4 sm:$0xff]  }
 0x17f   :  { %6525 = vmatpush1.bf16.msra.mxu0 %v9447_v17  ;;  %7181 = vmatpush1.bf16.msra.mxu1 %v9450_v14  ;;  %v9542_v17 = vld [vmem:[%s13682_s1 + $0xdc8] ss:$16 sps:$4 sm:$0xff]   ;;  %v9547_v14 = vld [vmem:[%s13682_s1 + $0xde4] ss:$16 sps:$4 sm:$0xff]  }
 0x180   :  { %6535 = vmatprep.subr.bf16.mxu0 %v9457_v19  ;;  %7191 = vmatprep.subr.bf16.mxu1 %v9460_v20  ;;  %v9550_v19 = vld [vmem:[%s13682_s1 + $0xdec] ss:$16 sps:$4 sm:$0xff]   ;;  %v9545_v20 = vld [vmem:[%s13682_s1 + $0xde0] ss:$16 sps:$4 sm:$0xff]  }
 0x182   :  { %6527 = vmatmul.mubr.bf16.vlgmr.msra.gmra.mrb[0].mxu0 %v7697_v16  ;;  %7183 = vmatmul.mubr.bf16.vlgmr.msra.gmra.mrb[0].mxu1 %v7697_v16  ;;  %v9548_v16 = vld [vmem:[%s13682_s1 + $0xde8] ss:$16 sps:$4 sm:$0xff]  }
 0x183   :  { %6536 = vmatpush1.bf16.msra.mxu0 %v9455_v22  ;;  %7192 = vmatpush1.bf16.msra.mxu1 %v9458_v23  ;;  %v9555_v22 = vld [vmem:[%s13682_s1 + $0xe04] ss:$16 sps:$4 sm:$0xff]   ;;  %v9558_v23 = vld [vmem:[%s13682_s1 + $0xe0c] ss:$16 sps:$4 sm:$0xff]  }
 0x184   :  { %6537 = vmatprep.subr.bf16.mxu0 %v9463_v24  ;;  %7193 = vmatprep.subr.bf16.mxu1 %v9466_v18  ;;  %v11868_v24 = vld [vmem:[%s13683_s0 + $0x38] sm:$0xff]  ;;  %v7699_v18 = vcombine.low %v11667_v21, %v11667_v21 }
 0x185   :  { %6567 = vmatprep.mubr.bf16.mxu0 %v7700_v25  ;;  %7223 = vmatprep.mubr.bf16.mxu1 %v7700_v25  ;;  %v9553_v25 = vld [vmem:[%s13682_s1 + $0xe00] ss:$16 sps:$4 sm:$0xff]   ;;  %v9564_v21 = vld [vmem:[%s13682_s1 + $0xe2c] ss:$16 sps:$4 sm:$0xff]  }
 0x187   :  { %6538 = vmatpush1.bf16.msra.mxu0 %v9461_v26  ;;  %7194 = vmatpush1.bf16.msra.mxu1 %v9464_v27  ;;  %v9556_v26 = vld [vmem:[%s13682_s1 + $0xe08] ss:$16 sps:$4 sm:$0xff]   ;;  %v9561_v27 = vld [vmem:[%s13682_s1 + $0xe24] ss:$16 sps:$4 sm:$0xff]  }
 0x188   :  { %6539 = vmatprep.subr.bf16.mxu0 %v9469_v28  ;;  %7195 = vmatprep.subr.bf16.mxu1 %v9472_v29  ;;  %v7702_v28 = vcombine.high %v11868_v24, %v11868_v24  ;;  %v9559_v29 = vld [vmem:[%s13682_s1 + $0xe20] ss:$16 sps:$4 sm:$0xff]  }
 0x18b   :  { %6540 = vmatpush1.bf16.msra.mxu0 %v9467_v30  ;;  %7196 = vmatpush1.bf16.msra.mxu1 %v9470_v31  ;;  %v9562_v30 = vld [vmem:[%s13682_s1 + $0xe28] ss:$16 sps:$4 sm:$0xff]   ;;  %v9567_v31 = vld [vmem:[%s13682_s1 + $0xe44] ss:$16 sps:$4 sm:$0xff]  }
 0x18c   :  { %6541 = vmatprep.subr.bf16.mxu0 %v9475_v32  ;;  %7197 = vmatprep.subr.bf16.mxu1 %v9478_v33  ;;  %v9570_v32 = vld [vmem:[%s13682_s1 + $0xe4c] ss:$16 sps:$4 sm:$0xff]   ;;  %v9565_v33 = vld [vmem:[%s13682_s1 + $0xe40] ss:$16 sps:$4 sm:$0xff]  }
 0x18f   :  { %6542 = vmatpush1.bf16.msra.mxu0 %v9473_v34  ;;  %7198 = vmatpush1.bf16.msra.mxu1 %v9476_v35  ;;  %v9568_v34 = vld [vmem:[%s13682_s1 + $0xe48] ss:$16 sps:$4 sm:$0xff]   ;;  %v9573_v35 = vld [vmem:[%s13682_s1 + $0xe64] ss:$16 sps:$4 sm:$0xff]  }
 0x190   :  { %6543 = vmatprep.subr.bf16.mxu0 %v9481_v36  ;;  %7199 = vmatprep.subr.bf16.mxu1 %v9484_v37  ;;  %v9576_v36 = vld [vmem:[%s13682_s1 + $0xe6c] ss:$16 sps:$4 sm:$0xff]   ;;  %v9571_v37 = vld [vmem:[%s13682_s1 + $0xe60] ss:$16 sps:$4 sm:$0xff]  }
 0x193   :  { %6544 = vmatpush1.bf16.msra.mxu0 %v9479_v38  ;;  %7200 = vmatpush1.bf16.msra.mxu1 %v9482_v39  ;;  %v9574_v38 = vld [vmem:[%s13682_s1 + $0xe68] ss:$16 sps:$4 sm:$0xff]   ;;  %v9579_v39 = vld [vmem:[%s13682_s1 + $0xe84] ss:$16 sps:$4 sm:$0xff]  }
 0x194   :  { %6545 = vmatprep.subr.bf16.mxu0 %v9487_v40  ;;  %7201 = vmatprep.subr.bf16.mxu1 %v9490_v41  ;;  %v9582_v40 = vld [vmem:[%s13682_s1 + $0xe8c] ss:$16 sps:$4 sm:$0xff]   ;;  %v9577_v41 = vld [vmem:[%s13682_s1 + $0xe80] ss:$16 sps:$4 sm:$0xff]  }
 0x197   :  { %6546 = vmatpush1.bf16.msra.mxu0 %v9485_v42  ;;  %7202 = vmatpush1.bf16.msra.mxu1 %v9488_v43  ;;  %v9580_v42 = vld [vmem:[%s13682_s1 + $0xe88] ss:$16 sps:$4 sm:$0xff]   ;;  %v9585_v43 = vld [vmem:[%s13682_s1 + $0xea4] ss:$16 sps:$4 sm:$0xff]  }
 0x198   :  { %6547 = vmatprep.subr.bf16.mxu0 %v9493_v44  ;;  %7203 = vmatprep.subr.bf16.mxu1 %v9496_v45  ;;  %v9588_v44 = vld [vmem:[%s13682_s1 + $0xeac] ss:$16 sps:$4 sm:$0xff]   ;;  %v9583_v45 = vld [vmem:[%s13682_s1 + $0xea0] ss:$16 sps:$4 sm:$0xff]  }
 0x19b   :  { %6548 = vmatpush1.bf16.msra.mxu0 %v9491_v46  ;;  %7204 = vmatpush1.bf16.msra.mxu1 %v9494_v47  ;;  %v9586_v46 = vld [vmem:[%s13682_s1 + $0xea8] ss:$16 sps:$4 sm:$0xff]   ;;  %v9591_v47 = vld [vmem:[%s13682_s1 + $0xec4] ss:$16 sps:$4 sm:$0xff]  }
 0x19c   :  { %6549 = vmatprep.subr.bf16.mxu0 %v9499_v48  ;;  %7205 = vmatprep.subr.bf16.mxu1 %v9502_v49  ;;  %v9594_v48 = vld [vmem:[%s13682_s1 + $0xecc] ss:$16 sps:$4 sm:$0xff]   ;;  %v9589_v49 = vld [vmem:[%s13682_s1 + $0xec0] ss:$16 sps:$4 sm:$0xff]  }
 0x19f   :  { %6550 = vmatpush1.bf16.msra.mxu0 %v9497_v50  ;;  %7206 = vmatpush1.bf16.msra.mxu1 %v9500_v51  ;;  %v9592_v50 = vld [vmem:[%s13682_s1 + $0xec8] ss:$16 sps:$4 sm:$0xff]   ;;  %v9597_v51 = vld [vmem:[%s13682_s1 + $0xee4] ss:$16 sps:$4 sm:$0xff]  }
 0x1a0   :  { %6551 = vmatprep.subr.bf16.mxu0 %v9505_v52  ;;  %7207 = vmatprep.subr.bf16.mxu1 %v9508_v53  ;;  %v9600_v52 = vld [vmem:[%s13682_s1 + $0xeec] ss:$16 sps:$4 sm:$0xff]   ;;  %v9595_v53 = vld [vmem:[%s13682_s1 + $0xee0] ss:$16 sps:$4 sm:$0xff]  }
 0x1a3   :  { %6552 = vmatpush1.bf16.msra.mxu0 %v9503_v54  ;;  %7208 = vmatpush1.bf16.msra.mxu1 %v9506_v55  ;;  %v9598_v54 = vld [vmem:[%s13682_s1 + $0xee8] ss:$16 sps:$4 sm:$0xff]   ;;  %v9603_v55 = vld [vmem:[%s13682_s1 + $0xf04] ss:$16 sps:$4 sm:$0xff]  }
 0x1a4   :  { %6553 = vmatprep.subr.bf16.mxu0 %v9511_v56  ;;  %7209 = vmatprep.subr.bf16.mxu1 %v9514_v57  ;;  %v9606_v56 = vld [vmem:[%s13682_s1 + $0xf0c] ss:$16 sps:$4 sm:$0xff]   ;;  %v9601_v57 = vld [vmem:[%s13682_s1 + $0xf00] ss:$16 sps:$4 sm:$0xff]  }
 0x1a7   :  { %6554 = vmatpush1.bf16.msra.mxu0 %v9509_v58  ;;  %7210 = vmatpush1.bf16.msra.mxu1 %v9512_v59  ;;  %v9604_v58 = vld [vmem:[%s13682_s1 + $0xf08] ss:$16 sps:$4 sm:$0xff]   ;;  %v9609_v59 = vld [vmem:[%s13682_s1 + $0xf24] ss:$16 sps:$4 sm:$0xff]  }
 0x1a8   :  { %6555 = vmatprep.subr.bf16.mxu0 %v9517_v60  ;;  %7211 = vmatprep.subr.bf16.mxu1 %v9520_v61  ;;  %v9612_v60 = vld [vmem:[%s13682_s1 + $0xf2c] ss:$16 sps:$4 sm:$0xff]   ;;  %v9607_v61 = vld [vmem:[%s13682_s1 + $0xf20] ss:$16 sps:$4 sm:$0xff]  }
 0x1ab   :  { %6556 = vmatpush1.bf16.msra.mxu0 %v9515_v62  ;;  %7212 = vmatpush1.bf16.msra.mxu1 %v9518_v63  ;;  %v9610_v62 = vld [vmem:[%s13682_s1 + $0xf28] ss:$16 sps:$4 sm:$0xff]   ;;  %v9615_v63 = vld [vmem:[%s13682_s1 + $0xf44] ss:$16 sps:$4 sm:$0xff]  }
 0x1ac   :  { %6557 = vmatprep.subr.bf16.mxu0 %v9523_v0  ;;  %7213 = vmatprep.subr.bf16.mxu1 %v9526_v1  ;;  %v9618_v0 = vld [vmem:[%s13682_s1 + $0xf4c] ss:$16 sps:$4 sm:$0xff]   ;;  %v9613_v1 = vld [vmem:[%s13682_s1 + $0xf40] ss:$16 sps:$4 sm:$0xff]  }
 0x1af   :  { %6558 = vmatpush1.bf16.msra.mxu0 %v9521_v2  ;;  %7214 = vmatpush1.bf16.msra.mxu1 %v9524_v3  ;;  %v9616_v2 = vld [vmem:[%s13682_s1 + $0xf48] ss:$16 sps:$4 sm:$0xff]   ;;  %v9621_v3 = vld [vmem:[%s13682_s1 + $0xf64] ss:$16 sps:$4 sm:$0xff]  }
 0x1b0   :  { %6559 = vmatprep.subr.bf16.mxu0 %v9529_v4  ;;  %7215 = vmatprep.subr.bf16.mxu1 %v9532_v5  ;;  %v9624_v4 = vld [vmem:[%s13682_s1 + $0xf6c] ss:$16 sps:$4 sm:$0xff]   ;;  %v9619_v5 = vld [vmem:[%s13682_s1 + $0xf60] ss:$16 sps:$4 sm:$0xff]  }
 0x1b3   :  { %6560 = vmatpush1.bf16.msra.mxu0 %v9527_v6  ;;  %7216 = vmatpush1.bf16.msra.mxu1 %v9530_v7  ;;  %v9622_v6 = vld [vmem:[%s13682_s1 + $0xf68] ss:$16 sps:$4 sm:$0xff]   ;;  %v9627_v7 = vld [vmem:[%s13682_s1 + $0xf84] ss:$16 sps:$4 sm:$0xff]  }
 0x1b4   :  { %6561 = vmatprep.subr.bf16.mxu0 %v9535_v8  ;;  %7217 = vmatprep.subr.bf16.mxu1 %v9538_v9  ;;  %v9630_v8 = vld [vmem:[%s13682_s1 + $0xf8c] ss:$16 sps:$4 sm:$0xff]   ;;  %v9625_v9 = vld [vmem:[%s13682_s1 + $0xf80] ss:$16 sps:$4 sm:$0xff]  }
 0x1b7   :  { %6562 = vmatpush1.bf16.msra.mxu0 %v9533_v10  ;;  %7218 = vmatpush1.bf16.msra.mxu1 %v9536_v12  ;;  %v9628_v10 = vld [vmem:[%s13682_s1 + $0xf88] ss:$16 sps:$4 sm:$0xff]   ;;  %v9633_v12 = vld [vmem:[%s13682_s1 + $0xfa4] ss:$16 sps:$4 sm:$0xff]  }
 0x1b8   :  { %6563 = vmatprep.subr.bf16.mxu0 %v9541_v13  ;;  %7219 = vmatprep.subr.bf16.mxu1 %v9544_v15  ;;  %v9636_v13 = vld [vmem:[%s13682_s1 + $0xfac] ss:$16 sps:$4 sm:$0xff]   ;;  %v9631_v15 = vld [vmem:[%s13682_s1 + $0xfa0] ss:$16 sps:$4 sm:$0xff]  }
 0x1bb   :  { %6564 = vmatpush1.bf16.msra.mxu0 %v9539_v11  ;;  %7220 = vmatpush1.bf16.msra.mxu1 %v9542_v17  ;;  %v9634_v11 = vld [vmem:[%s13682_s1 + $0xfa8] ss:$16 sps:$4 sm:$0xff]   ;;  %v9639_v17 = vld [vmem:[%s13682_s1 + $0xfc4] ss:$16 sps:$4 sm:$0xff]  }
 0x1bc   :  { %6565 = vmatprep.subr.bf16.mxu0 %v9547_v14  ;;  %7221 = vmatprep.subr.bf16.mxu1 %v9550_v19  ;;  %v9642_v14 = vld [vmem:[%s13682_s1 + $0xfcc] ss:$16 sps:$4 sm:$0xff]   ;;  %v9637_v19 = vld [vmem:[%s13682_s1 + $0xfc0] ss:$16 sps:$4 sm:$0xff]  }
 0x1bf   :  { %6566 = vmatpush1.bf16.msra.mxu0 %v9545_v20  ;;  %7222 = vmatpush1.bf16.msra.mxu1 %v9548_v16  ;;  %v9640_v20 = vld [vmem:[%s13682_s1 + $0xfc8] ss:$16 sps:$4 sm:$0xff]   ;;  %v9645_v16 = vld [vmem:[%s13682_s1 + $0xfe4] ss:$16 sps:$4 sm:$0xff]  }
 0x1c0   :  { %6576 = vmatprep.subr.bf16.mxu0 %v9555_v22  ;;  %7232 = vmatprep.subr.bf16.mxu1 %v9558_v23  ;;  %v9648_v22 = vld [vmem:[%s13682_s1 + $0xfec] ss:$16 sps:$4 sm:$0xff]   ;;  %v9643_v23 = vld [vmem:[%s13682_s1 + $0xfe0] ss:$16 sps:$4 sm:$0xff]  }
 0x1c2   :  { %6568 = vmatmul.mubr.bf16.vlgmr.msra.gmra.mrb[0].mxu0 %v7699_v18  ;;  %7224 = vmatmul.mubr.bf16.vlgmr.msra.gmra.mrb[0].mxu1 %v7699_v18  ;;  %v9646_v18 = vld [vmem:[%s13682_s1 + $0xfe8] ss:$16 sps:$4 sm:$0xff]  }
 0x1c3   :  { %6577 = vmatpush1.bf16.msra.mxu0 %v9553_v25  ;;  %7233 = vmatpush1.bf16.msra.mxu1 %v9556_v26  ;;  %v9653_v25 = vld [vmem:[%s13682_s1 + $0x1004] ss:$16 sps:$4 sm:$0xff]   ;;  %v9656_v26 = vld [vmem:[%s13682_s1 + $0x100c] ss:$16 sps:$4 sm:$0xff]  }
 0x1c4   :  { %6578 = vmatprep.subr.bf16.mxu0 %v9561_v27  ;;  %7234 = vmatprep.subr.bf16.mxu1 %v9564_v21  ;;  %v12069_v27 = vld [vmem:[%s13683_s0 + $0x40] sm:$0xff]  ;;  %v7701_v21 = vcombine.low %v11868_v24, %v11868_v24  ;;  %v9662_v24 = vld [vmem:[%s13682_s1 + $0x102c] ss:$16 sps:$4 sm:$0xff]  }
 0x1c5   :  { %6608 = vmatprep.mubr.bf16.mxu0 %v7702_v28  ;;  %7264 = vmatprep.mubr.bf16.mxu1 %v7702_v28  ;;  %v9651_v28 = vld [vmem:[%s13682_s1 + $0x1000] ss:$16 sps:$4 sm:$0xff]  }
 0x1c7   :  { %6579 = vmatpush1.bf16.msra.mxu0 %v9559_v29  ;;  %7235 = vmatpush1.bf16.msra.mxu1 %v9562_v30  ;;  %v9654_v29 = vld [vmem:[%s13682_s1 + $0x1008] ss:$16 sps:$4 sm:$0xff]   ;;  %v9659_v30 = vld [vmem:[%s13682_s1 + $0x1024] ss:$16 sps:$4 sm:$0xff]  }
 0x1c8   :  { %6580 = vmatprep.subr.bf16.mxu0 %v9567_v31  ;;  %7236 = vmatprep.subr.bf16.mxu1 %v9570_v32  ;;  %v7704_v31 = vcombine.high %v12069_v27, %v12069_v27  ;;  %v9657_v32 = vld [vmem:[%s13682_s1 + $0x1020] ss:$16 sps:$4 sm:$0xff]  }
 0x1cb   :  { %6581 = vmatpush1.bf16.msra.mxu0 %v9565_v33  ;;  %7237 = vmatpush1.bf16.msra.mxu1 %v9568_v34  ;;  %v9660_v33 = vld [vmem:[%s13682_s1 + $0x1028] ss:$16 sps:$4 sm:$0xff]   ;;  %v9665_v34 = vld [vmem:[%s13682_s1 + $0x1044] ss:$16 sps:$4 sm:$0xff]  }
 0x1cc   :  { %6582 = vmatprep.subr.bf16.mxu0 %v9573_v35  ;;  %7238 = vmatprep.subr.bf16.mxu1 %v9576_v36  ;;  %v9668_v35 = vld [vmem:[%s13682_s1 + $0x104c] ss:$16 sps:$4 sm:$0xff]   ;;  %v9663_v36 = vld [vmem:[%s13682_s1 + $0x1040] ss:$16 sps:$4 sm:$0xff]  }
 0x1cf   :  { %6583 = vmatpush1.bf16.msra.mxu0 %v9571_v37  ;;  %7239 = vmatpush1.bf16.msra.mxu1 %v9574_v38  ;;  %v9666_v37 = vld [vmem:[%s13682_s1 + $0x1048] ss:$16 sps:$4 sm:$0xff]   ;;  %v9671_v38 = vld [vmem:[%s13682_s1 + $0x1064] ss:$16 sps:$4 sm:$0xff]  }
 0x1d0   :  { %6584 = vmatprep.subr.bf16.mxu0 %v9579_v39  ;;  %7240 = vmatprep.subr.bf16.mxu1 %v9582_v40  ;;  %v9674_v39 = vld [vmem:[%s13682_s1 + $0x106c] ss:$16 sps:$4 sm:$0xff]   ;;  %v9669_v40 = vld [vmem:[%s13682_s1 + $0x1060] ss:$16 sps:$4 sm:$0xff]  }
 0x1d3   :  { %6585 = vmatpush1.bf16.msra.mxu0 %v9577_v41  ;;  %7241 = vmatpush1.bf16.msra.mxu1 %v9580_v42  ;;  %v9672_v41 = vld [vmem:[%s13682_s1 + $0x1068] ss:$16 sps:$4 sm:$0xff]   ;;  %v9677_v42 = vld [vmem:[%s13682_s1 + $0x1084] ss:$16 sps:$4 sm:$0xff]  }
 0x1d4   :  { %6586 = vmatprep.subr.bf16.mxu0 %v9585_v43  ;;  %7242 = vmatprep.subr.bf16.mxu1 %v9588_v44  ;;  %v9680_v43 = vld [vmem:[%s13682_s1 + $0x108c] ss:$16 sps:$4 sm:$0xff]   ;;  %v9675_v44 = vld [vmem:[%s13682_s1 + $0x1080] ss:$16 sps:$4 sm:$0xff]  }
 0x1d7   :  { %6587 = vmatpush1.bf16.msra.mxu0 %v9583_v45  ;;  %7243 = vmatpush1.bf16.msra.mxu1 %v9586_v46  ;;  %v9678_v45 = vld [vmem:[%s13682_s1 + $0x1088] ss:$16 sps:$4 sm:$0xff]   ;;  %v9683_v46 = vld [vmem:[%s13682_s1 + $0x10a4] ss:$16 sps:$4 sm:$0xff]  }
 0x1d8   :  { %6588 = vmatprep.subr.bf16.mxu0 %v9591_v47  ;;  %7244 = vmatprep.subr.bf16.mxu1 %v9594_v48  ;;  %v9686_v47 = vld [vmem:[%s13682_s1 + $0x10ac] ss:$16 sps:$4 sm:$0xff]   ;;  %v9681_v48 = vld [vmem:[%s13682_s1 + $0x10a0] ss:$16 sps:$4 sm:$0xff]  }
 0x1db   :  { %6589 = vmatpush1.bf16.msra.mxu0 %v9589_v49  ;;  %7245 = vmatpush1.bf16.msra.mxu1 %v9592_v50  ;;  %v9684_v49 = vld [vmem:[%s13682_s1 + $0x10a8] ss:$16 sps:$4 sm:$0xff]   ;;  %v9689_v50 = vld [vmem:[%s13682_s1 + $0x10c4] ss:$16 sps:$4 sm:$0xff]  }
 0x1dc   :  { %6590 = vmatprep.subr.bf16.mxu0 %v9597_v51  ;;  %7246 = vmatprep.subr.bf16.mxu1 %v9600_v52  ;;  %v9692_v51 = vld [vmem:[%s13682_s1 + $0x10cc] ss:$16 sps:$4 sm:$0xff]   ;;  %v9687_v52 = vld [vmem:[%s13682_s1 + $0x10c0] ss:$16 sps:$4 sm:$0xff]  }
 0x1df   :  { %6591 = vmatpush1.bf16.msra.mxu0 %v9595_v53  ;;  %7247 = vmatpush1.bf16.msra.mxu1 %v9598_v54  ;;  %v9690_v53 = vld [vmem:[%s13682_s1 + $0x10c8] ss:$16 sps:$4 sm:$0xff]   ;;  %v9695_v54 = vld [vmem:[%s13682_s1 + $0x10e4] ss:$16 sps:$4 sm:$0xff]  }
 0x1e0   :  { %6592 = vmatprep.subr.bf16.mxu0 %v9603_v55  ;;  %7248 = vmatprep.subr.bf16.mxu1 %v9606_v56  ;;  %v9698_v55 = vld [vmem:[%s13682_s1 + $0x10ec] ss:$16 sps:$4 sm:$0xff]   ;;  %v9693_v56 = vld [vmem:[%s13682_s1 + $0x10e0] ss:$16 sps:$4 sm:$0xff]  }
 0x1e3   :  { %6593 = vmatpush1.bf16.msra.mxu0 %v9601_v57  ;;  %7249 = vmatpush1.bf16.msra.mxu1 %v9604_v58  ;;  %v9696_v57 = vld [vmem:[%s13682_s1 + $0x10e8] ss:$16 sps:$4 sm:$0xff]   ;;  %v9701_v58 = vld [vmem:[%s13682_s1 + $0x1104] ss:$16 sps:$4 sm:$0xff]  }
 0x1e4   :  { %6594 = vmatprep.subr.bf16.mxu0 %v9609_v59  ;;  %7250 = vmatprep.subr.bf16.mxu1 %v9612_v60  ;;  %v9704_v59 = vld [vmem:[%s13682_s1 + $0x110c] ss:$16 sps:$4 sm:$0xff]   ;;  %v9699_v60 = vld [vmem:[%s13682_s1 + $0x1100] ss:$16 sps:$4 sm:$0xff]  }
 0x1e7   :  { %6595 = vmatpush1.bf16.msra.mxu0 %v9607_v61  ;;  %7251 = vmatpush1.bf16.msra.mxu1 %v9610_v62  ;;  %v9702_v61 = vld [vmem:[%s13682_s1 + $0x1108] ss:$16 sps:$4 sm:$0xff]   ;;  %v9707_v62 = vld [vmem:[%s13682_s1 + $0x1124] ss:$16 sps:$4 sm:$0xff]  }
 0x1e8   :  { %6596 = vmatprep.subr.bf16.mxu0 %v9615_v63  ;;  %7252 = vmatprep.subr.bf16.mxu1 %v9618_v0  ;;  %v9710_v63 = vld [vmem:[%s13682_s1 + $0x112c] ss:$16 sps:$4 sm:$0xff]   ;;  %v9705_v0 = vld [vmem:[%s13682_s1 + $0x1120] ss:$16 sps:$4 sm:$0xff]  }
 0x1eb   :  { %6597 = vmatpush1.bf16.msra.mxu0 %v9613_v1  ;;  %7253 = vmatpush1.bf16.msra.mxu1 %v9616_v2  ;;  %v9708_v1 = vld [vmem:[%s13682_s1 + $0x1128] ss:$16 sps:$4 sm:$0xff]   ;;  %v9713_v2 = vld [vmem:[%s13682_s1 + $0x1144] ss:$16 sps:$4 sm:$0xff]  }
 0x1ec   :  { %6598 = vmatprep.subr.bf16.mxu0 %v9621_v3  ;;  %7254 = vmatprep.subr.bf16.mxu1 %v9624_v4  ;;  %v9716_v3 = vld [vmem:[%s13682_s1 + $0x114c] ss:$16 sps:$4 sm:$0xff]   ;;  %v9711_v4 = vld [vmem:[%s13682_s1 + $0x1140] ss:$16 sps:$4 sm:$0xff]  }
 0x1ef   :  { %6599 = vmatpush1.bf16.msra.mxu0 %v9619_v5  ;;  %7255 = vmatpush1.bf16.msra.mxu1 %v9622_v6  ;;  %v9714_v5 = vld [vmem:[%s13682_s1 + $0x1148] ss:$16 sps:$4 sm:$0xff]   ;;  %v9719_v6 = vld [vmem:[%s13682_s1 + $0x1164] ss:$16 sps:$4 sm:$0xff]  }
 0x1f0   :  { %6600 = vmatprep.subr.bf16.mxu0 %v9627_v7  ;;  %7256 = vmatprep.subr.bf16.mxu1 %v9630_v8  ;;  %v9722_v7 = vld [vmem:[%s13682_s1 + $0x116c] ss:$16 sps:$4 sm:$0xff]   ;;  %v9717_v8 = vld [vmem:[%s13682_s1 + $0x1160] ss:$16 sps:$4 sm:$0xff]  }
 0x1f3   :  { %6601 = vmatpush1.bf16.msra.mxu0 %v9625_v9  ;;  %7257 = vmatpush1.bf16.msra.mxu1 %v9628_v10  ;;  %v9720_v9 = vld [vmem:[%s13682_s1 + $0x1168] ss:$16 sps:$4 sm:$0xff]   ;;  %v9725_v10 = vld [vmem:[%s13682_s1 + $0x1184] ss:$16 sps:$4 sm:$0xff]  }
 0x1f4   :  { %6602 = vmatprep.subr.bf16.mxu0 %v9633_v12  ;;  %7258 = vmatprep.subr.bf16.mxu1 %v9636_v13  ;;  %v9728_v12 = vld [vmem:[%s13682_s1 + $0x118c] ss:$16 sps:$4 sm:$0xff]   ;;  %v9723_v13 = vld [vmem:[%s13682_s1 + $0x1180] ss:$16 sps:$4 sm:$0xff]  }
 0x1f7   :  { %6603 = vmatpush1.bf16.msra.mxu0 %v9631_v15  ;;  %7259 = vmatpush1.bf16.msra.mxu1 %v9634_v11  ;;  %v9726_v15 = vld [vmem:[%s13682_s1 + $0x1188] ss:$16 sps:$4 sm:$0xff]   ;;  %v9731_v11 = vld [vmem:[%s13682_s1 + $0x11a4] ss:$16 sps:$4 sm:$0xff]  }
 0x1f8   :  { %6604 = vmatprep.subr.bf16.mxu0 %v9639_v17  ;;  %7260 = vmatprep.subr.bf16.mxu1 %v9642_v14  ;;  %v9734_v17 = vld [vmem:[%s13682_s1 + $0x11ac] ss:$16 sps:$4 sm:$0xff]   ;;  %v9729_v14 = vld [vmem:[%s13682_s1 + $0x11a0] ss:$16 sps:$4 sm:$0xff]  }
 0x1fb   :  { %6605 = vmatpush1.bf16.msra.mxu0 %v9637_v19  ;;  %7261 = vmatpush1.bf16.msra.mxu1 %v9640_v20  ;;  %v9732_v19 = vld [vmem:[%s13682_s1 + $0x11a8] ss:$16 sps:$4 sm:$0xff]   ;;  %v9737_v20 = vld [vmem:[%s13682_s1 + $0x11c4] ss:$16 sps:$4 sm:$0xff]  }
 0x1fc   :  { %6606 = vmatprep.subr.bf16.mxu0 %v9645_v16  ;;  %7262 = vmatprep.subr.bf16.mxu1 %v9648_v22  ;;  %v9740_v16 = vld [vmem:[%s13682_s1 + $0x11cc] ss:$16 sps:$4 sm:$0xff]   ;;  %v9735_v22 = vld [vmem:[%s13682_s1 + $0x11c0] ss:$16 sps:$4 sm:$0xff]  }
 0x1ff   :  { %6607 = vmatpush1.bf16.msra.mxu0 %v9643_v23  ;;  %7263 = vmatpush1.bf16.msra.mxu1 %v9646_v18  ;;  %v9738_v23 = vld [vmem:[%s13682_s1 + $0x11c8] ss:$16 sps:$4 sm:$0xff]   ;;  %v9743_v18 = vld [vmem:[%s13682_s1 + $0x11e4] ss:$16 sps:$4 sm:$0xff]  }
 0x200   :  { %6617 = vmatprep.subr.bf16.mxu0 %v9653_v25  ;;  %7273 = vmatprep.subr.bf16.mxu1 %v9656_v26  ;;  %v9746_v25 = vld [vmem:[%s13682_s1 + $0x11ec] ss:$16 sps:$4 sm:$0xff]   ;;  %v9741_v26 = vld [vmem:[%s13682_s1 + $0x11e0] ss:$16 sps:$4 sm:$0xff]  }
 0x202   :  { %6609 = vmatmul.mubr.bf16.vlgmr.msra.gmra.mrb[0].mxu0 %v7701_v21  ;;  %7265 = vmatmul.mubr.bf16.vlgmr.msra.gmra.mrb[0].mxu1 %v7701_v21  ;;  %v9744_v21 = vld [vmem:[%s13682_s1 + $0x11e8] ss:$16 sps:$4 sm:$0xff]  }
 0x203   :  { %6618 = vmatpush1.bf16.msra.mxu0 %v9651_v28  ;;  %7274 = vmatpush1.bf16.msra.mxu1 %v9654_v29  ;;  %v9751_v28 = vld [vmem:[%s13682_s1 + $0x1204] ss:$16 sps:$4 sm:$0xff]   ;;  %v9754_v29 = vld [vmem:[%s13682_s1 + $0x120c] ss:$16 sps:$4 sm:$0xff]  }
 0x204   :  { %6619 = vmatprep.subr.bf16.mxu0 %v9659_v30  ;;  %7275 = vmatprep.subr.bf16.mxu1 %v9662_v24  ;;  %v12270_v30 = vld [vmem:[%s13683_s0 + $0x48] sm:$0xff]  ;;  %v7703_v24 = vcombine.low %v12069_v27, %v12069_v27 }
 0x205   :  { %6649 = vmatprep.mubr.bf16.mxu0 %v7704_v31  ;;  %7305 = vmatprep.mubr.bf16.mxu1 %v7704_v31  ;;  %v9749_v31 = vld [vmem:[%s13682_s1 + $0x1200] ss:$16 sps:$4 sm:$0xff]   ;;  %v9760_v27 = vld [vmem:[%s13682_s1 + $0x122c] ss:$16 sps:$4 sm:$0xff]  }
 0x207   :  { %6620 = vmatpush1.bf16.msra.mxu0 %v9657_v32  ;;  %7276 = vmatpush1.bf16.msra.mxu1 %v9660_v33  ;;  %v9752_v32 = vld [vmem:[%s13682_s1 + $0x1208] ss:$16 sps:$4 sm:$0xff]   ;;  %v9757_v33 = vld [vmem:[%s13682_s1 + $0x1224] ss:$16 sps:$4 sm:$0xff]  }
 0x208   :  { %6621 = vmatprep.subr.bf16.mxu0 %v9665_v34  ;;  %7277 = vmatprep.subr.bf16.mxu1 %v9668_v35  ;;  %v7706_v34 = vcombine.high %v12270_v30, %v12270_v30  ;;  %v9755_v35 = vld [vmem:[%s13682_s1 + $0x1220] ss:$16 sps:$4 sm:$0xff]  }
 0x20b   :  { %6622 = vmatpush1.bf16.msra.mxu0 %v9663_v36  ;;  %7278 = vmatpush1.bf16.msra.mxu1 %v9666_v37  ;;  %v9758_v36 = vld [vmem:[%s13682_s1 + $0x1228] ss:$16 sps:$4 sm:$0xff]   ;;  %v9763_v37 = vld [vmem:[%s13682_s1 + $0x1244] ss:$16 sps:$4 sm:$0xff]  }
 0x20c   :  { %6623 = vmatprep.subr.bf16.mxu0 %v9671_v38  ;;  %7279 = vmatprep.subr.bf16.mxu1 %v9674_v39  ;;  %v9766_v38 = vld [vmem:[%s13682_s1 + $0x124c] ss:$16 sps:$4 sm:$0xff]   ;;  %v9761_v39 = vld [vmem:[%s13682_s1 + $0x1240] ss:$16 sps:$4 sm:$0xff]  }
 0x20f   :  { %6624 = vmatpush1.bf16.msra.mxu0 %v9669_v40  ;;  %7280 = vmatpush1.bf16.msra.mxu1 %v9672_v41  ;;  %v9764_v40 = vld [vmem:[%s13682_s1 + $0x1248] ss:$16 sps:$4 sm:$0xff]   ;;  %v9769_v41 = vld [vmem:[%s13682_s1 + $0x1264] ss:$16 sps:$4 sm:$0xff]  }
 0x210   :  { %6625 = vmatprep.subr.bf16.mxu0 %v9677_v42  ;;  %7281 = vmatprep.subr.bf16.mxu1 %v9680_v43  ;;  %v9772_v42 = vld [vmem:[%s13682_s1 + $0x126c] ss:$16 sps:$4 sm:$0xff]   ;;  %v9767_v43 = vld [vmem:[%s13682_s1 + $0x1260] ss:$16 sps:$4 sm:$0xff]  }
 0x213   :  { %6626 = vmatpush1.bf16.msra.mxu0 %v9675_v44  ;;  %7282 = vmatpush1.bf16.msra.mxu1 %v9678_v45  ;;  %v9770_v44 = vld [vmem:[%s13682_s1 + $0x1268] ss:$16 sps:$4 sm:$0xff]   ;;  %v9775_v45 = vld [vmem:[%s13682_s1 + $0x1284] ss:$16 sps:$4 sm:$0xff]  }
 0x214   :  { %6627 = vmatprep.subr.bf16.mxu0 %v9683_v46  ;;  %7283 = vmatprep.subr.bf16.mxu1 %v9686_v47  ;;  %v9778_v46 = vld [vmem:[%s13682_s1 + $0x128c] ss:$16 sps:$4 sm:$0xff]   ;;  %v9773_v47 = vld [vmem:[%s13682_s1 + $0x1280] ss:$16 sps:$4 sm:$0xff]  }
 0x217   :  { %6628 = vmatpush1.bf16.msra.mxu0 %v9681_v48  ;;  %7284 = vmatpush1.bf16.msra.mxu1 %v9684_v49  ;;  %v9776_v48 = vld [vmem:[%s13682_s1 + $0x1288] ss:$16 sps:$4 sm:$0xff]   ;;  %v9781_v49 = vld [vmem:[%s13682_s1 + $0x12a4] ss:$16 sps:$4 sm:$0xff]  }
 0x218   :  { %6629 = vmatprep.subr.bf16.mxu0 %v9689_v50  ;;  %7285 = vmatprep.subr.bf16.mxu1 %v9692_v51  ;;  %v9784_v50 = vld [vmem:[%s13682_s1 + $0x12ac] ss:$16 sps:$4 sm:$0xff]   ;;  %v9779_v51 = vld [vmem:[%s13682_s1 + $0x12a0] ss:$16 sps:$4 sm:$0xff]  }
 0x21b   :  { %6630 = vmatpush1.bf16.msra.mxu0 %v9687_v52  ;;  %7286 = vmatpush1.bf16.msra.mxu1 %v9690_v53  ;;  %v9782_v52 = vld [vmem:[%s13682_s1 + $0x12a8] ss:$16 sps:$4 sm:$0xff]   ;;  %v9787_v53 = vld [vmem:[%s13682_s1 + $0x12c4] ss:$16 sps:$4 sm:$0xff]  }
 0x21c   :  { %6631 = vmatprep.subr.bf16.mxu0 %v9695_v54  ;;  %7287 = vmatprep.subr.bf16.mxu1 %v9698_v55  ;;  %v9790_v54 = vld [vmem:[%s13682_s1 + $0x12cc] ss:$16 sps:$4 sm:$0xff]   ;;  %v9785_v55 = vld [vmem:[%s13682_s1 + $0x12c0] ss:$16 sps:$4 sm:$0xff]  }
 0x21f   :  { %6632 = vmatpush1.bf16.msra.mxu0 %v9693_v56  ;;  %7288 = vmatpush1.bf16.msra.mxu1 %v9696_v57  ;;  %v9788_v56 = vld [vmem:[%s13682_s1 + $0x12c8] ss:$16 sps:$4 sm:$0xff]   ;;  %v9793_v57 = vld [vmem:[%s13682_s1 + $0x12e4] ss:$16 sps:$4 sm:$0xff]  }
 0x220   :  { %6633 = vmatprep.subr.bf16.mxu0 %v9701_v58  ;;  %7289 = vmatprep.subr.bf16.mxu1 %v9704_v59  ;;  %v9796_v58 = vld [vmem:[%s13682_s1 + $0x12ec] ss:$16 sps:$4 sm:$0xff]   ;;  %v9791_v59 = vld [vmem:[%s13682_s1 + $0x12e0] ss:$16 sps:$4 sm:$0xff]  }
 0x223   :  { %6634 = vmatpush1.bf16.msra.mxu0 %v9699_v60  ;;  %7290 = vmatpush1.bf16.msra.mxu1 %v9702_v61  ;;  %v9794_v60 = vld [vmem:[%s13682_s1 + $0x12e8] ss:$16 sps:$4 sm:$0xff]   ;;  %v9799_v61 = vld [vmem:[%s13682_s1 + $0x1304] ss:$16 sps:$4 sm:$0xff]  }
 0x224   :  { %6635 = vmatprep.subr.bf16.mxu0 %v9707_v62  ;;  %7291 = vmatprep.subr.bf16.mxu1 %v9710_v63  ;;  %v9802_v62 = vld [vmem:[%s13682_s1 + $0x130c] ss:$16 sps:$4 sm:$0xff]   ;;  %v9797_v63 = vld [vmem:[%s13682_s1 + $0x1300] ss:$16 sps:$4 sm:$0xff]  }
 0x227   :  { %6636 = vmatpush1.bf16.msra.mxu0 %v9705_v0  ;;  %7292 = vmatpush1.bf16.msra.mxu1 %v9708_v1  ;;  %v9800_v0 = vld [vmem:[%s13682_s1 + $0x1308] ss:$16 sps:$4 sm:$0xff]   ;;  %v9805_v1 = vld [vmem:[%s13682_s1 + $0x1324] ss:$16 sps:$4 sm:$0xff]  }
 0x228   :  { %6637 = vmatprep.subr.bf16.mxu0 %v9713_v2  ;;  %7293 = vmatprep.subr.bf16.mxu1 %v9716_v3  ;;  %v9808_v2 = vld [vmem:[%s13682_s1 + $0x132c] ss:$16 sps:$4 sm:$0xff]   ;;  %v9803_v3 = vld [vmem:[%s13682_s1 + $0x1320] ss:$16 sps:$4 sm:$0xff]  }
 0x22b   :  { %6638 = vmatpush1.bf16.msra.mxu0 %v9711_v4  ;;  %7294 = vmatpush1.bf16.msra.mxu1 %v9714_v5  ;;  %v9806_v4 = vld [vmem:[%s13682_s1 + $0x1328] ss:$16 sps:$4 sm:$0xff]   ;;  %v9811_v5 = vld [vmem:[%s13682_s1 + $0x1344] ss:$16 sps:$4 sm:$0xff]  }
 0x22c   :  { %6639 = vmatprep.subr.bf16.mxu0 %v9719_v6  ;;  %7295 = vmatprep.subr.bf16.mxu1 %v9722_v7  ;;  %v9814_v6 = vld [vmem:[%s13682_s1 + $0x134c] ss:$16 sps:$4 sm:$0xff]   ;;  %v9809_v7 = vld [vmem:[%s13682_s1 + $0x1340] ss:$16 sps:$4 sm:$0xff]  }
 0x22f   :  { %6640 = vmatpush1.bf16.msra.mxu0 %v9717_v8  ;;  %7296 = vmatpush1.bf16.msra.mxu1 %v9720_v9  ;;  %v9812_v8 = vld [vmem:[%s13682_s1 + $0x1348] ss:$16 sps:$4 sm:$0xff]   ;;  %v9817_v9 = vld [vmem:[%s13682_s1 + $0x1364] ss:$16 sps:$4 sm:$0xff]  }
 0x230   :  { %6641 = vmatprep.subr.bf16.mxu0 %v9725_v10  ;;  %7297 = vmatprep.subr.bf16.mxu1 %v9728_v12  ;;  %v9820_v10 = vld [vmem:[%s13682_s1 + $0x136c] ss:$16 sps:$4 sm:$0xff]   ;;  %v9815_v12 = vld [vmem:[%s13682_s1 + $0x1360] ss:$16 sps:$4 sm:$0xff]  }
 0x233   :  { %6642 = vmatpush1.bf16.msra.mxu0 %v9723_v13  ;;  %7298 = vmatpush1.bf16.msra.mxu1 %v9726_v15  ;;  %v9818_v13 = vld [vmem:[%s13682_s1 + $0x1368] ss:$16 sps:$4 sm:$0xff]   ;;  %v9823_v15 = vld [vmem:[%s13682_s1 + $0x1384] ss:$16 sps:$4 sm:$0xff]  }
 0x234   :  { %6643 = vmatprep.subr.bf16.mxu0 %v9731_v11  ;;  %7299 = vmatprep.subr.bf16.mxu1 %v9734_v17  ;;  %v9826_v11 = vld [vmem:[%s13682_s1 + $0x138c] ss:$16 sps:$4 sm:$0xff]   ;;  %v9821_v17 = vld [vmem:[%s13682_s1 + $0x1380] ss:$16 sps:$4 sm:$0xff]  }
 0x237   :  { %6644 = vmatpush1.bf16.msra.mxu0 %v9729_v14  ;;  %7300 = vmatpush1.bf16.msra.mxu1 %v9732_v19  ;;  %v9824_v14 = vld [vmem:[%s13682_s1 + $0x1388] ss:$16 sps:$4 sm:$0xff]   ;;  %v9829_v19 = vld [vmem:[%s13682_s1 + $0x13a4] ss:$16 sps:$4 sm:$0xff]  }
 0x238   :  { %6645 = vmatprep.subr.bf16.mxu0 %v9737_v20  ;;  %7301 = vmatprep.subr.bf16.mxu1 %v9740_v16  ;;  %v9832_v20 = vld [vmem:[%s13682_s1 + $0x13ac] ss:$16 sps:$4 sm:$0xff]   ;;  %v9827_v16 = vld [vmem:[%s13682_s1 + $0x13a0] ss:$16 sps:$4 sm:$0xff]  }
 0x23b   :  { %6646 = vmatpush1.bf16.msra.mxu0 %v9735_v22  ;;  %7302 = vmatpush1.bf16.msra.mxu1 %v9738_v23  ;;  %v9830_v22 = vld [vmem:[%s13682_s1 + $0x13a8] ss:$16 sps:$4 sm:$0xff]   ;;  %v9835_v23 = vld [vmem:[%s13682_s1 + $0x13c4] ss:$16 sps:$4 sm:$0xff]  }
 0x23c   :  { %6647 = vmatprep.subr.bf16.mxu0 %v9743_v18  ;;  %7303 = vmatprep.subr.bf16.mxu1 %v9746_v25  ;;  %v9838_v18 = vld [vmem:[%s13682_s1 + $0x13cc] ss:$16 sps:$4 sm:$0xff]   ;;  %v9833_v25 = vld [vmem:[%s13682_s1 + $0x13c0] ss:$16 sps:$4 sm:$0xff]  }
 0x23f   :  { %6648 = vmatpush1.bf16.msra.mxu0 %v9741_v26  ;;  %7304 = vmatpush1.bf16.msra.mxu1 %v9744_v21  ;;  %v9836_v26 = vld [vmem:[%s13682_s1 + $0x13c8] ss:$16 sps:$4 sm:$0xff]   ;;  %v9841_v21 = vld [vmem:[%s13682_s1 + $0x13e4] ss:$16 sps:$4 sm:$0xff]  }
 0x240   :  { %6658 = vmatprep.subr.bf16.mxu0 %v9751_v28  ;;  %7314 = vmatprep.subr.bf16.mxu1 %v9754_v29  ;;  %v9844_v28 = vld [vmem:[%s13682_s1 + $0x13ec] ss:$16 sps:$4 sm:$0xff]   ;;  %v9839_v29 = vld [vmem:[%s13682_s1 + $0x13e0] ss:$16 sps:$4 sm:$0xff]  }
 0x242   :  { %6650 = vmatmul.mubr.bf16.vlgmr.msra.gmra.mrb[0].mxu0 %v7703_v24  ;;  %7306 = vmatmul.mubr.bf16.vlgmr.msra.gmra.mrb[0].mxu1 %v7703_v24  ;;  %v9842_v24 = vld [vmem:[%s13682_s1 + $0x13e8] ss:$16 sps:$4 sm:$0xff]  }
 0x243   :  { %6659 = vmatpush1.bf16.msra.mxu0 %v9749_v31  ;;  %7315 = vmatpush1.bf16.msra.mxu1 %v9752_v32  ;;  %v9849_v31 = vld [vmem:[%s13682_s1 + $0x1404] ss:$16 sps:$4 sm:$0xff]   ;;  %v9852_v32 = vld [vmem:[%s13682_s1 + $0x140c] ss:$16 sps:$4 sm:$0xff]  }
 0x244   :  { %6660 = vmatprep.subr.bf16.mxu0 %v9757_v33  ;;  %7316 = vmatprep.subr.bf16.mxu1 %v9760_v27  ;;  %v7705_v33 = vcombine.low %v12270_v30, %v12270_v30  ;;  %v12473_v27 = vld [vmem:[%s13683_s0 + $0x50] sm:$0xff] }
 0x245   :  { %6690 = vmatprep.mubr.bf16.mxu0 %v7706_v34  ;;  %7346 = vmatprep.mubr.bf16.mxu1 %v7706_v34  ;;  %v9847_v34 = vld [vmem:[%s13682_s1 + $0x1400] ss:$16 sps:$4 sm:$0xff]   ;;  %v9855_v30 = vld [vmem:[%s13682_s1 + $0x1424] ss:$16 sps:$4 sm:$0xff]  }
 0x247   :  { %6661 = vmatpush1.bf16.msra.mxu0 %v9755_v35  ;;  %7317 = vmatpush1.bf16.msra.mxu1 %v9758_v36  ;;  %v9850_v35 = vld [vmem:[%s13682_s1 + $0x1408] ss:$16 sps:$4 sm:$0xff]   ;;  %v9858_v36 = vld [vmem:[%s13682_s1 + $0x142c] ss:$16 sps:$4 sm:$0xff]  }
 0x248   :  { %6662 = vmatprep.subr.bf16.mxu0 %v9763_v37  ;;  %7318 = vmatprep.subr.bf16.mxu1 %v9766_v38  ;;  %v7708_v37 = vcombine.high %v12473_v27, %v12473_v27  ;;  %v9853_v38 = vld [vmem:[%s13682_s1 + $0x1420] ss:$16 sps:$4 sm:$0xff]  }
 0x24b   :  { %6663 = vmatpush1.bf16.msra.mxu0 %v9761_v39  ;;  %7319 = vmatpush1.bf16.msra.mxu1 %v9764_v40  ;;  %v9856_v39 = vld [vmem:[%s13682_s1 + $0x1428] ss:$16 sps:$4 sm:$0xff]   ;;  %v9861_v40 = vld [vmem:[%s13682_s1 + $0x1444] ss:$16 sps:$4 sm:$0xff]  }
 0x24c   :  { %6664 = vmatprep.subr.bf16.mxu0 %v9769_v41  ;;  %7320 = vmatprep.subr.bf16.mxu1 %v9772_v42  ;;  %v9864_v41 = vld [vmem:[%s13682_s1 + $0x144c] ss:$16 sps:$4 sm:$0xff]   ;;  %v9859_v42 = vld [vmem:[%s13682_s1 + $0x1440] ss:$16 sps:$4 sm:$0xff]  }
 0x24f   :  { %6665 = vmatpush1.bf16.msra.mxu0 %v9767_v43  ;;  %7321 = vmatpush1.bf16.msra.mxu1 %v9770_v44  ;;  %v9862_v43 = vld [vmem:[%s13682_s1 + $0x1448] ss:$16 sps:$4 sm:$0xff]   ;;  %v9867_v44 = vld [vmem:[%s13682_s1 + $0x1464] ss:$16 sps:$4 sm:$0xff]  }
 0x250   :  { %6666 = vmatprep.subr.bf16.mxu0 %v9775_v45  ;;  %7322 = vmatprep.subr.bf16.mxu1 %v9778_v46  ;;  %v9870_v45 = vld [vmem:[%s13682_s1 + $0x146c] ss:$16 sps:$4 sm:$0xff]   ;;  %v9865_v46 = vld [vmem:[%s13682_s1 + $0x1460] ss:$16 sps:$4 sm:$0xff]  }
 0x253   :  { %6667 = vmatpush1.bf16.msra.mxu0 %v9773_v47  ;;  %7323 = vmatpush1.bf16.msra.mxu1 %v9776_v48  ;;  %v9868_v47 = vld [vmem:[%s13682_s1 + $0x1468] ss:$16 sps:$4 sm:$0xff]   ;;  %v9873_v48 = vld [vmem:[%s13682_s1 + $0x1484] ss:$16 sps:$4 sm:$0xff]  }
 0x254   :  { %6668 = vmatprep.subr.bf16.mxu0 %v9781_v49  ;;  %7324 = vmatprep.subr.bf16.mxu1 %v9784_v50  ;;  %v9876_v49 = vld [vmem:[%s13682_s1 + $0x148c] ss:$16 sps:$4 sm:$0xff]   ;;  %v9871_v50 = vld [vmem:[%s13682_s1 + $0x1480] ss:$16 sps:$4 sm:$0xff]  }
 0x257   :  { %6669 = vmatpush1.bf16.msra.mxu0 %v9779_v51  ;;  %7325 = vmatpush1.bf16.msra.mxu1 %v9782_v52  ;;  %v9874_v51 = vld [vmem:[%s13682_s1 + $0x1488] ss:$16 sps:$4 sm:$0xff]   ;;  %v9879_v52 = vld [vmem:[%s13682_s1 + $0x14a4] ss:$16 sps:$4 sm:$0xff]  }
 0x258   :  { %6670 = vmatprep.subr.bf16.mxu0 %v9787_v53  ;;  %7326 = vmatprep.subr.bf16.mxu1 %v9790_v54  ;;  %v9882_v53 = vld [vmem:[%s13682_s1 + $0x14ac] ss:$16 sps:$4 sm:$0xff]   ;;  %v9877_v54 = vld [vmem:[%s13682_s1 + $0x14a0] ss:$16 sps:$4 sm:$0xff]  }
 0x25b   :  { %6671 = vmatpush1.bf16.msra.mxu0 %v9785_v55  ;;  %7327 = vmatpush1.bf16.msra.mxu1 %v9788_v56  ;;  %v9880_v55 = vld [vmem:[%s13682_s1 + $0x14a8] ss:$16 sps:$4 sm:$0xff]   ;;  %v9885_v56 = vld [vmem:[%s13682_s1 + $0x14c4] ss:$16 sps:$4 sm:$0xff]  }
 0x25c   :  { %6672 = vmatprep.subr.bf16.mxu0 %v9793_v57  ;;  %7328 = vmatprep.subr.bf16.mxu1 %v9796_v58  ;;  %v9888_v57 = vld [vmem:[%s13682_s1 + $0x14cc] ss:$16 sps:$4 sm:$0xff]   ;;  %v9883_v58 = vld [vmem:[%s13682_s1 + $0x14c0] ss:$16 sps:$4 sm:$0xff]  }
 0x25f   :  { %6673 = vmatpush1.bf16.msra.mxu0 %v9791_v59  ;;  %7329 = vmatpush1.bf16.msra.mxu1 %v9794_v60  ;;  %v9886_v59 = vld [vmem:[%s13682_s1 + $0x14c8] ss:$16 sps:$4 sm:$0xff]   ;;  %v9891_v60 = vld [vmem:[%s13682_s1 + $0x14e4] ss:$16 sps:$4 sm:$0xff]  }
 0x260   :  { %6674 = vmatprep.subr.bf16.mxu0 %v9799_v61  ;;  %7330 = vmatprep.subr.bf16.mxu1 %v9802_v62  ;;  %v9894_v61 = vld [vmem:[%s13682_s1 + $0x14ec] ss:$16 sps:$4 sm:$0xff]   ;;  %v9889_v62 = vld [vmem:[%s13682_s1 + $0x14e0] ss:$16 sps:$4 sm:$0xff]  }
 0x263   :  { %6675 = vmatpush1.bf16.msra.mxu0 %v9797_v63  ;;  %7331 = vmatpush1.bf16.msra.mxu1 %v9800_v0  ;;  %v9892_v63 = vld [vmem:[%s13682_s1 + $0x14e8] ss:$16 sps:$4 sm:$0xff]   ;;  %v9897_v0 = vld [vmem:[%s13682_s1 + $0x1504] ss:$16 sps:$4 sm:$0xff]  }
 0x264   :  { %6676 = vmatprep.subr.bf16.mxu0 %v9805_v1  ;;  %7332 = vmatprep.subr.bf16.mxu1 %v9808_v2  ;;  %v9900_v1 = vld [vmem:[%s13682_s1 + $0x150c] ss:$16 sps:$4 sm:$0xff]   ;;  %v9895_v2 = vld [vmem:[%s13682_s1 + $0x1500] ss:$16 sps:$4 sm:$0xff]  }
 0x267   :  { %6677 = vmatpush1.bf16.msra.mxu0 %v9803_v3  ;;  %7333 = vmatpush1.bf16.msra.mxu1 %v9806_v4  ;;  %v9898_v3 = vld [vmem:[%s13682_s1 + $0x1508] ss:$16 sps:$4 sm:$0xff]   ;;  %v9903_v4 = vld [vmem:[%s13682_s1 + $0x1524] ss:$16 sps:$4 sm:$0xff]  }
 0x268   :  { %6678 = vmatprep.subr.bf16.mxu0 %v9811_v5  ;;  %7334 = vmatprep.subr.bf16.mxu1 %v9814_v6  ;;  %v9906_v5 = vld [vmem:[%s13682_s1 + $0x152c] ss:$16 sps:$4 sm:$0xff]   ;;  %v9901_v6 = vld [vmem:[%s13682_s1 + $0x1520] ss:$16 sps:$4 sm:$0xff]  }
 0x26b   :  { %6679 = vmatpush1.bf16.msra.mxu0 %v9809_v7  ;;  %7335 = vmatpush1.bf16.msra.mxu1 %v9812_v8  ;;  %v9904_v7 = vld [vmem:[%s13682_s1 + $0x1528] ss:$16 sps:$4 sm:$0xff]   ;;  %v9909_v8 = vld [vmem:[%s13682_s1 + $0x1544] ss:$16 sps:$4 sm:$0xff]  }
 0x26c   :  { %6680 = vmatprep.subr.bf16.mxu0 %v9817_v9  ;;  %7336 = vmatprep.subr.bf16.mxu1 %v9820_v10  ;;  %v9912_v9 = vld [vmem:[%s13682_s1 + $0x154c] ss:$16 sps:$4 sm:$0xff]   ;;  %v9907_v10 = vld [vmem:[%s13682_s1 + $0x1540] ss:$16 sps:$4 sm:$0xff]  }
 0x26f   :  { %6681 = vmatpush1.bf16.msra.mxu0 %v9815_v12  ;;  %7337 = vmatpush1.bf16.msra.mxu1 %v9818_v13  ;;  %v9910_v12 = vld [vmem:[%s13682_s1 + $0x1548] ss:$16 sps:$4 sm:$0xff]   ;;  %v9915_v13 = vld [vmem:[%s13682_s1 + $0x1564] ss:$16 sps:$4 sm:$0xff]  }
 0x270   :  { %6682 = vmatprep.subr.bf16.mxu0 %v9823_v15  ;;  %7338 = vmatprep.subr.bf16.mxu1 %v9826_v11  ;;  %v9918_v15 = vld [vmem:[%s13682_s1 + $0x156c] ss:$16 sps:$4 sm:$0xff]   ;;  %v9913_v11 = vld [vmem:[%s13682_s1 + $0x1560] ss:$16 sps:$4 sm:$0xff]  }
 0x273   :  { %6683 = vmatpush1.bf16.msra.mxu0 %v9821_v17  ;;  %7339 = vmatpush1.bf16.msra.mxu1 %v9824_v14  ;;  %v9916_v17 = vld [vmem:[%s13682_s1 + $0x1568] ss:$16 sps:$4 sm:$0xff]   ;;  %v9921_v14 = vld [vmem:[%s13682_s1 + $0x1584] ss:$16 sps:$4 sm:$0xff]  }
 0x274   :  { %6684 = vmatprep.subr.bf16.mxu0 %v9829_v19  ;;  %7340 = vmatprep.subr.bf16.mxu1 %v9832_v20  ;;  %v9924_v19 = vld [vmem:[%s13682_s1 + $0x158c] ss:$16 sps:$4 sm:$0xff]   ;;  %v9919_v20 = vld [vmem:[%s13682_s1 + $0x1580] ss:$16 sps:$4 sm:$0xff]  }
 0x277   :  { %6685 = vmatpush1.bf16.msra.mxu0 %v9827_v16  ;;  %7341 = vmatpush1.bf16.msra.mxu1 %v9830_v22  ;;  %v9922_v16 = vld [vmem:[%s13682_s1 + $0x1588] ss:$16 sps:$4 sm:$0xff]   ;;  %v9927_v22 = vld [vmem:[%s13682_s1 + $0x15a4] ss:$16 sps:$4 sm:$0xff]  }
 0x278   :  { %6686 = vmatprep.subr.bf16.mxu0 %v9835_v23  ;;  %7342 = vmatprep.subr.bf16.mxu1 %v9838_v18  ;;  %v9930_v23 = vld [vmem:[%s13682_s1 + $0x15ac] ss:$16 sps:$4 sm:$0xff]   ;;  %v9925_v18 = vld [vmem:[%s13682_s1 + $0x15a0] ss:$16 sps:$4 sm:$0xff]  }
 0x27b   :  { %6687 = vmatpush1.bf16.msra.mxu0 %v9833_v25  ;;  %7343 = vmatpush1.bf16.msra.mxu1 %v9836_v26  ;;  %v9928_v25 = vld [vmem:[%s13682_s1 + $0x15a8] ss:$16 sps:$4 sm:$0xff]   ;;  %v9933_v26 = vld [vmem:[%s13682_s1 + $0x15c4] ss:$16 sps:$4 sm:$0xff]  }
 0x27c   :  { %6688 = vmatprep.subr.bf16.mxu0 %v9841_v21  ;;  %7344 = vmatprep.subr.bf16.mxu1 %v9844_v28  ;;  %v9936_v21 = vld [vmem:[%s13682_s1 + $0x15cc] ss:$16 sps:$4 sm:$0xff]   ;;  %v9931_v28 = vld [vmem:[%s13682_s1 + $0x15c0] ss:$16 sps:$4 sm:$0xff]  }
 0x27f   :  { %6689 = vmatpush1.bf16.msra.mxu0 %v9839_v29  ;;  %7345 = vmatpush1.bf16.msra.mxu1 %v9842_v24  ;;  %v9934_v29 = vld [vmem:[%s13682_s1 + $0x15c8] ss:$16 sps:$4 sm:$0xff]   ;;  %v9939_v24 = vld [vmem:[%s13682_s1 + $0x15e4] ss:$16 sps:$4 sm:$0xff]  }
 0x280   :  { %6699 = vmatprep.subr.bf16.mxu0 %v9849_v31  ;;  %7355 = vmatprep.subr.bf16.mxu1 %v9852_v32  ;;  %v9942_v31 = vld [vmem:[%s13682_s1 + $0x15ec] ss:$16 sps:$4 sm:$0xff]   ;;  %v9937_v32 = vld [vmem:[%s13682_s1 + $0x15e0] ss:$16 sps:$4 sm:$0xff]  }
 0x282   :  { %6691 = vmatmul.mubr.bf16.vlgmr.msra.gmra.mrb[0].mxu0 %v7705_v33  ;;  %7347 = vmatmul.mubr.bf16.vlgmr.msra.gmra.mrb[0].mxu1 %v7705_v33  ;;  %v9940_v33 = vld [vmem:[%s13682_s1 + $0x15e8] ss:$16 sps:$4 sm:$0xff]  }
 0x283   :  { %6700 = vmatpush1.bf16.msra.mxu0 %v9847_v34  ;;  %7356 = vmatpush1.bf16.msra.mxu1 %v9850_v35  ;;  %v9947_v34 = vld [vmem:[%s13682_s1 + $0x1604] ss:$16 sps:$4 sm:$0xff]   ;;  %v9950_v35 = vld [vmem:[%s13682_s1 + $0x160c] ss:$16 sps:$4 sm:$0xff]  }
 0x284   :  { %6701 = vmatprep.subr.bf16.mxu0 %v9855_v30  ;;  %7357 = vmatprep.subr.bf16.mxu1 %v9858_v36  ;;  %v7707_v30 = vcombine.low %v12473_v27, %v12473_v27  ;;  %v12674_v36 = vld [vmem:[%s13683_s0 + $0x58] sm:$0xff]  ;;  %v9953_v27 = vld [vmem:[%s13682_s1 + $0x1624] ss:$16 sps:$4 sm:$0xff]  }
 0x285   :  { %6731 = vmatprep.mubr.bf16.mxu0 %v7708_v37  ;;  %7387 = vmatprep.mubr.bf16.mxu1 %v7708_v37  ;;  %v9945_v37 = vld [vmem:[%s13682_s1 + $0x1600] ss:$16 sps:$4 sm:$0xff]  }
 0x287   :  { %6702 = vmatpush1.bf16.msra.mxu0 %v9853_v38  ;;  %7358 = vmatpush1.bf16.msra.mxu1 %v9856_v39  ;;  %v9948_v38 = vld [vmem:[%s13682_s1 + $0x1608] ss:$16 sps:$4 sm:$0xff]   ;;  %v9956_v39 = vld [vmem:[%s13682_s1 + $0x162c] ss:$16 sps:$4 sm:$0xff]  }
 0x288   :  { %6703 = vmatprep.subr.bf16.mxu0 %v9861_v40  ;;  %7359 = vmatprep.subr.bf16.mxu1 %v9864_v41  ;;  %v7710_v40 = vcombine.high %v12674_v36, %v12674_v36  ;;  %v9951_v41 = vld [vmem:[%s13682_s1 + $0x1620] ss:$16 sps:$4 sm:$0xff]  }
 0x28b   :  { %6704 = vmatpush1.bf16.msra.mxu0 %v9859_v42  ;;  %7360 = vmatpush1.bf16.msra.mxu1 %v9862_v43  ;;  %v9954_v42 = vld [vmem:[%s13682_s1 + $0x1628] ss:$16 sps:$4 sm:$0xff]   ;;  %v9959_v43 = vld [vmem:[%s13682_s1 + $0x1644] ss:$16 sps:$4 sm:$0xff]  }
 0x28c   :  { %6705 = vmatprep.subr.bf16.mxu0 %v9867_v44  ;;  %7361 = vmatprep.subr.bf16.mxu1 %v9870_v45  ;;  %v9962_v44 = vld [vmem:[%s13682_s1 + $0x164c] ss:$16 sps:$4 sm:$0xff]   ;;  %v9957_v45 = vld [vmem:[%s13682_s1 + $0x1640] ss:$16 sps:$4 sm:$0xff]  }
 0x28f   :  { %6706 = vmatpush1.bf16.msra.mxu0 %v9865_v46  ;;  %7362 = vmatpush1.bf16.msra.mxu1 %v9868_v47  ;;  %v9960_v46 = vld [vmem:[%s13682_s1 + $0x1648] ss:$16 sps:$4 sm:$0xff]   ;;  %v9965_v47 = vld [vmem:[%s13682_s1 + $0x1664] ss:$16 sps:$4 sm:$0xff]  }
 0x290   :  { %6707 = vmatprep.subr.bf16.mxu0 %v9873_v48  ;;  %7363 = vmatprep.subr.bf16.mxu1 %v9876_v49  ;;  %v9968_v48 = vld [vmem:[%s13682_s1 + $0x166c] ss:$16 sps:$4 sm:$0xff]   ;;  %v9963_v49 = vld [vmem:[%s13682_s1 + $0x1660] ss:$16 sps:$4 sm:$0xff]  }
 0x293   :  { %6708 = vmatpush1.bf16.msra.mxu0 %v9871_v50  ;;  %7364 = vmatpush1.bf16.msra.mxu1 %v9874_v51  ;;  %v9966_v50 = vld [vmem:[%s13682_s1 + $0x1668] ss:$16 sps:$4 sm:$0xff]   ;;  %v9971_v51 = vld [vmem:[%s13682_s1 + $0x1684] ss:$16 sps:$4 sm:$0xff]  }
 0x294   :  { %6709 = vmatprep.subr.bf16.mxu0 %v9879_v52  ;;  %7365 = vmatprep.subr.bf16.mxu1 %v9882_v53  ;;  %v9974_v52 = vld [vmem:[%s13682_s1 + $0x168c] ss:$16 sps:$4 sm:$0xff]   ;;  %v9969_v53 = vld [vmem:[%s13682_s1 + $0x1680] ss:$16 sps:$4 sm:$0xff]  }
 0x297   :  { %6710 = vmatpush1.bf16.msra.mxu0 %v9877_v54  ;;  %7366 = vmatpush1.bf16.msra.mxu1 %v9880_v55  ;;  %v9972_v54 = vld [vmem:[%s13682_s1 + $0x1688] ss:$16 sps:$4 sm:$0xff]   ;;  %v9977_v55 = vld [vmem:[%s13682_s1 + $0x16a4] ss:$16 sps:$4 sm:$0xff]  }
 0x298   :  { %6711 = vmatprep.subr.bf16.mxu0 %v9885_v56  ;;  %7367 = vmatprep.subr.bf16.mxu1 %v9888_v57  ;;  %v9980_v56 = vld [vmem:[%s13682_s1 + $0x16ac] ss:$16 sps:$4 sm:$0xff]   ;;  %v9975_v57 = vld [vmem:[%s13682_s1 + $0x16a0] ss:$16 sps:$4 sm:$0xff]  }
 0x29b   :  { %6712 = vmatpush1.bf16.msra.mxu0 %v9883_v58  ;;  %7368 = vmatpush1.bf16.msra.mxu1 %v9886_v59  ;;  %v9978_v58 = vld [vmem:[%s13682_s1 + $0x16a8] ss:$16 sps:$4 sm:$0xff]   ;;  %v9983_v59 = vld [vmem:[%s13682_s1 + $0x16c4] ss:$16 sps:$4 sm:$0xff]  }
 0x29c   :  { %6713 = vmatprep.subr.bf16.mxu0 %v9891_v60  ;;  %7369 = vmatprep.subr.bf16.mxu1 %v9894_v61  ;;  %v9986_v60 = vld [vmem:[%s13682_s1 + $0x16cc] ss:$16 sps:$4 sm:$0xff]   ;;  %v9981_v61 = vld [vmem:[%s13682_s1 + $0x16c0] ss:$16 sps:$4 sm:$0xff]  }
 0x29f   :  { %6714 = vmatpush1.bf16.msra.mxu0 %v9889_v62  ;;  %7370 = vmatpush1.bf16.msra.mxu1 %v9892_v63  ;;  %v9984_v62 = vld [vmem:[%s13682_s1 + $0x16c8] ss:$16 sps:$4 sm:$0xff]   ;;  %v9989_v63 = vld [vmem:[%s13682_s1 + $0x16e4] ss:$16 sps:$4 sm:$0xff]  }
 0x2a0   :  { %6715 = vmatprep.subr.bf16.mxu0 %v9897_v0  ;;  %7371 = vmatprep.subr.bf16.mxu1 %v9900_v1  ;;  %v9992_v0 = vld [vmem:[%s13682_s1 + $0x16ec] ss:$16 sps:$4 sm:$0xff]   ;;  %v9987_v1 = vld [vmem:[%s13682_s1 + $0x16e0] ss:$16 sps:$4 sm:$0xff]  }
 0x2a3   :  { %6716 = vmatpush1.bf16.msra.mxu0 %v9895_v2  ;;  %7372 = vmatpush1.bf16.msra.mxu1 %v9898_v3  ;;  %v9990_v2 = vld [vmem:[%s13682_s1 + $0x16e8] ss:$16 sps:$4 sm:$0xff]   ;;  %v9995_v3 = vld [vmem:[%s13682_s1 + $0x1704] ss:$16 sps:$4 sm:$0xff]  }
 0x2a4   :  { %6717 = vmatprep.subr.bf16.mxu0 %v9903_v4  ;;  %7373 = vmatprep.subr.bf16.mxu1 %v9906_v5  ;;  %v9998_v4 = vld [vmem:[%s13682_s1 + $0x170c] ss:$16 sps:$4 sm:$0xff]   ;;  %v9993_v5 = vld [vmem:[%s13682_s1 + $0x1700] ss:$16 sps:$4 sm:$0xff]  }
 0x2a7   :  { %6718 = vmatpush1.bf16.msra.mxu0 %v9901_v6  ;;  %7374 = vmatpush1.bf16.msra.mxu1 %v9904_v7  ;;  %v9996_v6 = vld [vmem:[%s13682_s1 + $0x1708] ss:$16 sps:$4 sm:$0xff]   ;;  %v10001_v7 = vld [vmem:[%s13682_s1 + $0x1724] ss:$16 sps:$4 sm:$0xff]  }
 0x2a8   :  { %6719 = vmatprep.subr.bf16.mxu0 %v9909_v8  ;;  %7375 = vmatprep.subr.bf16.mxu1 %v9912_v9  ;;  %v10004_v8 = vld [vmem:[%s13682_s1 + $0x172c] ss:$16 sps:$4 sm:$0xff]   ;;  %v9999_v9 = vld [vmem:[%s13682_s1 + $0x1720] ss:$16 sps:$4 sm:$0xff]  }
 0x2ab   :  { %6720 = vmatpush1.bf16.msra.mxu0 %v9907_v10  ;;  %7376 = vmatpush1.bf16.msra.mxu1 %v9910_v12  ;;  %v10002_v10 = vld [vmem:[%s13682_s1 + $0x1728] ss:$16 sps:$4 sm:$0xff]   ;;  %v10007_v12 = vld [vmem:[%s13682_s1 + $0x1744] ss:$16 sps:$4 sm:$0xff]  }
 0x2ac   :  { %6721 = vmatprep.subr.bf16.mxu0 %v9915_v13  ;;  %7377 = vmatprep.subr.bf16.mxu1 %v9918_v15  ;;  %v10010_v13 = vld [vmem:[%s13682_s1 + $0x174c] ss:$16 sps:$4 sm:$0xff]   ;;  %v10005_v15 = vld [vmem:[%s13682_s1 + $0x1740] ss:$16 sps:$4 sm:$0xff]  }
 0x2af   :  { %6722 = vmatpush1.bf16.msra.mxu0 %v9913_v11  ;;  %7378 = vmatpush1.bf16.msra.mxu1 %v9916_v17  ;;  %v10008_v11 = vld [vmem:[%s13682_s1 + $0x1748] ss:$16 sps:$4 sm:$0xff]   ;;  %v10013_v17 = vld [vmem:[%s13682_s1 + $0x1764] ss:$16 sps:$4 sm:$0xff]  }
 0x2b0   :  { %6723 = vmatprep.subr.bf16.mxu0 %v9921_v14  ;;  %7379 = vmatprep.subr.bf16.mxu1 %v9924_v19  ;;  %v10016_v14 = vld [vmem:[%s13682_s1 + $0x176c] ss:$16 sps:$4 sm:$0xff]   ;;  %v10011_v19 = vld [vmem:[%s13682_s1 + $0x1760] ss:$16 sps:$4 sm:$0xff]  }
 0x2b3   :  { %6724 = vmatpush1.bf16.msra.mxu0 %v9919_v20  ;;  %7380 = vmatpush1.bf16.msra.mxu1 %v9922_v16  ;;  %v10014_v20 = vld [vmem:[%s13682_s1 + $0x1768] ss:$16 sps:$4 sm:$0xff]   ;;  %v10019_v16 = vld [vmem:[%s13682_s1 + $0x1784] ss:$16 sps:$4 sm:$0xff]  }
 0x2b4   :  { %6725 = vmatprep.subr.bf16.mxu0 %v9927_v22  ;;  %7381 = vmatprep.subr.bf16.mxu1 %v9930_v23  ;;  %v10022_v22 = vld [vmem:[%s13682_s1 + $0x178c] ss:$16 sps:$4 sm:$0xff]   ;;  %v10017_v23 = vld [vmem:[%s13682_s1 + $0x1780] ss:$16 sps:$4 sm:$0xff]  }
 0x2b7   :  { %6726 = vmatpush1.bf16.msra.mxu0 %v9925_v18  ;;  %7382 = vmatpush1.bf16.msra.mxu1 %v9928_v25  ;;  %v10020_v18 = vld [vmem:[%s13682_s1 + $0x1788] ss:$16 sps:$4 sm:$0xff]   ;;  %v10025_v25 = vld [vmem:[%s13682_s1 + $0x17a4] ss:$16 sps:$4 sm:$0xff]  }
 0x2b8   :  { %6727 = vmatprep.subr.bf16.mxu0 %v9933_v26  ;;  %7383 = vmatprep.subr.bf16.mxu1 %v9936_v21  ;;  %v10028_v26 = vld [vmem:[%s13682_s1 + $0x17ac] ss:$16 sps:$4 sm:$0xff]   ;;  %v10023_v21 = vld [vmem:[%s13682_s1 + $0x17a0] ss:$16 sps:$4 sm:$0xff]  }
 0x2bb   :  { %6728 = vmatpush1.bf16.msra.mxu0 %v9931_v28  ;;  %7384 = vmatpush1.bf16.msra.mxu1 %v9934_v29  ;;  %v10026_v28 = vld [vmem:[%s13682_s1 + $0x17a8] ss:$16 sps:$4 sm:$0xff]   ;;  %v10031_v29 = vld [vmem:[%s13682_s1 + $0x17c4] ss:$16 sps:$4 sm:$0xff]  }
 0x2bc   :  { %6729 = vmatprep.subr.bf16.mxu0 %v9939_v24  ;;  %7385 = vmatprep.subr.bf16.mxu1 %v9942_v31  ;;  %v10034_v24 = vld [vmem:[%s13682_s1 + $0x17cc] ss:$16 sps:$4 sm:$0xff]   ;;  %v10029_v31 = vld [vmem:[%s13682_s1 + $0x17c0] ss:$16 sps:$4 sm:$0xff]  }
 0x2bf   :  { %6730 = vmatpush1.bf16.msra.mxu0 %v9937_v32  ;;  %7386 = vmatpush1.bf16.msra.mxu1 %v9940_v33  ;;  %v10032_v32 = vld [vmem:[%s13682_s1 + $0x17c8] ss:$16 sps:$4 sm:$0xff]   ;;  %v10037_v33 = vld [vmem:[%s13682_s1 + $0x17e4] ss:$16 sps:$4 sm:$0xff]  }
 0x2c0   :  { %6740 = vmatprep.subr.bf16.mxu0 %v9947_v34  ;;  %7396 = vmatprep.subr.bf16.mxu1 %v9950_v35  ;;  %v10040_v34 = vld [vmem:[%s13682_s1 + $0x17ec] ss:$16 sps:$4 sm:$0xff]   ;;  %v10035_v35 = vld [vmem:[%s13682_s1 + $0x17e0] ss:$16 sps:$4 sm:$0xff]  }
 0x2c2   :  { %6732 = vmatmul.mubr.bf16.vlgmr.msra.gmra.mrb[0].mxu0 %v7707_v30  ;;  %7388 = vmatmul.mubr.bf16.vlgmr.msra.gmra.mrb[0].mxu1 %v7707_v30  ;;  %v10038_v30 = vld [vmem:[%s13682_s1 + $0x17e8] ss:$16 sps:$4 sm:$0xff]  }
 0x2c3   :  { %6741 = vmatpush1.bf16.msra.mxu0 %v9945_v37  ;;  %7397 = vmatpush1.bf16.msra.mxu1 %v9948_v38  ;;  %v10045_v37 = vld [vmem:[%s13682_s1 + $0x1804] ss:$16 sps:$4 sm:$0xff]   ;;  %v10048_v38 = vld [vmem:[%s13682_s1 + $0x180c] ss:$16 sps:$4 sm:$0xff]  }
 0x2c4   :  { %6742 = vmatprep.subr.bf16.mxu0 %v9953_v27  ;;  %7398 = vmatprep.subr.bf16.mxu1 %v9956_v39  ;;  %v7709_v27 = vcombine.low %v12674_v36, %v12674_v36  ;;  %v12875_v39 = vld [vmem:[%s13683_s0 + $0x60] sm:$0xff] }
 0x2c5   :  { %6772 = vmatprep.mubr.bf16.mxu0 %v7710_v40  ;;  %7428 = vmatprep.mubr.bf16.mxu1 %v7710_v40  ;;  %v10043_v40 = vld [vmem:[%s13682_s1 + $0x1800] ss:$16 sps:$4 sm:$0xff]   ;;  %v10051_v36 = vld [vmem:[%s13682_s1 + $0x1824] ss:$16 sps:$4 sm:$0xff]  }
 0x2c7   :  { %6743 = vmatpush1.bf16.msra.mxu0 %v9951_v41  ;;  %7399 = vmatpush1.bf16.msra.mxu1 %v9954_v42  ;;  %v10046_v41 = vld [vmem:[%s13682_s1 + $0x1808] ss:$16 sps:$4 sm:$0xff]   ;;  %v10054_v42 = vld [vmem:[%s13682_s1 + $0x182c] ss:$16 sps:$4 sm:$0xff]  }
 0x2c8   :  { %6744 = vmatprep.subr.bf16.mxu0 %v9959_v43  ;;  %7400 = vmatprep.subr.bf16.mxu1 %v9962_v44  ;;  %v7712_v43 = vcombine.high %v12875_v39, %v12875_v39  ;;  %v10049_v44 = vld [vmem:[%s13682_s1 + $0x1820] ss:$16 sps:$4 sm:$0xff]  }
 0x2cb   :  { %6745 = vmatpush1.bf16.msra.mxu0 %v9957_v45  ;;  %7401 = vmatpush1.bf16.msra.mxu1 %v9960_v46  ;;  %v10052_v45 = vld [vmem:[%s13682_s1 + $0x1828] ss:$16 sps:$4 sm:$0xff]   ;;  %v10057_v46 = vld [vmem:[%s13682_s1 + $0x1844] ss:$16 sps:$4 sm:$0xff]  }
 0x2cc   :  { %6746 = vmatprep.subr.bf16.mxu0 %v9965_v47  ;;  %7402 = vmatprep.subr.bf16.mxu1 %v9968_v48  ;;  %v10060_v47 = vld [vmem:[%s13682_s1 + $0x184c] ss:$16 sps:$4 sm:$0xff]   ;;  %v10055_v48 = vld [vmem:[%s13682_s1 + $0x1840] ss:$16 sps:$4 sm:$0xff]  }
 0x2cf   :  { %6747 = vmatpush1.bf16.msra.mxu0 %v9963_v49  ;;  %7403 = vmatpush1.bf16.msra.mxu1 %v9966_v50  ;;  %v10058_v49 = vld [vmem:[%s13682_s1 + $0x1848] ss:$16 sps:$4 sm:$0xff]   ;;  %v10063_v50 = vld [vmem:[%s13682_s1 + $0x1864] ss:$16 sps:$4 sm:$0xff]  }
 0x2d0   :  { %6748 = vmatprep.subr.bf16.mxu0 %v9971_v51  ;;  %7404 = vmatprep.subr.bf16.mxu1 %v9974_v52  ;;  %v10066_v51 = vld [vmem:[%s13682_s1 + $0x186c] ss:$16 sps:$4 sm:$0xff]   ;;  %v10061_v52 = vld [vmem:[%s13682_s1 + $0x1860] ss:$16 sps:$4 sm:$0xff]  }
 0x2d3   :  { %6749 = vmatpush1.bf16.msra.mxu0 %v9969_v53  ;;  %7405 = vmatpush1.bf16.msra.mxu1 %v9972_v54  ;;  %v10064_v53 = vld [vmem:[%s13682_s1 + $0x1868] ss:$16 sps:$4 sm:$0xff]   ;;  %v10069_v54 = vld [vmem:[%s13682_s1 + $0x1884] ss:$16 sps:$4 sm:$0xff]  }
 0x2d4   :  { %6750 = vmatprep.subr.bf16.mxu0 %v9977_v55  ;;  %7406 = vmatprep.subr.bf16.mxu1 %v9980_v56  ;;  %v10072_v55 = vld [vmem:[%s13682_s1 + $0x188c] ss:$16 sps:$4 sm:$0xff]   ;;  %v10067_v56 = vld [vmem:[%s13682_s1 + $0x1880] ss:$16 sps:$4 sm:$0xff]  }
 0x2d7   :  { %6751 = vmatpush1.bf16.msra.mxu0 %v9975_v57  ;;  %7407 = vmatpush1.bf16.msra.mxu1 %v9978_v58  ;;  %v10070_v57 = vld [vmem:[%s13682_s1 + $0x1888] ss:$16 sps:$4 sm:$0xff]   ;;  %v10075_v58 = vld [vmem:[%s13682_s1 + $0x18a4] ss:$16 sps:$4 sm:$0xff]  }
 0x2d8   :  { %6752 = vmatprep.subr.bf16.mxu0 %v9983_v59  ;;  %7408 = vmatprep.subr.bf16.mxu1 %v9986_v60  ;;  %v10078_v59 = vld [vmem:[%s13682_s1 + $0x18ac] ss:$16 sps:$4 sm:$0xff]   ;;  %v10073_v60 = vld [vmem:[%s13682_s1 + $0x18a0] ss:$16 sps:$4 sm:$0xff]  }
 0x2db   :  { %6753 = vmatpush1.bf16.msra.mxu0 %v9981_v61  ;;  %7409 = vmatpush1.bf16.msra.mxu1 %v9984_v62  ;;  %v10076_v61 = vld [vmem:[%s13682_s1 + $0x18a8] ss:$16 sps:$4 sm:$0xff]   ;;  %v10081_v62 = vld [vmem:[%s13682_s1 + $0x18c4] ss:$16 sps:$4 sm:$0xff]  }
 0x2dc   :  { %6754 = vmatprep.subr.bf16.mxu0 %v9989_v63  ;;  %7410 = vmatprep.subr.bf16.mxu1 %v9992_v0  ;;  %v10084_v63 = vld [vmem:[%s13682_s1 + $0x18cc] ss:$16 sps:$4 sm:$0xff]   ;;  %v10079_v0 = vld [vmem:[%s13682_s1 + $0x18c0] ss:$16 sps:$4 sm:$0xff]  }
 0x2df   :  { %6755 = vmatpush1.bf16.msra.mxu0 %v9987_v1  ;;  %7411 = vmatpush1.bf16.msra.mxu1 %v9990_v2  ;;  %v10082_v1 = vld [vmem:[%s13682_s1 + $0x18c8] ss:$16 sps:$4 sm:$0xff]   ;;  %v10087_v2 = vld [vmem:[%s13682_s1 + $0x18e4] ss:$16 sps:$4 sm:$0xff]  }
 0x2e0   :  { %6756 = vmatprep.subr.bf16.mxu0 %v9995_v3  ;;  %7412 = vmatprep.subr.bf16.mxu1 %v9998_v4  ;;  %v10090_v3 = vld [vmem:[%s13682_s1 + $0x18ec] ss:$16 sps:$4 sm:$0xff]   ;;  %v10085_v4 = vld [vmem:[%s13682_s1 + $0x18e0] ss:$16 sps:$4 sm:$0xff]  }
 0x2e3   :  { %6757 = vmatpush1.bf16.msra.mxu0 %v9993_v5  ;;  %7413 = vmatpush1.bf16.msra.mxu1 %v9996_v6  ;;  %v10088_v5 = vld [vmem:[%s13682_s1 + $0x18e8] ss:$16 sps:$4 sm:$0xff]   ;;  %v10093_v6 = vld [vmem:[%s13682_s1 + $0x1904] ss:$16 sps:$4 sm:$0xff]  }
 0x2e4   :  { %6758 = vmatprep.subr.bf16.mxu0 %v10001_v7  ;;  %7414 = vmatprep.subr.bf16.mxu1 %v10004_v8  ;;  %v10096_v7 = vld [vmem:[%s13682_s1 + $0x190c] ss:$16 sps:$4 sm:$0xff]   ;;  %v10091_v8 = vld [vmem:[%s13682_s1 + $0x1900] ss:$16 sps:$4 sm:$0xff]  }
 0x2e7   :  { %6759 = vmatpush1.bf16.msra.mxu0 %v9999_v9  ;;  %7415 = vmatpush1.bf16.msra.mxu1 %v10002_v10  ;;  %v10094_v9 = vld [vmem:[%s13682_s1 + $0x1908] ss:$16 sps:$4 sm:$0xff]   ;;  %v10099_v10 = vld [vmem:[%s13682_s1 + $0x1924] ss:$16 sps:$4 sm:$0xff]  }
 0x2e8   :  { %6760 = vmatprep.subr.bf16.mxu0 %v10007_v12  ;;  %7416 = vmatprep.subr.bf16.mxu1 %v10010_v13  ;;  %v10102_v12 = vld [vmem:[%s13682_s1 + $0x192c] ss:$16 sps:$4 sm:$0xff]   ;;  %v10097_v13 = vld [vmem:[%s13682_s1 + $0x1920] ss:$16 sps:$4 sm:$0xff]  }
 0x2eb   :  { %6761 = vmatpush1.bf16.msra.mxu0 %v10005_v15  ;;  %7417 = vmatpush1.bf16.msra.mxu1 %v10008_v11  ;;  %v10100_v15 = vld [vmem:[%s13682_s1 + $0x1928] ss:$16 sps:$4 sm:$0xff]   ;;  %v10105_v11 = vld [vmem:[%s13682_s1 + $0x1944] ss:$16 sps:$4 sm:$0xff]  }
 0x2ec   :  { %6762 = vmatprep.subr.bf16.mxu0 %v10013_v17  ;;  %7418 = vmatprep.subr.bf16.mxu1 %v10016_v14  ;;  %v10108_v17 = vld [vmem:[%s13682_s1 + $0x194c] ss:$16 sps:$4 sm:$0xff]   ;;  %v10103_v14 = vld [vmem:[%s13682_s1 + $0x1940] ss:$16 sps:$4 sm:$0xff]  }
 0x2ef   :  { %6763 = vmatpush1.bf16.msra.mxu0 %v10011_v19  ;;  %7419 = vmatpush1.bf16.msra.mxu1 %v10014_v20  ;;  %v10106_v19 = vld [vmem:[%s13682_s1 + $0x1948] ss:$16 sps:$4 sm:$0xff]   ;;  %v10111_v20 = vld [vmem:[%s13682_s1 + $0x1964] ss:$16 sps:$4 sm:$0xff]  }
 0x2f0   :  { %6764 = vmatprep.subr.bf16.mxu0 %v10019_v16  ;;  %7420 = vmatprep.subr.bf16.mxu1 %v10022_v22  ;;  %v10114_v16 = vld [vmem:[%s13682_s1 + $0x196c] ss:$16 sps:$4 sm:$0xff]   ;;  %v10109_v22 = vld [vmem:[%s13682_s1 + $0x1960] ss:$16 sps:$4 sm:$0xff]  }
 0x2f3   :  { %6765 = vmatpush1.bf16.msra.mxu0 %v10017_v23  ;;  %7421 = vmatpush1.bf16.msra.mxu1 %v10020_v18  ;;  %v10112_v23 = vld [vmem:[%s13682_s1 + $0x1968] ss:$16 sps:$4 sm:$0xff]   ;;  %v10117_v18 = vld [vmem:[%s13682_s1 + $0x1984] ss:$16 sps:$4 sm:$0xff]  }
 0x2f4   :  { %6766 = vmatprep.subr.bf16.mxu0 %v10025_v25  ;;  %7422 = vmatprep.subr.bf16.mxu1 %v10028_v26  ;;  %v10120_v25 = vld [vmem:[%s13682_s1 + $0x198c] ss:$16 sps:$4 sm:$0xff]   ;;  %v10115_v26 = vld [vmem:[%s13682_s1 + $0x1980] ss:$16 sps:$4 sm:$0xff]  }
 0x2f7   :  { %6767 = vmatpush1.bf16.msra.mxu0 %v10023_v21  ;;  %7423 = vmatpush1.bf16.msra.mxu1 %v10026_v28  ;;  %v10118_v21 = vld [vmem:[%s13682_s1 + $0x1988] ss:$16 sps:$4 sm:$0xff]   ;;  %v10123_v28 = vld [vmem:[%s13682_s1 + $0x19a4] ss:$16 sps:$4 sm:$0xff]  }
 0x2f8   :  { %6768 = vmatprep.subr.bf16.mxu0 %v10031_v29  ;;  %7424 = vmatprep.subr.bf16.mxu1 %v10034_v24  ;;  %v10126_v29 = vld [vmem:[%s13682_s1 + $0x19ac] ss:$16 sps:$4 sm:$0xff]   ;;  %v10121_v24 = vld [vmem:[%s13682_s1 + $0x19a0] ss:$16 sps:$4 sm:$0xff]  }
 0x2fb   :  { %6769 = vmatpush1.bf16.msra.mxu0 %v10029_v31  ;;  %7425 = vmatpush1.bf16.msra.mxu1 %v10032_v32  ;;  %v10124_v31 = vld [vmem:[%s13682_s1 + $0x19a8] ss:$16 sps:$4 sm:$0xff]   ;;  %v10129_v32 = vld [vmem:[%s13682_s1 + $0x19c4] ss:$16 sps:$4 sm:$0xff]  }
 0x2fc   :  { %6770 = vmatprep.subr.bf16.mxu0 %v10037_v33  ;;  %7426 = vmatprep.subr.bf16.mxu1 %v10040_v34  ;;  %v10132_v33 = vld [vmem:[%s13682_s1 + $0x19cc] ss:$16 sps:$4 sm:$0xff]   ;;  %v10127_v34 = vld [vmem:[%s13682_s1 + $0x19c0] ss:$16 sps:$4 sm:$0xff]  }
 0x2ff   :  { %6771 = vmatpush1.bf16.msra.mxu0 %v10035_v35  ;;  %7427 = vmatpush1.bf16.msra.mxu1 %v10038_v30  ;;  %v10130_v35 = vld [vmem:[%s13682_s1 + $0x19c8] ss:$16 sps:$4 sm:$0xff]   ;;  %v10135_v30 = vld [vmem:[%s13682_s1 + $0x19e4] ss:$16 sps:$4 sm:$0xff]  }
 0x300   :  { %6781 = vmatprep.subr.bf16.mxu0 %v10045_v37  ;;  %7437 = vmatprep.subr.bf16.mxu1 %v10048_v38  ;;  %v10138_v37 = vld [vmem:[%s13682_s1 + $0x19ec] ss:$16 sps:$4 sm:$0xff]   ;;  %v10133_v38 = vld [vmem:[%s13682_s1 + $0x19e0] ss:$16 sps:$4 sm:$0xff]  }
 0x302   :  { %6773 = vmatmul.mubr.bf16.vlgmr.msra.gmra.mrb[0].mxu0 %v7709_v27  ;;  %7429 = vmatmul.mubr.bf16.vlgmr.msra.gmra.mrb[0].mxu1 %v7709_v27  ;;  %v10136_v27 = vld [vmem:[%s13682_s1 + $0x19e8] ss:$16 sps:$4 sm:$0xff]  }
 0x303   :  { %6782 = vmatpush1.bf16.msra.mxu0 %v10043_v40  ;;  %7438 = vmatpush1.bf16.msra.mxu1 %v10046_v41  ;;  %v10143_v40 = vld [vmem:[%s13682_s1 + $0x1a04] ss:$16 sps:$4 sm:$0xff]   ;;  %v10146_v41 = vld [vmem:[%s13682_s1 + $0x1a0c] ss:$16 sps:$4 sm:$0xff]  }
 0x304   :  { %6783 = vmatprep.subr.bf16.mxu0 %v10051_v36  ;;  %7439 = vmatprep.subr.bf16.mxu1 %v10054_v42  ;;  %v7711_v36 = vcombine.low %v12875_v39, %v12875_v39  ;;  %v13076_v42 = vld [vmem:[%s13683_s0 + $0x68] sm:$0xff]  ;;  %v10149_v39 = vld [vmem:[%s13682_s1 + $0x1a24] ss:$16 sps:$4 sm:$0xff]  }
 0x305   :  { %6813 = vmatprep.mubr.bf16.mxu0 %v7712_v43  ;;  %7469 = vmatprep.mubr.bf16.mxu1 %v7712_v43  ;;  %v10141_v43 = vld [vmem:[%s13682_s1 + $0x1a00] ss:$16 sps:$4 sm:$0xff]  }
 0x307   :  { %6784 = vmatpush1.bf16.msra.mxu0 %v10049_v44  ;;  %7440 = vmatpush1.bf16.msra.mxu1 %v10052_v45  ;;  %v10144_v44 = vld [vmem:[%s13682_s1 + $0x1a08] ss:$16 sps:$4 sm:$0xff]   ;;  %v10152_v45 = vld [vmem:[%s13682_s1 + $0x1a2c] ss:$16 sps:$4 sm:$0xff]  }
 0x308   :  { %6785 = vmatprep.subr.bf16.mxu0 %v10057_v46  ;;  %7441 = vmatprep.subr.bf16.mxu1 %v10060_v47  ;;  %v7714_v46 = vcombine.high %v13076_v42, %v13076_v42  ;;  %v10147_v47 = vld [vmem:[%s13682_s1 + $0x1a20] ss:$16 sps:$4 sm:$0xff]  }
 0x30b   :  { %6786 = vmatpush1.bf16.msra.mxu0 %v10055_v48  ;;  %7442 = vmatpush1.bf16.msra.mxu1 %v10058_v49  ;;  %v10150_v48 = vld [vmem:[%s13682_s1 + $0x1a28] ss:$16 sps:$4 sm:$0xff]   ;;  %v10155_v49 = vld [vmem:[%s13682_s1 + $0x1a44] ss:$16 sps:$4 sm:$0xff]  }
 0x30c   :  { %6787 = vmatprep.subr.bf16.mxu0 %v10063_v50  ;;  %7443 = vmatprep.subr.bf16.mxu1 %v10066_v51  ;;  %v10158_v50 = vld [vmem:[%s13682_s1 + $0x1a4c] ss:$16 sps:$4 sm:$0xff]   ;;  %v10153_v51 = vld [vmem:[%s13682_s1 + $0x1a40] ss:$16 sps:$4 sm:$0xff]  }
 0x30f   :  { %6788 = vmatpush1.bf16.msra.mxu0 %v10061_v52  ;;  %7444 = vmatpush1.bf16.msra.mxu1 %v10064_v53  ;;  %v10156_v52 = vld [vmem:[%s13682_s1 + $0x1a48] ss:$16 sps:$4 sm:$0xff]   ;;  %v10161_v53 = vld [vmem:[%s13682_s1 + $0x1a64] ss:$16 sps:$4 sm:$0xff]  }
 0x310   :  { %6789 = vmatprep.subr.bf16.mxu0 %v10069_v54  ;;  %7445 = vmatprep.subr.bf16.mxu1 %v10072_v55  ;;  %v10164_v54 = vld [vmem:[%s13682_s1 + $0x1a6c] ss:$16 sps:$4 sm:$0xff]   ;;  %v10159_v55 = vld [vmem:[%s13682_s1 + $0x1a60] ss:$16 sps:$4 sm:$0xff]  }
 0x313   :  { %6790 = vmatpush1.bf16.msra.mxu0 %v10067_v56  ;;  %7446 = vmatpush1.bf16.msra.mxu1 %v10070_v57  ;;  %v10162_v56 = vld [vmem:[%s13682_s1 + $0x1a68] ss:$16 sps:$4 sm:$0xff]   ;;  %v10167_v57 = vld [vmem:[%s13682_s1 + $0x1a84] ss:$16 sps:$4 sm:$0xff]  }
 0x314   :  { %6791 = vmatprep.subr.bf16.mxu0 %v10075_v58  ;;  %7447 = vmatprep.subr.bf16.mxu1 %v10078_v59  ;;  %v10170_v58 = vld [vmem:[%s13682_s1 + $0x1a8c] ss:$16 sps:$4 sm:$0xff]   ;;  %v10165_v59 = vld [vmem:[%s13682_s1 + $0x1a80] ss:$16 sps:$4 sm:$0xff]  }
 0x317   :  { %6792 = vmatpush1.bf16.msra.mxu0 %v10073_v60  ;;  %7448 = vmatpush1.bf16.msra.mxu1 %v10076_v61  ;;  %v10168_v60 = vld [vmem:[%s13682_s1 + $0x1a88] ss:$16 sps:$4 sm:$0xff]   ;;  %v10173_v61 = vld [vmem:[%s13682_s1 + $0x1aa4] ss:$16 sps:$4 sm:$0xff]  }
 0x318   :  { %6793 = vmatprep.subr.bf16.mxu0 %v10081_v62  ;;  %7449 = vmatprep.subr.bf16.mxu1 %v10084_v63  ;;  %v10176_v62 = vld [vmem:[%s13682_s1 + $0x1aac] ss:$16 sps:$4 sm:$0xff]   ;;  %v10171_v63 = vld [vmem:[%s13682_s1 + $0x1aa0] ss:$16 sps:$4 sm:$0xff]  }
 0x31b   :  { %6794 = vmatpush1.bf16.msra.mxu0 %v10079_v0  ;;  %7450 = vmatpush1.bf16.msra.mxu1 %v10082_v1  ;;  %v10174_v0 = vld [vmem:[%s13682_s1 + $0x1aa8] ss:$16 sps:$4 sm:$0xff]   ;;  %v10179_v1 = vld [vmem:[%s13682_s1 + $0x1ac4] ss:$16 sps:$4 sm:$0xff]  }
 0x31c   :  { %6795 = vmatprep.subr.bf16.mxu0 %v10087_v2  ;;  %7451 = vmatprep.subr.bf16.mxu1 %v10090_v3  ;;  %v10182_v2 = vld [vmem:[%s13682_s1 + $0x1acc] ss:$16 sps:$4 sm:$0xff]   ;;  %v10177_v3 = vld [vmem:[%s13682_s1 + $0x1ac0] ss:$16 sps:$4 sm:$0xff]  }
 0x31f   :  { %6796 = vmatpush1.bf16.msra.mxu0 %v10085_v4  ;;  %7452 = vmatpush1.bf16.msra.mxu1 %v10088_v5  ;;  %v10180_v4 = vld [vmem:[%s13682_s1 + $0x1ac8] ss:$16 sps:$4 sm:$0xff]   ;;  %v10185_v5 = vld [vmem:[%s13682_s1 + $0x1ae4] ss:$16 sps:$4 sm:$0xff]  }
 0x320   :  { %6797 = vmatprep.subr.bf16.mxu0 %v10093_v6  ;;  %7453 = vmatprep.subr.bf16.mxu1 %v10096_v7  ;;  %v10188_v6 = vld [vmem:[%s13682_s1 + $0x1aec] ss:$16 sps:$4 sm:$0xff]   ;;  %v10183_v7 = vld [vmem:[%s13682_s1 + $0x1ae0] ss:$16 sps:$4 sm:$0xff]  }
 0x323   :  { %6798 = vmatpush1.bf16.msra.mxu0 %v10091_v8  ;;  %7454 = vmatpush1.bf16.msra.mxu1 %v10094_v9  ;;  %v10186_v8 = vld [vmem:[%s13682_s1 + $0x1ae8] ss:$16 sps:$4 sm:$0xff]   ;;  %v10191_v9 = vld [vmem:[%s13682_s1 + $0x1b04] ss:$16 sps:$4 sm:$0xff]  }
 0x324   :  { %6799 = vmatprep.subr.bf16.mxu0 %v10099_v10  ;;  %7455 = vmatprep.subr.bf16.mxu1 %v10102_v12  ;;  %v10194_v10 = vld [vmem:[%s13682_s1 + $0x1b0c] ss:$16 sps:$4 sm:$0xff]   ;;  %v10189_v12 = vld [vmem:[%s13682_s1 + $0x1b00] ss:$16 sps:$4 sm:$0xff]  }
 0x327   :  { %6800 = vmatpush1.bf16.msra.mxu0 %v10097_v13  ;;  %7456 = vmatpush1.bf16.msra.mxu1 %v10100_v15  ;;  %v10192_v13 = vld [vmem:[%s13682_s1 + $0x1b08] ss:$16 sps:$4 sm:$0xff]   ;;  %v10197_v15 = vld [vmem:[%s13682_s1 + $0x1b24] ss:$16 sps:$4 sm:$0xff]  }
 0x328   :  { %6801 = vmatprep.subr.bf16.mxu0 %v10105_v11  ;;  %7457 = vmatprep.subr.bf16.mxu1 %v10108_v17  ;;  %v10200_v11 = vld [vmem:[%s13682_s1 + $0x1b2c] ss:$16 sps:$4 sm:$0xff]   ;;  %v10195_v17 = vld [vmem:[%s13682_s1 + $0x1b20] ss:$16 sps:$4 sm:$0xff]  }
 0x32b   :  { %6802 = vmatpush1.bf16.msra.mxu0 %v10103_v14  ;;  %7458 = vmatpush1.bf16.msra.mxu1 %v10106_v19  ;;  %v10198_v14 = vld [vmem:[%s13682_s1 + $0x1b28] ss:$16 sps:$4 sm:$0xff]   ;;  %v10203_v19 = vld [vmem:[%s13682_s1 + $0x1b44] ss:$16 sps:$4 sm:$0xff]  }
 0x32c   :  { %6803 = vmatprep.subr.bf16.mxu0 %v10111_v20  ;;  %7459 = vmatprep.subr.bf16.mxu1 %v10114_v16  ;;  %v10206_v20 = vld [vmem:[%s13682_s1 + $0x1b4c] ss:$16 sps:$4 sm:$0xff]   ;;  %v10201_v16 = vld [vmem:[%s13682_s1 + $0x1b40] ss:$16 sps:$4 sm:$0xff]  }
 0x32f   :  { %6804 = vmatpush1.bf16.msra.mxu0 %v10109_v22  ;;  %7460 = vmatpush1.bf16.msra.mxu1 %v10112_v23  ;;  %v10204_v22 = vld [vmem:[%s13682_s1 + $0x1b48] ss:$16 sps:$4 sm:$0xff]   ;;  %v10209_v23 = vld [vmem:[%s13682_s1 + $0x1b64] ss:$16 sps:$4 sm:$0xff]  }
 0x330   :  { %6805 = vmatprep.subr.bf16.mxu0 %v10117_v18  ;;  %7461 = vmatprep.subr.bf16.mxu1 %v10120_v25  ;;  %v10212_v18 = vld [vmem:[%s13682_s1 + $0x1b6c] ss:$16 sps:$4 sm:$0xff]   ;;  %v10207_v25 = vld [vmem:[%s13682_s1 + $0x1b60] ss:$16 sps:$4 sm:$0xff]  }
 0x333   :  { %6806 = vmatpush1.bf16.msra.mxu0 %v10115_v26  ;;  %7462 = vmatpush1.bf16.msra.mxu1 %v10118_v21  ;;  %v10210_v26 = vld [vmem:[%s13682_s1 + $0x1b68] ss:$16 sps:$4 sm:$0xff]   ;;  %v10215_v21 = vld [vmem:[%s13682_s1 + $0x1b84] ss:$16 sps:$4 sm:$0xff]  }
 0x334   :  { %6807 = vmatprep.subr.bf16.mxu0 %v10123_v28  ;;  %7463 = vmatprep.subr.bf16.mxu1 %v10126_v29  ;;  %v10218_v28 = vld [vmem:[%s13682_s1 + $0x1b8c] ss:$16 sps:$4 sm:$0xff]   ;;  %v10213_v29 = vld [vmem:[%s13682_s1 + $0x1b80] ss:$16 sps:$4 sm:$0xff]  }
 0x337   :  { %6808 = vmatpush1.bf16.msra.mxu0 %v10121_v24  ;;  %7464 = vmatpush1.bf16.msra.mxu1 %v10124_v31  ;;  %v10216_v24 = vld [vmem:[%s13682_s1 + $0x1b88] ss:$16 sps:$4 sm:$0xff]   ;;  %v10221_v31 = vld [vmem:[%s13682_s1 + $0x1ba4] ss:$16 sps:$4 sm:$0xff]  }
 0x338   :  { %6809 = vmatprep.subr.bf16.mxu0 %v10129_v32  ;;  %7465 = vmatprep.subr.bf16.mxu1 %v10132_v33  ;;  %v10224_v32 = vld [vmem:[%s13682_s1 + $0x1bac] ss:$16 sps:$4 sm:$0xff]   ;;  %v10219_v33 = vld [vmem:[%s13682_s1 + $0x1ba0] ss:$16 sps:$4 sm:$0xff]  }
 0x33b   :  { %6810 = vmatpush1.bf16.msra.mxu0 %v10127_v34  ;;  %7466 = vmatpush1.bf16.msra.mxu1 %v10130_v35  ;;  %v10222_v34 = vld [vmem:[%s13682_s1 + $0x1ba8] ss:$16 sps:$4 sm:$0xff]   ;;  %v10227_v35 = vld [vmem:[%s13682_s1 + $0x1bc4] ss:$16 sps:$4 sm:$0xff]  }
 0x33c   :  { %6811 = vmatprep.subr.bf16.mxu0 %v10135_v30  ;;  %7467 = vmatprep.subr.bf16.mxu1 %v10138_v37  ;;  %v10230_v30 = vld [vmem:[%s13682_s1 + $0x1bcc] ss:$16 sps:$4 sm:$0xff]   ;;  %v10225_v37 = vld [vmem:[%s13682_s1 + $0x1bc0] ss:$16 sps:$4 sm:$0xff]  }
 0x33f   :  { %6812 = vmatpush1.bf16.msra.mxu0 %v10133_v38  ;;  %7468 = vmatpush1.bf16.msra.mxu1 %v10136_v27  ;;  %v10228_v38 = vld [vmem:[%s13682_s1 + $0x1bc8] ss:$16 sps:$4 sm:$0xff]   ;;  %v10233_v27 = vld [vmem:[%s13682_s1 + $0x1be4] ss:$16 sps:$4 sm:$0xff]  }
 0x340   :  { %6822 = vmatprep.subr.bf16.mxu0 %v10143_v40  ;;  %7478 = vmatprep.subr.bf16.mxu1 %v10146_v41  ;;  %v10236_v40 = vld [vmem:[%s13682_s1 + $0x1bec] ss:$16 sps:$4 sm:$0xff]   ;;  %v10231_v41 = vld [vmem:[%s13682_s1 + $0x1be0] ss:$16 sps:$4 sm:$0xff]  }
 0x342   :  { %6814 = vmatmul.mubr.bf16.vlgmr.msra.gmra.mrb[0].mxu0 %v7711_v36  ;;  %7470 = vmatmul.mubr.bf16.vlgmr.msra.gmra.mrb[0].mxu1 %v7711_v36  ;;  %v10234_v36 = vld [vmem:[%s13682_s1 + $0x1be8] ss:$16 sps:$4 sm:$0xff]  }
 0x343   :  { %6823 = vmatpush1.bf16.msra.mxu0 %v10141_v43  ;;  %7479 = vmatpush1.bf16.msra.mxu1 %v10144_v44  ;;  %v10241_v43 = vld [vmem:[%s13682_s1 + $0x1c04] ss:$16 sps:$4 sm:$0xff]   ;;  %v10244_v44 = vld [vmem:[%s13682_s1 + $0x1c0c] ss:$16 sps:$4 sm:$0xff]  }
 0x344   :  { %6824 = vmatprep.subr.bf16.mxu0 %v10149_v39  ;;  %7480 = vmatprep.subr.bf16.mxu1 %v10152_v45  ;;  %v7713_v39 = vcombine.low %v13076_v42, %v13076_v42  ;;  %v13277_v45 = vld [vmem:[%s13683_s0 + $0x70] sm:$0xff] }
 0x345   :  { %6854 = vmatprep.mubr.bf16.mxu0 %v7714_v46  ;;  %7510 = vmatprep.mubr.bf16.mxu1 %v7714_v46  ;;  %v10239_v46 = vld [vmem:[%s13682_s1 + $0x1c00] ss:$16 sps:$4 sm:$0xff]   ;;  %v10247_v42 = vld [vmem:[%s13682_s1 + $0x1c24] ss:$16 sps:$4 sm:$0xff]  }
 0x347   :  { %6825 = vmatpush1.bf16.msra.mxu0 %v10147_v47  ;;  %7481 = vmatpush1.bf16.msra.mxu1 %v10150_v48  ;;  %v10242_v47 = vld [vmem:[%s13682_s1 + $0x1c08] ss:$16 sps:$4 sm:$0xff]   ;;  %v10250_v48 = vld [vmem:[%s13682_s1 + $0x1c2c] ss:$16 sps:$4 sm:$0xff]  }
 0x348   :  { %6826 = vmatprep.subr.bf16.mxu0 %v10155_v49  ;;  %7482 = vmatprep.subr.bf16.mxu1 %v10158_v50  ;;  %v7716_v49 = vcombine.high %v13277_v45, %v13277_v45  ;;  %v10245_v50 = vld [vmem:[%s13682_s1 + $0x1c20] ss:$16 sps:$4 sm:$0xff]  }
 0x34b   :  { %6827 = vmatpush1.bf16.msra.mxu0 %v10153_v51  ;;  %7483 = vmatpush1.bf16.msra.mxu1 %v10156_v52  ;;  %v10248_v51 = vld [vmem:[%s13682_s1 + $0x1c28] ss:$16 sps:$4 sm:$0xff]   ;;  %v10253_v52 = vld [vmem:[%s13682_s1 + $0x1c44] ss:$16 sps:$4 sm:$0xff]  }
 0x34c   :  { %6828 = vmatprep.subr.bf16.mxu0 %v10161_v53  ;;  %7484 = vmatprep.subr.bf16.mxu1 %v10164_v54  ;;  %v10256_v53 = vld [vmem:[%s13682_s1 + $0x1c4c] ss:$16 sps:$4 sm:$0xff]   ;;  %v10251_v54 = vld [vmem:[%s13682_s1 + $0x1c40] ss:$16 sps:$4 sm:$0xff]  }
 0x34f   :  { %6829 = vmatpush1.bf16.msra.mxu0 %v10159_v55  ;;  %7485 = vmatpush1.bf16.msra.mxu1 %v10162_v56  ;;  %v10254_v55 = vld [vmem:[%s13682_s1 + $0x1c48] ss:$16 sps:$4 sm:$0xff]   ;;  %v10259_v56 = vld [vmem:[%s13682_s1 + $0x1c64] ss:$16 sps:$4 sm:$0xff]  }
 0x350   :  { %6830 = vmatprep.subr.bf16.mxu0 %v10167_v57  ;;  %7486 = vmatprep.subr.bf16.mxu1 %v10170_v58  ;;  %v10262_v57 = vld [vmem:[%s13682_s1 + $0x1c6c] ss:$16 sps:$4 sm:$0xff]   ;;  %v10257_v58 = vld [vmem:[%s13682_s1 + $0x1c60] ss:$16 sps:$4 sm:$0xff]  }
 0x353   :  { %6831 = vmatpush1.bf16.msra.mxu0 %v10165_v59  ;;  %7487 = vmatpush1.bf16.msra.mxu1 %v10168_v60  ;;  %v10260_v59 = vld [vmem:[%s13682_s1 + $0x1c68] ss:$16 sps:$4 sm:$0xff]   ;;  %v10265_v60 = vld [vmem:[%s13682_s1 + $0x1c84] ss:$16 sps:$4 sm:$0xff]  }
 0x354   :  { %6832 = vmatprep.subr.bf16.mxu0 %v10173_v61  ;;  %7488 = vmatprep.subr.bf16.mxu1 %v10176_v62  ;;  %v10268_v61 = vld [vmem:[%s13682_s1 + $0x1c8c] ss:$16 sps:$4 sm:$0xff]   ;;  %v10263_v62 = vld [vmem:[%s13682_s1 + $0x1c80] ss:$16 sps:$4 sm:$0xff]  }
 0x357   :  { %6833 = vmatpush1.bf16.msra.mxu0 %v10171_v63  ;;  %7489 = vmatpush1.bf16.msra.mxu1 %v10174_v0  ;;  %v10266_v63 = vld [vmem:[%s13682_s1 + $0x1c88] ss:$16 sps:$4 sm:$0xff]   ;;  %v10271_v0 = vld [vmem:[%s13682_s1 + $0x1ca4] ss:$16 sps:$4 sm:$0xff]  }
 0x358   :  { %6834 = vmatprep.subr.bf16.mxu0 %v10179_v1  ;;  %7490 = vmatprep.subr.bf16.mxu1 %v10182_v2  ;;  %v10274_v1 = vld [vmem:[%s13682_s1 + $0x1cac] ss:$16 sps:$4 sm:$0xff]   ;;  %v10269_v2 = vld [vmem:[%s13682_s1 + $0x1ca0] ss:$16 sps:$4 sm:$0xff]  }
 0x35b   :  { %6835 = vmatpush1.bf16.msra.mxu0 %v10177_v3  ;;  %7491 = vmatpush1.bf16.msra.mxu1 %v10180_v4  ;;  %v10272_v3 = vld [vmem:[%s13682_s1 + $0x1ca8] ss:$16 sps:$4 sm:$0xff]   ;;  %v10277_v4 = vld [vmem:[%s13682_s1 + $0x1cc4] ss:$16 sps:$4 sm:$0xff]  }
 0x35c   :  { %6836 = vmatprep.subr.bf16.mxu0 %v10185_v5  ;;  %7492 = vmatprep.subr.bf16.mxu1 %v10188_v6  ;;  %v10280_v5 = vld [vmem:[%s13682_s1 + $0x1ccc] ss:$16 sps:$4 sm:$0xff]   ;;  %v10275_v6 = vld [vmem:[%s13682_s1 + $0x1cc0] ss:$16 sps:$4 sm:$0xff]  }
 0x35f   :  { %6837 = vmatpush1.bf16.msra.mxu0 %v10183_v7  ;;  %7493 = vmatpush1.bf16.msra.mxu1 %v10186_v8  ;;  %v10278_v7 = vld [vmem:[%s13682_s1 + $0x1cc8] ss:$16 sps:$4 sm:$0xff]   ;;  %v10283_v8 = vld [vmem:[%s13682_s1 + $0x1ce4] ss:$16 sps:$4 sm:$0xff]  }
 0x360   :  { %6838 = vmatprep.subr.bf16.mxu0 %v10191_v9  ;;  %7494 = vmatprep.subr.bf16.mxu1 %v10194_v10  ;;  %v10286_v9 = vld [vmem:[%s13682_s1 + $0x1cec] ss:$16 sps:$4 sm:$0xff]   ;;  %v10281_v10 = vld [vmem:[%s13682_s1 + $0x1ce0] ss:$16 sps:$4 sm:$0xff]  }
 0x363   :  { %6839 = vmatpush1.bf16.msra.mxu0 %v10189_v12  ;;  %7495 = vmatpush1.bf16.msra.mxu1 %v10192_v13  ;;  %v10284_v12 = vld [vmem:[%s13682_s1 + $0x1ce8] ss:$16 sps:$4 sm:$0xff]   ;;  %v10289_v13 = vld [vmem:[%s13682_s1 + $0x1d04] ss:$16 sps:$4 sm:$0xff]  }
 0x364   :  { %6840 = vmatprep.subr.bf16.mxu0 %v10197_v15  ;;  %7496 = vmatprep.subr.bf16.mxu1 %v10200_v11  ;;  %v10292_v15 = vld [vmem:[%s13682_s1 + $0x1d0c] ss:$16 sps:$4 sm:$0xff]   ;;  %v10287_v11 = vld [vmem:[%s13682_s1 + $0x1d00] ss:$16 sps:$4 sm:$0xff]  }
 0x367   :  { %6841 = vmatpush1.bf16.msra.mxu0 %v10195_v17  ;;  %7497 = vmatpush1.bf16.msra.mxu1 %v10198_v14  ;;  %v10290_v17 = vld [vmem:[%s13682_s1 + $0x1d08] ss:$16 sps:$4 sm:$0xff]   ;;  %v10295_v14 = vld [vmem:[%s13682_s1 + $0x1d24] ss:$16 sps:$4 sm:$0xff]  }
 0x368   :  { %6842 = vmatprep.subr.bf16.mxu0 %v10203_v19  ;;  %7498 = vmatprep.subr.bf16.mxu1 %v10206_v20  ;;  %v10298_v19 = vld [vmem:[%s13682_s1 + $0x1d2c] ss:$16 sps:$4 sm:$0xff]   ;;  %v10293_v20 = vld [vmem:[%s13682_s1 + $0x1d20] ss:$16 sps:$4 sm:$0xff]  }
 0x36b   :  { %6843 = vmatpush1.bf16.msra.mxu0 %v10201_v16  ;;  %7499 = vmatpush1.bf16.msra.mxu1 %v10204_v22  ;;  %v10296_v16 = vld [vmem:[%s13682_s1 + $0x1d28] ss:$16 sps:$4 sm:$0xff]   ;;  %v10301_v22 = vld [vmem:[%s13682_s1 + $0x1d44] ss:$16 sps:$4 sm:$0xff]  }
 0x36c   :  { %6844 = vmatprep.subr.bf16.mxu0 %v10209_v23  ;;  %7500 = vmatprep.subr.bf16.mxu1 %v10212_v18  ;;  %v10304_v23 = vld [vmem:[%s13682_s1 + $0x1d4c] ss:$16 sps:$4 sm:$0xff]   ;;  %v10299_v18 = vld [vmem:[%s13682_s1 + $0x1d40] ss:$16 sps:$4 sm:$0xff]  }
 0x36f   :  { %6845 = vmatpush1.bf16.msra.mxu0 %v10207_v25  ;;  %7501 = vmatpush1.bf16.msra.mxu1 %v10210_v26  ;;  %v10302_v25 = vld [vmem:[%s13682_s1 + $0x1d48] ss:$16 sps:$4 sm:$0xff]   ;;  %v10307_v26 = vld [vmem:[%s13682_s1 + $0x1d64] ss:$16 sps:$4 sm:$0xff]  }
 0x370   :  { %6846 = vmatprep.subr.bf16.mxu0 %v10215_v21  ;;  %7502 = vmatprep.subr.bf16.mxu1 %v10218_v28  ;;  %v10310_v21 = vld [vmem:[%s13682_s1 + $0x1d6c] ss:$16 sps:$4 sm:$0xff]   ;;  %v10305_v28 = vld [vmem:[%s13682_s1 + $0x1d60] ss:$16 sps:$4 sm:$0xff]  }
 0x373   :  { %6847 = vmatpush1.bf16.msra.mxu0 %v10213_v29  ;;  %7503 = vmatpush1.bf16.msra.mxu1 %v10216_v24  ;;  %v10308_v29 = vld [vmem:[%s13682_s1 + $0x1d68] ss:$16 sps:$4 sm:$0xff]   ;;  %v10313_v24 = vld [vmem:[%s13682_s1 + $0x1d84] ss:$16 sps:$4 sm:$0xff]  }
 0x374   :  { %6848 = vmatprep.subr.bf16.mxu0 %v10221_v31  ;;  %7504 = vmatprep.subr.bf16.mxu1 %v10224_v32  ;;  %v10316_v31 = vld [vmem:[%s13682_s1 + $0x1d8c] ss:$16 sps:$4 sm:$0xff]   ;;  %v10311_v32 = vld [vmem:[%s13682_s1 + $0x1d80] ss:$16 sps:$4 sm:$0xff]  }
 0x377   :  { %6849 = vmatpush1.bf16.msra.mxu0 %v10219_v33  ;;  %7505 = vmatpush1.bf16.msra.mxu1 %v10222_v34  ;;  %v10314_v33 = vld [vmem:[%s13682_s1 + $0x1d88] ss:$16 sps:$4 sm:$0xff]   ;;  %v10319_v34 = vld [vmem:[%s13682_s1 + $0x1da4] ss:$16 sps:$4 sm:$0xff]  }
 0x378   :  { %6850 = vmatprep.subr.bf16.mxu0 %v10227_v35  ;;  %7506 = vmatprep.subr.bf16.mxu1 %v10230_v30  ;;  %v10322_v35 = vld [vmem:[%s13682_s1 + $0x1dac] ss:$16 sps:$4 sm:$0xff]   ;;  %v10317_v30 = vld [vmem:[%s13682_s1 + $0x1da0] ss:$16 sps:$4 sm:$0xff]  }
 0x37b   :  { %6851 = vmatpush1.bf16.msra.mxu0 %v10225_v37  ;;  %7507 = vmatpush1.bf16.msra.mxu1 %v10228_v38  ;;  %v10320_v37 = vld [vmem:[%s13682_s1 + $0x1da8] ss:$16 sps:$4 sm:$0xff]   ;;  %v10325_v38 = vld [vmem:[%s13682_s1 + $0x1dc4] ss:$16 sps:$4 sm:$0xff]  }
 0x37c   :  { %6852 = vmatprep.subr.bf16.mxu0 %v10233_v27  ;;  %7508 = vmatprep.subr.bf16.mxu1 %v10236_v40  ;;  %v10328_v27 = vld [vmem:[%s13682_s1 + $0x1dcc] ss:$16 sps:$4 sm:$0xff]   ;;  %v10323_v40 = vld [vmem:[%s13682_s1 + $0x1dc0] ss:$16 sps:$4 sm:$0xff]  }
 0x37f   :  { %6853 = vmatpush1.bf16.msra.mxu0 %v10231_v41  ;;  %7509 = vmatpush1.bf16.msra.mxu1 %v10234_v36  ;;  %v10326_v41 = vld [vmem:[%s13682_s1 + $0x1dc8] ss:$16 sps:$4 sm:$0xff]   ;;  %v10331_v36 = vld [vmem:[%s13682_s1 + $0x1de4] ss:$16 sps:$4 sm:$0xff]  }
 0x380   :  { %6863 = vmatprep.subr.bf16.mxu0 %v10241_v43  ;;  %7519 = vmatprep.subr.bf16.mxu1 %v10244_v44  ;;  %v10334_v43 = vld [vmem:[%s13682_s1 + $0x1dec] ss:$16 sps:$4 sm:$0xff]   ;;  %v10329_v44 = vld [vmem:[%s13682_s1 + $0x1de0] ss:$16 sps:$4 sm:$0xff]  }
 0x382   :  { %6855 = vmatmul.mubr.bf16.vlgmr.msra.gmra.mrb[0].mxu0 %v7713_v39  ;;  %7511 = vmatmul.mubr.bf16.vlgmr.msra.gmra.mrb[0].mxu1 %v7713_v39  ;;  %v10332_v39 = vld [vmem:[%s13682_s1 + $0x1de8] ss:$16 sps:$4 sm:$0xff]  }
 0x383   :  { %6864 = vmatpush1.bf16.msra.mxu0 %v10239_v46  ;;  %7520 = vmatpush1.bf16.msra.mxu1 %v10242_v47  ;;  %v10339_v46 = vld [vmem:[%s13682_s1 + $0x1e04] ss:$16 sps:$4 sm:$0xff]   ;;  %v10342_v47 = vld [vmem:[%s13682_s1 + $0x1e0c] ss:$16 sps:$4 sm:$0xff]  }
 0x384   :  { %6865 = vmatprep.subr.bf16.mxu0 %v10247_v42  ;;  %7521 = vmatprep.subr.bf16.mxu1 %v10250_v48  ;;  %v7715_v42 = vcombine.low %v13277_v45, %v13277_v45  ;;  %v13478_v48 = vld [vmem:[%s13683_s0 + $0x78] sm:$0xff]  ;;  %v10345_v45 = vld [vmem:[%s13682_s1 + $0x1e24] ss:$16 sps:$4 sm:$0xff]  }
 0x385   :  { %6895 = vmatprep.mubr.bf16.mxu0 %v7716_v49  ;;  %7551 = vmatprep.mubr.bf16.mxu1 %v7716_v49  ;;  %v10337_v49 = vld [vmem:[%s13682_s1 + $0x1e00] ss:$16 sps:$4 sm:$0xff]  }
 0x387   :  { %6866 = vmatpush1.bf16.msra.mxu0 %v10245_v50  ;;  %7522 = vmatpush1.bf16.msra.mxu1 %v10248_v51  ;;  %v10340_v50 = vld [vmem:[%s13682_s1 + $0x1e08] ss:$16 sps:$4 sm:$0xff]   ;;  %v10348_v51 = vld [vmem:[%s13682_s1 + $0x1e2c] ss:$16 sps:$4 sm:$0xff]  }
 0x388   :  { %6867 = vmatprep.subr.bf16.mxu0 %v10253_v52  ;;  %7523 = vmatprep.subr.bf16.mxu1 %v10256_v53  ;;  %v7718_v52 = vcombine.high %v13478_v48, %v13478_v48  ;;  %v10343_v53 = vld [vmem:[%s13682_s1 + $0x1e20] ss:$16 sps:$4 sm:$0xff]  }
 0x38b   :  { %6868 = vmatpush1.bf16.msra.mxu0 %v10251_v54  ;;  %7524 = vmatpush1.bf16.msra.mxu1 %v10254_v55  ;;  %v10346_v54 = vld [vmem:[%s13682_s1 + $0x1e28] ss:$16 sps:$4 sm:$0xff]   ;;  %v10351_v55 = vld [vmem:[%s13682_s1 + $0x1e44] ss:$16 sps:$4 sm:$0xff]  }
 0x38c   :  { %6869 = vmatprep.subr.bf16.mxu0 %v10259_v56  ;;  %7525 = vmatprep.subr.bf16.mxu1 %v10262_v57  ;;  %v10354_v56 = vld [vmem:[%s13682_s1 + $0x1e4c] ss:$16 sps:$4 sm:$0xff]   ;;  %v10349_v57 = vld [vmem:[%s13682_s1 + $0x1e40] ss:$16 sps:$4 sm:$0xff]  }
 0x38f   :  { %6870 = vmatpush1.bf16.msra.mxu0 %v10257_v58  ;;  %7526 = vmatpush1.bf16.msra.mxu1 %v10260_v59  ;;  %v10352_v58 = vld [vmem:[%s13682_s1 + $0x1e48] ss:$16 sps:$4 sm:$0xff]   ;;  %v10357_v59 = vld [vmem:[%s13682_s1 + $0x1e64] ss:$16 sps:$4 sm:$0xff]  }
 0x390   :  { %6871 = vmatprep.subr.bf16.mxu0 %v10265_v60  ;;  %7527 = vmatprep.subr.bf16.mxu1 %v10268_v61  ;;  %v10360_v60 = vld [vmem:[%s13682_s1 + $0x1e6c] ss:$16 sps:$4 sm:$0xff]   ;;  %v10355_v61 = vld [vmem:[%s13682_s1 + $0x1e60] ss:$16 sps:$4 sm:$0xff]  }
 0x393   :  { %6872 = vmatpush1.bf16.msra.mxu0 %v10263_v62  ;;  %7528 = vmatpush1.bf16.msra.mxu1 %v10266_v63  ;;  %v10358_v62 = vld [vmem:[%s13682_s1 + $0x1e68] ss:$16 sps:$4 sm:$0xff]   ;;  %v10363_v63 = vld [vmem:[%s13682_s1 + $0x1e84] ss:$16 sps:$4 sm:$0xff]  }
 0x394   :  { %6873 = vmatprep.subr.bf16.mxu0 %v10271_v0  ;;  %7529 = vmatprep.subr.bf16.mxu1 %v10274_v1  ;;  %v10366_v0 = vld [vmem:[%s13682_s1 + $0x1e8c] ss:$16 sps:$4 sm:$0xff]   ;;  %v10361_v1 = vld [vmem:[%s13682_s1 + $0x1e80] ss:$16 sps:$4 sm:$0xff]  }
 0x397   :  { %6874 = vmatpush1.bf16.msra.mxu0 %v10269_v2  ;;  %7530 = vmatpush1.bf16.msra.mxu1 %v10272_v3  ;;  %v10364_v2 = vld [vmem:[%s13682_s1 + $0x1e88] ss:$16 sps:$4 sm:$0xff]   ;;  %v10369_v3 = vld [vmem:[%s13682_s1 + $0x1ea4] ss:$16 sps:$4 sm:$0xff]  }
 0x398   :  { %6875 = vmatprep.subr.bf16.mxu0 %v10277_v4  ;;  %7531 = vmatprep.subr.bf16.mxu1 %v10280_v5  ;;  %v10372_v4 = vld [vmem:[%s13682_s1 + $0x1eac] ss:$16 sps:$4 sm:$0xff]   ;;  %v10367_v5 = vld [vmem:[%s13682_s1 + $0x1ea0] ss:$16 sps:$4 sm:$0xff]  }
 0x39b   :  { %6876 = vmatpush1.bf16.msra.mxu0 %v10275_v6  ;;  %7532 = vmatpush1.bf16.msra.mxu1 %v10278_v7  ;;  %v10370_v6 = vld [vmem:[%s13682_s1 + $0x1ea8] ss:$16 sps:$4 sm:$0xff]   ;;  %v10375_v7 = vld [vmem:[%s13682_s1 + $0x1ec4] ss:$16 sps:$4 sm:$0xff]  }
 0x39c   :  { %6877 = vmatprep.subr.bf16.mxu0 %v10283_v8  ;;  %7533 = vmatprep.subr.bf16.mxu1 %v10286_v9  ;;  %v10378_v8 = vld [vmem:[%s13682_s1 + $0x1ecc] ss:$16 sps:$4 sm:$0xff]   ;;  %v10373_v9 = vld [vmem:[%s13682_s1 + $0x1ec0] ss:$16 sps:$4 sm:$0xff]  }
 0x39f   :  { %6878 = vmatpush1.bf16.msra.mxu0 %v10281_v10  ;;  %7534 = vmatpush1.bf16.msra.mxu1 %v10284_v12  ;;  %v10376_v10 = vld [vmem:[%s13682_s1 + $0x1ec8] ss:$16 sps:$4 sm:$0xff]   ;;  %v10381_v12 = vld [vmem:[%s13682_s1 + $0x1ee4] ss:$16 sps:$4 sm:$0xff]  }
 0x3a0   :  { %6879 = vmatprep.subr.bf16.mxu0 %v10289_v13  ;;  %7535 = vmatprep.subr.bf16.mxu1 %v10292_v15  ;;  %v10384_v13 = vld [vmem:[%s13682_s1 + $0x1eec] ss:$16 sps:$4 sm:$0xff]   ;;  %v10379_v15 = vld [vmem:[%s13682_s1 + $0x1ee0] ss:$16 sps:$4 sm:$0xff]  }
 0x3a3   :  { %6880 = vmatpush1.bf16.msra.mxu0 %v10287_v11  ;;  %7536 = vmatpush1.bf16.msra.mxu1 %v10290_v17  ;;  %v10382_v11 = vld [vmem:[%s13682_s1 + $0x1ee8] ss:$16 sps:$4 sm:$0xff]   ;;  %v10387_v17 = vld [vmem:[%s13682_s1 + $0x1f04] ss:$16 sps:$4 sm:$0xff]  }
 0x3a4   :  { %6881 = vmatprep.subr.bf16.mxu0 %v10295_v14  ;;  %7537 = vmatprep.subr.bf16.mxu1 %v10298_v19  ;;  %v10390_v14 = vld [vmem:[%s13682_s1 + $0x1f0c] ss:$16 sps:$4 sm:$0xff]   ;;  %v10385_v19 = vld [vmem:[%s13682_s1 + $0x1f00] ss:$16 sps:$4 sm:$0xff]  }
 0x3a7   :  { %6882 = vmatpush1.bf16.msra.mxu0 %v10293_v20  ;;  %7538 = vmatpush1.bf16.msra.mxu1 %v10296_v16  ;;  %v10388_v20 = vld [vmem:[%s13682_s1 + $0x1f08] ss:$16 sps:$4 sm:$0xff]   ;;  %v10393_v16 = vld [vmem:[%s13682_s1 + $0x1f24] ss:$16 sps:$4 sm:$0xff]  }
 0x3a8   :  { %6883 = vmatprep.subr.bf16.mxu0 %v10301_v22  ;;  %7539 = vmatprep.subr.bf16.mxu1 %v10304_v23  ;;  %v10396_v22 = vld [vmem:[%s13682_s1 + $0x1f2c] ss:$16 sps:$4 sm:$0xff]   ;;  %v10391_v23 = vld [vmem:[%s13682_s1 + $0x1f20] ss:$16 sps:$4 sm:$0xff]  }
 0x3ab   :  { %6884 = vmatpush1.bf16.msra.mxu0 %v10299_v18  ;;  %7540 = vmatpush1.bf16.msra.mxu1 %v10302_v25  ;;  %v10394_v18 = vld [vmem:[%s13682_s1 + $0x1f28] ss:$16 sps:$4 sm:$0xff]   ;;  %v10399_v25 = vld [vmem:[%s13682_s1 + $0x1f44] ss:$16 sps:$4 sm:$0xff]  }
 0x3ac   :  { %6885 = vmatprep.subr.bf16.mxu0 %v10307_v26  ;;  %7541 = vmatprep.subr.bf16.mxu1 %v10310_v21  ;;  %v10402_v26 = vld [vmem:[%s13682_s1 + $0x1f4c] ss:$16 sps:$4 sm:$0xff]   ;;  %v10397_v21 = vld [vmem:[%s13682_s1 + $0x1f40] ss:$16 sps:$4 sm:$0xff]  }
 0x3af   :  { %6886 = vmatpush1.bf16.msra.mxu0 %v10305_v28  ;;  %7542 = vmatpush1.bf16.msra.mxu1 %v10308_v29  ;;  %v10400_v28 = vld [vmem:[%s13682_s1 + $0x1f48] ss:$16 sps:$4 sm:$0xff]   ;;  %v10405_v29 = vld [vmem:[%s13682_s1 + $0x1f64] ss:$16 sps:$4 sm:$0xff]  }
 0x3b0   :  { %6887 = vmatprep.subr.bf16.mxu0 %v10313_v24  ;;  %7543 = vmatprep.subr.bf16.mxu1 %v10316_v31  ;;  %v10408_v24 = vld [vmem:[%s13682_s1 + $0x1f6c] ss:$16 sps:$4 sm:$0xff]   ;;  %v10403_v31 = vld [vmem:[%s13682_s1 + $0x1f60] ss:$16 sps:$4 sm:$0xff]  }
 0x3b3   :  { %6888 = vmatpush1.bf16.msra.mxu0 %v10311_v32  ;;  %7544 = vmatpush1.bf16.msra.mxu1 %v10314_v33  ;;  %v10406_v32 = vld [vmem:[%s13682_s1 + $0x1f68] ss:$16 sps:$4 sm:$0xff]   ;;  %v10411_v33 = vld [vmem:[%s13682_s1 + $0x1f84] ss:$16 sps:$4 sm:$0xff]  }
 0x3b4   :  { %6889 = vmatprep.subr.bf16.mxu0 %v10319_v34  ;;  %7545 = vmatprep.subr.bf16.mxu1 %v10322_v35  ;;  %v10414_v34 = vld [vmem:[%s13682_s1 + $0x1f8c] ss:$16 sps:$4 sm:$0xff]   ;;  %v10409_v35 = vld [vmem:[%s13682_s1 + $0x1f80] ss:$16 sps:$4 sm:$0xff]  }
 0x3b7   :  { %6890 = vmatpush1.bf16.msra.mxu0 %v10317_v30  ;;  %7546 = vmatpush1.bf16.msra.mxu1 %v10320_v37  ;;  %v10412_v30 = vld [vmem:[%s13682_s1 + $0x1f88] ss:$16 sps:$4 sm:$0xff]   ;;  %v10417_v37 = vld [vmem:[%s13682_s1 + $0x1fa4] ss:$16 sps:$4 sm:$0xff]  }
 0x3b8   :  { %6891 = vmatprep.subr.bf16.mxu0 %v10325_v38  ;;  %7547 = vmatprep.subr.bf16.mxu1 %v10328_v27  ;;  %v10420_v38 = vld [vmem:[%s13682_s1 + $0x1fac] ss:$16 sps:$4 sm:$0xff]   ;;  %v10415_v27 = vld [vmem:[%s13682_s1 + $0x1fa0] ss:$16 sps:$4 sm:$0xff]  }
 0x3bb   :  { %6892 = vmatpush1.bf16.msra.mxu0 %v10323_v40  ;;  %7548 = vmatpush1.bf16.msra.mxu1 %v10326_v41  ;;  %v10418_v40 = vld [vmem:[%s13682_s1 + $0x1fa8] ss:$16 sps:$4 sm:$0xff]   ;;  %v10423_v41 = vld [vmem:[%s13682_s1 + $0x1fc4] ss:$16 sps:$4 sm:$0xff]  }
 0x3bc   :  { %6893 = vmatprep.subr.bf16.mxu0 %v10331_v36  ;;  %7549 = vmatprep.subr.bf16.mxu1 %v10334_v43  ;;  %v10426_v36 = vld [vmem:[%s13682_s1 + $0x1fcc] ss:$16 sps:$4 sm:$0xff]   ;;  %v10421_v43 = vld [vmem:[%s13682_s1 + $0x1fc0] ss:$16 sps:$4 sm:$0xff]  }
 0x3bf   :  { %6894 = vmatpush1.bf16.msra.mxu0 %v10329_v44  ;;  %7550 = vmatpush1.bf16.msra.mxu1 %v10332_v39  ;;  %v10424_v44 = vld [vmem:[%s13682_s1 + $0x1fc8] ss:$16 sps:$4 sm:$0xff]   ;;  %v10429_v39 = vld [vmem:[%s13682_s1 + $0x1fe4] ss:$16 sps:$4 sm:$0xff]  }
 0x3c0   :  { %6904 = vmatprep.subr.bf16.mxu0 %v10339_v46  ;;  %7560 = vmatprep.subr.bf16.mxu1 %v10342_v47  ;;  %v10432_v46 = vld [vmem:[%s13682_s1 + $0x1fec] ss:$16 sps:$4 sm:$0xff]   ;;  %v10427_v47 = vld [vmem:[%s13682_s1 + $0x1fe0] ss:$16 sps:$4 sm:$0xff]  }
 0x3c2   :  { %6896 = vmatmul.mubr.bf16.vlgmr.msra.gmra.mrb[0].mxu0 %v7715_v42  ;;  %7552 = vmatmul.mubr.bf16.vlgmr.msra.gmra.mrb[0].mxu1 %v7715_v42  ;;  %v10430_v42 = vld [vmem:[%s13682_s1 + $0x1fe8] ss:$16 sps:$4 sm:$0xff]  }
 0x3c3   :  { %6905 = vmatpush1.bf16.msra.mxu0 %v10337_v49  ;;  %7561 = vmatpush1.bf16.msra.mxu1 %v10340_v50  ;;  %v7717_v49 = vcombine.low %v13478_v48, %v13478_v48  ;;  %v7603_v50 = vlaneseq }
 0x3c4   :  { %6906 = vmatprep.subr.bf16.mxu0 %v10345_v45  ;;  %7562 = vmatprep.subr.bf16.mxu1 %v10348_v51 }
 0x3c5   :  { %6936 = vmatprep.mubr.bf16.mxu0 %v7718_v52  ;;  %7592 = vmatprep.mubr.bf16.mxu1 %v7718_v52  ;;  %v7604_v45 = vshrl.u32 %v7603_v50, 7 }
 0x3c7   :  { %6907 = vmatpush1.bf16.msra.mxu0 %v10343_v53  ;;  %7563 = vmatpush1.bf16.msra.mxu1 %v10346_v54  ;;  %v7605_v51 = vsub.s32 0, %v7604_v45  ;;  %v7613_v52 = vsub.s32 2, %v7604_v45  ;;  %v7601_v53 = vld [vmem:[%s13684_s2] sm:$0xf]  ;;  %v7609_v54 = vsub.s32 1, %v7604_v45 }
 0x3c8   :  { %6908 = vmatprep.subr.bf16.mxu0 %v10351_v55  ;;  %7564 = vmatprep.subr.bf16.mxu1 %v10354_v56  ;;  %v7617_v55 = vsub.s32 3, %v7604_v45  ;;  %v7627_v56 = vld [vmem:[%s13685_s3] sm:$0xf] }
 0x3c9   :  { %v7614_v48 = vrot.slane %v7601_v53, %v7613_v52 }
 0x3cb   :  { %6909 = vmatpush1.bf16.msra.mxu0 %v10349_v57  ;;  %7565 = vmatpush1.bf16.msra.mxu1 %v10352_v58  ;;  %v7606_v57 = vrot.slane %v7601_v53, %v7605_v51  ;;  %v7610_v58 = vrot.slane %v7601_v53, %v7609_v54 }
 0x3cc   :  { %6910 = vmatprep.subr.bf16.mxu0 %v10357_v59  ;;  %7566 = vmatprep.subr.bf16.mxu1 %v10360_v60  ;;  %v7618_v59 = vrot.slane %v7601_v53, %v7617_v55  ;;  %v7632_v60 = vrot.slane %v7627_v56, %v7605_v51 }
 0x3cf   :  { %6911 = vmatpush1.bf16.msra.mxu0 %v10355_v61  ;;  %7567 = vmatpush1.bf16.msra.mxu1 %v10358_v62  ;;  %v7640_v61 = vrot.slane %v7627_v56, %v7613_v52 }
 0x3d0   :  { %6912 = vmatprep.subr.bf16.mxu0 %v10363_v63  ;;  %7568 = vmatprep.subr.bf16.mxu1 %v10366_v0  ;;  %v7636_v0 = vrot.slane %v7627_v56, %v7609_v54 }
 0x3d3   :  { %6913 = vmatpush1.bf16.msra.mxu0 %v10361_v1  ;;  %7569 = vmatpush1.bf16.msra.mxu1 %v10364_v2  ;;  %v7644_v1 = vrot.slane %v7627_v56, %v7617_v55 }
 0x3d4   :  { %6914 = vmatprep.subr.bf16.mxu0 %v10369_v3  ;;  %7570 = vmatprep.subr.bf16.mxu1 %v10372_v4 }
 0x3d7   :  { %6915 = vmatpush1.bf16.msra.mxu0 %v10367_v5  ;;  %7571 = vmatpush1.bf16.msra.mxu1 %v10370_v6 }
 0x3d8   :  { %6916 = vmatprep.subr.bf16.mxu0 %v10375_v7  ;;  %7572 = vmatprep.subr.bf16.mxu1 %v10378_v8 }
 0x3db   :  { %6917 = vmatpush1.bf16.msra.mxu0 %v10373_v9  ;;  %7573 = vmatpush1.bf16.msra.mxu1 %v10376_v10 }
 0x3dc   :  { %6918 = vmatprep.subr.bf16.mxu0 %v10381_v12  ;;  %7574 = vmatprep.subr.bf16.mxu1 %v10384_v13 }
 0x3df   :  { %6919 = vmatpush1.bf16.msra.mxu0 %v10379_v15  ;;  %7575 = vmatpush1.bf16.msra.mxu1 %v10382_v11 }
 0x3e0   :  { %6920 = vmatprep.subr.bf16.mxu0 %v10387_v17  ;;  %7576 = vmatprep.subr.bf16.mxu1 %v10390_v14 }
 0x3e3   :  { %6921 = vmatpush1.bf16.msra.mxu0 %v10385_v19  ;;  %7577 = vmatpush1.bf16.msra.mxu1 %v10388_v20 }
 0x3e4   :  { %6922 = vmatprep.subr.bf16.mxu0 %v10393_v16  ;;  %7578 = vmatprep.subr.bf16.mxu1 %v10396_v22 }
 0x3e7   :  { %6923 = vmatpush1.bf16.msra.mxu0 %v10391_v23  ;;  %7579 = vmatpush1.bf16.msra.mxu1 %v10394_v18 }
 0x3e8   :  { %6924 = vmatprep.subr.bf16.mxu0 %v10399_v25  ;;  %7580 = vmatprep.subr.bf16.mxu1 %v10402_v26 }
 0x3eb   :  { %6925 = vmatpush1.bf16.msra.mxu0 %v10397_v21  ;;  %7581 = vmatpush1.bf16.msra.mxu1 %v10400_v28 }
 0x3ec   :  { %6926 = vmatprep.subr.bf16.mxu0 %v10405_v29  ;;  %7582 = vmatprep.subr.bf16.mxu1 %v10408_v24 }
 0x3ef   :  { %6927 = vmatpush1.bf16.msra.mxu0 %v10403_v31  ;;  %7583 = vmatpush1.bf16.msra.mxu1 %v10406_v32 }
 0x3f0   :  { %6928 = vmatprep.subr.bf16.mxu0 %v10411_v33  ;;  %7584 = vmatprep.subr.bf16.mxu1 %v10414_v34 }
 0x3f3   :  { %6929 = vmatpush1.bf16.msra.mxu0 %v10409_v35  ;;  %7585 = vmatpush1.bf16.msra.mxu1 %v10412_v30 }
 0x3f4   :  { %6930 = vmatprep.subr.bf16.mxu0 %v10417_v37  ;;  %7586 = vmatprep.subr.bf16.mxu1 %v10420_v38 }
 0x3f7   :  { %6931 = vmatpush1.bf16.msra.mxu0 %v10415_v27  ;;  %7587 = vmatpush1.bf16.msra.mxu1 %v10418_v40 }
 0x3f8   :  { %6932 = vmatprep.subr.bf16.mxu0 %v10423_v41  ;;  %7588 = vmatprep.subr.bf16.mxu1 %v10426_v36 }
 0x3fb   :  { %6933 = vmatpush1.bf16.msra.mxu0 %v10421_v43  ;;  %7589 = vmatpush1.bf16.msra.mxu1 %v10424_v44 }
 0x3fc   :  { %6934 = vmatprep.subr.bf16.mxu0 %v10429_v39  ;;  %7590 = vmatprep.subr.bf16.mxu1 %v10432_v46 }
 0x3ff   :  { %6935 = vmatpush1.bf16.msra.mxu0 %v10427_v47  ;;  %7591 = vmatpush1.bf16.msra.mxu1 %v10430_v42 }
 0x402   :  { %6937 = vmatmul.mubr.bf16.vlgmr.msra.gmra.mrb[0].mxu0 %v7717_v49  ;;  %7593 = vmatmul.mubr.bf16.vlgmr.msra.gmra.mrb[0].mxu1 %v7717_v49 }
 0x4d5   :  { %v6938_v62 = vpop.f32.mrb[0].mxu0  ;;  %v7594_v63 = vpop.f32.mrb[0].mxu1 }
 0x4d6   :  { %v7623_v2 = vmul.f32 %v7606_v57, %v6938_v62  ;;  %v7625_v3 = vmul.f32 %v7614_v48, %v7594_v63  ;;  %v6940_v4 = vpop.f32.mrb[1].mxu0  ;;  %v7596_v5 = vpop.f32.mrb[1].mxu1 }
 0x4d7   :  { %v7624_v6 = vmul.f32 %v7610_v58, %v6940_v4  ;;  %v7626_v7 = vmul.f32 %v7618_v59, %v7596_v5  ;;  %v6942_v8 = vpop.f32.mrb[2].mxu0  ;;  %v7598_v9 = vpop.f32.mrb[2].mxu1 }
 0x4d8   :  { %v7649_v10 = vadd.f32 %v7632_v60, %v7623_v2  ;;  %v7651_v12 = vadd.f32 %v7640_v61, %v7625_v3  ;;  %v6943_v13 = vpop.f32.mrb[3].mxu0  ;;  %v7599_v15 = vpop.f32.mrb[3].mxu1 }
 0x4d9   :  { %v7650_v11 = vadd.f32 %v7636_v0, %v7624_v6  ;;  %v7652_v17 = vadd.f32 %v7644_v1, %v7626_v7 }
 0x4da   :  { %vm7653_vm0 = vcmp.gt.f32.partialorder %v7649_v10, 0.0  ;;  %v7657_v14 = vmul.f32 0.2, %v7649_v10  ;;  %vm7655_vm1 = vcmp.gt.f32.partialorder %v7651_v12, 0.0  ;;  %v7659_v19 = vmul.f32 0.2, %v7651_v12 }
 0x4db   :  { %vm7654_vm2 = vcmp.gt.f32.partialorder %v7650_v11, 0.0  ;;  %v7658_v20 = vmul.f32 0.2, %v7650_v11  ;;  %vm7656_vm3 = vcmp.gt.f32.partialorder %v7652_v17, 0.0  ;;  %v7660_v16 = vmul.f32 0.2, %v7652_v17 }
 0x4dc   :  { %v7661_v22 = vsel %vm7653_vm0, %v7649_v10, %v7657_v14  ;;  %v7663_v23 = vsel %vm7655_vm1, %v7651_v12, %v7659_v19 }
 0x4dd   :  { %v7662_v18 = vsel %vm7654_vm2, %v7650_v11, %v7658_v20  ;;  %v7664_v25 = vsel %vm7656_vm3, %v7652_v17, %v7660_v16 }
 0x4de   :  { %v8745_v26 = vpack.c.bf16 %v7662_v18, %v7661_v22  ;;  %v8746_v21 = vpack.c.bf16 %v7664_v25, %v7663_v23 }
 0x4e0   :  { %7681 = vst [vmem:[%s13686_s4] sm:$0xff] %v8745_v26  ;;  %7682 = vst [vmem:[%s13686_s4 + $0x8] sm:$0xff] %v8746_v21 }

// kernel: encoder_forward.14
= control target key start
LH: loop header
LB: loop body
LE: loop exit
PB: predicated region body
PF: predicated region fallthrough
CT: control target
= control target key end

     0   :  { %s15376_s1 = inlined_call_operand.vmem [shape: bf16[4608,512], index: 1, kind: input, shape index: {}]   ;;  %s15377_s0 = inlined_call_operand.vmem [shape: bf16[8,4608], index: 0, kind: input, shape index: {}]   ;;  %s15378_s2 = inlined_call_operand.vmem [shape: f32[1,512], index: 2, kind: input, shape index: {}]   ;;  %s15379_s3 = inlined_call_operand.vmem [shape: f32[1,512], index: 3, kind: input, shape index: {}]   ;;  %s15380_s4 = inlined_call_operand.vmem [shape: bf16[8,512], index: 4, kind: output, shape index: {}]  }
   0x1   :  { %v9963_v0 = vld [vmem:[%s15376_s1 + $0x4] ss:$16 sps:$4 sm:$0xff]   ;;  %v9965_v1 = vld [vmem:[%s15376_s1 + $0xc] ss:$16 sps:$4 sm:$0xff]   ;;  %v9967_v2 = vld [vmem:[%s15376_s1] ss:$16 sps:$4 sm:$0xff]  }
   0x2   :  { %7073 = vmatprep.subr.bf16.mxu0 %v9963_v0  ;;  %v9968_v3 = vld [vmem:[%s15376_s1 + $0x8] ss:$16 sps:$4 sm:$0xff]   ;;  %7811 = vmatprep.subr.bf16.mxu1 %v9965_v1  ;;  %v9969_v4 = vld [vmem:[%s15376_s1 + $0x24] ss:$16 sps:$4 sm:$0xff]   ;;  %v9971_v5 = vld [vmem:[%s15376_s1 + $0x2c] ss:$16 sps:$4 sm:$0xff]  }
   0x3   :  { %7074 = vmatpush1.bf16.msra.mxu0 %v9967_v2  ;;  %7812 = vmatpush1.bf16.msra.mxu1 %v9968_v3  ;;  %v9973_v6 = vld [vmem:[%s15376_s1 + $0x20] ss:$16 sps:$4 sm:$0xff]   ;;  %v9974_v7 = vld [vmem:[%s15376_s1 + $0x28] ss:$16 sps:$4 sm:$0xff]   ;;  %v9975_v8 = vld [vmem:[%s15376_s1 + $0x44] ss:$16 sps:$4 sm:$0xff]  }
   0x4   :  { %7075 = vmatprep.subr.bf16.mxu0 %v9969_v4  ;;  %7813 = vmatprep.subr.bf16.mxu1 %v9971_v5  ;;  %v9977_v9 = vld [vmem:[%s15376_s1 + $0x4c] ss:$16 sps:$4 sm:$0xff]   ;;  %v9979_v10 = vld [vmem:[%s15376_s1 + $0x40] ss:$16 sps:$4 sm:$0xff]   ;;  %v9980_v11 = vld [vmem:[%s15376_s1 + $0x48] ss:$16 sps:$4 sm:$0xff]  }
   0x5   :  { %v9981_v12 = vld [vmem:[%s15376_s1 + $0x64] ss:$16 sps:$4 sm:$0xff]   ;;  %v9983_v13 = vld [vmem:[%s15376_s1 + $0x6c] ss:$16 sps:$4 sm:$0xff]   ;;  %v9985_v14 = vld [vmem:[%s15376_s1 + $0x60] ss:$16 sps:$4 sm:$0xff]  }
   0x6   :  { %v9986_v15 = vld [vmem:[%s15376_s1 + $0x68] ss:$16 sps:$4 sm:$0xff]   ;;  %v9987_v16 = vld [vmem:[%s15376_s1 + $0x84] ss:$16 sps:$4 sm:$0xff]   ;;  %v9989_v17 = vld [vmem:[%s15376_s1 + $0x8c] ss:$16 sps:$4 sm:$0xff]  }
   0x7   :  { %7076 = vmatpush1.bf16.msra.mxu0 %v9973_v6  ;;  %7814 = vmatpush1.bf16.msra.mxu1 %v9974_v7  ;;  %v9991_v18 = vld [vmem:[%s15376_s1 + $0x80] ss:$16 sps:$4 sm:$0xff]   ;;  %v9992_v19 = vld [vmem:[%s15376_s1 + $0x88] ss:$16 sps:$4 sm:$0xff]   ;;  %v9993_v20 = vld [vmem:[%s15376_s1 + $0xa4] ss:$16 sps:$4 sm:$0xff]  }
   0x8   :  { %7077 = vmatprep.subr.bf16.mxu0 %v9975_v8  ;;  %7815 = vmatprep.subr.bf16.mxu1 %v9977_v9  ;;  %v9995_v21 = vld [vmem:[%s15376_s1 + $0xac] ss:$16 sps:$4 sm:$0xff]   ;;  %v9997_v22 = vld [vmem:[%s15376_s1 + $0xa0] ss:$16 sps:$4 sm:$0xff]   ;;  %v9998_v23 = vld [vmem:[%s15376_s1 + $0xa8] ss:$16 sps:$4 sm:$0xff]  }
   0x9   :  { %v9999_v24 = vld [vmem:[%s15376_s1 + $0xc4] ss:$16 sps:$4 sm:$0xff]   ;;  %v10001_v25 = vld [vmem:[%s15376_s1 + $0xcc] ss:$16 sps:$4 sm:$0xff]   ;;  %v10003_v26 = vld [vmem:[%s15376_s1 + $0xc0] ss:$16 sps:$4 sm:$0xff]  }
   0xa   :  { %v10004_v27 = vld [vmem:[%s15376_s1 + $0xc8] ss:$16 sps:$4 sm:$0xff]   ;;  %v10005_v28 = vld [vmem:[%s15376_s1 + $0xe4] ss:$16 sps:$4 sm:$0xff]   ;;  %v10007_v29 = vld [vmem:[%s15376_s1 + $0xec] ss:$16 sps:$4 sm:$0xff]  }
   0xb   :  { %7078 = vmatpush1.bf16.msra.mxu0 %v9979_v10  ;;  %7816 = vmatpush1.bf16.msra.mxu1 %v9980_v11  ;;  %v10009_v30 = vld [vmem:[%s15376_s1 + $0xe0] ss:$16 sps:$4 sm:$0xff]   ;;  %v10010_v31 = vld [vmem:[%s15376_s1 + $0xe8] ss:$16 sps:$4 sm:$0xff]   ;;  %v10011_v32 = vld [vmem:[%s15376_s1 + $0x104] ss:$16 sps:$4 sm:$0xff]  }
   0xc   :  { %7079 = vmatprep.subr.bf16.mxu0 %v9981_v12  ;;  %7817 = vmatprep.subr.bf16.mxu1 %v9983_v13  ;;  %v10013_v33 = vld [vmem:[%s15376_s1 + $0x10c] ss:$16 sps:$4 sm:$0xff]   ;;  %v10015_v34 = vld [vmem:[%s15376_s1 + $0x100] ss:$16 sps:$4 sm:$0xff]   ;;  %v10016_v35 = vld [vmem:[%s15376_s1 + $0x108] ss:$16 sps:$4 sm:$0xff]  }
   0xd   :  { %v10017_v36 = vld [vmem:[%s15376_s1 + $0x124] ss:$16 sps:$4 sm:$0xff]   ;;  %v10019_v37 = vld [vmem:[%s15376_s1 + $0x12c] ss:$16 sps:$4 sm:$0xff]   ;;  %v10021_v38 = vld [vmem:[%s15376_s1 + $0x120] ss:$16 sps:$4 sm:$0xff]  }
   0xe   :  { %v10022_v39 = vld [vmem:[%s15376_s1 + $0x128] ss:$16 sps:$4 sm:$0xff]   ;;  %v10023_v40 = vld [vmem:[%s15376_s1 + $0x144] ss:$16 sps:$4 sm:$0xff]   ;;  %v10025_v41 = vld [vmem:[%s15376_s1 + $0x14c] ss:$16 sps:$4 sm:$0xff]  }
   0xf   :  { %7080 = vmatpush1.bf16.msra.mxu0 %v9985_v14  ;;  %7818 = vmatpush1.bf16.msra.mxu1 %v9986_v15  ;;  %v10027_v42 = vld [vmem:[%s15376_s1 + $0x140] ss:$16 sps:$4 sm:$0xff]   ;;  %v10028_v43 = vld [vmem:[%s15376_s1 + $0x148] ss:$16 sps:$4 sm:$0xff]   ;;  %v10029_v44 = vld [vmem:[%s15376_s1 + $0x164] ss:$16 sps:$4 sm:$0xff]  }
  0x10   :  { %7081 = vmatprep.subr.bf16.mxu0 %v9987_v16  ;;  %7819 = vmatprep.subr.bf16.mxu1 %v9989_v17  ;;  %v10031_v45 = vld [vmem:[%s15376_s1 + $0x16c] ss:$16 sps:$4 sm:$0xff]   ;;  %v17_v46 = vld [vmem:[%s15377_s0] sm:$0xff]  ;;  %v10034_v49 = vld [vmem:[%s15376_s1 + $0x168] ss:$16 sps:$4 sm:$0xff]  }
  0x11   :  { %v10033_v47 = vld [vmem:[%s15376_s1 + $0x160] ss:$16 sps:$4 sm:$0xff]   ;;  %v8636_v48 = vcombine.high %v17_v46, %v17_v46  ;;  %v10035_v50 = vld [vmem:[%s15376_s1 + $0x184] ss:$16 sps:$4 sm:$0xff]   ;;  %v10037_v51 = vld [vmem:[%s15376_s1 + $0x18c] ss:$16 sps:$4 sm:$0xff]   ;;  %v8635_v4 = vcombine.low %v17_v46, %v17_v46 }
  0x12   :  { %v10039_v52 = vld [vmem:[%s15376_s1 + $0x180] ss:$16 sps:$4 sm:$0xff]   ;;  %v10040_v53 = vld [vmem:[%s15376_s1 + $0x188] ss:$16 sps:$4 sm:$0xff]   ;;  %v10041_v54 = vld [vmem:[%s15376_s1 + $0x1a4] ss:$16 sps:$4 sm:$0xff]  }
  0x13   :  { %7082 = vmatpush1.bf16.msra.mxu0 %v9991_v18  ;;  %7820 = vmatpush1.bf16.msra.mxu1 %v9992_v19  ;;  %v10043_v55 = vld [vmem:[%s15376_s1 + $0x1ac] ss:$16 sps:$4 sm:$0xff]   ;;  %v10045_v56 = vld [vmem:[%s15376_s1 + $0x1a0] ss:$16 sps:$4 sm:$0xff]   ;;  %v10046_v57 = vld [vmem:[%s15376_s1 + $0x1a8] ss:$16 sps:$4 sm:$0xff]  }
  0x14   :  { %7083 = vmatprep.subr.bf16.mxu0 %v9993_v20  ;;  %7821 = vmatprep.subr.bf16.mxu1 %v9995_v21  ;;  %v10047_v58 = vld [vmem:[%s15376_s1 + $0x1c4] ss:$16 sps:$4 sm:$0xff]   ;;  %v10049_v59 = vld [vmem:[%s15376_s1 + $0x1cc] ss:$16 sps:$4 sm:$0xff]   ;;  %v10051_v60 = vld [vmem:[%s15376_s1 + $0x1c0] ss:$16 sps:$4 sm:$0xff]  }
  0x15   :  { %7105 = vmatprep.mubr.bf16.mxu0 %v8636_v48  ;;  %7843 = vmatprep.mubr.bf16.mxu1 %v8636_v48  ;;  %v10052_v61 = vld [vmem:[%s15376_s1 + $0x1c8] ss:$16 sps:$4 sm:$0xff]   ;;  %v10053_v62 = vld [vmem:[%s15376_s1 + $0x1e4] ss:$16 sps:$4 sm:$0xff]   ;;  %v10055_v63 = vld [vmem:[%s15376_s1 + $0x1ec] ss:$16 sps:$4 sm:$0xff]  }
  0x16   :  { %v10057_v0 = vld [vmem:[%s15376_s1 + $0x1e0] ss:$16 sps:$4 sm:$0xff]   ;;  %v10058_v1 = vld [vmem:[%s15376_s1 + $0x1e8] ss:$16 sps:$4 sm:$0xff]   ;;  %v10063_v2 = vld [vmem:[%s15376_s1 + $0x204] ss:$16 sps:$4 sm:$0xff]  }
  0x17   :  { %7084 = vmatpush1.bf16.msra.mxu0 %v9997_v22  ;;  %7822 = vmatpush1.bf16.msra.mxu1 %v9998_v23  ;;  %v10066_v3 = vld [vmem:[%s15376_s1 + $0x20c] ss:$16 sps:$4 sm:$0xff]   ;;  %v10061_v5 = vld [vmem:[%s15376_s1 + $0x200] ss:$16 sps:$4 sm:$0xff]   ;;  %v10064_v6 = vld [vmem:[%s15376_s1 + $0x208] ss:$16 sps:$4 sm:$0xff]  }
  0x18   :  { %7085 = vmatprep.subr.bf16.mxu0 %v9999_v24  ;;  %7823 = vmatprep.subr.bf16.mxu1 %v10001_v25  ;;  %v10069_v7 = vld [vmem:[%s15376_s1 + $0x224] ss:$16 sps:$4 sm:$0xff]   ;;  %v10072_v8 = vld [vmem:[%s15376_s1 + $0x22c] ss:$16 sps:$4 sm:$0xff]   ;;  %v10067_v9 = vld [vmem:[%s15376_s1 + $0x220] ss:$16 sps:$4 sm:$0xff]  }
  0x19   :  { %v10070_v10 = vld [vmem:[%s15376_s1 + $0x228] ss:$16 sps:$4 sm:$0xff]   ;;  %v10075_v11 = vld [vmem:[%s15376_s1 + $0x244] ss:$16 sps:$4 sm:$0xff]   ;;  %v10078_v12 = vld [vmem:[%s15376_s1 + $0x24c] ss:$16 sps:$4 sm:$0xff]  }
  0x1a   :  { %v10073_v13 = vld [vmem:[%s15376_s1 + $0x240] ss:$16 sps:$4 sm:$0xff]   ;;  %v10076_v14 = vld [vmem:[%s15376_s1 + $0x248] ss:$16 sps:$4 sm:$0xff]   ;;  %v10081_v15 = vld [vmem:[%s15376_s1 + $0x264] ss:$16 sps:$4 sm:$0xff]  }
  0x1b   :  { %7086 = vmatpush1.bf16.msra.mxu0 %v10003_v26  ;;  %7824 = vmatpush1.bf16.msra.mxu1 %v10004_v27  ;;  %v10084_v16 = vld [vmem:[%s15376_s1 + $0x26c] ss:$16 sps:$4 sm:$0xff]   ;;  %v10079_v17 = vld [vmem:[%s15376_s1 + $0x260] ss:$16 sps:$4 sm:$0xff]   ;;  %v10082_v18 = vld [vmem:[%s15376_s1 + $0x268] ss:$16 sps:$4 sm:$0xff]  }
  0x1c   :  { %7087 = vmatprep.subr.bf16.mxu0 %v10005_v28  ;;  %7825 = vmatprep.subr.bf16.mxu1 %v10007_v29  ;;  %v10087_v19 = vld [vmem:[%s15376_s1 + $0x284] ss:$16 sps:$4 sm:$0xff]   ;;  %v10090_v20 = vld [vmem:[%s15376_s1 + $0x28c] ss:$16 sps:$4 sm:$0xff]   ;;  %v10085_v21 = vld [vmem:[%s15376_s1 + $0x280] ss:$16 sps:$4 sm:$0xff]  }
  0x1d   :  { %v10088_v22 = vld [vmem:[%s15376_s1 + $0x288] ss:$16 sps:$4 sm:$0xff]   ;;  %v10093_v23 = vld [vmem:[%s15376_s1 + $0x2a4] ss:$16 sps:$4 sm:$0xff]   ;;  %v10096_v24 = vld [vmem:[%s15376_s1 + $0x2ac] ss:$16 sps:$4 sm:$0xff]  }
  0x1e   :  { %v10091_v25 = vld [vmem:[%s15376_s1 + $0x2a0] ss:$16 sps:$4 sm:$0xff]   ;;  %v10094_v26 = vld [vmem:[%s15376_s1 + $0x2a8] ss:$16 sps:$4 sm:$0xff]   ;;  %v10099_v27 = vld [vmem:[%s15376_s1 + $0x2c4] ss:$16 sps:$4 sm:$0xff]  }
  0x1f   :  { %7088 = vmatpush1.bf16.msra.mxu0 %v10009_v30  ;;  %7826 = vmatpush1.bf16.msra.mxu1 %v10010_v31  ;;  %v10102_v28 = vld [vmem:[%s15376_s1 + $0x2cc] ss:$16 sps:$4 sm:$0xff]   ;;  %v10097_v31 = vld [vmem:[%s15376_s1 + $0x2c0] ss:$16 sps:$4 sm:$0xff]   ;;  %v10124_v48 = vld [vmem:[%s15376_s1 + $0x348] ss:$16 sps:$4 sm:$0xff]  }
  0x20   :  { %7089 = vmatprep.subr.bf16.mxu0 %v10011_v32  ;;  %7827 = vmatprep.subr.bf16.mxu1 %v10013_v33  ;;  %v12028_v29 = vld [vmem:[%s15377_s0 + $0x8] sm:$0xff]  ;;  %v10105_v33 = vld [vmem:[%s15376_s1 + $0x2e4] ss:$16 sps:$4 sm:$0xff]  }
  0x21   :  { %v8638_v30 = vcombine.high %v12028_v29, %v12028_v29  ;;  %v10100_v32 = vld [vmem:[%s15376_s1 + $0x2c8] ss:$16 sps:$4 sm:$0xff]   ;;  %v10126_v46 = vld [vmem:[%s15376_s1 + $0x34c] ss:$16 sps:$4 sm:$0xff]  }
  0x23   :  { %7090 = vmatpush1.bf16.msra.mxu0 %v10015_v34  ;;  %7828 = vmatpush1.bf16.msra.mxu1 %v10016_v35  ;;  %v10108_v34 = vld [vmem:[%s15376_s1 + $0x2ec] ss:$16 sps:$4 sm:$0xff]   ;;  %v10103_v35 = vld [vmem:[%s15376_s1 + $0x2e0] ss:$16 sps:$4 sm:$0xff]  }
  0x24   :  { %7091 = vmatprep.subr.bf16.mxu0 %v10017_v36  ;;  %7829 = vmatprep.subr.bf16.mxu1 %v10019_v37  ;;  %v10106_v36 = vld [vmem:[%s15376_s1 + $0x2e8] ss:$16 sps:$4 sm:$0xff]   ;;  %v10111_v37 = vld [vmem:[%s15376_s1 + $0x304] ss:$16 sps:$4 sm:$0xff]  }
  0x27   :  { %7092 = vmatpush1.bf16.msra.mxu0 %v10021_v38  ;;  %7830 = vmatpush1.bf16.msra.mxu1 %v10022_v39  ;;  %v10114_v38 = vld [vmem:[%s15376_s1 + $0x30c] ss:$16 sps:$4 sm:$0xff]   ;;  %v10109_v39 = vld [vmem:[%s15376_s1 + $0x300] ss:$16 sps:$4 sm:$0xff]  }
  0x28   :  { %7093 = vmatprep.subr.bf16.mxu0 %v10023_v40  ;;  %7831 = vmatprep.subr.bf16.mxu1 %v10025_v41  ;;  %v10112_v40 = vld [vmem:[%s15376_s1 + $0x308] ss:$16 sps:$4 sm:$0xff]   ;;  %v10117_v41 = vld [vmem:[%s15376_s1 + $0x324] ss:$16 sps:$4 sm:$0xff]  }
  0x2b   :  { %7094 = vmatpush1.bf16.msra.mxu0 %v10027_v42  ;;  %7832 = vmatpush1.bf16.msra.mxu1 %v10028_v43  ;;  %v10120_v42 = vld [vmem:[%s15376_s1 + $0x32c] ss:$16 sps:$4 sm:$0xff]   ;;  %v10115_v43 = vld [vmem:[%s15376_s1 + $0x320] ss:$16 sps:$4 sm:$0xff]  }
  0x2c   :  { %7095 = vmatprep.subr.bf16.mxu0 %v10029_v44  ;;  %7833 = vmatprep.subr.bf16.mxu1 %v10031_v45  ;;  %v10118_v44 = vld [vmem:[%s15376_s1 + $0x328] ss:$16 sps:$4 sm:$0xff]   ;;  %v10123_v45 = vld [vmem:[%s15376_s1 + $0x344] ss:$16 sps:$4 sm:$0xff]  }
  0x2f   :  { %7096 = vmatpush1.bf16.msra.mxu0 %v10033_v47  ;;  %7834 = vmatpush1.bf16.msra.mxu1 %v10034_v49  ;;  %v10121_v47 = vld [vmem:[%s15376_s1 + $0x340] ss:$16 sps:$4 sm:$0xff]   ;;  %v10129_v49 = vld [vmem:[%s15376_s1 + $0x364] ss:$16 sps:$4 sm:$0xff]  }
  0x30   :  { %7097 = vmatprep.subr.bf16.mxu0 %v10035_v50  ;;  %7835 = vmatprep.subr.bf16.mxu1 %v10037_v51  ;;  %v10132_v50 = vld [vmem:[%s15376_s1 + $0x36c] ss:$16 sps:$4 sm:$0xff]   ;;  %v10127_v51 = vld [vmem:[%s15376_s1 + $0x360] ss:$16 sps:$4 sm:$0xff]  }
  0x33   :  { %7098 = vmatpush1.bf16.msra.mxu0 %v10039_v52  ;;  %7836 = vmatpush1.bf16.msra.mxu1 %v10040_v53  ;;  %v10130_v52 = vld [vmem:[%s15376_s1 + $0x368] ss:$16 sps:$4 sm:$0xff]   ;;  %v10135_v53 = vld [vmem:[%s15376_s1 + $0x384] ss:$16 sps:$4 sm:$0xff]  }
  0x34   :  { %7099 = vmatprep.subr.bf16.mxu0 %v10041_v54  ;;  %7837 = vmatprep.subr.bf16.mxu1 %v10043_v55  ;;  %v10138_v54 = vld [vmem:[%s15376_s1 + $0x38c] ss:$16 sps:$4 sm:$0xff]   ;;  %v10133_v55 = vld [vmem:[%s15376_s1 + $0x380] ss:$16 sps:$4 sm:$0xff]  }
  0x37   :  { %7100 = vmatpush1.bf16.msra.mxu0 %v10045_v56  ;;  %7838 = vmatpush1.bf16.msra.mxu1 %v10046_v57  ;;  %v10136_v56 = vld [vmem:[%s15376_s1 + $0x388] ss:$16 sps:$4 sm:$0xff]   ;;  %v10141_v57 = vld [vmem:[%s15376_s1 + $0x3a4] ss:$16 sps:$4 sm:$0xff]  }
  0x38   :  { %7101 = vmatprep.subr.bf16.mxu0 %v10047_v58  ;;  %7839 = vmatprep.subr.bf16.mxu1 %v10049_v59  ;;  %v10144_v58 = vld [vmem:[%s15376_s1 + $0x3ac] ss:$16 sps:$4 sm:$0xff]   ;;  %v10139_v59 = vld [vmem:[%s15376_s1 + $0x3a0] ss:$16 sps:$4 sm:$0xff]  }
  0x3b   :  { %7102 = vmatpush1.bf16.msra.mxu0 %v10051_v60  ;;  %7840 = vmatpush1.bf16.msra.mxu1 %v10052_v61  ;;  %v10142_v60 = vld [vmem:[%s15376_s1 + $0x3a8] ss:$16 sps:$4 sm:$0xff]   ;;  %v10147_v61 = vld [vmem:[%s15376_s1 + $0x3c4] ss:$16 sps:$4 sm:$0xff]  }
  0x3c   :  { %7103 = vmatprep.subr.bf16.mxu0 %v10053_v62  ;;  %7841 = vmatprep.subr.bf16.mxu1 %v10055_v63  ;;  %v10150_v62 = vld [vmem:[%s15376_s1 + $0x3cc] ss:$16 sps:$4 sm:$0xff]   ;;  %v10145_v63 = vld [vmem:[%s15376_s1 + $0x3c0] ss:$16 sps:$4 sm:$0xff]  }
  0x3f   :  { %7104 = vmatpush1.bf16.msra.mxu0 %v10057_v0  ;;  %7842 = vmatpush1.bf16.msra.mxu1 %v10058_v1  ;;  %v10148_v0 = vld [vmem:[%s15376_s1 + $0x3c8] ss:$16 sps:$4 sm:$0xff]   ;;  %v10153_v1 = vld [vmem:[%s15376_s1 + $0x3e4] ss:$16 sps:$4 sm:$0xff]  }
  0x40   :  { %7114 = vmatprep.subr.bf16.mxu0 %v10063_v2  ;;  %7852 = vmatprep.subr.bf16.mxu1 %v10066_v3  ;;  %v10156_v2 = vld [vmem:[%s15376_s1 + $0x3ec] ss:$16 sps:$4 sm:$0xff]   ;;  %v10151_v3 = vld [vmem:[%s15376_s1 + $0x3e0] ss:$16 sps:$4 sm:$0xff]  }
  0x42   :  { %7106 = vmatmul.mubr.bf16.vlgmr.msra.gmra.mrb[0].mxu0 %v8635_v4  ;;  %7844 = vmatmul.mubr.bf16.vlgmr.msra.gmra.mrb[0].mxu1 %v8635_v4  ;;  %v10154_v4 = vld [vmem:[%s15376_s1 + $0x3e8] ss:$16 sps:$4 sm:$0xff]  }
  0x43   :  { %7115 = vmatpush1.bf16.msra.mxu0 %v10061_v5  ;;  %7853 = vmatpush1.bf16.msra.mxu1 %v10064_v6  ;;  %v10161_v5 = vld [vmem:[%s15376_s1 + $0x404] ss:$16 sps:$4 sm:$0xff]   ;;  %v10164_v6 = vld [vmem:[%s15376_s1 + $0x40c] ss:$16 sps:$4 sm:$0xff]  }
  0x44   :  { %7116 = vmatprep.subr.bf16.mxu0 %v10069_v7  ;;  %7854 = vmatprep.subr.bf16.mxu1 %v10072_v8  ;;  %v8637_v7 = vcombine.low %v12028_v29, %v12028_v29  ;;  %v10159_v8 = vld [vmem:[%s15376_s1 + $0x400] ss:$16 sps:$4 sm:$0xff]   ;;  %v10194_v29 = vld [vmem:[%s15376_s1 + $0x4ac] ss:$16 sps:$4 sm:$0xff]  }
  0x45   :  { %7146 = vmatprep.mubr.bf16.mxu0 %v8638_v30  ;;  %7884 = vmatprep.mubr.bf16.mxu1 %v8638_v30  ;;  %v10189_v30 = vld [vmem:[%s15376_s1 + $0x4a0] ss:$16 sps:$4 sm:$0xff]  }
  0x47   :  { %7117 = vmatpush1.bf16.msra.mxu0 %v10067_v9  ;;  %7855 = vmatpush1.bf16.msra.mxu1 %v10070_v10  ;;  %v10162_v9 = vld [vmem:[%s15376_s1 + $0x408] ss:$16 sps:$4 sm:$0xff]   ;;  %v10167_v10 = vld [vmem:[%s15376_s1 + $0x424] ss:$16 sps:$4 sm:$0xff]  }
  0x48   :  { %7118 = vmatprep.subr.bf16.mxu0 %v10075_v11  ;;  %7856 = vmatprep.subr.bf16.mxu1 %v10078_v12  ;;  %v12166_v11 = vld [vmem:[%s15377_s0 + $0x10] sm:$0xff]  ;;  %v10170_v12 = vld [vmem:[%s15376_s1 + $0x42c] ss:$16 sps:$4 sm:$0xff]  }
  0x4b   :  { %7119 = vmatpush1.bf16.msra.mxu0 %v10073_v13  ;;  %7857 = vmatpush1.bf16.msra.mxu1 %v10076_v14  ;;  %v8640_v13 = vcombine.high %v12166_v11, %v12166_v11  ;;  %v10165_v14 = vld [vmem:[%s15376_s1 + $0x420] ss:$16 sps:$4 sm:$0xff]  }
  0x4c   :  { %7120 = vmatprep.subr.bf16.mxu0 %v10081_v15  ;;  %7858 = vmatprep.subr.bf16.mxu1 %v10084_v16  ;;  %v10168_v15 = vld [vmem:[%s15376_s1 + $0x428] ss:$16 sps:$4 sm:$0xff]   ;;  %v10173_v16 = vld [vmem:[%s15376_s1 + $0x444] ss:$16 sps:$4 sm:$0xff]  }
  0x4f   :  { %7121 = vmatpush1.bf16.msra.mxu0 %v10079_v17  ;;  %7859 = vmatpush1.bf16.msra.mxu1 %v10082_v18  ;;  %v10176_v17 = vld [vmem:[%s15376_s1 + $0x44c] ss:$16 sps:$4 sm:$0xff]   ;;  %v10171_v18 = vld [vmem:[%s15376_s1 + $0x440] ss:$16 sps:$4 sm:$0xff]  }
  0x50   :  { %7122 = vmatprep.subr.bf16.mxu0 %v10087_v19  ;;  %7860 = vmatprep.subr.bf16.mxu1 %v10090_v20  ;;  %v10174_v19 = vld [vmem:[%s15376_s1 + $0x448] ss:$16 sps:$4 sm:$0xff]   ;;  %v10179_v20 = vld [vmem:[%s15376_s1 + $0x464] ss:$16 sps:$4 sm:$0xff]  }
  0x53   :  { %7123 = vmatpush1.bf16.msra.mxu0 %v10085_v21  ;;  %7861 = vmatpush1.bf16.msra.mxu1 %v10088_v22  ;;  %v10182_v21 = vld [vmem:[%s15376_s1 + $0x46c] ss:$16 sps:$4 sm:$0xff]   ;;  %v10177_v22 = vld [vmem:[%s15376_s1 + $0x460] ss:$16 sps:$4 sm:$0xff]  }
  0x54   :  { %7124 = vmatprep.subr.bf16.mxu0 %v10093_v23  ;;  %7862 = vmatprep.subr.bf16.mxu1 %v10096_v24  ;;  %v10180_v23 = vld [vmem:[%s15376_s1 + $0x468] ss:$16 sps:$4 sm:$0xff]   ;;  %v10185_v24 = vld [vmem:[%s15376_s1 + $0x484] ss:$16 sps:$4 sm:$0xff]  }
  0x57   :  { %7125 = vmatpush1.bf16.msra.mxu0 %v10091_v25  ;;  %7863 = vmatpush1.bf16.msra.mxu1 %v10094_v26  ;;  %v10188_v25 = vld [vmem:[%s15376_s1 + $0x48c] ss:$16 sps:$4 sm:$0xff]   ;;  %v10183_v26 = vld [vmem:[%s15376_s1 + $0x480] ss:$16 sps:$4 sm:$0xff]  }
  0x58   :  { %7126 = vmatprep.subr.bf16.mxu0 %v10099_v27  ;;  %7864 = vmatprep.subr.bf16.mxu1 %v10102_v28  ;;  %v10186_v27 = vld [vmem:[%s15376_s1 + $0x488] ss:$16 sps:$4 sm:$0xff]   ;;  %v10191_v28 = vld [vmem:[%s15376_s1 + $0x4a4] ss:$16 sps:$4 sm:$0xff]  }
  0x5b   :  { %7127 = vmatpush1.bf16.msra.mxu0 %v10097_v31  ;;  %7865 = vmatpush1.bf16.msra.mxu1 %v10100_v32  ;;  %v10192_v31 = vld [vmem:[%s15376_s1 + $0x4a8] ss:$16 sps:$4 sm:$0xff]   ;;  %v10197_v32 = vld [vmem:[%s15376_s1 + $0x4c4] ss:$16 sps:$4 sm:$0xff]  }
  0x5c   :  { %7128 = vmatprep.subr.bf16.mxu0 %v10105_v33  ;;  %7866 = vmatprep.subr.bf16.mxu1 %v10108_v34  ;;  %v10200_v33 = vld [vmem:[%s15376_s1 + $0x4cc] ss:$16 sps:$4 sm:$0xff]   ;;  %v10195_v34 = vld [vmem:[%s15376_s1 + $0x4c0] ss:$16 sps:$4 sm:$0xff]  }
  0x5f   :  { %7129 = vmatpush1.bf16.msra.mxu0 %v10103_v35  ;;  %7867 = vmatpush1.bf16.msra.mxu1 %v10106_v36  ;;  %v10198_v35 = vld [vmem:[%s15376_s1 + $0x4c8] ss:$16 sps:$4 sm:$0xff]   ;;  %v10203_v36 = vld [vmem:[%s15376_s1 + $0x4e4] ss:$16 sps:$4 sm:$0xff]  }
  0x60   :  { %7130 = vmatprep.subr.bf16.mxu0 %v10111_v37  ;;  %7868 = vmatprep.subr.bf16.mxu1 %v10114_v38  ;;  %v10206_v37 = vld [vmem:[%s15376_s1 + $0x4ec] ss:$16 sps:$4 sm:$0xff]   ;;  %v10201_v38 = vld [vmem:[%s15376_s1 + $0x4e0] ss:$16 sps:$4 sm:$0xff]  }
  0x63   :  { %7131 = vmatpush1.bf16.msra.mxu0 %v10109_v39  ;;  %7869 = vmatpush1.bf16.msra.mxu1 %v10112_v40  ;;  %v10204_v39 = vld [vmem:[%s15376_s1 + $0x4e8] ss:$16 sps:$4 sm:$0xff]   ;;  %v10209_v40 = vld [vmem:[%s15376_s1 + $0x504] ss:$16 sps:$4 sm:$0xff]  }
  0x64   :  { %7132 = vmatprep.subr.bf16.mxu0 %v10117_v41  ;;  %7870 = vmatprep.subr.bf16.mxu1 %v10120_v42  ;;  %v10212_v41 = vld [vmem:[%s15376_s1 + $0x50c] ss:$16 sps:$4 sm:$0xff]   ;;  %v10207_v42 = vld [vmem:[%s15376_s1 + $0x500] ss:$16 sps:$4 sm:$0xff]  }
  0x67   :  { %7133 = vmatpush1.bf16.msra.mxu0 %v10115_v43  ;;  %7871 = vmatpush1.bf16.msra.mxu1 %v10118_v44  ;;  %v10210_v43 = vld [vmem:[%s15376_s1 + $0x508] ss:$16 sps:$4 sm:$0xff]   ;;  %v10215_v44 = vld [vmem:[%s15376_s1 + $0x524] ss:$16 sps:$4 sm:$0xff]  }
  0x68   :  { %7134 = vmatprep.subr.bf16.mxu0 %v10123_v45  ;;  %7872 = vmatprep.subr.bf16.mxu1 %v10126_v46  ;;  %v10218_v45 = vld [vmem:[%s15376_s1 + $0x52c] ss:$16 sps:$4 sm:$0xff]   ;;  %v10213_v46 = vld [vmem:[%s15376_s1 + $0x520] ss:$16 sps:$4 sm:$0xff]  }
  0x6b   :  { %7135 = vmatpush1.bf16.msra.mxu0 %v10121_v47  ;;  %7873 = vmatpush1.bf16.msra.mxu1 %v10124_v48  ;;  %v10216_v47 = vld [vmem:[%s15376_s1 + $0x528] ss:$16 sps:$4 sm:$0xff]   ;;  %v10221_v48 = vld [vmem:[%s15376_s1 + $0x544] ss:$16 sps:$4 sm:$0xff]  }
  0x6c   :  { %7136 = vmatprep.subr.bf16.mxu0 %v10129_v49  ;;  %7874 = vmatprep.subr.bf16.mxu1 %v10132_v50  ;;  %v10224_v49 = vld [vmem:[%s15376_s1 + $0x54c] ss:$16 sps:$4 sm:$0xff]   ;;  %v10219_v50 = vld [vmem:[%s15376_s1 + $0x540] ss:$16 sps:$4 sm:$0xff]  }
  0x6f   :  { %7137 = vmatpush1.bf16.msra.mxu0 %v10127_v51  ;;  %7875 = vmatpush1.bf16.msra.mxu1 %v10130_v52  ;;  %v10222_v51 = vld [vmem:[%s15376_s1 + $0x548] ss:$16 sps:$4 sm:$0xff]   ;;  %v10227_v52 = vld [vmem:[%s15376_s1 + $0x564] ss:$16 sps:$4 sm:$0xff]  }
  0x70   :  { %7138 = vmatprep.subr.bf16.mxu0 %v10135_v53  ;;  %7876 = vmatprep.subr.bf16.mxu1 %v10138_v54  ;;  %v10230_v53 = vld [vmem:[%s15376_s1 + $0x56c] ss:$16 sps:$4 sm:$0xff]   ;;  %v10225_v54 = vld [vmem:[%s15376_s1 + $0x560] ss:$16 sps:$4 sm:$0xff]  }
  0x73   :  { %7139 = vmatpush1.bf16.msra.mxu0 %v10133_v55  ;;  %7877 = vmatpush1.bf16.msra.mxu1 %v10136_v56  ;;  %v10228_v55 = vld [vmem:[%s15376_s1 + $0x568] ss:$16 sps:$4 sm:$0xff]   ;;  %v10233_v56 = vld [vmem:[%s15376_s1 + $0x584] ss:$16 sps:$4 sm:$0xff]  }
  0x74   :  { %7140 = vmatprep.subr.bf16.mxu0 %v10141_v57  ;;  %7878 = vmatprep.subr.bf16.mxu1 %v10144_v58  ;;  %v10236_v57 = vld [vmem:[%s15376_s1 + $0x58c] ss:$16 sps:$4 sm:$0xff]   ;;  %v10231_v58 = vld [vmem:[%s15376_s1 + $0x580] ss:$16 sps:$4 sm:$0xff]  }
  0x77   :  { %7141 = vmatpush1.bf16.msra.mxu0 %v10139_v59  ;;  %7879 = vmatpush1.bf16.msra.mxu1 %v10142_v60  ;;  %v10234_v59 = vld [vmem:[%s15376_s1 + $0x588] ss:$16 sps:$4 sm:$0xff]   ;;  %v10239_v60 = vld [vmem:[%s15376_s1 + $0x5a4] ss:$16 sps:$4 sm:$0xff]  }
  0x78   :  { %7142 = vmatprep.subr.bf16.mxu0 %v10147_v61  ;;  %7880 = vmatprep.subr.bf16.mxu1 %v10150_v62  ;;  %v10242_v61 = vld [vmem:[%s15376_s1 + $0x5ac] ss:$16 sps:$4 sm:$0xff]   ;;  %v10237_v62 = vld [vmem:[%s15376_s1 + $0x5a0] ss:$16 sps:$4 sm:$0xff]  }
  0x7b   :  { %7143 = vmatpush1.bf16.msra.mxu0 %v10145_v63  ;;  %7881 = vmatpush1.bf16.msra.mxu1 %v10148_v0  ;;  %v10240_v63 = vld [vmem:[%s15376_s1 + $0x5a8] ss:$16 sps:$4 sm:$0xff]   ;;  %v10245_v0 = vld [vmem:[%s15376_s1 + $0x5c4] ss:$16 sps:$4 sm:$0xff]  }
  0x7c   :  { %7144 = vmatprep.subr.bf16.mxu0 %v10153_v1  ;;  %7882 = vmatprep.subr.bf16.mxu1 %v10156_v2  ;;  %v10248_v1 = vld [vmem:[%s15376_s1 + $0x5cc] ss:$16 sps:$4 sm:$0xff]   ;;  %v10243_v2 = vld [vmem:[%s15376_s1 + $0x5c0] ss:$16 sps:$4 sm:$0xff]  }
  0x7f   :  { %7145 = vmatpush1.bf16.msra.mxu0 %v10151_v3  ;;  %7883 = vmatpush1.bf16.msra.mxu1 %v10154_v4  ;;  %v10246_v3 = vld [vmem:[%s15376_s1 + $0x5c8] ss:$16 sps:$4 sm:$0xff]   ;;  %v10251_v4 = vld [vmem:[%s15376_s1 + $0x5e4] ss:$16 sps:$4 sm:$0xff]  }
  0x80   :  { %7155 = vmatprep.subr.bf16.mxu0 %v10161_v5  ;;  %7893 = vmatprep.subr.bf16.mxu1 %v10164_v6  ;;  %v10254_v5 = vld [vmem:[%s15376_s1 + $0x5ec] ss:$16 sps:$4 sm:$0xff]   ;;  %v10249_v6 = vld [vmem:[%s15376_s1 + $0x5e0] ss:$16 sps:$4 sm:$0xff]  }
  0x82   :  { %7147 = vmatmul.mubr.bf16.vlgmr.msra.gmra.mrb[0].mxu0 %v8637_v7  ;;  %7885 = vmatmul.mubr.bf16.vlgmr.msra.gmra.mrb[0].mxu1 %v8637_v7  ;;  %v10252_v7 = vld [vmem:[%s15376_s1 + $0x5e8] ss:$16 sps:$4 sm:$0xff]  }
  0x83   :  { %7156 = vmatpush1.bf16.msra.mxu0 %v10159_v8  ;;  %7894 = vmatpush1.bf16.msra.mxu1 %v10162_v9  ;;  %v10259_v8 = vld [vmem:[%s15376_s1 + $0x604] ss:$16 sps:$4 sm:$0xff]   ;;  %v10262_v9 = vld [vmem:[%s15376_s1 + $0x60c] ss:$16 sps:$4 sm:$0xff]  }
  0x84   :  { %7157 = vmatprep.subr.bf16.mxu0 %v10167_v10  ;;  %7895 = vmatprep.subr.bf16.mxu1 %v10170_v12  ;;  %v10257_v10 = vld [vmem:[%s15376_s1 + $0x600] ss:$16 sps:$4 sm:$0xff]   ;;  %v8639_v12 = vcombine.low %v12166_v11, %v12166_v11  ;;  %v10268_v11 = vld [vmem:[%s15376_s1 + $0x62c] ss:$16 sps:$4 sm:$0xff]  }
  0x85   :  { %7187 = vmatprep.mubr.bf16.mxu0 %v8640_v13  ;;  %7925 = vmatprep.mubr.bf16.mxu1 %v8640_v13  ;;  %v10260_v13 = vld [vmem:[%s15376_s1 + $0x608] ss:$16 sps:$4 sm:$0xff]  }
  0x87   :  { %7158 = vmatpush1.bf16.msra.mxu0 %v10165_v14  ;;  %7896 = vmatpush1.bf16.msra.mxu1 %v10168_v15  ;;  %v12364_v14 = vld [vmem:[%s15377_s0 + $0x18] sm:$0xff]  ;;  %v10265_v15 = vld [vmem:[%s15376_s1 + $0x624] ss:$16 sps:$4 sm:$0xff]  }
  0x88   :  { %7159 = vmatprep.subr.bf16.mxu0 %v10173_v16  ;;  %7897 = vmatprep.subr.bf16.mxu1 %v10176_v17  ;;  %v8642_v16 = vcombine.high %v12364_v14, %v12364_v14  ;;  %v10263_v17 = vld [vmem:[%s15376_s1 + $0x620] ss:$16 sps:$4 sm:$0xff]  }
  0x8b   :  { %7160 = vmatpush1.bf16.msra.mxu0 %v10171_v18  ;;  %7898 = vmatpush1.bf16.msra.mxu1 %v10174_v19  ;;  %v10266_v18 = vld [vmem:[%s15376_s1 + $0x628] ss:$16 sps:$4 sm:$0xff]   ;;  %v10271_v19 = vld [vmem:[%s15376_s1 + $0x644] ss:$16 sps:$4 sm:$0xff]  }
  0x8c   :  { %7161 = vmatprep.subr.bf16.mxu0 %v10179_v20  ;;  %7899 = vmatprep.subr.bf16.mxu1 %v10182_v21  ;;  %v10274_v20 = vld [vmem:[%s15376_s1 + $0x64c] ss:$16 sps:$4 sm:$0xff]   ;;  %v10269_v21 = vld [vmem:[%s15376_s1 + $0x640] ss:$16 sps:$4 sm:$0xff]  }
  0x8f   :  { %7162 = vmatpush1.bf16.msra.mxu0 %v10177_v22  ;;  %7900 = vmatpush1.bf16.msra.mxu1 %v10180_v23  ;;  %v10272_v22 = vld [vmem:[%s15376_s1 + $0x648] ss:$16 sps:$4 sm:$0xff]   ;;  %v10277_v23 = vld [vmem:[%s15376_s1 + $0x664] ss:$16 sps:$4 sm:$0xff]  }
  0x90   :  { %7163 = vmatprep.subr.bf16.mxu0 %v10185_v24  ;;  %7901 = vmatprep.subr.bf16.mxu1 %v10188_v25  ;;  %v10280_v24 = vld [vmem:[%s15376_s1 + $0x66c] ss:$16 sps:$4 sm:$0xff]   ;;  %v10275_v25 = vld [vmem:[%s15376_s1 + $0x660] ss:$16 sps:$4 sm:$0xff]  }
  0x93   :  { %7164 = vmatpush1.bf16.msra.mxu0 %v10183_v26  ;;  %7902 = vmatpush1.bf16.msra.mxu1 %v10186_v27  ;;  %v10278_v26 = vld [vmem:[%s15376_s1 + $0x668] ss:$16 sps:$4 sm:$0xff]   ;;  %v10283_v27 = vld [vmem:[%s15376_s1 + $0x684] ss:$16 sps:$4 sm:$0xff]  }
  0x94   :  { %7165 = vmatprep.subr.bf16.mxu0 %v10191_v28  ;;  %7903 = vmatprep.subr.bf16.mxu1 %v10194_v29  ;;  %v10286_v28 = vld [vmem:[%s15376_s1 + $0x68c] ss:$16 sps:$4 sm:$0xff]   ;;  %v10281_v29 = vld [vmem:[%s15376_s1 + $0x680] ss:$16 sps:$4 sm:$0xff]  }
  0x97   :  { %7166 = vmatpush1.bf16.msra.mxu0 %v10189_v30  ;;  %7904 = vmatpush1.bf16.msra.mxu1 %v10192_v31  ;;  %v10284_v30 = vld [vmem:[%s15376_s1 + $0x688] ss:$16 sps:$4 sm:$0xff]   ;;  %v10289_v31 = vld [vmem:[%s15376_s1 + $0x6a4] ss:$16 sps:$4 sm:$0xff]  }
  0x98   :  { %7167 = vmatprep.subr.bf16.mxu0 %v10197_v32  ;;  %7905 = vmatprep.subr.bf16.mxu1 %v10200_v33  ;;  %v10292_v32 = vld [vmem:[%s15376_s1 + $0x6ac] ss:$16 sps:$4 sm:$0xff]   ;;  %v10287_v33 = vld [vmem:[%s15376_s1 + $0x6a0] ss:$16 sps:$4 sm:$0xff]  }
  0x9b   :  { %7168 = vmatpush1.bf16.msra.mxu0 %v10195_v34  ;;  %7906 = vmatpush1.bf16.msra.mxu1 %v10198_v35  ;;  %v10290_v34 = vld [vmem:[%s15376_s1 + $0x6a8] ss:$16 sps:$4 sm:$0xff]   ;;  %v10295_v35 = vld [vmem:[%s15376_s1 + $0x6c4] ss:$16 sps:$4 sm:$0xff]  }
  0x9c   :  { %7169 = vmatprep.subr.bf16.mxu0 %v10203_v36  ;;  %7907 = vmatprep.subr.bf16.mxu1 %v10206_v37  ;;  %v10298_v36 = vld [vmem:[%s15376_s1 + $0x6cc] ss:$16 sps:$4 sm:$0xff]   ;;  %v10293_v37 = vld [vmem:[%s15376_s1 + $0x6c0] ss:$16 sps:$4 sm:$0xff]  }
  0x9f   :  { %7170 = vmatpush1.bf16.msra.mxu0 %v10201_v38  ;;  %7908 = vmatpush1.bf16.msra.mxu1 %v10204_v39  ;;  %v10296_v38 = vld [vmem:[%s15376_s1 + $0x6c8] ss:$16 sps:$4 sm:$0xff]   ;;  %v10301_v39 = vld [vmem:[%s15376_s1 + $0x6e4] ss:$16 sps:$4 sm:$0xff]  }
  0xa0   :  { %7171 = vmatprep.subr.bf16.mxu0 %v10209_v40  ;;  %7909 = vmatprep.subr.bf16.mxu1 %v10212_v41  ;;  %v10304_v40 = vld [vmem:[%s15376_s1 + $0x6ec] ss:$16 sps:$4 sm:$0xff]   ;;  %v10299_v41 = vld [vmem:[%s15376_s1 + $0x6e0] ss:$16 sps:$4 sm:$0xff]  }
  0xa3   :  { %7172 = vmatpush1.bf16.msra.mxu0 %v10207_v42  ;;  %7910 = vmatpush1.bf16.msra.mxu1 %v10210_v43  ;;  %v10302_v42 = vld [vmem:[%s15376_s1 + $0x6e8] ss:$16 sps:$4 sm:$0xff]   ;;  %v10307_v43 = vld [vmem:[%s15376_s1 + $0x704] ss:$16 sps:$4 sm:$0xff]  }
  0xa4   :  { %7173 = vmatprep.subr.bf16.mxu0 %v10215_v44  ;;  %7911 = vmatprep.subr.bf16.mxu1 %v10218_v45  ;;  %v10310_v44 = vld [vmem:[%s15376_s1 + $0x70c] ss:$16 sps:$4 sm:$0xff]   ;;  %v10305_v45 = vld [vmem:[%s15376_s1 + $0x700] ss:$16 sps:$4 sm:$0xff]  }
  0xa7   :  { %7174 = vmatpush1.bf16.msra.mxu0 %v10213_v46  ;;  %7912 = vmatpush1.bf16.msra.mxu1 %v10216_v47  ;;  %v10308_v46 = vld [vmem:[%s15376_s1 + $0x708] ss:$16 sps:$4 sm:$0xff]   ;;  %v10313_v47 = vld [vmem:[%s15376_s1 + $0x724] ss:$16 sps:$4 sm:$0xff]  }
  0xa8   :  { %7175 = vmatprep.subr.bf16.mxu0 %v10221_v48  ;;  %7913 = vmatprep.subr.bf16.mxu1 %v10224_v49  ;;  %v10316_v48 = vld [vmem:[%s15376_s1 + $0x72c] ss:$16 sps:$4 sm:$0xff]   ;;  %v10311_v49 = vld [vmem:[%s15376_s1 + $0x720] ss:$16 sps:$4 sm:$0xff]  }
  0xab   :  { %7176 = vmatpush1.bf16.msra.mxu0 %v10219_v50  ;;  %7914 = vmatpush1.bf16.msra.mxu1 %v10222_v51  ;;  %v10314_v50 = vld [vmem:[%s15376_s1 + $0x728] ss:$16 sps:$4 sm:$0xff]   ;;  %v10319_v51 = vld [vmem:[%s15376_s1 + $0x744] ss:$16 sps:$4 sm:$0xff]  }
  0xac   :  { %7177 = vmatprep.subr.bf16.mxu0 %v10227_v52  ;;  %7915 = vmatprep.subr.bf16.mxu1 %v10230_v53  ;;  %v10322_v52 = vld [vmem:[%s15376_s1 + $0x74c] ss:$16 sps:$4 sm:$0xff]   ;;  %v10317_v53 = vld [vmem:[%s15376_s1 + $0x740] ss:$16 sps:$4 sm:$0xff]  }
  0xaf   :  { %7178 = vmatpush1.bf16.msra.mxu0 %v10225_v54  ;;  %7916 = vmatpush1.bf16.msra.mxu1 %v10228_v55  ;;  %v10320_v54 = vld [vmem:[%s15376_s1 + $0x748] ss:$16 sps:$4 sm:$0xff]   ;;  %v10325_v55 = vld [vmem:[%s15376_s1 + $0x764] ss:$16 sps:$4 sm:$0xff]  }
  0xb0   :  { %7179 = vmatprep.subr.bf16.mxu0 %v10233_v56  ;;  %7917 = vmatprep.subr.bf16.mxu1 %v10236_v57  ;;  %v10328_v56 = vld [vmem:[%s15376_s1 + $0x76c] ss:$16 sps:$4 sm:$0xff]   ;;  %v10323_v57 = vld [vmem:[%s15376_s1 + $0x760] ss:$16 sps:$4 sm:$0xff]  }
  0xb3   :  { %7180 = vmatpush1.bf16.msra.mxu0 %v10231_v58  ;;  %7918 = vmatpush1.bf16.msra.mxu1 %v10234_v59  ;;  %v10326_v58 = vld [vmem:[%s15376_s1 + $0x768] ss:$16 sps:$4 sm:$0xff]   ;;  %v10331_v59 = vld [vmem:[%s15376_s1 + $0x784] ss:$16 sps:$4 sm:$0xff]  }
  0xb4   :  { %7181 = vmatprep.subr.bf16.mxu0 %v10239_v60  ;;  %7919 = vmatprep.subr.bf16.mxu1 %v10242_v61  ;;  %v10334_v60 = vld [vmem:[%s15376_s1 + $0x78c] ss:$16 sps:$4 sm:$0xff]   ;;  %v10329_v61 = vld [vmem:[%s15376_s1 + $0x780] ss:$16 sps:$4 sm:$0xff]  }
  0xb7   :  { %7182 = vmatpush1.bf16.msra.mxu0 %v10237_v62  ;;  %7920 = vmatpush1.bf16.msra.mxu1 %v10240_v63  ;;  %v10332_v62 = vld [vmem:[%s15376_s1 + $0x788] ss:$16 sps:$4 sm:$0xff]   ;;  %v10337_v63 = vld [vmem:[%s15376_s1 + $0x7a4] ss:$16 sps:$4 sm:$0xff]  }
  0xb8   :  { %7183 = vmatprep.subr.bf16.mxu0 %v10245_v0  ;;  %7921 = vmatprep.subr.bf16.mxu1 %v10248_v1  ;;  %v10340_v0 = vld [vmem:[%s15376_s1 + $0x7ac] ss:$16 sps:$4 sm:$0xff]   ;;  %v10335_v1 = vld [vmem:[%s15376_s1 + $0x7a0] ss:$16 sps:$4 sm:$0xff]  }
  0xbb   :  { %7184 = vmatpush1.bf16.msra.mxu0 %v10243_v2  ;;  %7922 = vmatpush1.bf16.msra.mxu1 %v10246_v3  ;;  %v10338_v2 = vld [vmem:[%s15376_s1 + $0x7a8] ss:$16 sps:$4 sm:$0xff]   ;;  %v10343_v3 = vld [vmem:[%s15376_s1 + $0x7c4] ss:$16 sps:$4 sm:$0xff]  }
  0xbc   :  { %7185 = vmatprep.subr.bf16.mxu0 %v10251_v4  ;;  %7923 = vmatprep.subr.bf16.mxu1 %v10254_v5  ;;  %v10346_v4 = vld [vmem:[%s15376_s1 + $0x7cc] ss:$16 sps:$4 sm:$0xff]   ;;  %v10341_v5 = vld [vmem:[%s15376_s1 + $0x7c0] ss:$16 sps:$4 sm:$0xff]  }
  0xbf   :  { %7186 = vmatpush1.bf16.msra.mxu0 %v10249_v6  ;;  %7924 = vmatpush1.bf16.msra.mxu1 %v10252_v7  ;;  %v10344_v6 = vld [vmem:[%s15376_s1 + $0x7c8] ss:$16 sps:$4 sm:$0xff]   ;;  %v10349_v7 = vld [vmem:[%s15376_s1 + $0x7e4] ss:$16 sps:$4 sm:$0xff]  }
  0xc0   :  { %7196 = vmatprep.subr.bf16.mxu0 %v10259_v8  ;;  %7934 = vmatprep.subr.bf16.mxu1 %v10262_v9  ;;  %v10352_v8 = vld [vmem:[%s15376_s1 + $0x7ec] ss:$16 sps:$4 sm:$0xff]   ;;  %v10347_v9 = vld [vmem:[%s15376_s1 + $0x7e0] ss:$16 sps:$4 sm:$0xff]  }
  0xc2   :  { %7188 = vmatmul.mubr.bf16.vlgmr.msra.gmra.mrb[0].mxu0 %v8639_v12  ;;  %7926 = vmatmul.mubr.bf16.vlgmr.msra.gmra.mrb[0].mxu1 %v8639_v12  ;;  %v10357_v12 = vld [vmem:[%s15376_s1 + $0x804] ss:$16 sps:$4 sm:$0xff]  }
  0xc3   :  { %7197 = vmatpush1.bf16.msra.mxu0 %v10257_v10  ;;  %7935 = vmatpush1.bf16.msra.mxu1 %v10260_v13  ;;  %v10350_v10 = vld [vmem:[%s15376_s1 + $0x7e8] ss:$16 sps:$4 sm:$0xff]   ;;  %v10360_v13 = vld [vmem:[%s15376_s1 + $0x80c] ss:$16 sps:$4 sm:$0xff]  }
  0xc4   :  { %7198 = vmatprep.subr.bf16.mxu0 %v10265_v15  ;;  %7936 = vmatprep.subr.bf16.mxu1 %v10268_v11  ;;  %v10355_v15 = vld [vmem:[%s15376_s1 + $0x800] ss:$16 sps:$4 sm:$0xff]   ;;  %v8641_v11 = vcombine.low %v12364_v14, %v12364_v14  ;;  %v10366_v14 = vld [vmem:[%s15376_s1 + $0x82c] ss:$16 sps:$4 sm:$0xff]  }
  0xc5   :  { %7228 = vmatprep.mubr.bf16.mxu0 %v8642_v16  ;;  %7966 = vmatprep.mubr.bf16.mxu1 %v8642_v16  ;;  %v12562_v16 = vld [vmem:[%s15377_s0 + $0x20] sm:$0xff] }
  0xc7   :  { %7199 = vmatpush1.bf16.msra.mxu0 %v10263_v17  ;;  %7937 = vmatpush1.bf16.msra.mxu1 %v10266_v18  ;;  %v10358_v17 = vld [vmem:[%s15376_s1 + $0x808] ss:$16 sps:$4 sm:$0xff]   ;;  %v10363_v18 = vld [vmem:[%s15376_s1 + $0x824] ss:$16 sps:$4 sm:$0xff]  }
  0xc8   :  { %7200 = vmatprep.subr.bf16.mxu0 %v10271_v19  ;;  %7938 = vmatprep.subr.bf16.mxu1 %v10274_v20  ;;  %v8644_v19 = vcombine.high %v12562_v16, %v12562_v16  ;;  %v10361_v20 = vld [vmem:[%s15376_s1 + $0x820] ss:$16 sps:$4 sm:$0xff]  }
  0xcb   :  { %7201 = vmatpush1.bf16.msra.mxu0 %v10269_v21  ;;  %7939 = vmatpush1.bf16.msra.mxu1 %v10272_v22  ;;  %v10364_v21 = vld [vmem:[%s15376_s1 + $0x828] ss:$16 sps:$4 sm:$0xff]   ;;  %v10369_v22 = vld [vmem:[%s15376_s1 + $0x844] ss:$16 sps:$4 sm:$0xff]  }
  0xcc   :  { %7202 = vmatprep.subr.bf16.mxu0 %v10277_v23  ;;  %7940 = vmatprep.subr.bf16.mxu1 %v10280_v24  ;;  %v10372_v23 = vld [vmem:[%s15376_s1 + $0x84c] ss:$16 sps:$4 sm:$0xff]   ;;  %v10367_v24 = vld [vmem:[%s15376_s1 + $0x840] ss:$16 sps:$4 sm:$0xff]  }
  0xcf   :  { %7203 = vmatpush1.bf16.msra.mxu0 %v10275_v25  ;;  %7941 = vmatpush1.bf16.msra.mxu1 %v10278_v26  ;;  %v10370_v25 = vld [vmem:[%s15376_s1 + $0x848] ss:$16 sps:$4 sm:$0xff]   ;;  %v10375_v26 = vld [vmem:[%s15376_s1 + $0x864] ss:$16 sps:$4 sm:$0xff]  }
  0xd0   :  { %7204 = vmatprep.subr.bf16.mxu0 %v10283_v27  ;;  %7942 = vmatprep.subr.bf16.mxu1 %v10286_v28  ;;  %v10378_v27 = vld [vmem:[%s15376_s1 + $0x86c] ss:$16 sps:$4 sm:$0xff]   ;;  %v10373_v28 = vld [vmem:[%s15376_s1 + $0x860] ss:$16 sps:$4 sm:$0xff]  }
  0xd3   :  { %7205 = vmatpush1.bf16.msra.mxu0 %v10281_v29  ;;  %7943 = vmatpush1.bf16.msra.mxu1 %v10284_v30  ;;  %v10376_v29 = vld [vmem:[%s15376_s1 + $0x868] ss:$16 sps:$4 sm:$0xff]   ;;  %v10381_v30 = vld [vmem:[%s15376_s1 + $0x884] ss:$16 sps:$4 sm:$0xff]  }
  0xd4   :  { %7206 = vmatprep.subr.bf16.mxu0 %v10289_v31  ;;  %7944 = vmatprep.subr.bf16.mxu1 %v10292_v32  ;;  %v10384_v31 = vld [vmem:[%s15376_s1 + $0x88c] ss:$16 sps:$4 sm:$0xff]   ;;  %v10379_v32 = vld [vmem:[%s15376_s1 + $0x880] ss:$16 sps:$4 sm:$0xff]  }
  0xd7   :  { %7207 = vmatpush1.bf16.msra.mxu0 %v10287_v33  ;;  %7945 = vmatpush1.bf16.msra.mxu1 %v10290_v34  ;;  %v10382_v33 = vld [vmem:[%s15376_s1 + $0x888] ss:$16 sps:$4 sm:$0xff]   ;;  %v10387_v34 = vld [vmem:[%s15376_s1 + $0x8a4] ss:$16 sps:$4 sm:$0xff]  }
  0xd8   :  { %7208 = vmatprep.subr.bf16.mxu0 %v10295_v35  ;;  %7946 = vmatprep.subr.bf16.mxu1 %v10298_v36  ;;  %v10390_v35 = vld [vmem:[%s15376_s1 + $0x8ac] ss:$16 sps:$4 sm:$0xff]   ;;  %v10385_v36 = vld [vmem:[%s15376_s1 + $0x8a0] ss:$16 sps:$4 sm:$0xff]  }
  0xdb   :  { %7209 = vmatpush1.bf16.msra.mxu0 %v10293_v37  ;;  %7947 = vmatpush1.bf16.msra.mxu1 %v10296_v38  ;;  %v10388_v37 = vld [vmem:[%s15376_s1 + $0x8a8] ss:$16 sps:$4 sm:$0xff]   ;;  %v10393_v38 = vld [vmem:[%s15376_s1 + $0x8c4] ss:$16 sps:$4 sm:$0xff]  }
  0xdc   :  { %7210 = vmatprep.subr.bf16.mxu0 %v10301_v39  ;;  %7948 = vmatprep.subr.bf16.mxu1 %v10304_v40  ;;  %v10396_v39 = vld [vmem:[%s15376_s1 + $0x8cc] ss:$16 sps:$4 sm:$0xff]   ;;  %v10391_v40 = vld [vmem:[%s15376_s1 + $0x8c0] ss:$16 sps:$4 sm:$0xff]  }
  0xdf   :  { %7211 = vmatpush1.bf16.msra.mxu0 %v10299_v41  ;;  %7949 = vmatpush1.bf16.msra.mxu1 %v10302_v42  ;;  %v10394_v41 = vld [vmem:[%s15376_s1 + $0x8c8] ss:$16 sps:$4 sm:$0xff]   ;;  %v10399_v42 = vld [vmem:[%s15376_s1 + $0x8e4] ss:$16 sps:$4 sm:$0xff]  }
  0xe0   :  { %7212 = vmatprep.subr.bf16.mxu0 %v10307_v43  ;;  %7950 = vmatprep.subr.bf16.mxu1 %v10310_v44  ;;  %v10402_v43 = vld [vmem:[%s15376_s1 + $0x8ec] ss:$16 sps:$4 sm:$0xff]   ;;  %v10397_v44 = vld [vmem:[%s15376_s1 + $0x8e0] ss:$16 sps:$4 sm:$0xff]  }
  0xe3   :  { %7213 = vmatpush1.bf16.msra.mxu0 %v10305_v45  ;;  %7951 = vmatpush1.bf16.msra.mxu1 %v10308_v46  ;;  %v10400_v45 = vld [vmem:[%s15376_s1 + $0x8e8] ss:$16 sps:$4 sm:$0xff]   ;;  %v10405_v46 = vld [vmem:[%s15376_s1 + $0x904] ss:$16 sps:$4 sm:$0xff]  }
  0xe4   :  { %7214 = vmatprep.subr.bf16.mxu0 %v10313_v47  ;;  %7952 = vmatprep.subr.bf16.mxu1 %v10316_v48  ;;  %v10408_v47 = vld [vmem:[%s15376_s1 + $0x90c] ss:$16 sps:$4 sm:$0xff]   ;;  %v10403_v48 = vld [vmem:[%s15376_s1 + $0x900] ss:$16 sps:$4 sm:$0xff]  }
  0xe7   :  { %7215 = vmatpush1.bf16.msra.mxu0 %v10311_v49  ;;  %7953 = vmatpush1.bf16.msra.mxu1 %v10314_v50  ;;  %v10406_v49 = vld [vmem:[%s15376_s1 + $0x908] ss:$16 sps:$4 sm:$0xff]   ;;  %v10411_v50 = vld [vmem:[%s15376_s1 + $0x924] ss:$16 sps:$4 sm:$0xff]  }
  0xe8   :  { %7216 = vmatprep.subr.bf16.mxu0 %v10319_v51  ;;  %7954 = vmatprep.subr.bf16.mxu1 %v10322_v52  ;;  %v10414_v51 = vld [vmem:[%s15376_s1 + $0x92c] ss:$16 sps:$4 sm:$0xff]   ;;  %v10409_v52 = vld [vmem:[%s15376_s1 + $0x920] ss:$16 sps:$4 sm:$0xff]  }
  0xeb   :  { %7217 = vmatpush1.bf16.msra.mxu0 %v10317_v53  ;;  %7955 = vmatpush1.bf16.msra.mxu1 %v10320_v54  ;;  %v10412_v53 = vld [vmem:[%s15376_s1 + $0x928] ss:$16 sps:$4 sm:$0xff]   ;;  %v10417_v54 = vld [vmem:[%s15376_s1 + $0x944] ss:$16 sps:$4 sm:$0xff]  }
  0xec   :  { %7218 = vmatprep.subr.bf16.mxu0 %v10325_v55  ;;  %7956 = vmatprep.subr.bf16.mxu1 %v10328_v56  ;;  %v10420_v55 = vld [vmem:[%s15376_s1 + $0x94c] ss:$16 sps:$4 sm:$0xff]   ;;  %v10415_v56 = vld [vmem:[%s15376_s1 + $0x940] ss:$16 sps:$4 sm:$0xff]  }
  0xef   :  { %7219 = vmatpush1.bf16.msra.mxu0 %v10323_v57  ;;  %7957 = vmatpush1.bf16.msra.mxu1 %v10326_v58  ;;  %v10418_v57 = vld [vmem:[%s15376_s1 + $0x948] ss:$16 sps:$4 sm:$0xff]   ;;  %v10423_v58 = vld [vmem:[%s15376_s1 + $0x964] ss:$16 sps:$4 sm:$0xff]  }
  0xf0   :  { %7220 = vmatprep.subr.bf16.mxu0 %v10331_v59  ;;  %7958 = vmatprep.subr.bf16.mxu1 %v10334_v60  ;;  %v10426_v59 = vld [vmem:[%s15376_s1 + $0x96c] ss:$16 sps:$4 sm:$0xff]   ;;  %v10421_v60 = vld [vmem:[%s15376_s1 + $0x960] ss:$16 sps:$4 sm:$0xff]  }
  0xf3   :  { %7221 = vmatpush1.bf16.msra.mxu0 %v10329_v61  ;;  %7959 = vmatpush1.bf16.msra.mxu1 %v10332_v62  ;;  %v10424_v61 = vld [vmem:[%s15376_s1 + $0x968] ss:$16 sps:$4 sm:$0xff]   ;;  %v10429_v62 = vld [vmem:[%s15376_s1 + $0x984] ss:$16 sps:$4 sm:$0xff]  }
  0xf4   :  { %7222 = vmatprep.subr.bf16.mxu0 %v10337_v63  ;;  %7960 = vmatprep.subr.bf16.mxu1 %v10340_v0  ;;  %v10432_v63 = vld [vmem:[%s15376_s1 + $0x98c] ss:$16 sps:$4 sm:$0xff]   ;;  %v10427_v0 = vld [vmem:[%s15376_s1 + $0x980] ss:$16 sps:$4 sm:$0xff]  }
  0xf7   :  { %7223 = vmatpush1.bf16.msra.mxu0 %v10335_v1  ;;  %7961 = vmatpush1.bf16.msra.mxu1 %v10338_v2  ;;  %v10430_v1 = vld [vmem:[%s15376_s1 + $0x988] ss:$16 sps:$4 sm:$0xff]   ;;  %v10435_v2 = vld [vmem:[%s15376_s1 + $0x9a4] ss:$16 sps:$4 sm:$0xff]  }
  0xf8   :  { %7224 = vmatprep.subr.bf16.mxu0 %v10343_v3  ;;  %7962 = vmatprep.subr.bf16.mxu1 %v10346_v4  ;;  %v10438_v3 = vld [vmem:[%s15376_s1 + $0x9ac] ss:$16 sps:$4 sm:$0xff]   ;;  %v10433_v4 = vld [vmem:[%s15376_s1 + $0x9a0] ss:$16 sps:$4 sm:$0xff]  }
  0xfb   :  { %7225 = vmatpush1.bf16.msra.mxu0 %v10341_v5  ;;  %7963 = vmatpush1.bf16.msra.mxu1 %v10344_v6  ;;  %v10436_v5 = vld [vmem:[%s15376_s1 + $0x9a8] ss:$16 sps:$4 sm:$0xff]   ;;  %v10441_v6 = vld [vmem:[%s15376_s1 + $0x9c4] ss:$16 sps:$4 sm:$0xff]  }
  0xfc   :  { %7226 = vmatprep.subr.bf16.mxu0 %v10349_v7  ;;  %7964 = vmatprep.subr.bf16.mxu1 %v10352_v8  ;;  %v10444_v7 = vld [vmem:[%s15376_s1 + $0x9cc] ss:$16 sps:$4 sm:$0xff]   ;;  %v10439_v8 = vld [vmem:[%s15376_s1 + $0x9c0] ss:$16 sps:$4 sm:$0xff]  }
  0xff   :  { %7227 = vmatpush1.bf16.msra.mxu0 %v10347_v9  ;;  %7965 = vmatpush1.bf16.msra.mxu1 %v10350_v10  ;;  %v10442_v9 = vld [vmem:[%s15376_s1 + $0x9c8] ss:$16 sps:$4 sm:$0xff]   ;;  %v10447_v10 = vld [vmem:[%s15376_s1 + $0x9e4] ss:$16 sps:$4 sm:$0xff]  }
 0x100   :  { %7237 = vmatprep.subr.bf16.mxu0 %v10357_v12  ;;  %7975 = vmatprep.subr.bf16.mxu1 %v10360_v13  ;;  %v10450_v12 = vld [vmem:[%s15376_s1 + $0x9ec] ss:$16 sps:$4 sm:$0xff]   ;;  %v10445_v13 = vld [vmem:[%s15376_s1 + $0x9e0] ss:$16 sps:$4 sm:$0xff]  }
 0x102   :  { %7229 = vmatmul.mubr.bf16.vlgmr.msra.gmra.mrb[0].mxu0 %v8641_v11  ;;  %7967 = vmatmul.mubr.bf16.vlgmr.msra.gmra.mrb[0].mxu1 %v8641_v11  ;;  %v10455_v11 = vld [vmem:[%s15376_s1 + $0xa04] ss:$16 sps:$4 sm:$0xff]  }
 0x103   :  { %7238 = vmatpush1.bf16.msra.mxu0 %v10355_v15  ;;  %7976 = vmatpush1.bf16.msra.mxu1 %v10358_v17  ;;  %v10448_v15 = vld [vmem:[%s15376_s1 + $0x9e8] ss:$16 sps:$4 sm:$0xff]   ;;  %v10458_v17 = vld [vmem:[%s15376_s1 + $0xa0c] ss:$16 sps:$4 sm:$0xff]  }
 0x104   :  { %7239 = vmatprep.subr.bf16.mxu0 %v10363_v18  ;;  %7977 = vmatprep.subr.bf16.mxu1 %v10366_v14  ;;  %v12758_v18 = vld [vmem:[%s15377_s0 + $0x28] sm:$0xff]  ;;  %v8643_v14 = vcombine.low %v12562_v16, %v12562_v16 }
 0x105   :  { %7269 = vmatprep.mubr.bf16.mxu0 %v8644_v19  ;;  %8007 = vmatprep.mubr.bf16.mxu1 %v8644_v19  ;;  %v10453_v19 = vld [vmem:[%s15376_s1 + $0xa00] ss:$16 sps:$4 sm:$0xff]   ;;  %v10464_v16 = vld [vmem:[%s15376_s1 + $0xa2c] ss:$16 sps:$4 sm:$0xff]  }
 0x107   :  { %7240 = vmatpush1.bf16.msra.mxu0 %v10361_v20  ;;  %7978 = vmatpush1.bf16.msra.mxu1 %v10364_v21  ;;  %v10456_v20 = vld [vmem:[%s15376_s1 + $0xa08] ss:$16 sps:$4 sm:$0xff]   ;;  %v10461_v21 = vld [vmem:[%s15376_s1 + $0xa24] ss:$16 sps:$4 sm:$0xff]  }
 0x108   :  { %7241 = vmatprep.subr.bf16.mxu0 %v10369_v22  ;;  %7979 = vmatprep.subr.bf16.mxu1 %v10372_v23  ;;  %v8646_v22 = vcombine.high %v12758_v18, %v12758_v18  ;;  %v10459_v23 = vld [vmem:[%s15376_s1 + $0xa20] ss:$16 sps:$4 sm:$0xff]  }
 0x10b   :  { %7242 = vmatpush1.bf16.msra.mxu0 %v10367_v24  ;;  %7980 = vmatpush1.bf16.msra.mxu1 %v10370_v25  ;;  %v10462_v24 = vld [vmem:[%s15376_s1 + $0xa28] ss:$16 sps:$4 sm:$0xff]   ;;  %v10467_v25 = vld [vmem:[%s15376_s1 + $0xa44] ss:$16 sps:$4 sm:$0xff]  }
 0x10c   :  { %7243 = vmatprep.subr.bf16.mxu0 %v10375_v26  ;;  %7981 = vmatprep.subr.bf16.mxu1 %v10378_v27  ;;  %v10470_v26 = vld [vmem:[%s15376_s1 + $0xa4c] ss:$16 sps:$4 sm:$0xff]   ;;  %v10465_v27 = vld [vmem:[%s15376_s1 + $0xa40] ss:$16 sps:$4 sm:$0xff]  }
 0x10f   :  { %7244 = vmatpush1.bf16.msra.mxu0 %v10373_v28  ;;  %7982 = vmatpush1.bf16.msra.mxu1 %v10376_v29  ;;  %v10468_v28 = vld [vmem:[%s15376_s1 + $0xa48] ss:$16 sps:$4 sm:$0xff]   ;;  %v10473_v29 = vld [vmem:[%s15376_s1 + $0xa64] ss:$16 sps:$4 sm:$0xff]  }
 0x110   :  { %7245 = vmatprep.subr.bf16.mxu0 %v10381_v30  ;;  %7983 = vmatprep.subr.bf16.mxu1 %v10384_v31  ;;  %v10476_v30 = vld [vmem:[%s15376_s1 + $0xa6c] ss:$16 sps:$4 sm:$0xff]   ;;  %v10471_v31 = vld [vmem:[%s15376_s1 + $0xa60] ss:$16 sps:$4 sm:$0xff]  }
 0x113   :  { %7246 = vmatpush1.bf16.msra.mxu0 %v10379_v32  ;;  %7984 = vmatpush1.bf16.msra.mxu1 %v10382_v33  ;;  %v10474_v32 = vld [vmem:[%s15376_s1 + $0xa68] ss:$16 sps:$4 sm:$0xff]   ;;  %v10479_v33 = vld [vmem:[%s15376_s1 + $0xa84] ss:$16 sps:$4 sm:$0xff]  }
 0x114   :  { %7247 = vmatprep.subr.bf16.mxu0 %v10387_v34  ;;  %7985 = vmatprep.subr.bf16.mxu1 %v10390_v35  ;;  %v10482_v34 = vld [vmem:[%s15376_s1 + $0xa8c] ss:$16 sps:$4 sm:$0xff]   ;;  %v10477_v35 = vld [vmem:[%s15376_s1 + $0xa80] ss:$16 sps:$4 sm:$0xff]  }
 0x117   :  { %7248 = vmatpush1.bf16.msra.mxu0 %v10385_v36  ;;  %7986 = vmatpush1.bf16.msra.mxu1 %v10388_v37  ;;  %v10480_v36 = vld [vmem:[%s15376_s1 + $0xa88] ss:$16 sps:$4 sm:$0xff]   ;;  %v10485_v37 = vld [vmem:[%s15376_s1 + $0xaa4] ss:$16 sps:$4 sm:$0xff]  }
 0x118   :  { %7249 = vmatprep.subr.bf16.mxu0 %v10393_v38  ;;  %7987 = vmatprep.subr.bf16.mxu1 %v10396_v39  ;;  %v10488_v38 = vld [vmem:[%s15376_s1 + $0xaac] ss:$16 sps:$4 sm:$0xff]   ;;  %v10483_v39 = vld [vmem:[%s15376_s1 + $0xaa0] ss:$16 sps:$4 sm:$0xff]  }
 0x11b   :  { %7250 = vmatpush1.bf16.msra.mxu0 %v10391_v40  ;;  %7988 = vmatpush1.bf16.msra.mxu1 %v10394_v41  ;;  %v10486_v40 = vld [vmem:[%s15376_s1 + $0xaa8] ss:$16 sps:$4 sm:$0xff]   ;;  %v10491_v41 = vld [vmem:[%s15376_s1 + $0xac4] ss:$16 sps:$4 sm:$0xff]  }
 0x11c   :  { %7251 = vmatprep.subr.bf16.mxu0 %v10399_v42  ;;  %7989 = vmatprep.subr.bf16.mxu1 %v10402_v43  ;;  %v10494_v42 = vld [vmem:[%s15376_s1 + $0xacc] ss:$16 sps:$4 sm:$0xff]   ;;  %v10489_v43 = vld [vmem:[%s15376_s1 + $0xac0] ss:$16 sps:$4 sm:$0xff]  }
 0x11f   :  { %7252 = vmatpush1.bf16.msra.mxu0 %v10397_v44  ;;  %7990 = vmatpush1.bf16.msra.mxu1 %v10400_v45  ;;  %v10492_v44 = vld [vmem:[%s15376_s1 + $0xac8] ss:$16 sps:$4 sm:$0xff]   ;;  %v10497_v45 = vld [vmem:[%s15376_s1 + $0xae4] ss:$16 sps:$4 sm:$0xff]  }
 0x120   :  { %7253 = vmatprep.subr.bf16.mxu0 %v10405_v46  ;;  %7991 = vmatprep.subr.bf16.mxu1 %v10408_v47  ;;  %v10500_v46 = vld [vmem:[%s15376_s1 + $0xaec] ss:$16 sps:$4 sm:$0xff]   ;;  %v10495_v47 = vld [vmem:[%s15376_s1 + $0xae0] ss:$16 sps:$4 sm:$0xff]  }
 0x123   :  { %7254 = vmatpush1.bf16.msra.mxu0 %v10403_v48  ;;  %7992 = vmatpush1.bf16.msra.mxu1 %v10406_v49  ;;  %v10498_v48 = vld [vmem:[%s15376_s1 + $0xae8] ss:$16 sps:$4 sm:$0xff]   ;;  %v10503_v49 = vld [vmem:[%s15376_s1 + $0xb04] ss:$16 sps:$4 sm:$0xff]  }
 0x124   :  { %7255 = vmatprep.subr.bf16.mxu0 %v10411_v50  ;;  %7993 = vmatprep.subr.bf16.mxu1 %v10414_v51  ;;  %v10506_v50 = vld [vmem:[%s15376_s1 + $0xb0c] ss:$16 sps:$4 sm:$0xff]   ;;  %v10501_v51 = vld [vmem:[%s15376_s1 + $0xb00] ss:$16 sps:$4 sm:$0xff]  }
 0x127   :  { %7256 = vmatpush1.bf16.msra.mxu0 %v10409_v52  ;;  %7994 = vmatpush1.bf16.msra.mxu1 %v10412_v53  ;;  %v10504_v52 = vld [vmem:[%s15376_s1 + $0xb08] ss:$16 sps:$4 sm:$0xff]   ;;  %v10509_v53 = vld [vmem:[%s15376_s1 + $0xb24] ss:$16 sps:$4 sm:$0xff]  }
 0x128   :  { %7257 = vmatprep.subr.bf16.mxu0 %v10417_v54  ;;  %7995 = vmatprep.subr.bf16.mxu1 %v10420_v55  ;;  %v10512_v54 = vld [vmem:[%s15376_s1 + $0xb2c] ss:$16 sps:$4 sm:$0xff]   ;;  %v10507_v55 = vld [vmem:[%s15376_s1 + $0xb20] ss:$16 sps:$4 sm:$0xff]  }
 0x12b   :  { %7258 = vmatpush1.bf16.msra.mxu0 %v10415_v56  ;;  %7996 = vmatpush1.bf16.msra.mxu1 %v10418_v57  ;;  %v10510_v56 = vld [vmem:[%s15376_s1 + $0xb28] ss:$16 sps:$4 sm:$0xff]   ;;  %v10515_v57 = vld [vmem:[%s15376_s1 + $0xb44] ss:$16 sps:$4 sm:$0xff]  }
 0x12c   :  { %7259 = vmatprep.subr.bf16.mxu0 %v10423_v58  ;;  %7997 = vmatprep.subr.bf16.mxu1 %v10426_v59  ;;  %v10518_v58 = vld [vmem:[%s15376_s1 + $0xb4c] ss:$16 sps:$4 sm:$0xff]   ;;  %v10513_v59 = vld [vmem:[%s15376_s1 + $0xb40] ss:$16 sps:$4 sm:$0xff]  }
 0x12f   :  { %7260 = vmatpush1.bf16.msra.mxu0 %v10421_v60  ;;  %7998 = vmatpush1.bf16.msra.mxu1 %v10424_v61  ;;  %v10516_v60 = vld [vmem:[%s15376_s1 + $0xb48] ss:$16 sps:$4 sm:$0xff]   ;;  %v10521_v61 = vld [vmem:[%s15376_s1 + $0xb64] ss:$16 sps:$4 sm:$0xff]  }
 0x130   :  { %7261 = vmatprep.subr.bf16.mxu0 %v10429_v62  ;;  %7999 = vmatprep.subr.bf16.mxu1 %v10432_v63  ;;  %v10524_v62 = vld [vmem:[%s15376_s1 + $0xb6c] ss:$16 sps:$4 sm:$0xff]   ;;  %v10519_v63 = vld [vmem:[%s15376_s1 + $0xb60] ss:$16 sps:$4 sm:$0xff]  }
 0x133   :  { %7262 = vmatpush1.bf16.msra.mxu0 %v10427_v0  ;;  %8000 = vmatpush1.bf16.msra.mxu1 %v10430_v1  ;;  %v10522_v0 = vld [vmem:[%s15376_s1 + $0xb68] ss:$16 sps:$4 sm:$0xff]   ;;  %v10527_v1 = vld [vmem:[%s15376_s1 + $0xb84] ss:$16 sps:$4 sm:$0xff]  }
 0x134   :  { %7263 = vmatprep.subr.bf16.mxu0 %v10435_v2  ;;  %8001 = vmatprep.subr.bf16.mxu1 %v10438_v3  ;;  %v10530_v2 = vld [vmem:[%s15376_s1 + $0xb8c] ss:$16 sps:$4 sm:$0xff]   ;;  %v10525_v3 = vld [vmem:[%s15376_s1 + $0xb80] ss:$16 sps:$4 sm:$0xff]  }
 0x137   :  { %7264 = vmatpush1.bf16.msra.mxu0 %v10433_v4  ;;  %8002 = vmatpush1.bf16.msra.mxu1 %v10436_v5  ;;  %v10528_v4 = vld [vmem:[%s15376_s1 + $0xb88] ss:$16 sps:$4 sm:$0xff]   ;;  %v10533_v5 = vld [vmem:[%s15376_s1 + $0xba4] ss:$16 sps:$4 sm:$0xff]  }
 0x138   :  { %7265 = vmatprep.subr.bf16.mxu0 %v10441_v6  ;;  %8003 = vmatprep.subr.bf16.mxu1 %v10444_v7  ;;  %v10536_v6 = vld [vmem:[%s15376_s1 + $0xbac] ss:$16 sps:$4 sm:$0xff]   ;;  %v10531_v7 = vld [vmem:[%s15376_s1 + $0xba0] ss:$16 sps:$4 sm:$0xff]  }
 0x13b   :  { %7266 = vmatpush1.bf16.msra.mxu0 %v10439_v8  ;;  %8004 = vmatpush1.bf16.msra.mxu1 %v10442_v9  ;;  %v10534_v8 = vld [vmem:[%s15376_s1 + $0xba8] ss:$16 sps:$4 sm:$0xff]   ;;  %v10539_v9 = vld [vmem:[%s15376_s1 + $0xbc4] ss:$16 sps:$4 sm:$0xff]  }
 0x13c   :  { %7267 = vmatprep.subr.bf16.mxu0 %v10447_v10  ;;  %8005 = vmatprep.subr.bf16.mxu1 %v10450_v12  ;;  %v10542_v10 = vld [vmem:[%s15376_s1 + $0xbcc] ss:$16 sps:$4 sm:$0xff]   ;;  %v10537_v12 = vld [vmem:[%s15376_s1 + $0xbc0] ss:$16 sps:$4 sm:$0xff]  }
 0x13f   :  { %7268 = vmatpush1.bf16.msra.mxu0 %v10445_v13  ;;  %8006 = vmatpush1.bf16.msra.mxu1 %v10448_v15  ;;  %v10540_v13 = vld [vmem:[%s15376_s1 + $0xbc8] ss:$16 sps:$4 sm:$0xff]   ;;  %v10545_v15 = vld [vmem:[%s15376_s1 + $0xbe4] ss:$16 sps:$4 sm:$0xff]  }
 0x140   :  { %7278 = vmatprep.subr.bf16.mxu0 %v10455_v11  ;;  %8016 = vmatprep.subr.bf16.mxu1 %v10458_v17  ;;  %v10548_v11 = vld [vmem:[%s15376_s1 + $0xbec] ss:$16 sps:$4 sm:$0xff]   ;;  %v10543_v17 = vld [vmem:[%s15376_s1 + $0xbe0] ss:$16 sps:$4 sm:$0xff]  }
 0x142   :  { %7270 = vmatmul.mubr.bf16.vlgmr.msra.gmra.mrb[0].mxu0 %v8643_v14  ;;  %8008 = vmatmul.mubr.bf16.vlgmr.msra.gmra.mrb[0].mxu1 %v8643_v14  ;;  %v10546_v14 = vld [vmem:[%s15376_s1 + $0xbe8] ss:$16 sps:$4 sm:$0xff]  }
 0x143   :  { %7279 = vmatpush1.bf16.msra.mxu0 %v10453_v19  ;;  %8017 = vmatpush1.bf16.msra.mxu1 %v10456_v20  ;;  %v10553_v19 = vld [vmem:[%s15376_s1 + $0xc04] ss:$16 sps:$4 sm:$0xff]   ;;  %v10556_v20 = vld [vmem:[%s15376_s1 + $0xc0c] ss:$16 sps:$4 sm:$0xff]  }
 0x144   :  { %7280 = vmatprep.subr.bf16.mxu0 %v10461_v21  ;;  %8018 = vmatprep.subr.bf16.mxu1 %v10464_v16  ;;  %v12959_v21 = vld [vmem:[%s15377_s0 + $0x30] sm:$0xff]  ;;  %v8645_v16 = vcombine.low %v12758_v18, %v12758_v18  ;;  %v10562_v18 = vld [vmem:[%s15376_s1 + $0xc2c] ss:$16 sps:$4 sm:$0xff]  }
 0x145   :  { %7310 = vmatprep.mubr.bf16.mxu0 %v8646_v22  ;;  %8048 = vmatprep.mubr.bf16.mxu1 %v8646_v22  ;;  %v10551_v22 = vld [vmem:[%s15376_s1 + $0xc00] ss:$16 sps:$4 sm:$0xff]  }
 0x147   :  { %7281 = vmatpush1.bf16.msra.mxu0 %v10459_v23  ;;  %8019 = vmatpush1.bf16.msra.mxu1 %v10462_v24  ;;  %v10554_v23 = vld [vmem:[%s15376_s1 + $0xc08] ss:$16 sps:$4 sm:$0xff]   ;;  %v10559_v24 = vld [vmem:[%s15376_s1 + $0xc24] ss:$16 sps:$4 sm:$0xff]  }
 0x148   :  { %7282 = vmatprep.subr.bf16.mxu0 %v10467_v25  ;;  %8020 = vmatprep.subr.bf16.mxu1 %v10470_v26  ;;  %v8648_v25 = vcombine.high %v12959_v21, %v12959_v21  ;;  %v10557_v26 = vld [vmem:[%s15376_s1 + $0xc20] ss:$16 sps:$4 sm:$0xff]  }
 0x14b   :  { %7283 = vmatpush1.bf16.msra.mxu0 %v10465_v27  ;;  %8021 = vmatpush1.bf16.msra.mxu1 %v10468_v28  ;;  %v10560_v27 = vld [vmem:[%s15376_s1 + $0xc28] ss:$16 sps:$4 sm:$0xff]   ;;  %v10565_v28 = vld [vmem:[%s15376_s1 + $0xc44] ss:$16 sps:$4 sm:$0xff]  }
 0x14c   :  { %7284 = vmatprep.subr.bf16.mxu0 %v10473_v29  ;;  %8022 = vmatprep.subr.bf16.mxu1 %v10476_v30  ;;  %v10568_v29 = vld [vmem:[%s15376_s1 + $0xc4c] ss:$16 sps:$4 sm:$0xff]   ;;  %v10563_v30 = vld [vmem:[%s15376_s1 + $0xc40] ss:$16 sps:$4 sm:$0xff]  }
 0x14f   :  { %7285 = vmatpush1.bf16.msra.mxu0 %v10471_v31  ;;  %8023 = vmatpush1.bf16.msra.mxu1 %v10474_v32  ;;  %v10566_v31 = vld [vmem:[%s15376_s1 + $0xc48] ss:$16 sps:$4 sm:$0xff]   ;;  %v10571_v32 = vld [vmem:[%s15376_s1 + $0xc64] ss:$16 sps:$4 sm:$0xff]  }
 0x150   :  { %7286 = vmatprep.subr.bf16.mxu0 %v10479_v33  ;;  %8024 = vmatprep.subr.bf16.mxu1 %v10482_v34  ;;  %v10574_v33 = vld [vmem:[%s15376_s1 + $0xc6c] ss:$16 sps:$4 sm:$0xff]   ;;  %v10569_v34 = vld [vmem:[%s15376_s1 + $0xc60] ss:$16 sps:$4 sm:$0xff]  }
 0x153   :  { %7287 = vmatpush1.bf16.msra.mxu0 %v10477_v35  ;;  %8025 = vmatpush1.bf16.msra.mxu1 %v10480_v36  ;;  %v10572_v35 = vld [vmem:[%s15376_s1 + $0xc68] ss:$16 sps:$4 sm:$0xff]   ;;  %v10577_v36 = vld [vmem:[%s15376_s1 + $0xc84] ss:$16 sps:$4 sm:$0xff]  }
 0x154   :  { %7288 = vmatprep.subr.bf16.mxu0 %v10485_v37  ;;  %8026 = vmatprep.subr.bf16.mxu1 %v10488_v38  ;;  %v10580_v37 = vld [vmem:[%s15376_s1 + $0xc8c] ss:$16 sps:$4 sm:$0xff]   ;;  %v10575_v38 = vld [vmem:[%s15376_s1 + $0xc80] ss:$16 sps:$4 sm:$0xff]  }
 0x157   :  { %7289 = vmatpush1.bf16.msra.mxu0 %v10483_v39  ;;  %8027 = vmatpush1.bf16.msra.mxu1 %v10486_v40  ;;  %v10578_v39 = vld [vmem:[%s15376_s1 + $0xc88] ss:$16 sps:$4 sm:$0xff]   ;;  %v10583_v40 = vld [vmem:[%s15376_s1 + $0xca4] ss:$16 sps:$4 sm:$0xff]  }
 0x158   :  { %7290 = vmatprep.subr.bf16.mxu0 %v10491_v41  ;;  %8028 = vmatprep.subr.bf16.mxu1 %v10494_v42  ;;  %v10586_v41 = vld [vmem:[%s15376_s1 + $0xcac] ss:$16 sps:$4 sm:$0xff]   ;;  %v10581_v42 = vld [vmem:[%s15376_s1 + $0xca0] ss:$16 sps:$4 sm:$0xff]  }
 0x15b   :  { %7291 = vmatpush1.bf16.msra.mxu0 %v10489_v43  ;;  %8029 = vmatpush1.bf16.msra.mxu1 %v10492_v44  ;;  %v10584_v43 = vld [vmem:[%s15376_s1 + $0xca8] ss:$16 sps:$4 sm:$0xff]   ;;  %v10589_v44 = vld [vmem:[%s15376_s1 + $0xcc4] ss:$16 sps:$4 sm:$0xff]  }
 0x15c   :  { %7292 = vmatprep.subr.bf16.mxu0 %v10497_v45  ;;  %8030 = vmatprep.subr.bf16.mxu1 %v10500_v46  ;;  %v10592_v45 = vld [vmem:[%s15376_s1 + $0xccc] ss:$16 sps:$4 sm:$0xff]   ;;  %v10587_v46 = vld [vmem:[%s15376_s1 + $0xcc0] ss:$16 sps:$4 sm:$0xff]  }
 0x15f   :  { %7293 = vmatpush1.bf16.msra.mxu0 %v10495_v47  ;;  %8031 = vmatpush1.bf16.msra.mxu1 %v10498_v48  ;;  %v10590_v47 = vld [vmem:[%s15376_s1 + $0xcc8] ss:$16 sps:$4 sm:$0xff]   ;;  %v10595_v48 = vld [vmem:[%s15376_s1 + $0xce4] ss:$16 sps:$4 sm:$0xff]  }
 0x160   :  { %7294 = vmatprep.subr.bf16.mxu0 %v10503_v49  ;;  %8032 = vmatprep.subr.bf16.mxu1 %v10506_v50  ;;  %v10598_v49 = vld [vmem:[%s15376_s1 + $0xcec] ss:$16 sps:$4 sm:$0xff]   ;;  %v10593_v50 = vld [vmem:[%s15376_s1 + $0xce0] ss:$16 sps:$4 sm:$0xff]  }
 0x163   :  { %7295 = vmatpush1.bf16.msra.mxu0 %v10501_v51  ;;  %8033 = vmatpush1.bf16.msra.mxu1 %v10504_v52  ;;  %v10596_v51 = vld [vmem:[%s15376_s1 + $0xce8] ss:$16 sps:$4 sm:$0xff]   ;;  %v10601_v52 = vld [vmem:[%s15376_s1 + $0xd04] ss:$16 sps:$4 sm:$0xff]  }
 0x164   :  { %7296 = vmatprep.subr.bf16.mxu0 %v10509_v53  ;;  %8034 = vmatprep.subr.bf16.mxu1 %v10512_v54  ;;  %v10604_v53 = vld [vmem:[%s15376_s1 + $0xd0c] ss:$16 sps:$4 sm:$0xff]   ;;  %v10599_v54 = vld [vmem:[%s15376_s1 + $0xd00] ss:$16 sps:$4 sm:$0xff]  }
 0x167   :  { %7297 = vmatpush1.bf16.msra.mxu0 %v10507_v55  ;;  %8035 = vmatpush1.bf16.msra.mxu1 %v10510_v56  ;;  %v10602_v55 = vld [vmem:[%s15376_s1 + $0xd08] ss:$16 sps:$4 sm:$0xff]   ;;  %v10607_v56 = vld [vmem:[%s15376_s1 + $0xd24] ss:$16 sps:$4 sm:$0xff]  }
 0x168   :  { %7298 = vmatprep.subr.bf16.mxu0 %v10515_v57  ;;  %8036 = vmatprep.subr.bf16.mxu1 %v10518_v58  ;;  %v10610_v57 = vld [vmem:[%s15376_s1 + $0xd2c] ss:$16 sps:$4 sm:$0xff]   ;;  %v10605_v58 = vld [vmem:[%s15376_s1 + $0xd20] ss:$16 sps:$4 sm:$0xff]  }
 0x16b   :  { %7299 = vmatpush1.bf16.msra.mxu0 %v10513_v59  ;;  %8037 = vmatpush1.bf16.msra.mxu1 %v10516_v60  ;;  %v10608_v59 = vld [vmem:[%s15376_s1 + $0xd28] ss:$16 sps:$4 sm:$0xff]   ;;  %v10613_v60 = vld [vmem:[%s15376_s1 + $0xd44] ss:$16 sps:$4 sm:$0xff]  }
 0x16c   :  { %7300 = vmatprep.subr.bf16.mxu0 %v10521_v61  ;;  %8038 = vmatprep.subr.bf16.mxu1 %v10524_v62  ;;  %v10616_v61 = vld [vmem:[%s15376_s1 + $0xd4c] ss:$16 sps:$4 sm:$0xff]   ;;  %v10611_v62 = vld [vmem:[%s15376_s1 + $0xd40] ss:$16 sps:$4 sm:$0xff]  }
 0x16f   :  { %7301 = vmatpush1.bf16.msra.mxu0 %v10519_v63  ;;  %8039 = vmatpush1.bf16.msra.mxu1 %v10522_v0  ;;  %v10614_v63 = vld [vmem:[%s15376_s1 + $0xd48] ss:$16 sps:$4 sm:$0xff]   ;;  %v10619_v0 = vld [vmem:[%s15376_s1 + $0xd64] ss:$16 sps:$4 sm:$0xff]  }
 0x170   :  { %7302 = vmatprep.subr.bf16.mxu0 %v10527_v1  ;;  %8040 = vmatprep.subr.bf16.mxu1 %v10530_v2  ;;  %v10622_v1 = vld [vmem:[%s15376_s1 + $0xd6c] ss:$16 sps:$4 sm:$0xff]   ;;  %v10617_v2 = vld [vmem:[%s15376_s1 + $0xd60] ss:$16 sps:$4 sm:$0xff]  }
 0x173   :  { %7303 = vmatpush1.bf16.msra.mxu0 %v10525_v3  ;;  %8041 = vmatpush1.bf16.msra.mxu1 %v10528_v4  ;;  %v10620_v3 = vld [vmem:[%s15376_s1 + $0xd68] ss:$16 sps:$4 sm:$0xff]   ;;  %v10625_v4 = vld [vmem:[%s15376_s1 + $0xd84] ss:$16 sps:$4 sm:$0xff]  }
 0x174   :  { %7304 = vmatprep.subr.bf16.mxu0 %v10533_v5  ;;  %8042 = vmatprep.subr.bf16.mxu1 %v10536_v6  ;;  %v10628_v5 = vld [vmem:[%s15376_s1 + $0xd8c] ss:$16 sps:$4 sm:$0xff]   ;;  %v10623_v6 = vld [vmem:[%s15376_s1 + $0xd80] ss:$16 sps:$4 sm:$0xff]  }
 0x177   :  { %7305 = vmatpush1.bf16.msra.mxu0 %v10531_v7  ;;  %8043 = vmatpush1.bf16.msra.mxu1 %v10534_v8  ;;  %v10626_v7 = vld [vmem:[%s15376_s1 + $0xd88] ss:$16 sps:$4 sm:$0xff]   ;;  %v10631_v8 = vld [vmem:[%s15376_s1 + $0xda4] ss:$16 sps:$4 sm:$0xff]  }
 0x178   :  { %7306 = vmatprep.subr.bf16.mxu0 %v10539_v9  ;;  %8044 = vmatprep.subr.bf16.mxu1 %v10542_v10  ;;  %v10634_v9 = vld [vmem:[%s15376_s1 + $0xdac] ss:$16 sps:$4 sm:$0xff]   ;;  %v10629_v10 = vld [vmem:[%s15376_s1 + $0xda0] ss:$16 sps:$4 sm:$0xff]  }
 0x17b   :  { %7307 = vmatpush1.bf16.msra.mxu0 %v10537_v12  ;;  %8045 = vmatpush1.bf16.msra.mxu1 %v10540_v13  ;;  %v10632_v12 = vld [vmem:[%s15376_s1 + $0xda8] ss:$16 sps:$4 sm:$0xff]   ;;  %v10637_v13 = vld [vmem:[%s15376_s1 + $0xdc4] ss:$16 sps:$4 sm:$0xff]  }
 0x17c   :  { %7308 = vmatprep.subr.bf16.mxu0 %v10545_v15  ;;  %8046 = vmatprep.subr.bf16.mxu1 %v10548_v11  ;;  %v10640_v15 = vld [vmem:[%s15376_s1 + $0xdcc] ss:$16 sps:$4 sm:$0xff]   ;;  %v10635_v11 = vld [vmem:[%s15376_s1 + $0xdc0] ss:$16 sps:$4 sm:$0xff]  }
 0x17f   :  { %7309 = vmatpush1.bf16.msra.mxu0 %v10543_v17  ;;  %8047 = vmatpush1.bf16.msra.mxu1 %v10546_v14  ;;  %v10638_v17 = vld [vmem:[%s15376_s1 + $0xdc8] ss:$16 sps:$4 sm:$0xff]   ;;  %v10643_v14 = vld [vmem:[%s15376_s1 + $0xde4] ss:$16 sps:$4 sm:$0xff]  }
 0x180   :  { %7319 = vmatprep.subr.bf16.mxu0 %v10553_v19  ;;  %8057 = vmatprep.subr.bf16.mxu1 %v10556_v20  ;;  %v10646_v19 = vld [vmem:[%s15376_s1 + $0xdec] ss:$16 sps:$4 sm:$0xff]   ;;  %v10641_v20 = vld [vmem:[%s15376_s1 + $0xde0] ss:$16 sps:$4 sm:$0xff]  }
 0x182   :  { %7311 = vmatmul.mubr.bf16.vlgmr.msra.gmra.mrb[0].mxu0 %v8645_v16  ;;  %8049 = vmatmul.mubr.bf16.vlgmr.msra.gmra.mrb[0].mxu1 %v8645_v16  ;;  %v10644_v16 = vld [vmem:[%s15376_s1 + $0xde8] ss:$16 sps:$4 sm:$0xff]  }
 0x183   :  { %7320 = vmatpush1.bf16.msra.mxu0 %v10551_v22  ;;  %8058 = vmatpush1.bf16.msra.mxu1 %v10554_v23  ;;  %v10651_v22 = vld [vmem:[%s15376_s1 + $0xe04] ss:$16 sps:$4 sm:$0xff]   ;;  %v10654_v23 = vld [vmem:[%s15376_s1 + $0xe0c] ss:$16 sps:$4 sm:$0xff]  }
 0x184   :  { %7321 = vmatprep.subr.bf16.mxu0 %v10559_v24  ;;  %8059 = vmatprep.subr.bf16.mxu1 %v10562_v18  ;;  %v13160_v24 = vld [vmem:[%s15377_s0 + $0x38] sm:$0xff]  ;;  %v8647_v18 = vcombine.low %v12959_v21, %v12959_v21 }
 0x185   :  { %7351 = vmatprep.mubr.bf16.mxu0 %v8648_v25  ;;  %8089 = vmatprep.mubr.bf16.mxu1 %v8648_v25  ;;  %v10649_v25 = vld [vmem:[%s15376_s1 + $0xe00] ss:$16 sps:$4 sm:$0xff]   ;;  %v10660_v21 = vld [vmem:[%s15376_s1 + $0xe2c] ss:$16 sps:$4 sm:$0xff]  }
 0x187   :  { %7322 = vmatpush1.bf16.msra.mxu0 %v10557_v26  ;;  %8060 = vmatpush1.bf16.msra.mxu1 %v10560_v27  ;;  %v10652_v26 = vld [vmem:[%s15376_s1 + $0xe08] ss:$16 sps:$4 sm:$0xff]   ;;  %v10657_v27 = vld [vmem:[%s15376_s1 + $0xe24] ss:$16 sps:$4 sm:$0xff]  }
 0x188   :  { %7323 = vmatprep.subr.bf16.mxu0 %v10565_v28  ;;  %8061 = vmatprep.subr.bf16.mxu1 %v10568_v29  ;;  %v8650_v28 = vcombine.high %v13160_v24, %v13160_v24  ;;  %v10655_v29 = vld [vmem:[%s15376_s1 + $0xe20] ss:$16 sps:$4 sm:$0xff]  }
 0x18b   :  { %7324 = vmatpush1.bf16.msra.mxu0 %v10563_v30  ;;  %8062 = vmatpush1.bf16.msra.mxu1 %v10566_v31  ;;  %v10658_v30 = vld [vmem:[%s15376_s1 + $0xe28] ss:$16 sps:$4 sm:$0xff]   ;;  %v10663_v31 = vld [vmem:[%s15376_s1 + $0xe44] ss:$16 sps:$4 sm:$0xff]  }
 0x18c   :  { %7325 = vmatprep.subr.bf16.mxu0 %v10571_v32  ;;  %8063 = vmatprep.subr.bf16.mxu1 %v10574_v33  ;;  %v10666_v32 = vld [vmem:[%s15376_s1 + $0xe4c] ss:$16 sps:$4 sm:$0xff]   ;;  %v10661_v33 = vld [vmem:[%s15376_s1 + $0xe40] ss:$16 sps:$4 sm:$0xff]  }
 0x18f   :  { %7326 = vmatpush1.bf16.msra.mxu0 %v10569_v34  ;;  %8064 = vmatpush1.bf16.msra.mxu1 %v10572_v35  ;;  %v10664_v34 = vld [vmem:[%s15376_s1 + $0xe48] ss:$16 sps:$4 sm:$0xff]   ;;  %v10669_v35 = vld [vmem:[%s15376_s1 + $0xe64] ss:$16 sps:$4 sm:$0xff]  }
 0x190   :  { %7327 = vmatprep.subr.bf16.mxu0 %v10577_v36  ;;  %8065 = vmatprep.subr.bf16.mxu1 %v10580_v37  ;;  %v10672_v36 = vld [vmem:[%s15376_s1 + $0xe6c] ss:$16 sps:$4 sm:$0xff]   ;;  %v10667_v37 = vld [vmem:[%s15376_s1 + $0xe60] ss:$16 sps:$4 sm:$0xff]  }
 0x193   :  { %7328 = vmatpush1.bf16.msra.mxu0 %v10575_v38  ;;  %8066 = vmatpush1.bf16.msra.mxu1 %v10578_v39  ;;  %v10670_v38 = vld [vmem:[%s15376_s1 + $0xe68] ss:$16 sps:$4 sm:$0xff]   ;;  %v10675_v39 = vld [vmem:[%s15376_s1 + $0xe84] ss:$16 sps:$4 sm:$0xff]  }
 0x194   :  { %7329 = vmatprep.subr.bf16.mxu0 %v10583_v40  ;;  %8067 = vmatprep.subr.bf16.mxu1 %v10586_v41  ;;  %v10678_v40 = vld [vmem:[%s15376_s1 + $0xe8c] ss:$16 sps:$4 sm:$0xff]   ;;  %v10673_v41 = vld [vmem:[%s15376_s1 + $0xe80] ss:$16 sps:$4 sm:$0xff]  }
 0x197   :  { %7330 = vmatpush1.bf16.msra.mxu0 %v10581_v42  ;;  %8068 = vmatpush1.bf16.msra.mxu1 %v10584_v43  ;;  %v10676_v42 = vld [vmem:[%s15376_s1 + $0xe88] ss:$16 sps:$4 sm:$0xff]   ;;  %v10681_v43 = vld [vmem:[%s15376_s1 + $0xea4] ss:$16 sps:$4 sm:$0xff]  }
 0x198   :  { %7331 = vmatprep.subr.bf16.mxu0 %v10589_v44  ;;  %8069 = vmatprep.subr.bf16.mxu1 %v10592_v45  ;;  %v10684_v44 = vld [vmem:[%s15376_s1 + $0xeac] ss:$16 sps:$4 sm:$0xff]   ;;  %v10679_v45 = vld [vmem:[%s15376_s1 + $0xea0] ss:$16 sps:$4 sm:$0xff]  }
 0x19b   :  { %7332 = vmatpush1.bf16.msra.mxu0 %v10587_v46  ;;  %8070 = vmatpush1.bf16.msra.mxu1 %v10590_v47  ;;  %v10682_v46 = vld [vmem:[%s15376_s1 + $0xea8] ss:$16 sps:$4 sm:$0xff]   ;;  %v10687_v47 = vld [vmem:[%s15376_s1 + $0xec4] ss:$16 sps:$4 sm:$0xff]  }
 0x19c   :  { %7333 = vmatprep.subr.bf16.mxu0 %v10595_v48  ;;  %8071 = vmatprep.subr.bf16.mxu1 %v10598_v49  ;;  %v10690_v48 = vld [vmem:[%s15376_s1 + $0xecc] ss:$16 sps:$4 sm:$0xff]   ;;  %v10685_v49 = vld [vmem:[%s15376_s1 + $0xec0] ss:$16 sps:$4 sm:$0xff]  }
 0x19f   :  { %7334 = vmatpush1.bf16.msra.mxu0 %v10593_v50  ;;  %8072 = vmatpush1.bf16.msra.mxu1 %v10596_v51  ;;  %v10688_v50 = vld [vmem:[%s15376_s1 + $0xec8] ss:$16 sps:$4 sm:$0xff]   ;;  %v10693_v51 = vld [vmem:[%s15376_s1 + $0xee4] ss:$16 sps:$4 sm:$0xff]  }
 0x1a0   :  { %7335 = vmatprep.subr.bf16.mxu0 %v10601_v52  ;;  %8073 = vmatprep.subr.bf16.mxu1 %v10604_v53  ;;  %v10696_v52 = vld [vmem:[%s15376_s1 + $0xeec] ss:$16 sps:$4 sm:$0xff]   ;;  %v10691_v53 = vld [vmem:[%s15376_s1 + $0xee0] ss:$16 sps:$4 sm:$0xff]  }
 0x1a3   :  { %7336 = vmatpush1.bf16.msra.mxu0 %v10599_v54  ;;  %8074 = vmatpush1.bf16.msra.mxu1 %v10602_v55  ;;  %v10694_v54 = vld [vmem:[%s15376_s1 + $0xee8] ss:$16 sps:$4 sm:$0xff]   ;;  %v10699_v55 = vld [vmem:[%s15376_s1 + $0xf04] ss:$16 sps:$4 sm:$0xff]  }
 0x1a4   :  { %7337 = vmatprep.subr.bf16.mxu0 %v10607_v56  ;;  %8075 = vmatprep.subr.bf16.mxu1 %v10610_v57  ;;  %v10702_v56 = vld [vmem:[%s15376_s1 + $0xf0c] ss:$16 sps:$4 sm:$0xff]   ;;  %v10697_v57 = vld [vmem:[%s15376_s1 + $0xf00] ss:$16 sps:$4 sm:$0xff]  }
 0x1a7   :  { %7338 = vmatpush1.bf16.msra.mxu0 %v10605_v58  ;;  %8076 = vmatpush1.bf16.msra.mxu1 %v10608_v59  ;;  %v10700_v58 = vld [vmem:[%s15376_s1 + $0xf08] ss:$16 sps:$4 sm:$0xff]   ;;  %v10705_v59 = vld [vmem:[%s15376_s1 + $0xf24] ss:$16 sps:$4 sm:$0xff]  }
 0x1a8   :  { %7339 = vmatprep.subr.bf16.mxu0 %v10613_v60  ;;  %8077 = vmatprep.subr.bf16.mxu1 %v10616_v61  ;;  %v10708_v60 = vld [vmem:[%s15376_s1 + $0xf2c] ss:$16 sps:$4 sm:$0xff]   ;;  %v10703_v61 = vld [vmem:[%s15376_s1 + $0xf20] ss:$16 sps:$4 sm:$0xff]  }
 0x1ab   :  { %7340 = vmatpush1.bf16.msra.mxu0 %v10611_v62  ;;  %8078 = vmatpush1.bf16.msra.mxu1 %v10614_v63  ;;  %v10706_v62 = vld [vmem:[%s15376_s1 + $0xf28] ss:$16 sps:$4 sm:$0xff]   ;;  %v10711_v63 = vld [vmem:[%s15376_s1 + $0xf44] ss:$16 sps:$4 sm:$0xff]  }
 0x1ac   :  { %7341 = vmatprep.subr.bf16.mxu0 %v10619_v0  ;;  %8079 = vmatprep.subr.bf16.mxu1 %v10622_v1  ;;  %v10714_v0 = vld [vmem:[%s15376_s1 + $0xf4c] ss:$16 sps:$4 sm:$0xff]   ;;  %v10709_v1 = vld [vmem:[%s15376_s1 + $0xf40] ss:$16 sps:$4 sm:$0xff]  }
 0x1af   :  { %7342 = vmatpush1.bf16.msra.mxu0 %v10617_v2  ;;  %8080 = vmatpush1.bf16.msra.mxu1 %v10620_v3  ;;  %v10712_v2 = vld [vmem:[%s15376_s1 + $0xf48] ss:$16 sps:$4 sm:$0xff]   ;;  %v10717_v3 = vld [vmem:[%s15376_s1 + $0xf64] ss:$16 sps:$4 sm:$0xff]  }
 0x1b0   :  { %7343 = vmatprep.subr.bf16.mxu0 %v10625_v4  ;;  %8081 = vmatprep.subr.bf16.mxu1 %v10628_v5  ;;  %v10720_v4 = vld [vmem:[%s15376_s1 + $0xf6c] ss:$16 sps:$4 sm:$0xff]   ;;  %v10715_v5 = vld [vmem:[%s15376_s1 + $0xf60] ss:$16 sps:$4 sm:$0xff]  }
 0x1b3   :  { %7344 = vmatpush1.bf16.msra.mxu0 %v10623_v6  ;;  %8082 = vmatpush1.bf16.msra.mxu1 %v10626_v7  ;;  %v10718_v6 = vld [vmem:[%s15376_s1 + $0xf68] ss:$16 sps:$4 sm:$0xff]   ;;  %v10723_v7 = vld [vmem:[%s15376_s1 + $0xf84] ss:$16 sps:$4 sm:$0xff]  }
 0x1b4   :  { %7345 = vmatprep.subr.bf16.mxu0 %v10631_v8  ;;  %8083 = vmatprep.subr.bf16.mxu1 %v10634_v9  ;;  %v10726_v8 = vld [vmem:[%s15376_s1 + $0xf8c] ss:$16 sps:$4 sm:$0xff]   ;;  %v10721_v9 = vld [vmem:[%s15376_s1 + $0xf80] ss:$16 sps:$4 sm:$0xff]  }
 0x1b7   :  { %7346 = vmatpush1.bf16.msra.mxu0 %v10629_v10  ;;  %8084 = vmatpush1.bf16.msra.mxu1 %v10632_v12  ;;  %v10724_v10 = vld [vmem:[%s15376_s1 + $0xf88] ss:$16 sps:$4 sm:$0xff]   ;;  %v10729_v12 = vld [vmem:[%s15376_s1 + $0xfa4] ss:$16 sps:$4 sm:$0xff]  }
 0x1b8   :  { %7347 = vmatprep.subr.bf16.mxu0 %v10637_v13  ;;  %8085 = vmatprep.subr.bf16.mxu1 %v10640_v15  ;;  %v10732_v13 = vld [vmem:[%s15376_s1 + $0xfac] ss:$16 sps:$4 sm:$0xff]   ;;  %v10727_v15 = vld [vmem:[%s15376_s1 + $0xfa0] ss:$16 sps:$4 sm:$0xff]  }
 0x1bb   :  { %7348 = vmatpush1.bf16.msra.mxu0 %v10635_v11  ;;  %8086 = vmatpush1.bf16.msra.mxu1 %v10638_v17  ;;  %v10730_v11 = vld [vmem:[%s15376_s1 + $0xfa8] ss:$16 sps:$4 sm:$0xff]   ;;  %v10735_v17 = vld [vmem:[%s15376_s1 + $0xfc4] ss:$16 sps:$4 sm:$0xff]  }
 0x1bc   :  { %7349 = vmatprep.subr.bf16.mxu0 %v10643_v14  ;;  %8087 = vmatprep.subr.bf16.mxu1 %v10646_v19  ;;  %v10738_v14 = vld [vmem:[%s15376_s1 + $0xfcc] ss:$16 sps:$4 sm:$0xff]   ;;  %v10733_v19 = vld [vmem:[%s15376_s1 + $0xfc0] ss:$16 sps:$4 sm:$0xff]  }
 0x1bf   :  { %7350 = vmatpush1.bf16.msra.mxu0 %v10641_v20  ;;  %8088 = vmatpush1.bf16.msra.mxu1 %v10644_v16  ;;  %v10736_v20 = vld [vmem:[%s15376_s1 + $0xfc8] ss:$16 sps:$4 sm:$0xff]   ;;  %v10741_v16 = vld [vmem:[%s15376_s1 + $0xfe4] ss:$16 sps:$4 sm:$0xff]  }
 0x1c0   :  { %7360 = vmatprep.subr.bf16.mxu0 %v10651_v22  ;;  %8098 = vmatprep.subr.bf16.mxu1 %v10654_v23  ;;  %v10744_v22 = vld [vmem:[%s15376_s1 + $0xfec] ss:$16 sps:$4 sm:$0xff]   ;;  %v10739_v23 = vld [vmem:[%s15376_s1 + $0xfe0] ss:$16 sps:$4 sm:$0xff]  }
 0x1c2   :  { %7352 = vmatmul.mubr.bf16.vlgmr.msra.gmra.mrb[0].mxu0 %v8647_v18  ;;  %8090 = vmatmul.mubr.bf16.vlgmr.msra.gmra.mrb[0].mxu1 %v8647_v18  ;;  %v10742_v18 = vld [vmem:[%s15376_s1 + $0xfe8] ss:$16 sps:$4 sm:$0xff]  }
 0x1c3   :  { %7361 = vmatpush1.bf16.msra.mxu0 %v10649_v25  ;;  %8099 = vmatpush1.bf16.msra.mxu1 %v10652_v26  ;;  %v10749_v25 = vld [vmem:[%s15376_s1 + $0x1004] ss:$16 sps:$4 sm:$0xff]   ;;  %v10752_v26 = vld [vmem:[%s15376_s1 + $0x100c] ss:$16 sps:$4 sm:$0xff]  }
 0x1c4   :  { %7362 = vmatprep.subr.bf16.mxu0 %v10657_v27  ;;  %8100 = vmatprep.subr.bf16.mxu1 %v10660_v21  ;;  %v13361_v27 = vld [vmem:[%s15377_s0 + $0x40] sm:$0xff]  ;;  %v8649_v21 = vcombine.low %v13160_v24, %v13160_v24  ;;  %v10758_v24 = vld [vmem:[%s15376_s1 + $0x102c] ss:$16 sps:$4 sm:$0xff]  }
 0x1c5   :  { %7392 = vmatprep.mubr.bf16.mxu0 %v8650_v28  ;;  %8130 = vmatprep.mubr.bf16.mxu1 %v8650_v28  ;;  %v10747_v28 = vld [vmem:[%s15376_s1 + $0x1000] ss:$16 sps:$4 sm:$0xff]  }
 0x1c7   :  { %7363 = vmatpush1.bf16.msra.mxu0 %v10655_v29  ;;  %8101 = vmatpush1.bf16.msra.mxu1 %v10658_v30  ;;  %v10750_v29 = vld [vmem:[%s15376_s1 + $0x1008] ss:$16 sps:$4 sm:$0xff]   ;;  %v10755_v30 = vld [vmem:[%s15376_s1 + $0x1024] ss:$16 sps:$4 sm:$0xff]  }
 0x1c8   :  { %7364 = vmatprep.subr.bf16.mxu0 %v10663_v31  ;;  %8102 = vmatprep.subr.bf16.mxu1 %v10666_v32  ;;  %v8652_v31 = vcombine.high %v13361_v27, %v13361_v27  ;;  %v10753_v32 = vld [vmem:[%s15376_s1 + $0x1020] ss:$16 sps:$4 sm:$0xff]  }
 0x1cb   :  { %7365 = vmatpush1.bf16.msra.mxu0 %v10661_v33  ;;  %8103 = vmatpush1.bf16.msra.mxu1 %v10664_v34  ;;  %v10756_v33 = vld [vmem:[%s15376_s1 + $0x1028] ss:$16 sps:$4 sm:$0xff]   ;;  %v10761_v34 = vld [vmem:[%s15376_s1 + $0x1044] ss:$16 sps:$4 sm:$0xff]  }
 0x1cc   :  { %7366 = vmatprep.subr.bf16.mxu0 %v10669_v35  ;;  %8104 = vmatprep.subr.bf16.mxu1 %v10672_v36  ;;  %v10764_v35 = vld [vmem:[%s15376_s1 + $0x104c] ss:$16 sps:$4 sm:$0xff]   ;;  %v10759_v36 = vld [vmem:[%s15376_s1 + $0x1040] ss:$16 sps:$4 sm:$0xff]  }
 0x1cf   :  { %7367 = vmatpush1.bf16.msra.mxu0 %v10667_v37  ;;  %8105 = vmatpush1.bf16.msra.mxu1 %v10670_v38  ;;  %v10762_v37 = vld [vmem:[%s15376_s1 + $0x1048] ss:$16 sps:$4 sm:$0xff]   ;;  %v10767_v38 = vld [vmem:[%s15376_s1 + $0x1064] ss:$16 sps:$4 sm:$0xff]  }
 0x1d0   :  { %7368 = vmatprep.subr.bf16.mxu0 %v10675_v39  ;;  %8106 = vmatprep.subr.bf16.mxu1 %v10678_v40  ;;  %v10770_v39 = vld [vmem:[%s15376_s1 + $0x106c] ss:$16 sps:$4 sm:$0xff]   ;;  %v10765_v40 = vld [vmem:[%s15376_s1 + $0x1060] ss:$16 sps:$4 sm:$0xff]  }
 0x1d3   :  { %7369 = vmatpush1.bf16.msra.mxu0 %v10673_v41  ;;  %8107 = vmatpush1.bf16.msra.mxu1 %v10676_v42  ;;  %v10768_v41 = vld [vmem:[%s15376_s1 + $0x1068] ss:$16 sps:$4 sm:$0xff]   ;;  %v10773_v42 = vld [vmem:[%s15376_s1 + $0x1084] ss:$16 sps:$4 sm:$0xff]  }
 0x1d4   :  { %7370 = vmatprep.subr.bf16.mxu0 %v10681_v43  ;;  %8108 = vmatprep.subr.bf16.mxu1 %v10684_v44  ;;  %v10776_v43 = vld [vmem:[%s15376_s1 + $0x108c] ss:$16 sps:$4 sm:$0xff]   ;;  %v10771_v44 = vld [vmem:[%s15376_s1 + $0x1080] ss:$16 sps:$4 sm:$0xff]  }
 0x1d7   :  { %7371 = vmatpush1.bf16.msra.mxu0 %v10679_v45  ;;  %8109 = vmatpush1.bf16.msra.mxu1 %v10682_v46  ;;  %v10774_v45 = vld [vmem:[%s15376_s1 + $0x1088] ss:$16 sps:$4 sm:$0xff]   ;;  %v10779_v46 = vld [vmem:[%s15376_s1 + $0x10a4] ss:$16 sps:$4 sm:$0xff]  }
 0x1d8   :  { %7372 = vmatprep.subr.bf16.mxu0 %v10687_v47  ;;  %8110 = vmatprep.subr.bf16.mxu1 %v10690_v48  ;;  %v10782_v47 = vld [vmem:[%s15376_s1 + $0x10ac] ss:$16 sps:$4 sm:$0xff]   ;;  %v10777_v48 = vld [vmem:[%s15376_s1 + $0x10a0] ss:$16 sps:$4 sm:$0xff]  }
 0x1db   :  { %7373 = vmatpush1.bf16.msra.mxu0 %v10685_v49  ;;  %8111 = vmatpush1.bf16.msra.mxu1 %v10688_v50  ;;  %v10780_v49 = vld [vmem:[%s15376_s1 + $0x10a8] ss:$16 sps:$4 sm:$0xff]   ;;  %v10785_v50 = vld [vmem:[%s15376_s1 + $0x10c4] ss:$16 sps:$4 sm:$0xff]  }
 0x1dc   :  { %7374 = vmatprep.subr.bf16.mxu0 %v10693_v51  ;;  %8112 = vmatprep.subr.bf16.mxu1 %v10696_v52  ;;  %v10788_v51 = vld [vmem:[%s15376_s1 + $0x10cc] ss:$16 sps:$4 sm:$0xff]   ;;  %v10783_v52 = vld [vmem:[%s15376_s1 + $0x10c0] ss:$16 sps:$4 sm:$0xff]  }
 0x1df   :  { %7375 = vmatpush1.bf16.msra.mxu0 %v10691_v53  ;;  %8113 = vmatpush1.bf16.msra.mxu1 %v10694_v54  ;;  %v10786_v53 = vld [vmem:[%s15376_s1 + $0x10c8] ss:$16 sps:$4 sm:$0xff]   ;;  %v10791_v54 = vld [vmem:[%s15376_s1 + $0x10e4] ss:$16 sps:$4 sm:$0xff]  }
 0x1e0   :  { %7376 = vmatprep.subr.bf16.mxu0 %v10699_v55  ;;  %8114 = vmatprep.subr.bf16.mxu1 %v10702_v56  ;;  %v10794_v55 = vld [vmem:[%s15376_s1 + $0x10ec] ss:$16 sps:$4 sm:$0xff]   ;;  %v10789_v56 = vld [vmem:[%s15376_s1 + $0x10e0] ss:$16 sps:$4 sm:$0xff]  }
 0x1e3   :  { %7377 = vmatpush1.bf16.msra.mxu0 %v10697_v57  ;;  %8115 = vmatpush1.bf16.msra.mxu1 %v10700_v58  ;;  %v10792_v57 = vld [vmem:[%s15376_s1 + $0x10e8] ss:$16 sps:$4 sm:$0xff]   ;;  %v10797_v58 = vld [vmem:[%s15376_s1 + $0x1104] ss:$16 sps:$4 sm:$0xff]  }
 0x1e4   :  { %7378 = vmatprep.subr.bf16.mxu0 %v10705_v59  ;;  %8116 = vmatprep.subr.bf16.mxu1 %v10708_v60  ;;  %v10800_v59 = vld [vmem:[%s15376_s1 + $0x110c] ss:$16 sps:$4 sm:$0xff]   ;;  %v10795_v60 = vld [vmem:[%s15376_s1 + $0x1100] ss:$16 sps:$4 sm:$0xff]  }
 0x1e7   :  { %7379 = vmatpush1.bf16.msra.mxu0 %v10703_v61  ;;  %8117 = vmatpush1.bf16.msra.mxu1 %v10706_v62  ;;  %v10798_v61 = vld [vmem:[%s15376_s1 + $0x1108] ss:$16 sps:$4 sm:$0xff]   ;;  %v10803_v62 = vld [vmem:[%s15376_s1 + $0x1124] ss:$16 sps:$4 sm:$0xff]  }
 0x1e8   :  { %7380 = vmatprep.subr.bf16.mxu0 %v10711_v63  ;;  %8118 = vmatprep.subr.bf16.mxu1 %v10714_v0  ;;  %v10806_v63 = vld [vmem:[%s15376_s1 + $0x112c] ss:$16 sps:$4 sm:$0xff]   ;;  %v10801_v0 = vld [vmem:[%s15376_s1 + $0x1120] ss:$16 sps:$4 sm:$0xff]  }
 0x1eb   :  { %7381 = vmatpush1.bf16.msra.mxu0 %v10709_v1  ;;  %8119 = vmatpush1.bf16.msra.mxu1 %v10712_v2  ;;  %v10804_v1 = vld [vmem:[%s15376_s1 + $0x1128] ss:$16 sps:$4 sm:$0xff]   ;;  %v10809_v2 = vld [vmem:[%s15376_s1 + $0x1144] ss:$16 sps:$4 sm:$0xff]  }
 0x1ec   :  { %7382 = vmatprep.subr.bf16.mxu0 %v10717_v3  ;;  %8120 = vmatprep.subr.bf16.mxu1 %v10720_v4  ;;  %v10812_v3 = vld [vmem:[%s15376_s1 + $0x114c] ss:$16 sps:$4 sm:$0xff]   ;;  %v10807_v4 = vld [vmem:[%s15376_s1 + $0x1140] ss:$16 sps:$4 sm:$0xff]  }
 0x1ef   :  { %7383 = vmatpush1.bf16.msra.mxu0 %v10715_v5  ;;  %8121 = vmatpush1.bf16.msra.mxu1 %v10718_v6  ;;  %v10810_v5 = vld [vmem:[%s15376_s1 + $0x1148] ss:$16 sps:$4 sm:$0xff]   ;;  %v10815_v6 = vld [vmem:[%s15376_s1 + $0x1164] ss:$16 sps:$4 sm:$0xff]  }
 0x1f0   :  { %7384 = vmatprep.subr.bf16.mxu0 %v10723_v7  ;;  %8122 = vmatprep.subr.bf16.mxu1 %v10726_v8  ;;  %v10818_v7 = vld [vmem:[%s15376_s1 + $0x116c] ss:$16 sps:$4 sm:$0xff]   ;;  %v10813_v8 = vld [vmem:[%s15376_s1 + $0x1160] ss:$16 sps:$4 sm:$0xff]  }
 0x1f3   :  { %7385 = vmatpush1.bf16.msra.mxu0 %v10721_v9  ;;  %8123 = vmatpush1.bf16.msra.mxu1 %v10724_v10  ;;  %v10816_v9 = vld [vmem:[%s15376_s1 + $0x1168] ss:$16 sps:$4 sm:$0xff]   ;;  %v10821_v10 = vld [vmem:[%s15376_s1 + $0x1184] ss:$16 sps:$4 sm:$0xff]  }
 0x1f4   :  { %7386 = vmatprep.subr.bf16.mxu0 %v10729_v12  ;;  %8124 = vmatprep.subr.bf16.mxu1 %v10732_v13  ;;  %v10824_v12 = vld [vmem:[%s15376_s1 + $0x118c] ss:$16 sps:$4 sm:$0xff]   ;;  %v10819_v13 = vld [vmem:[%s15376_s1 + $0x1180] ss:$16 sps:$4 sm:$0xff]  }
 0x1f7   :  { %7387 = vmatpush1.bf16.msra.mxu0 %v10727_v15  ;;  %8125 = vmatpush1.bf16.msra.mxu1 %v10730_v11  ;;  %v10822_v15 = vld [vmem:[%s15376_s1 + $0x1188] ss:$16 sps:$4 sm:$0xff]   ;;  %v10827_v11 = vld [vmem:[%s15376_s1 + $0x11a4] ss:$16 sps:$4 sm:$0xff]  }
 0x1f8   :  { %7388 = vmatprep.subr.bf16.mxu0 %v10735_v17  ;;  %8126 = vmatprep.subr.bf16.mxu1 %v10738_v14  ;;  %v10830_v17 = vld [vmem:[%s15376_s1 + $0x11ac] ss:$16 sps:$4 sm:$0xff]   ;;  %v10825_v14 = vld [vmem:[%s15376_s1 + $0x11a0] ss:$16 sps:$4 sm:$0xff]  }
 0x1fb   :  { %7389 = vmatpush1.bf16.msra.mxu0 %v10733_v19  ;;  %8127 = vmatpush1.bf16.msra.mxu1 %v10736_v20  ;;  %v10828_v19 = vld [vmem:[%s15376_s1 + $0x11a8] ss:$16 sps:$4 sm:$0xff]   ;;  %v10833_v20 = vld [vmem:[%s15376_s1 + $0x11c4] ss:$16 sps:$4 sm:$0xff]  }
 0x1fc   :  { %7390 = vmatprep.subr.bf16.mxu0 %v10741_v16  ;;  %8128 = vmatprep.subr.bf16.mxu1 %v10744_v22  ;;  %v10836_v16 = vld [vmem:[%s15376_s1 + $0x11cc] ss:$16 sps:$4 sm:$0xff]   ;;  %v10831_v22 = vld [vmem:[%s15376_s1 + $0x11c0] ss:$16 sps:$4 sm:$0xff]  }
 0x1ff   :  { %7391 = vmatpush1.bf16.msra.mxu0 %v10739_v23  ;;  %8129 = vmatpush1.bf16.msra.mxu1 %v10742_v18  ;;  %v10834_v23 = vld [vmem:[%s15376_s1 + $0x11c8] ss:$16 sps:$4 sm:$0xff]   ;;  %v10839_v18 = vld [vmem:[%s15376_s1 + $0x11e4] ss:$16 sps:$4 sm:$0xff]  }
 0x200   :  { %7401 = vmatprep.subr.bf16.mxu0 %v10749_v25  ;;  %8139 = vmatprep.subr.bf16.mxu1 %v10752_v26  ;;  %v10842_v25 = vld [vmem:[%s15376_s1 + $0x11ec] ss:$16 sps:$4 sm:$0xff]   ;;  %v10837_v26 = vld [vmem:[%s15376_s1 + $0x11e0] ss:$16 sps:$4 sm:$0xff]  }
 0x202   :  { %7393 = vmatmul.mubr.bf16.vlgmr.msra.gmra.mrb[0].mxu0 %v8649_v21  ;;  %8131 = vmatmul.mubr.bf16.vlgmr.msra.gmra.mrb[0].mxu1 %v8649_v21  ;;  %v10840_v21 = vld [vmem:[%s15376_s1 + $0x11e8] ss:$16 sps:$4 sm:$0xff]  }
 0x203   :  { %7402 = vmatpush1.bf16.msra.mxu0 %v10747_v28  ;;  %8140 = vmatpush1.bf16.msra.mxu1 %v10750_v29  ;;  %v10847_v28 = vld [vmem:[%s15376_s1 + $0x1204] ss:$16 sps:$4 sm:$0xff]   ;;  %v10850_v29 = vld [vmem:[%s15376_s1 + $0x120c] ss:$16 sps:$4 sm:$0xff]  }
 0x204   :  { %7403 = vmatprep.subr.bf16.mxu0 %v10755_v30  ;;  %8141 = vmatprep.subr.bf16.mxu1 %v10758_v24  ;;  %v13562_v30 = vld [vmem:[%s15377_s0 + $0x48] sm:$0xff]  ;;  %v8651_v24 = vcombine.low %v13361_v27, %v13361_v27 }
 0x205   :  { %7433 = vmatprep.mubr.bf16.mxu0 %v8652_v31  ;;  %8171 = vmatprep.mubr.bf16.mxu1 %v8652_v31  ;;  %v10845_v31 = vld [vmem:[%s15376_s1 + $0x1200] ss:$16 sps:$4 sm:$0xff]   ;;  %v10856_v27 = vld [vmem:[%s15376_s1 + $0x122c] ss:$16 sps:$4 sm:$0xff]  }
 0x207   :  { %7404 = vmatpush1.bf16.msra.mxu0 %v10753_v32  ;;  %8142 = vmatpush1.bf16.msra.mxu1 %v10756_v33  ;;  %v10848_v32 = vld [vmem:[%s15376_s1 + $0x1208] ss:$16 sps:$4 sm:$0xff]   ;;  %v10853_v33 = vld [vmem:[%s15376_s1 + $0x1224] ss:$16 sps:$4 sm:$0xff]  }
 0x208   :  { %7405 = vmatprep.subr.bf16.mxu0 %v10761_v34  ;;  %8143 = vmatprep.subr.bf16.mxu1 %v10764_v35  ;;  %v8654_v34 = vcombine.high %v13562_v30, %v13562_v30  ;;  %v10851_v35 = vld [vmem:[%s15376_s1 + $0x1220] ss:$16 sps:$4 sm:$0xff]  }
 0x20b   :  { %7406 = vmatpush1.bf16.msra.mxu0 %v10759_v36  ;;  %8144 = vmatpush1.bf16.msra.mxu1 %v10762_v37  ;;  %v10854_v36 = vld [vmem:[%s15376_s1 + $0x1228] ss:$16 sps:$4 sm:$0xff]   ;;  %v10859_v37 = vld [vmem:[%s15376_s1 + $0x1244] ss:$16 sps:$4 sm:$0xff]  }
 0x20c   :  { %7407 = vmatprep.subr.bf16.mxu0 %v10767_v38  ;;  %8145 = vmatprep.subr.bf16.mxu1 %v10770_v39  ;;  %v10862_v38 = vld [vmem:[%s15376_s1 + $0x124c] ss:$16 sps:$4 sm:$0xff]   ;;  %v10857_v39 = vld [vmem:[%s15376_s1 + $0x1240] ss:$16 sps:$4 sm:$0xff]  }
 0x20f   :  { %7408 = vmatpush1.bf16.msra.mxu0 %v10765_v40  ;;  %8146 = vmatpush1.bf16.msra.mxu1 %v10768_v41  ;;  %v10860_v40 = vld [vmem:[%s15376_s1 + $0x1248] ss:$16 sps:$4 sm:$0xff]   ;;  %v10865_v41 = vld [vmem:[%s15376_s1 + $0x1264] ss:$16 sps:$4 sm:$0xff]  }
 0x210   :  { %7409 = vmatprep.subr.bf16.mxu0 %v10773_v42  ;;  %8147 = vmatprep.subr.bf16.mxu1 %v10776_v43  ;;  %v10868_v42 = vld [vmem:[%s15376_s1 + $0x126c] ss:$16 sps:$4 sm:$0xff]   ;;  %v10863_v43 = vld [vmem:[%s15376_s1 + $0x1260] ss:$16 sps:$4 sm:$0xff]  }
 0x213   :  { %7410 = vmatpush1.bf16.msra.mxu0 %v10771_v44  ;;  %8148 = vmatpush1.bf16.msra.mxu1 %v10774_v45  ;;  %v10866_v44 = vld [vmem:[%s15376_s1 + $0x1268] ss:$16 sps:$4 sm:$0xff]   ;;  %v10871_v45 = vld [vmem:[%s15376_s1 + $0x1284] ss:$16 sps:$4 sm:$0xff]  }
 0x214   :  { %7411 = vmatprep.subr.bf16.mxu0 %v10779_v46  ;;  %8149 = vmatprep.subr.bf16.mxu1 %v10782_v47  ;;  %v10874_v46 = vld [vmem:[%s15376_s1 + $0x128c] ss:$16 sps:$4 sm:$0xff]   ;;  %v10869_v47 = vld [vmem:[%s15376_s1 + $0x1280] ss:$16 sps:$4 sm:$0xff]  }
 0x217   :  { %7412 = vmatpush1.bf16.msra.mxu0 %v10777_v48  ;;  %8150 = vmatpush1.bf16.msra.mxu1 %v10780_v49  ;;  %v10872_v48 = vld [vmem:[%s15376_s1 + $0x1288] ss:$16 sps:$4 sm:$0xff]   ;;  %v10877_v49 = vld [vmem:[%s15376_s1 + $0x12a4] ss:$16 sps:$4 sm:$0xff]  }
 0x218   :  { %7413 = vmatprep.subr.bf16.mxu0 %v10785_v50  ;;  %8151 = vmatprep.subr.bf16.mxu1 %v10788_v51  ;;  %v10880_v50 = vld [vmem:[%s15376_s1 + $0x12ac] ss:$16 sps:$4 sm:$0xff]   ;;  %v10875_v51 = vld [vmem:[%s15376_s1 + $0x12a0] ss:$16 sps:$4 sm:$0xff]  }
 0x21b   :  { %7414 = vmatpush1.bf16.msra.mxu0 %v10783_v52  ;;  %8152 = vmatpush1.bf16.msra.mxu1 %v10786_v53  ;;  %v10878_v52 = vld [vmem:[%s15376_s1 + $0x12a8] ss:$16 sps:$4 sm:$0xff]   ;;  %v10883_v53 = vld [vmem:[%s15376_s1 + $0x12c4] ss:$16 sps:$4 sm:$0xff]  }
 0x21c   :  { %7415 = vmatprep.subr.bf16.mxu0 %v10791_v54  ;;  %8153 = vmatprep.subr.bf16.mxu1 %v10794_v55  ;;  %v10886_v54 = vld [vmem:[%s15376_s1 + $0x12cc] ss:$16 sps:$4 sm:$0xff]   ;;  %v10881_v55 = vld [vmem:[%s15376_s1 + $0x12c0] ss:$16 sps:$4 sm:$0xff]  }
 0x21f   :  { %7416 = vmatpush1.bf16.msra.mxu0 %v10789_v56  ;;  %8154 = vmatpush1.bf16.msra.mxu1 %v10792_v57  ;;  %v10884_v56 = vld [vmem:[%s15376_s1 + $0x12c8] ss:$16 sps:$4 sm:$0xff]   ;;  %v10889_v57 = vld [vmem:[%s15376_s1 + $0x12e4] ss:$16 sps:$4 sm:$0xff]  }
 0x220   :  { %7417 = vmatprep.subr.bf16.mxu0 %v10797_v58  ;;  %8155 = vmatprep.subr.bf16.mxu1 %v10800_v59  ;;  %v10892_v58 = vld [vmem:[%s15376_s1 + $0x12ec] ss:$16 sps:$4 sm:$0xff]   ;;  %v10887_v59 = vld [vmem:[%s15376_s1 + $0x12e0] ss:$16 sps:$4 sm:$0xff]  }
 0x223   :  { %7418 = vmatpush1.bf16.msra.mxu0 %v10795_v60  ;;  %8156 = vmatpush1.bf16.msra.mxu1 %v10798_v61  ;;  %v10890_v60 = vld [vmem:[%s15376_s1 + $0x12e8] ss:$16 sps:$4 sm:$0xff]   ;;  %v10895_v61 = vld [vmem:[%s15376_s1 + $0x1304] ss:$16 sps:$4 sm:$0xff]  }
 0x224   :  { %7419 = vmatprep.subr.bf16.mxu0 %v10803_v62  ;;  %8157 = vmatprep.subr.bf16.mxu1 %v10806_v63  ;;  %v10898_v62 = vld [vmem:[%s15376_s1 + $0x130c] ss:$16 sps:$4 sm:$0xff]   ;;  %v10893_v63 = vld [vmem:[%s15376_s1 + $0x1300] ss:$16 sps:$4 sm:$0xff]  }
 0x227   :  { %7420 = vmatpush1.bf16.msra.mxu0 %v10801_v0  ;;  %8158 = vmatpush1.bf16.msra.mxu1 %v10804_v1  ;;  %v10896_v0 = vld [vmem:[%s15376_s1 + $0x1308] ss:$16 sps:$4 sm:$0xff]   ;;  %v10901_v1 = vld [vmem:[%s15376_s1 + $0x1324] ss:$16 sps:$4 sm:$0xff]  }
 0x228   :  { %7421 = vmatprep.subr.bf16.mxu0 %v10809_v2  ;;  %8159 = vmatprep.subr.bf16.mxu1 %v10812_v3  ;;  %v10904_v2 = vld [vmem:[%s15376_s1 + $0x132c] ss:$16 sps:$4 sm:$0xff]   ;;  %v10899_v3 = vld [vmem:[%s15376_s1 + $0x1320] ss:$16 sps:$4 sm:$0xff]  }
 0x22b   :  { %7422 = vmatpush1.bf16.msra.mxu0 %v10807_v4  ;;  %8160 = vmatpush1.bf16.msra.mxu1 %v10810_v5  ;;  %v10902_v4 = vld [vmem:[%s15376_s1 + $0x1328] ss:$16 sps:$4 sm:$0xff]   ;;  %v10907_v5 = vld [vmem:[%s15376_s1 + $0x1344] ss:$16 sps:$4 sm:$0xff]  }
 0x22c   :  { %7423 = vmatprep.subr.bf16.mxu0 %v10815_v6  ;;  %8161 = vmatprep.subr.bf16.mxu1 %v10818_v7  ;;  %v10910_v6 = vld [vmem:[%s15376_s1 + $0x134c] ss:$16 sps:$4 sm:$0xff]   ;;  %v10905_v7 = vld [vmem:[%s15376_s1 + $0x1340] ss:$16 sps:$4 sm:$0xff]  }
 0x22f   :  { %7424 = vmatpush1.bf16.msra.mxu0 %v10813_v8  ;;  %8162 = vmatpush1.bf16.msra.mxu1 %v10816_v9  ;;  %v10908_v8 = vld [vmem:[%s15376_s1 + $0x1348] ss:$16 sps:$4 sm:$0xff]   ;;  %v10913_v9 = vld [vmem:[%s15376_s1 + $0x1364] ss:$16 sps:$4 sm:$0xff]  }
 0x230   :  { %7425 = vmatprep.subr.bf16.mxu0 %v10821_v10  ;;  %8163 = vmatprep.subr.bf16.mxu1 %v10824_v12  ;;  %v10916_v10 = vld [vmem:[%s15376_s1 + $0x136c] ss:$16 sps:$4 sm:$0xff]   ;;  %v10911_v12 = vld [vmem:[%s15376_s1 + $0x1360] ss:$16 sps:$4 sm:$0xff]  }
 0x233   :  { %7426 = vmatpush1.bf16.msra.mxu0 %v10819_v13  ;;  %8164 = vmatpush1.bf16.msra.mxu1 %v10822_v15  ;;  %v10914_v13 = vld [vmem:[%s15376_s1 + $0x1368] ss:$16 sps:$4 sm:$0xff]   ;;  %v10919_v15 = vld [vmem:[%s15376_s1 + $0x1384] ss:$16 sps:$4 sm:$0xff]  }
 0x234   :  { %7427 = vmatprep.subr.bf16.mxu0 %v10827_v11  ;;  %8165 = vmatprep.subr.bf16.mxu1 %v10830_v17  ;;  %v10922_v11 = vld [vmem:[%s15376_s1 + $0x138c] ss:$16 sps:$4 sm:$0xff]   ;;  %v10917_v17 = vld [vmem:[%s15376_s1 + $0x1380] ss:$16 sps:$4 sm:$0xff]  }
 0x237   :  { %7428 = vmatpush1.bf16.msra.mxu0 %v10825_v14  ;;  %8166 = vmatpush1.bf16.msra.mxu1 %v10828_v19  ;;  %v10920_v14 = vld [vmem:[%s15376_s1 + $0x1388] ss:$16 sps:$4 sm:$0xff]   ;;  %v10925_v19 = vld [vmem:[%s15376_s1 + $0x13a4] ss:$16 sps:$4 sm:$0xff]  }
 0x238   :  { %7429 = vmatprep.subr.bf16.mxu0 %v10833_v20  ;;  %8167 = vmatprep.subr.bf16.mxu1 %v10836_v16  ;;  %v10928_v20 = vld [vmem:[%s15376_s1 + $0x13ac] ss:$16 sps:$4 sm:$0xff]   ;;  %v10923_v16 = vld [vmem:[%s15376_s1 + $0x13a0] ss:$16 sps:$4 sm:$0xff]  }
 0x23b   :  { %7430 = vmatpush1.bf16.msra.mxu0 %v10831_v22  ;;  %8168 = vmatpush1.bf16.msra.mxu1 %v10834_v23  ;;  %v10926_v22 = vld [vmem:[%s15376_s1 + $0x13a8] ss:$16 sps:$4 sm:$0xff]   ;;  %v10931_v23 = vld [vmem:[%s15376_s1 + $0x13c4] ss:$16 sps:$4 sm:$0xff]  }
 0x23c   :  { %7431 = vmatprep.subr.bf16.mxu0 %v10839_v18  ;;  %8169 = vmatprep.subr.bf16.mxu1 %v10842_v25  ;;  %v10934_v18 = vld [vmem:[%s15376_s1 + $0x13cc] ss:$16 sps:$4 sm:$0xff]   ;;  %v10929_v25 = vld [vmem:[%s15376_s1 + $0x13c0] ss:$16 sps:$4 sm:$0xff]  }
 0x23f   :  { %7432 = vmatpush1.bf16.msra.mxu0 %v10837_v26  ;;  %8170 = vmatpush1.bf16.msra.mxu1 %v10840_v21  ;;  %v10932_v26 = vld [vmem:[%s15376_s1 + $0x13c8] ss:$16 sps:$4 sm:$0xff]   ;;  %v10937_v21 = vld [vmem:[%s15376_s1 + $0x13e4] ss:$16 sps:$4 sm:$0xff]  }
 0x240   :  { %7442 = vmatprep.subr.bf16.mxu0 %v10847_v28  ;;  %8180 = vmatprep.subr.bf16.mxu1 %v10850_v29  ;;  %v10940_v28 = vld [vmem:[%s15376_s1 + $0x13ec] ss:$16 sps:$4 sm:$0xff]   ;;  %v10935_v29 = vld [vmem:[%s15376_s1 + $0x13e0] ss:$16 sps:$4 sm:$0xff]  }
 0x242   :  { %7434 = vmatmul.mubr.bf16.vlgmr.msra.gmra.mrb[0].mxu0 %v8651_v24  ;;  %8172 = vmatmul.mubr.bf16.vlgmr.msra.gmra.mrb[0].mxu1 %v8651_v24  ;;  %v10938_v24 = vld [vmem:[%s15376_s1 + $0x13e8] ss:$16 sps:$4 sm:$0xff]  }
 0x243   :  { %7443 = vmatpush1.bf16.msra.mxu0 %v10845_v31  ;;  %8181 = vmatpush1.bf16.msra.mxu1 %v10848_v32  ;;  %v10945_v31 = vld [vmem:[%s15376_s1 + $0x1404] ss:$16 sps:$4 sm:$0xff]   ;;  %v10948_v32 = vld [vmem:[%s15376_s1 + $0x140c] ss:$16 sps:$4 sm:$0xff]  }
 0x244   :  { %7444 = vmatprep.subr.bf16.mxu0 %v10853_v33  ;;  %8182 = vmatprep.subr.bf16.mxu1 %v10856_v27  ;;  %v13763_v33 = vld [vmem:[%s15377_s0 + $0x50] sm:$0xff]  ;;  %v8653_v27 = vcombine.low %v13562_v30, %v13562_v30  ;;  %v10954_v30 = vld [vmem:[%s15376_s1 + $0x142c] ss:$16 sps:$4 sm:$0xff]  }
 0x245   :  { %7474 = vmatprep.mubr.bf16.mxu0 %v8654_v34  ;;  %8212 = vmatprep.mubr.bf16.mxu1 %v8654_v34  ;;  %v10943_v34 = vld [vmem:[%s15376_s1 + $0x1400] ss:$16 sps:$4 sm:$0xff]  }
 0x247   :  { %7445 = vmatpush1.bf16.msra.mxu0 %v10851_v35  ;;  %8183 = vmatpush1.bf16.msra.mxu1 %v10854_v36  ;;  %v10946_v35 = vld [vmem:[%s15376_s1 + $0x1408] ss:$16 sps:$4 sm:$0xff]   ;;  %v10951_v36 = vld [vmem:[%s15376_s1 + $0x1424] ss:$16 sps:$4 sm:$0xff]  }
 0x248   :  { %7446 = vmatprep.subr.bf16.mxu0 %v10859_v37  ;;  %8184 = vmatprep.subr.bf16.mxu1 %v10862_v38  ;;  %v8656_v37 = vcombine.high %v13763_v33, %v13763_v33  ;;  %v10949_v38 = vld [vmem:[%s15376_s1 + $0x1420] ss:$16 sps:$4 sm:$0xff]  }
 0x24b   :  { %7447 = vmatpush1.bf16.msra.mxu0 %v10857_v39  ;;  %8185 = vmatpush1.bf16.msra.mxu1 %v10860_v40  ;;  %v10952_v39 = vld [vmem:[%s15376_s1 + $0x1428] ss:$16 sps:$4 sm:$0xff]   ;;  %v10957_v40 = vld [vmem:[%s15376_s1 + $0x1444] ss:$16 sps:$4 sm:$0xff]  }
 0x24c   :  { %7448 = vmatprep.subr.bf16.mxu0 %v10865_v41  ;;  %8186 = vmatprep.subr.bf16.mxu1 %v10868_v42  ;;  %v10960_v41 = vld [vmem:[%s15376_s1 + $0x144c] ss:$16 sps:$4 sm:$0xff]   ;;  %v10955_v42 = vld [vmem:[%s15376_s1 + $0x1440] ss:$16 sps:$4 sm:$0xff]  }
 0x24f   :  { %7449 = vmatpush1.bf16.msra.mxu0 %v10863_v43  ;;  %8187 = vmatpush1.bf16.msra.mxu1 %v10866_v44  ;;  %v10958_v43 = vld [vmem:[%s15376_s1 + $0x1448] ss:$16 sps:$4 sm:$0xff]   ;;  %v10963_v44 = vld [vmem:[%s15376_s1 + $0x1464] ss:$16 sps:$4 sm:$0xff]  }
 0x250   :  { %7450 = vmatprep.subr.bf16.mxu0 %v10871_v45  ;;  %8188 = vmatprep.subr.bf16.mxu1 %v10874_v46  ;;  %v10966_v45 = vld [vmem:[%s15376_s1 + $0x146c] ss:$16 sps:$4 sm:$0xff]   ;;  %v10961_v46 = vld [vmem:[%s15376_s1 + $0x1460] ss:$16 sps:$4 sm:$0xff]  }
 0x253   :  { %7451 = vmatpush1.bf16.msra.mxu0 %v10869_v47  ;;  %8189 = vmatpush1.bf16.msra.mxu1 %v10872_v48  ;;  %v10964_v47 = vld [vmem:[%s15376_s1 + $0x1468] ss:$16 sps:$4 sm:$0xff]   ;;  %v10969_v48 = vld [vmem:[%s15376_s1 + $0x1484] ss:$16 sps:$4 sm:$0xff]  }
 0x254   :  { %7452 = vmatprep.subr.bf16.mxu0 %v10877_v49  ;;  %8190 = vmatprep.subr.bf16.mxu1 %v10880_v50  ;;  %v10972_v49 = vld [vmem:[%s15376_s1 + $0x148c] ss:$16 sps:$4 sm:$0xff]   ;;  %v10967_v50 = vld [vmem:[%s15376_s1 + $0x1480] ss:$16 sps:$4 sm:$0xff]  }
 0x257   :  { %7453 = vmatpush1.bf16.msra.mxu0 %v10875_v51  ;;  %8191 = vmatpush1.bf16.msra.mxu1 %v10878_v52  ;;  %v10970_v51 = vld [vmem:[%s15376_s1 + $0x1488] ss:$16 sps:$4 sm:$0xff]   ;;  %v10975_v52 = vld [vmem:[%s15376_s1 + $0x14a4] ss:$16 sps:$4 sm:$0xff]  }
 0x258   :  { %7454 = vmatprep.subr.bf16.mxu0 %v10883_v53  ;;  %8192 = vmatprep.subr.bf16.mxu1 %v10886_v54  ;;  %v10978_v53 = vld [vmem:[%s15376_s1 + $0x14ac] ss:$16 sps:$4 sm:$0xff]   ;;  %v10973_v54 = vld [vmem:[%s15376_s1 + $0x14a0] ss:$16 sps:$4 sm:$0xff]  }
 0x25b   :  { %7455 = vmatpush1.bf16.msra.mxu0 %v10881_v55  ;;  %8193 = vmatpush1.bf16.msra.mxu1 %v10884_v56  ;;  %v10976_v55 = vld [vmem:[%s15376_s1 + $0x14a8] ss:$16 sps:$4 sm:$0xff]   ;;  %v10981_v56 = vld [vmem:[%s15376_s1 + $0x14c4] ss:$16 sps:$4 sm:$0xff]  }
 0x25c   :  { %7456 = vmatprep.subr.bf16.mxu0 %v10889_v57  ;;  %8194 = vmatprep.subr.bf16.mxu1 %v10892_v58  ;;  %v10984_v57 = vld [vmem:[%s15376_s1 + $0x14cc] ss:$16 sps:$4 sm:$0xff]   ;;  %v10979_v58 = vld [vmem:[%s15376_s1 + $0x14c0] ss:$16 sps:$4 sm:$0xff]  }
 0x25f   :  { %7457 = vmatpush1.bf16.msra.mxu0 %v10887_v59  ;;  %8195 = vmatpush1.bf16.msra.mxu1 %v10890_v60  ;;  %v10982_v59 = vld [vmem:[%s15376_s1 + $0x14c8] ss:$16 sps:$4 sm:$0xff]   ;;  %v10987_v60 = vld [vmem:[%s15376_s1 + $0x14e4] ss:$16 sps:$4 sm:$0xff]  }
 0x260   :  { %7458 = vmatprep.subr.bf16.mxu0 %v10895_v61  ;;  %8196 = vmatprep.subr.bf16.mxu1 %v10898_v62  ;;  %v10990_v61 = vld [vmem:[%s15376_s1 + $0x14ec] ss:$16 sps:$4 sm:$0xff]   ;;  %v10985_v62 = vld [vmem:[%s15376_s1 + $0x14e0] ss:$16 sps:$4 sm:$0xff]  }
 0x263   :  { %7459 = vmatpush1.bf16.msra.mxu0 %v10893_v63  ;;  %8197 = vmatpush1.bf16.msra.mxu1 %v10896_v0  ;;  %v10988_v63 = vld [vmem:[%s15376_s1 + $0x14e8] ss:$16 sps:$4 sm:$0xff]   ;;  %v10993_v0 = vld [vmem:[%s15376_s1 + $0x1504] ss:$16 sps:$4 sm:$0xff]  }
 0x264   :  { %7460 = vmatprep.subr.bf16.mxu0 %v10901_v1  ;;  %8198 = vmatprep.subr.bf16.mxu1 %v10904_v2  ;;  %v10996_v1 = vld [vmem:[%s15376_s1 + $0x150c] ss:$16 sps:$4 sm:$0xff]   ;;  %v10991_v2 = vld [vmem:[%s15376_s1 + $0x1500] ss:$16 sps:$4 sm:$0xff]  }
 0x267   :  { %7461 = vmatpush1.bf16.msra.mxu0 %v10899_v3  ;;  %8199 = vmatpush1.bf16.msra.mxu1 %v10902_v4  ;;  %v10994_v3 = vld [vmem:[%s15376_s1 + $0x1508] ss:$16 sps:$4 sm:$0xff]   ;;  %v10999_v4 = vld [vmem:[%s15376_s1 + $0x1524] ss:$16 sps:$4 sm:$0xff]  }
 0x268   :  { %7462 = vmatprep.subr.bf16.mxu0 %v10907_v5  ;;  %8200 = vmatprep.subr.bf16.mxu1 %v10910_v6  ;;  %v11002_v5 = vld [vmem:[%s15376_s1 + $0x152c] ss:$16 sps:$4 sm:$0xff]   ;;  %v10997_v6 = vld [vmem:[%s15376_s1 + $0x1520] ss:$16 sps:$4 sm:$0xff]  }
 0x26b   :  { %7463 = vmatpush1.bf16.msra.mxu0 %v10905_v7  ;;  %8201 = vmatpush1.bf16.msra.mxu1 %v10908_v8  ;;  %v11000_v7 = vld [vmem:[%s15376_s1 + $0x1528] ss:$16 sps:$4 sm:$0xff]   ;;  %v11005_v8 = vld [vmem:[%s15376_s1 + $0x1544] ss:$16 sps:$4 sm:$0xff]  }
 0x26c   :  { %7464 = vmatprep.subr.bf16.mxu0 %v10913_v9  ;;  %8202 = vmatprep.subr.bf16.mxu1 %v10916_v10  ;;  %v11008_v9 = vld [vmem:[%s15376_s1 + $0x154c] ss:$16 sps:$4 sm:$0xff]   ;;  %v11003_v10 = vld [vmem:[%s15376_s1 + $0x1540] ss:$16 sps:$4 sm:$0xff]  }
 0x26f   :  { %7465 = vmatpush1.bf16.msra.mxu0 %v10911_v12  ;;  %8203 = vmatpush1.bf16.msra.mxu1 %v10914_v13  ;;  %v11006_v12 = vld [vmem:[%s15376_s1 + $0x1548] ss:$16 sps:$4 sm:$0xff]   ;;  %v11011_v13 = vld [vmem:[%s15376_s1 + $0x1564] ss:$16 sps:$4 sm:$0xff]  }
 0x270   :  { %7466 = vmatprep.subr.bf16.mxu0 %v10919_v15  ;;  %8204 = vmatprep.subr.bf16.mxu1 %v10922_v11  ;;  %v11014_v15 = vld [vmem:[%s15376_s1 + $0x156c] ss:$16 sps:$4 sm:$0xff]   ;;  %v11009_v11 = vld [vmem:[%s15376_s1 + $0x1560] ss:$16 sps:$4 sm:$0xff]  }
 0x273   :  { %7467 = vmatpush1.bf16.msra.mxu0 %v10917_v17  ;;  %8205 = vmatpush1.bf16.msra.mxu1 %v10920_v14  ;;  %v11012_v17 = vld [vmem:[%s15376_s1 + $0x1568] ss:$16 sps:$4 sm:$0xff]   ;;  %v11017_v14 = vld [vmem:[%s15376_s1 + $0x1584] ss:$16 sps:$4 sm:$0xff]  }
 0x274   :  { %7468 = vmatprep.subr.bf16.mxu0 %v10925_v19  ;;  %8206 = vmatprep.subr.bf16.mxu1 %v10928_v20  ;;  %v11020_v19 = vld [vmem:[%s15376_s1 + $0x158c] ss:$16 sps:$4 sm:$0xff]   ;;  %v11015_v20 = vld [vmem:[%s15376_s1 + $0x1580] ss:$16 sps:$4 sm:$0xff]  }
 0x277   :  { %7469 = vmatpush1.bf16.msra.mxu0 %v10923_v16  ;;  %8207 = vmatpush1.bf16.msra.mxu1 %v10926_v22  ;;  %v11018_v16 = vld [vmem:[%s15376_s1 + $0x1588] ss:$16 sps:$4 sm:$0xff]   ;;  %v11023_v22 = vld [vmem:[%s15376_s1 + $0x15a4] ss:$16 sps:$4 sm:$0xff]  }
 0x278   :  { %7470 = vmatprep.subr.bf16.mxu0 %v10931_v23  ;;  %8208 = vmatprep.subr.bf16.mxu1 %v10934_v18  ;;  %v11026_v23 = vld [vmem:[%s15376_s1 + $0x15ac] ss:$16 sps:$4 sm:$0xff]   ;;  %v11021_v18 = vld [vmem:[%s15376_s1 + $0x15a0] ss:$16 sps:$4 sm:$0xff]  }
 0x27b   :  { %7471 = vmatpush1.bf16.msra.mxu0 %v10929_v25  ;;  %8209 = vmatpush1.bf16.msra.mxu1 %v10932_v26  ;;  %v11024_v25 = vld [vmem:[%s15376_s1 + $0x15a8] ss:$16 sps:$4 sm:$0xff]   ;;  %v11029_v26 = vld [vmem:[%s15376_s1 + $0x15c4] ss:$16 sps:$4 sm:$0xff]  }
 0x27c   :  { %7472 = vmatprep.subr.bf16.mxu0 %v10937_v21  ;;  %8210 = vmatprep.subr.bf16.mxu1 %v10940_v28  ;;  %v11032_v21 = vld [vmem:[%s15376_s1 + $0x15cc] ss:$16 sps:$4 sm:$0xff]   ;;  %v11027_v28 = vld [vmem:[%s15376_s1 + $0x15c0] ss:$16 sps:$4 sm:$0xff]  }
 0x27f   :  { %7473 = vmatpush1.bf16.msra.mxu0 %v10935_v29  ;;  %8211 = vmatpush1.bf16.msra.mxu1 %v10938_v24  ;;  %v11030_v29 = vld [vmem:[%s15376_s1 + $0x15c8] ss:$16 sps:$4 sm:$0xff]   ;;  %v11035_v24 = vld [vmem:[%s15376_s1 + $0x15e4] ss:$16 sps:$4 sm:$0xff]  }
 0x280   :  { %7483 = vmatprep.subr.bf16.mxu0 %v10945_v31  ;;  %8221 = vmatprep.subr.bf16.mxu1 %v10948_v32  ;;  %v11038_v31 = vld [vmem:[%s15376_s1 + $0x15ec] ss:$16 sps:$4 sm:$0xff]   ;;  %v11033_v32 = vld [vmem:[%s15376_s1 + $0x15e0] ss:$16 sps:$4 sm:$0xff]  }
 0x282   :  { %7475 = vmatmul.mubr.bf16.vlgmr.msra.gmra.mrb[0].mxu0 %v8653_v27  ;;  %8213 = vmatmul.mubr.bf16.vlgmr.msra.gmra.mrb[0].mxu1 %v8653_v27  ;;  %v11036_v27 = vld [vmem:[%s15376_s1 + $0x15e8] ss:$16 sps:$4 sm:$0xff]  }
 0x283   :  { %7484 = vmatpush1.bf16.msra.mxu0 %v10943_v34  ;;  %8222 = vmatpush1.bf16.msra.mxu1 %v10946_v35  ;;  %v11043_v34 = vld [vmem:[%s15376_s1 + $0x1604] ss:$16 sps:$4 sm:$0xff]   ;;  %v11046_v35 = vld [vmem:[%s15376_s1 + $0x160c] ss:$16 sps:$4 sm:$0xff]  }
 0x284   :  { %7485 = vmatprep.subr.bf16.mxu0 %v10951_v36  ;;  %8223 = vmatprep.subr.bf16.mxu1 %v10954_v30  ;;  %v8655_v36 = vcombine.low %v13763_v33, %v13763_v33  ;;  %v13966_v30 = vld [vmem:[%s15377_s0 + $0x58] sm:$0xff]  ;;  %v11049_v33 = vld [vmem:[%s15376_s1 + $0x1624] ss:$16 sps:$4 sm:$0xff]  }
 0x285   :  { %7515 = vmatprep.mubr.bf16.mxu0 %v8656_v37  ;;  %8253 = vmatprep.mubr.bf16.mxu1 %v8656_v37  ;;  %v11041_v37 = vld [vmem:[%s15376_s1 + $0x1600] ss:$16 sps:$4 sm:$0xff]  }
 0x287   :  { %7486 = vmatpush1.bf16.msra.mxu0 %v10949_v38  ;;  %8224 = vmatpush1.bf16.msra.mxu1 %v10952_v39  ;;  %v11044_v38 = vld [vmem:[%s15376_s1 + $0x1608] ss:$16 sps:$4 sm:$0xff]   ;;  %v11052_v39 = vld [vmem:[%s15376_s1 + $0x162c] ss:$16 sps:$4 sm:$0xff]  }
 0x288   :  { %7487 = vmatprep.subr.bf16.mxu0 %v10957_v40  ;;  %8225 = vmatprep.subr.bf16.mxu1 %v10960_v41  ;;  %v8658_v40 = vcombine.high %v13966_v30, %v13966_v30  ;;  %v11047_v41 = vld [vmem:[%s15376_s1 + $0x1620] ss:$16 sps:$4 sm:$0xff]  }
 0x28b   :  { %7488 = vmatpush1.bf16.msra.mxu0 %v10955_v42  ;;  %8226 = vmatpush1.bf16.msra.mxu1 %v10958_v43  ;;  %v11050_v42 = vld [vmem:[%s15376_s1 + $0x1628] ss:$16 sps:$4 sm:$0xff]   ;;  %v11055_v43 = vld [vmem:[%s15376_s1 + $0x1644] ss:$16 sps:$4 sm:$0xff]  }
 0x28c   :  { %7489 = vmatprep.subr.bf16.mxu0 %v10963_v44  ;;  %8227 = vmatprep.subr.bf16.mxu1 %v10966_v45  ;;  %v11058_v44 = vld [vmem:[%s15376_s1 + $0x164c] ss:$16 sps:$4 sm:$0xff]   ;;  %v11053_v45 = vld [vmem:[%s15376_s1 + $0x1640] ss:$16 sps:$4 sm:$0xff]  }
 0x28f   :  { %7490 = vmatpush1.bf16.msra.mxu0 %v10961_v46  ;;  %8228 = vmatpush1.bf16.msra.mxu1 %v10964_v47  ;;  %v11056_v46 = vld [vmem:[%s15376_s1 + $0x1648] ss:$16 sps:$4 sm:$0xff]   ;;  %v11061_v47 = vld [vmem:[%s15376_s1 + $0x1664] ss:$16 sps:$4 sm:$0xff]  }
 0x290   :  { %7491 = vmatprep.subr.bf16.mxu0 %v10969_v48  ;;  %8229 = vmatprep.subr.bf16.mxu1 %v10972_v49  ;;  %v11064_v48 = vld [vmem:[%s15376_s1 + $0x166c] ss:$16 sps:$4 sm:$0xff]   ;;  %v11059_v49 = vld [vmem:[%s15376_s1 + $0x1660] ss:$16 sps:$4 sm:$0xff]  }
 0x293   :  { %7492 = vmatpush1.bf16.msra.mxu0 %v10967_v50  ;;  %8230 = vmatpush1.bf16.msra.mxu1 %v10970_v51  ;;  %v11062_v50 = vld [vmem:[%s15376_s1 + $0x1668] ss:$16 sps:$4 sm:$0xff]   ;;  %v11067_v51 = vld [vmem:[%s15376_s1 + $0x1684] ss:$16 sps:$4 sm:$0xff]  }
 0x294   :  { %7493 = vmatprep.subr.bf16.mxu0 %v10975_v52  ;;  %8231 = vmatprep.subr.bf16.mxu1 %v10978_v53  ;;  %v11070_v52 = vld [vmem:[%s15376_s1 + $0x168c] ss:$16 sps:$4 sm:$0xff]   ;;  %v11065_v53 = vld [vmem:[%s15376_s1 + $0x1680] ss:$16 sps:$4 sm:$0xff]  }
 0x297   :  { %7494 = vmatpush1.bf16.msra.mxu0 %v10973_v54  ;;  %8232 = vmatpush1.bf16.msra.mxu1 %v10976_v55  ;;  %v11068_v54 = vld [vmem:[%s15376_s1 + $0x1688] ss:$16 sps:$4 sm:$0xff]   ;;  %v11073_v55 = vld [vmem:[%s15376_s1 + $0x16a4] ss:$16 sps:$4 sm:$0xff]  }
 0x298   :  { %7495 = vmatprep.subr.bf16.mxu0 %v10981_v56  ;;  %8233 = vmatprep.subr.bf16.mxu1 %v10984_v57  ;;  %v11076_v56 = vld [vmem:[%s15376_s1 + $0x16ac] ss:$16 sps:$4 sm:$0xff]   ;;  %v11071_v57 = vld [vmem:[%s15376_s1 + $0x16a0] ss:$16 sps:$4 sm:$0xff]  }
 0x29b   :  { %7496 = vmatpush1.bf16.msra.mxu0 %v10979_v58  ;;  %8234 = vmatpush1.bf16.msra.mxu1 %v10982_v59  ;;  %v11074_v58 = vld [vmem:[%s15376_s1 + $0x16a8] ss:$16 sps:$4 sm:$0xff]   ;;  %v11079_v59 = vld [vmem:[%s15376_s1 + $0x16c4] ss:$16 sps:$4 sm:$0xff]  }
 0x29c   :  { %7497 = vmatprep.subr.bf16.mxu0 %v10987_v60  ;;  %8235 = vmatprep.subr.bf16.mxu1 %v10990_v61  ;;  %v11082_v60 = vld [vmem:[%s15376_s1 + $0x16cc] ss:$16 sps:$4 sm:$0xff]   ;;  %v11077_v61 = vld [vmem:[%s15376_s1 + $0x16c0] ss:$16 sps:$4 sm:$0xff]  }
 0x29f   :  { %7498 = vmatpush1.bf16.msra.mxu0 %v10985_v62  ;;  %8236 = vmatpush1.bf16.msra.mxu1 %v10988_v63  ;;  %v11080_v62 = vld [vmem:[%s15376_s1 + $0x16c8] ss:$16 sps:$4 sm:$0xff]   ;;  %v11085_v63 = vld [vmem:[%s15376_s1 + $0x16e4] ss:$16 sps:$4 sm:$0xff]  }
 0x2a0   :  { %7499 = vmatprep.subr.bf16.mxu0 %v10993_v0  ;;  %8237 = vmatprep.subr.bf16.mxu1 %v10996_v1  ;;  %v11088_v0 = vld [vmem:[%s15376_s1 + $0x16ec] ss:$16 sps:$4 sm:$0xff]   ;;  %v11083_v1 = vld [vmem:[%s15376_s1 + $0x16e0] ss:$16 sps:$4 sm:$0xff]  }
 0x2a3   :  { %7500 = vmatpush1.bf16.msra.mxu0 %v10991_v2  ;;  %8238 = vmatpush1.bf16.msra.mxu1 %v10994_v3  ;;  %v11086_v2 = vld [vmem:[%s15376_s1 + $0x16e8] ss:$16 sps:$4 sm:$0xff]   ;;  %v11091_v3 = vld [vmem:[%s15376_s1 + $0x1704] ss:$16 sps:$4 sm:$0xff]  }
 0x2a4   :  { %7501 = vmatprep.subr.bf16.mxu0 %v10999_v4  ;;  %8239 = vmatprep.subr.bf16.mxu1 %v11002_v5  ;;  %v11094_v4 = vld [vmem:[%s15376_s1 + $0x170c] ss:$16 sps:$4 sm:$0xff]   ;;  %v11089_v5 = vld [vmem:[%s15376_s1 + $0x1700] ss:$16 sps:$4 sm:$0xff]  }
 0x2a7   :  { %7502 = vmatpush1.bf16.msra.mxu0 %v10997_v6  ;;  %8240 = vmatpush1.bf16.msra.mxu1 %v11000_v7  ;;  %v11092_v6 = vld [vmem:[%s15376_s1 + $0x1708] ss:$16 sps:$4 sm:$0xff]   ;;  %v11097_v7 = vld [vmem:[%s15376_s1 + $0x1724] ss:$16 sps:$4 sm:$0xff]  }
 0x2a8   :  { %7503 = vmatprep.subr.bf16.mxu0 %v11005_v8  ;;  %8241 = vmatprep.subr.bf16.mxu1 %v11008_v9  ;;  %v11100_v8 = vld [vmem:[%s15376_s1 + $0x172c] ss:$16 sps:$4 sm:$0xff]   ;;  %v11095_v9 = vld [vmem:[%s15376_s1 + $0x1720] ss:$16 sps:$4 sm:$0xff]  }
 0x2ab   :  { %7504 = vmatpush1.bf16.msra.mxu0 %v11003_v10  ;;  %8242 = vmatpush1.bf16.msra.mxu1 %v11006_v12  ;;  %v11098_v10 = vld [vmem:[%s15376_s1 + $0x1728] ss:$16 sps:$4 sm:$0xff]   ;;  %v11103_v12 = vld [vmem:[%s15376_s1 + $0x1744] ss:$16 sps:$4 sm:$0xff]  }
 0x2ac   :  { %7505 = vmatprep.subr.bf16.mxu0 %v11011_v13  ;;  %8243 = vmatprep.subr.bf16.mxu1 %v11014_v15  ;;  %v11106_v13 = vld [vmem:[%s15376_s1 + $0x174c] ss:$16 sps:$4 sm:$0xff]   ;;  %v11101_v15 = vld [vmem:[%s15376_s1 + $0x1740] ss:$16 sps:$4 sm:$0xff]  }
 0x2af   :  { %7506 = vmatpush1.bf16.msra.mxu0 %v11009_v11  ;;  %8244 = vmatpush1.bf16.msra.mxu1 %v11012_v17  ;;  %v11104_v11 = vld [vmem:[%s15376_s1 + $0x1748] ss:$16 sps:$4 sm:$0xff]   ;;  %v11109_v17 = vld [vmem:[%s15376_s1 + $0x1764] ss:$16 sps:$4 sm:$0xff]  }
 0x2b0   :  { %7507 = vmatprep.subr.bf16.mxu0 %v11017_v14  ;;  %8245 = vmatprep.subr.bf16.mxu1 %v11020_v19  ;;  %v11112_v14 = vld [vmem:[%s15376_s1 + $0x176c] ss:$16 sps:$4 sm:$0xff]   ;;  %v11107_v19 = vld [vmem:[%s15376_s1 + $0x1760] ss:$16 sps:$4 sm:$0xff]  }
 0x2b3   :  { %7508 = vmatpush1.bf16.msra.mxu0 %v11015_v20  ;;  %8246 = vmatpush1.bf16.msra.mxu1 %v11018_v16  ;;  %v11110_v20 = vld [vmem:[%s15376_s1 + $0x1768] ss:$16 sps:$4 sm:$0xff]   ;;  %v11115_v16 = vld [vmem:[%s15376_s1 + $0x1784] ss:$16 sps:$4 sm:$0xff]  }
 0x2b4   :  { %7509 = vmatprep.subr.bf16.mxu0 %v11023_v22  ;;  %8247 = vmatprep.subr.bf16.mxu1 %v11026_v23  ;;  %v11118_v22 = vld [vmem:[%s15376_s1 + $0x178c] ss:$16 sps:$4 sm:$0xff]   ;;  %v11113_v23 = vld [vmem:[%s15376_s1 + $0x1780] ss:$16 sps:$4 sm:$0xff]  }
 0x2b7   :  { %7510 = vmatpush1.bf16.msra.mxu0 %v11021_v18  ;;  %8248 = vmatpush1.bf16.msra.mxu1 %v11024_v25  ;;  %v11116_v18 = vld [vmem:[%s15376_s1 + $0x1788] ss:$16 sps:$4 sm:$0xff]   ;;  %v11121_v25 = vld [vmem:[%s15376_s1 + $0x17a4] ss:$16 sps:$4 sm:$0xff]  }
 0x2b8   :  { %7511 = vmatprep.subr.bf16.mxu0 %v11029_v26  ;;  %8249 = vmatprep.subr.bf16.mxu1 %v11032_v21  ;;  %v11124_v26 = vld [vmem:[%s15376_s1 + $0x17ac] ss:$16 sps:$4 sm:$0xff]   ;;  %v11119_v21 = vld [vmem:[%s15376_s1 + $0x17a0] ss:$16 sps:$4 sm:$0xff]  }
 0x2bb   :  { %7512 = vmatpush1.bf16.msra.mxu0 %v11027_v28  ;;  %8250 = vmatpush1.bf16.msra.mxu1 %v11030_v29  ;;  %v11122_v28 = vld [vmem:[%s15376_s1 + $0x17a8] ss:$16 sps:$4 sm:$0xff]   ;;  %v11127_v29 = vld [vmem:[%s15376_s1 + $0x17c4] ss:$16 sps:$4 sm:$0xff]  }
 0x2bc   :  { %7513 = vmatprep.subr.bf16.mxu0 %v11035_v24  ;;  %8251 = vmatprep.subr.bf16.mxu1 %v11038_v31  ;;  %v11130_v24 = vld [vmem:[%s15376_s1 + $0x17cc] ss:$16 sps:$4 sm:$0xff]   ;;  %v11125_v31 = vld [vmem:[%s15376_s1 + $0x17c0] ss:$16 sps:$4 sm:$0xff]  }
 0x2bf   :  { %7514 = vmatpush1.bf16.msra.mxu0 %v11033_v32  ;;  %8252 = vmatpush1.bf16.msra.mxu1 %v11036_v27  ;;  %v11128_v32 = vld [vmem:[%s15376_s1 + $0x17c8] ss:$16 sps:$4 sm:$0xff]   ;;  %v11133_v27 = vld [vmem:[%s15376_s1 + $0x17e4] ss:$16 sps:$4 sm:$0xff]  }
 0x2c0   :  { %7524 = vmatprep.subr.bf16.mxu0 %v11043_v34  ;;  %8262 = vmatprep.subr.bf16.mxu1 %v11046_v35  ;;  %v11136_v34 = vld [vmem:[%s15376_s1 + $0x17ec] ss:$16 sps:$4 sm:$0xff]   ;;  %v11131_v35 = vld [vmem:[%s15376_s1 + $0x17e0] ss:$16 sps:$4 sm:$0xff]  }
 0x2c2   :  { %7516 = vmatmul.mubr.bf16.vlgmr.msra.gmra.mrb[0].mxu0 %v8655_v36  ;;  %8254 = vmatmul.mubr.bf16.vlgmr.msra.gmra.mrb[0].mxu1 %v8655_v36  ;;  %v11134_v36 = vld [vmem:[%s15376_s1 + $0x17e8] ss:$16 sps:$4 sm:$0xff]  }
 0x2c3   :  { %7525 = vmatpush1.bf16.msra.mxu0 %v11041_v37  ;;  %8263 = vmatpush1.bf16.msra.mxu1 %v11044_v38  ;;  %v11141_v37 = vld [vmem:[%s15376_s1 + $0x1804] ss:$16 sps:$4 sm:$0xff]   ;;  %v11144_v38 = vld [vmem:[%s15376_s1 + $0x180c] ss:$16 sps:$4 sm:$0xff]  }
 0x2c4   :  { %7526 = vmatprep.subr.bf16.mxu0 %v11049_v33  ;;  %8264 = vmatprep.subr.bf16.mxu1 %v11052_v39  ;;  %v8657_v33 = vcombine.low %v13966_v30, %v13966_v30  ;;  %v14167_v39 = vld [vmem:[%s15377_s0 + $0x60] sm:$0xff] }
 0x2c5   :  { %7556 = vmatprep.mubr.bf16.mxu0 %v8658_v40  ;;  %8294 = vmatprep.mubr.bf16.mxu1 %v8658_v40  ;;  %v11139_v40 = vld [vmem:[%s15376_s1 + $0x1800] ss:$16 sps:$4 sm:$0xff]   ;;  %v11147_v30 = vld [vmem:[%s15376_s1 + $0x1824] ss:$16 sps:$4 sm:$0xff]  }
 0x2c7   :  { %7527 = vmatpush1.bf16.msra.mxu0 %v11047_v41  ;;  %8265 = vmatpush1.bf16.msra.mxu1 %v11050_v42  ;;  %v11142_v41 = vld [vmem:[%s15376_s1 + $0x1808] ss:$16 sps:$4 sm:$0xff]   ;;  %v11150_v42 = vld [vmem:[%s15376_s1 + $0x182c] ss:$16 sps:$4 sm:$0xff]  }
 0x2c8   :  { %7528 = vmatprep.subr.bf16.mxu0 %v11055_v43  ;;  %8266 = vmatprep.subr.bf16.mxu1 %v11058_v44  ;;  %v8660_v43 = vcombine.high %v14167_v39, %v14167_v39  ;;  %v11145_v44 = vld [vmem:[%s15376_s1 + $0x1820] ss:$16 sps:$4 sm:$0xff]  }
 0x2cb   :  { %7529 = vmatpush1.bf16.msra.mxu0 %v11053_v45  ;;  %8267 = vmatpush1.bf16.msra.mxu1 %v11056_v46  ;;  %v11148_v45 = vld [vmem:[%s15376_s1 + $0x1828] ss:$16 sps:$4 sm:$0xff]   ;;  %v11153_v46 = vld [vmem:[%s15376_s1 + $0x1844] ss:$16 sps:$4 sm:$0xff]  }
 0x2cc   :  { %7530 = vmatprep.subr.bf16.mxu0 %v11061_v47  ;;  %8268 = vmatprep.subr.bf16.mxu1 %v11064_v48  ;;  %v11156_v47 = vld [vmem:[%s15376_s1 + $0x184c] ss:$16 sps:$4 sm:$0xff]   ;;  %v11151_v48 = vld [vmem:[%s15376_s1 + $0x1840] ss:$16 sps:$4 sm:$0xff]  }
 0x2cf   :  { %7531 = vmatpush1.bf16.msra.mxu0 %v11059_v49  ;;  %8269 = vmatpush1.bf16.msra.mxu1 %v11062_v50  ;;  %v11154_v49 = vld [vmem:[%s15376_s1 + $0x1848] ss:$16 sps:$4 sm:$0xff]   ;;  %v11159_v50 = vld [vmem:[%s15376_s1 + $0x1864] ss:$16 sps:$4 sm:$0xff]  }
 0x2d0   :  { %7532 = vmatprep.subr.bf16.mxu0 %v11067_v51  ;;  %8270 = vmatprep.subr.bf16.mxu1 %v11070_v52  ;;  %v11162_v51 = vld [vmem:[%s15376_s1 + $0x186c] ss:$16 sps:$4 sm:$0xff]   ;;  %v11157_v52 = vld [vmem:[%s15376_s1 + $0x1860] ss:$16 sps:$4 sm:$0xff]  }
 0x2d3   :  { %7533 = vmatpush1.bf16.msra.mxu0 %v11065_v53  ;;  %8271 = vmatpush1.bf16.msra.mxu1 %v11068_v54  ;;  %v11160_v53 = vld [vmem:[%s15376_s1 + $0x1868] ss:$16 sps:$4 sm:$0xff]   ;;  %v11165_v54 = vld [vmem:[%s15376_s1 + $0x1884] ss:$16 sps:$4 sm:$0xff]  }
 0x2d4   :  { %7534 = vmatprep.subr.bf16.mxu0 %v11073_v55  ;;  %8272 = vmatprep.subr.bf16.mxu1 %v11076_v56  ;;  %v11168_v55 = vld [vmem:[%s15376_s1 + $0x188c] ss:$16 sps:$4 sm:$0xff]   ;;  %v11163_v56 = vld [vmem:[%s15376_s1 + $0x1880] ss:$16 sps:$4 sm:$0xff]  }
 0x2d7   :  { %7535 = vmatpush1.bf16.msra.mxu0 %v11071_v57  ;;  %8273 = vmatpush1.bf16.msra.mxu1 %v11074_v58  ;;  %v11166_v57 = vld [vmem:[%s15376_s1 + $0x1888] ss:$16 sps:$4 sm:$0xff]   ;;  %v11171_v58 = vld [vmem:[%s15376_s1 + $0x18a4] ss:$16 sps:$4 sm:$0xff]  }
 0x2d8   :  { %7536 = vmatprep.subr.bf16.mxu0 %v11079_v59  ;;  %8274 = vmatprep.subr.bf16.mxu1 %v11082_v60  ;;  %v11174_v59 = vld [vmem:[%s15376_s1 + $0x18ac] ss:$16 sps:$4 sm:$0xff]   ;;  %v11169_v60 = vld [vmem:[%s15376_s1 + $0x18a0] ss:$16 sps:$4 sm:$0xff]  }
 0x2db   :  { %7537 = vmatpush1.bf16.msra.mxu0 %v11077_v61  ;;  %8275 = vmatpush1.bf16.msra.mxu1 %v11080_v62  ;;  %v11172_v61 = vld [vmem:[%s15376_s1 + $0x18a8] ss:$16 sps:$4 sm:$0xff]   ;;  %v11177_v62 = vld [vmem:[%s15376_s1 + $0x18c4] ss:$16 sps:$4 sm:$0xff]  }
 0x2dc   :  { %7538 = vmatprep.subr.bf16.mxu0 %v11085_v63  ;;  %8276 = vmatprep.subr.bf16.mxu1 %v11088_v0  ;;  %v11180_v63 = vld [vmem:[%s15376_s1 + $0x18cc] ss:$16 sps:$4 sm:$0xff]   ;;  %v11175_v0 = vld [vmem:[%s15376_s1 + $0x18c0] ss:$16 sps:$4 sm:$0xff]  }
 0x2df   :  { %7539 = vmatpush1.bf16.msra.mxu0 %v11083_v1  ;;  %8277 = vmatpush1.bf16.msra.mxu1 %v11086_v2  ;;  %v11178_v1 = vld [vmem:[%s15376_s1 + $0x18c8] ss:$16 sps:$4 sm:$0xff]   ;;  %v11183_v2 = vld [vmem:[%s15376_s1 + $0x18e4] ss:$16 sps:$4 sm:$0xff]  }
 0x2e0   :  { %7540 = vmatprep.subr.bf16.mxu0 %v11091_v3  ;;  %8278 = vmatprep.subr.bf16.mxu1 %v11094_v4  ;;  %v11186_v3 = vld [vmem:[%s15376_s1 + $0x18ec] ss:$16 sps:$4 sm:$0xff]   ;;  %v11181_v4 = vld [vmem:[%s15376_s1 + $0x18e0] ss:$16 sps:$4 sm:$0xff]  }
 0x2e3   :  { %7541 = vmatpush1.bf16.msra.mxu0 %v11089_v5  ;;  %8279 = vmatpush1.bf16.msra.mxu1 %v11092_v6  ;;  %v11184_v5 = vld [vmem:[%s15376_s1 + $0x18e8] ss:$16 sps:$4 sm:$0xff]   ;;  %v11189_v6 = vld [vmem:[%s15376_s1 + $0x1904] ss:$16 sps:$4 sm:$0xff]  }
 0x2e4   :  { %7542 = vmatprep.subr.bf16.mxu0 %v11097_v7  ;;  %8280 = vmatprep.subr.bf16.mxu1 %v11100_v8  ;;  %v11192_v7 = vld [vmem:[%s15376_s1 + $0x190c] ss:$16 sps:$4 sm:$0xff]   ;;  %v11187_v8 = vld [vmem:[%s15376_s1 + $0x1900] ss:$16 sps:$4 sm:$0xff]  }
 0x2e7   :  { %7543 = vmatpush1.bf16.msra.mxu0 %v11095_v9  ;;  %8281 = vmatpush1.bf16.msra.mxu1 %v11098_v10  ;;  %v11190_v9 = vld [vmem:[%s15376_s1 + $0x1908] ss:$16 sps:$4 sm:$0xff]   ;;  %v11195_v10 = vld [vmem:[%s15376_s1 + $0x1924] ss:$16 sps:$4 sm:$0xff]  }
 0x2e8   :  { %7544 = vmatprep.subr.bf16.mxu0 %v11103_v12  ;;  %8282 = vmatprep.subr.bf16.mxu1 %v11106_v13  ;;  %v11198_v12 = vld [vmem:[%s15376_s1 + $0x192c] ss:$16 sps:$4 sm:$0xff]   ;;  %v11193_v13 = vld [vmem:[%s15376_s1 + $0x1920] ss:$16 sps:$4 sm:$0xff]  }
 0x2eb   :  { %7545 = vmatpush1.bf16.msra.mxu0 %v11101_v15  ;;  %8283 = vmatpush1.bf16.msra.mxu1 %v11104_v11  ;;  %v11196_v15 = vld [vmem:[%s15376_s1 + $0x1928] ss:$16 sps:$4 sm:$0xff]   ;;  %v11201_v11 = vld [vmem:[%s15376_s1 + $0x1944] ss:$16 sps:$4 sm:$0xff]  }
 0x2ec   :  { %7546 = vmatprep.subr.bf16.mxu0 %v11109_v17  ;;  %8284 = vmatprep.subr.bf16.mxu1 %v11112_v14  ;;  %v11204_v17 = vld [vmem:[%s15376_s1 + $0x194c] ss:$16 sps:$4 sm:$0xff]   ;;  %v11199_v14 = vld [vmem:[%s15376_s1 + $0x1940] ss:$16 sps:$4 sm:$0xff]  }
 0x2ef   :  { %7547 = vmatpush1.bf16.msra.mxu0 %v11107_v19  ;;  %8285 = vmatpush1.bf16.msra.mxu1 %v11110_v20  ;;  %v11202_v19 = vld [vmem:[%s15376_s1 + $0x1948] ss:$16 sps:$4 sm:$0xff]   ;;  %v11207_v20 = vld [vmem:[%s15376_s1 + $0x1964] ss:$16 sps:$4 sm:$0xff]  }
 0x2f0   :  { %7548 = vmatprep.subr.bf16.mxu0 %v11115_v16  ;;  %8286 = vmatprep.subr.bf16.mxu1 %v11118_v22  ;;  %v11210_v16 = vld [vmem:[%s15376_s1 + $0x196c] ss:$16 sps:$4 sm:$0xff]   ;;  %v11205_v22 = vld [vmem:[%s15376_s1 + $0x1960] ss:$16 sps:$4 sm:$0xff]  }
 0x2f3   :  { %7549 = vmatpush1.bf16.msra.mxu0 %v11113_v23  ;;  %8287 = vmatpush1.bf16.msra.mxu1 %v11116_v18  ;;  %v11208_v23 = vld [vmem:[%s15376_s1 + $0x1968] ss:$16 sps:$4 sm:$0xff]   ;;  %v11213_v18 = vld [vmem:[%s15376_s1 + $0x1984] ss:$16 sps:$4 sm:$0xff]  }
 0x2f4   :  { %7550 = vmatprep.subr.bf16.mxu0 %v11121_v25  ;;  %8288 = vmatprep.subr.bf16.mxu1 %v11124_v26  ;;  %v11216_v25 = vld [vmem:[%s15376_s1 + $0x198c] ss:$16 sps:$4 sm:$0xff]   ;;  %v11211_v26 = vld [vmem:[%s15376_s1 + $0x1980] ss:$16 sps:$4 sm:$0xff]  }
 0x2f7   :  { %7551 = vmatpush1.bf16.msra.mxu0 %v11119_v21  ;;  %8289 = vmatpush1.bf16.msra.mxu1 %v11122_v28  ;;  %v11214_v21 = vld [vmem:[%s15376_s1 + $0x1988] ss:$16 sps:$4 sm:$0xff]   ;;  %v11219_v28 = vld [vmem:[%s15376_s1 + $0x19a4] ss:$16 sps:$4 sm:$0xff]  }
 0x2f8   :  { %7552 = vmatprep.subr.bf16.mxu0 %v11127_v29  ;;  %8290 = vmatprep.subr.bf16.mxu1 %v11130_v24  ;;  %v11222_v29 = vld [vmem:[%s15376_s1 + $0x19ac] ss:$16 sps:$4 sm:$0xff]   ;;  %v11217_v24 = vld [vmem:[%s15376_s1 + $0x19a0] ss:$16 sps:$4 sm:$0xff]  }
 0x2fb   :  { %7553 = vmatpush1.bf16.msra.mxu0 %v11125_v31  ;;  %8291 = vmatpush1.bf16.msra.mxu1 %v11128_v32  ;;  %v11220_v31 = vld [vmem:[%s15376_s1 + $0x19a8] ss:$16 sps:$4 sm:$0xff]   ;;  %v11225_v32 = vld [vmem:[%s15376_s1 + $0x19c4] ss:$16 sps:$4 sm:$0xff]  }
 0x2fc   :  { %7554 = vmatprep.subr.bf16.mxu0 %v11133_v27  ;;  %8292 = vmatprep.subr.bf16.mxu1 %v11136_v34  ;;  %v11228_v27 = vld [vmem:[%s15376_s1 + $0x19cc] ss:$16 sps:$4 sm:$0xff]   ;;  %v11223_v34 = vld [vmem:[%s15376_s1 + $0x19c0] ss:$16 sps:$4 sm:$0xff]  }
 0x2ff   :  { %7555 = vmatpush1.bf16.msra.mxu0 %v11131_v35  ;;  %8293 = vmatpush1.bf16.msra.mxu1 %v11134_v36  ;;  %v11226_v35 = vld [vmem:[%s15376_s1 + $0x19c8] ss:$16 sps:$4 sm:$0xff]   ;;  %v11231_v36 = vld [vmem:[%s15376_s1 + $0x19e4] ss:$16 sps:$4 sm:$0xff]  }
 0x300   :  { %7565 = vmatprep.subr.bf16.mxu0 %v11141_v37  ;;  %8303 = vmatprep.subr.bf16.mxu1 %v11144_v38  ;;  %v11234_v37 = vld [vmem:[%s15376_s1 + $0x19ec] ss:$16 sps:$4 sm:$0xff]   ;;  %v11229_v38 = vld [vmem:[%s15376_s1 + $0x19e0] ss:$16 sps:$4 sm:$0xff]  }
 0x302   :  { %7557 = vmatmul.mubr.bf16.vlgmr.msra.gmra.mrb[0].mxu0 %v8657_v33  ;;  %8295 = vmatmul.mubr.bf16.vlgmr.msra.gmra.mrb[0].mxu1 %v8657_v33  ;;  %v11232_v33 = vld [vmem:[%s15376_s1 + $0x19e8] ss:$16 sps:$4 sm:$0xff]  }
 0x303   :  { %7566 = vmatpush1.bf16.msra.mxu0 %v11139_v40  ;;  %8304 = vmatpush1.bf16.msra.mxu1 %v11142_v41  ;;  %v11239_v40 = vld [vmem:[%s15376_s1 + $0x1a04] ss:$16 sps:$4 sm:$0xff]   ;;  %v11242_v41 = vld [vmem:[%s15376_s1 + $0x1a0c] ss:$16 sps:$4 sm:$0xff]  }
 0x304   :  { %7567 = vmatprep.subr.bf16.mxu0 %v11147_v30  ;;  %8305 = vmatprep.subr.bf16.mxu1 %v11150_v42  ;;  %v8659_v30 = vcombine.low %v14167_v39, %v14167_v39  ;;  %v14368_v42 = vld [vmem:[%s15377_s0 + $0x68] sm:$0xff]  ;;  %v11245_v39 = vld [vmem:[%s15376_s1 + $0x1a24] ss:$16 sps:$4 sm:$0xff]  }
 0x305   :  { %7597 = vmatprep.mubr.bf16.mxu0 %v8660_v43  ;;  %8335 = vmatprep.mubr.bf16.mxu1 %v8660_v43  ;;  %v11237_v43 = vld [vmem:[%s15376_s1 + $0x1a00] ss:$16 sps:$4 sm:$0xff]  }
 0x307   :  { %7568 = vmatpush1.bf16.msra.mxu0 %v11145_v44  ;;  %8306 = vmatpush1.bf16.msra.mxu1 %v11148_v45  ;;  %v11240_v44 = vld [vmem:[%s15376_s1 + $0x1a08] ss:$16 sps:$4 sm:$0xff]   ;;  %v11248_v45 = vld [vmem:[%s15376_s1 + $0x1a2c] ss:$16 sps:$4 sm:$0xff]  }
 0x308   :  { %7569 = vmatprep.subr.bf16.mxu0 %v11153_v46  ;;  %8307 = vmatprep.subr.bf16.mxu1 %v11156_v47  ;;  %v8662_v46 = vcombine.high %v14368_v42, %v14368_v42  ;;  %v11243_v47 = vld [vmem:[%s15376_s1 + $0x1a20] ss:$16 sps:$4 sm:$0xff]  }
 0x30b   :  { %7570 = vmatpush1.bf16.msra.mxu0 %v11151_v48  ;;  %8308 = vmatpush1.bf16.msra.mxu1 %v11154_v49  ;;  %v11246_v48 = vld [vmem:[%s15376_s1 + $0x1a28] ss:$16 sps:$4 sm:$0xff]   ;;  %v11251_v49 = vld [vmem:[%s15376_s1 + $0x1a44] ss:$16 sps:$4 sm:$0xff]  }
 0x30c   :  { %7571 = vmatprep.subr.bf16.mxu0 %v11159_v50  ;;  %8309 = vmatprep.subr.bf16.mxu1 %v11162_v51  ;;  %v11254_v50 = vld [vmem:[%s15376_s1 + $0x1a4c] ss:$16 sps:$4 sm:$0xff]   ;;  %v11249_v51 = vld [vmem:[%s15376_s1 + $0x1a40] ss:$16 sps:$4 sm:$0xff]  }
 0x30f   :  { %7572 = vmatpush1.bf16.msra.mxu0 %v11157_v52  ;;  %8310 = vmatpush1.bf16.msra.mxu1 %v11160_v53  ;;  %v11252_v52 = vld [vmem:[%s15376_s1 + $0x1a48] ss:$16 sps:$4 sm:$0xff]   ;;  %v11257_v53 = vld [vmem:[%s15376_s1 + $0x1a64] ss:$16 sps:$4 sm:$0xff]  }
 0x310   :  { %7573 = vmatprep.subr.bf16.mxu0 %v11165_v54  ;;  %8311 = vmatprep.subr.bf16.mxu1 %v11168_v55  ;;  %v11260_v54 = vld [vmem:[%s15376_s1 + $0x1a6c] ss:$16 sps:$4 sm:$0xff]   ;;  %v11255_v55 = vld [vmem:[%s15376_s1 + $0x1a60] ss:$16 sps:$4 sm:$0xff]  }
 0x313   :  { %7574 = vmatpush1.bf16.msra.mxu0 %v11163_v56  ;;  %8312 = vmatpush1.bf16.msra.mxu1 %v11166_v57  ;;  %v11258_v56 = vld [vmem:[%s15376_s1 + $0x1a68] ss:$16 sps:$4 sm:$0xff]   ;;  %v11263_v57 = vld [vmem:[%s15376_s1 + $0x1a84] ss:$16 sps:$4 sm:$0xff]  }
 0x314   :  { %7575 = vmatprep.subr.bf16.mxu0 %v11171_v58  ;;  %8313 = vmatprep.subr.bf16.mxu1 %v11174_v59  ;;  %v11266_v58 = vld [vmem:[%s15376_s1 + $0x1a8c] ss:$16 sps:$4 sm:$0xff]   ;;  %v11261_v59 = vld [vmem:[%s15376_s1 + $0x1a80] ss:$16 sps:$4 sm:$0xff]  }
 0x317   :  { %7576 = vmatpush1.bf16.msra.mxu0 %v11169_v60  ;;  %8314 = vmatpush1.bf16.msra.mxu1 %v11172_v61  ;;  %v11264_v60 = vld [vmem:[%s15376_s1 + $0x1a88] ss:$16 sps:$4 sm:$0xff]   ;;  %v11269_v61 = vld [vmem:[%s15376_s1 + $0x1aa4] ss:$16 sps:$4 sm:$0xff]  }
 0x318   :  { %7577 = vmatprep.subr.bf16.mxu0 %v11177_v62  ;;  %8315 = vmatprep.subr.bf16.mxu1 %v11180_v63  ;;  %v11272_v62 = vld [vmem:[%s15376_s1 + $0x1aac] ss:$16 sps:$4 sm:$0xff]   ;;  %v11267_v63 = vld [vmem:[%s15376_s1 + $0x1aa0] ss:$16 sps:$4 sm:$0xff]  }
 0x31b   :  { %7578 = vmatpush1.bf16.msra.mxu0 %v11175_v0  ;;  %8316 = vmatpush1.bf16.msra.mxu1 %v11178_v1  ;;  %v11270_v0 = vld [vmem:[%s15376_s1 + $0x1aa8] ss:$16 sps:$4 sm:$0xff]   ;;  %v11275_v1 = vld [vmem:[%s15376_s1 + $0x1ac4] ss:$16 sps:$4 sm:$0xff]  }
 0x31c   :  { %7579 = vmatprep.subr.bf16.mxu0 %v11183_v2  ;;  %8317 = vmatprep.subr.bf16.mxu1 %v11186_v3  ;;  %v11278_v2 = vld [vmem:[%s15376_s1 + $0x1acc] ss:$16 sps:$4 sm:$0xff]   ;;  %v11273_v3 = vld [vmem:[%s15376_s1 + $0x1ac0] ss:$16 sps:$4 sm:$0xff]  }
 0x31f   :  { %7580 = vmatpush1.bf16.msra.mxu0 %v11181_v4  ;;  %8318 = vmatpush1.bf16.msra.mxu1 %v11184_v5  ;;  %v11276_v4 = vld [vmem:[%s15376_s1 + $0x1ac8] ss:$16 sps:$4 sm:$0xff]   ;;  %v11281_v5 = vld [vmem:[%s15376_s1 + $0x1ae4] ss:$16 sps:$4 sm:$0xff]  }
 0x320   :  { %7581 = vmatprep.subr.bf16.mxu0 %v11189_v6  ;;  %8319 = vmatprep.subr.bf16.mxu1 %v11192_v7  ;;  %v11284_v6 = vld [vmem:[%s15376_s1 + $0x1aec] ss:$16 sps:$4 sm:$0xff]   ;;  %v11279_v7 = vld [vmem:[%s15376_s1 + $0x1ae0] ss:$16 sps:$4 sm:$0xff]  }
 0x323   :  { %7582 = vmatpush1.bf16.msra.mxu0 %v11187_v8  ;;  %8320 = vmatpush1.bf16.msra.mxu1 %v11190_v9  ;;  %v11282_v8 = vld [vmem:[%s15376_s1 + $0x1ae8] ss:$16 sps:$4 sm:$0xff]   ;;  %v11287_v9 = vld [vmem:[%s15376_s1 + $0x1b04] ss:$16 sps:$4 sm:$0xff]  }
 0x324   :  { %7583 = vmatprep.subr.bf16.mxu0 %v11195_v10  ;;  %8321 = vmatprep.subr.bf16.mxu1 %v11198_v12  ;;  %v11290_v10 = vld [vmem:[%s15376_s1 + $0x1b0c] ss:$16 sps:$4 sm:$0xff]   ;;  %v11285_v12 = vld [vmem:[%s15376_s1 + $0x1b00] ss:$16 sps:$4 sm:$0xff]  }
 0x327   :  { %7584 = vmatpush1.bf16.msra.mxu0 %v11193_v13  ;;  %8322 = vmatpush1.bf16.msra.mxu1 %v11196_v15  ;;  %v11288_v13 = vld [vmem:[%s15376_s1 + $0x1b08] ss:$16 sps:$4 sm:$0xff]   ;;  %v11293_v15 = vld [vmem:[%s15376_s1 + $0x1b24] ss:$16 sps:$4 sm:$0xff]  }
 0x328   :  { %7585 = vmatprep.subr.bf16.mxu0 %v11201_v11  ;;  %8323 = vmatprep.subr.bf16.mxu1 %v11204_v17  ;;  %v11296_v11 = vld [vmem:[%s15376_s1 + $0x1b2c] ss:$16 sps:$4 sm:$0xff]   ;;  %v11291_v17 = vld [vmem:[%s15376_s1 + $0x1b20] ss:$16 sps:$4 sm:$0xff]  }
 0x32b   :  { %7586 = vmatpush1.bf16.msra.mxu0 %v11199_v14  ;;  %8324 = vmatpush1.bf16.msra.mxu1 %v11202_v19  ;;  %v11294_v14 = vld [vmem:[%s15376_s1 + $0x1b28] ss:$16 sps:$4 sm:$0xff]   ;;  %v11299_v19 = vld [vmem:[%s15376_s1 + $0x1b44] ss:$16 sps:$4 sm:$0xff]  }
 0x32c   :  { %7587 = vmatprep.subr.bf16.mxu0 %v11207_v20  ;;  %8325 = vmatprep.subr.bf16.mxu1 %v11210_v16  ;;  %v11302_v20 = vld [vmem:[%s15376_s1 + $0x1b4c] ss:$16 sps:$4 sm:$0xff]   ;;  %v11297_v16 = vld [vmem:[%s15376_s1 + $0x1b40] ss:$16 sps:$4 sm:$0xff]  }
 0x32f   :  { %7588 = vmatpush1.bf16.msra.mxu0 %v11205_v22  ;;  %8326 = vmatpush1.bf16.msra.mxu1 %v11208_v23  ;;  %v11300_v22 = vld [vmem:[%s15376_s1 + $0x1b48] ss:$16 sps:$4 sm:$0xff]   ;;  %v11305_v23 = vld [vmem:[%s15376_s1 + $0x1b64] ss:$16 sps:$4 sm:$0xff]  }
 0x330   :  { %7589 = vmatprep.subr.bf16.mxu0 %v11213_v18  ;;  %8327 = vmatprep.subr.bf16.mxu1 %v11216_v25  ;;  %v11308_v18 = vld [vmem:[%s15376_s1 + $0x1b6c] ss:$16 sps:$4 sm:$0xff]   ;;  %v11303_v25 = vld [vmem:[%s15376_s1 + $0x1b60] ss:$16 sps:$4 sm:$0xff]  }
 0x333   :  { %7590 = vmatpush1.bf16.msra.mxu0 %v11211_v26  ;;  %8328 = vmatpush1.bf16.msra.mxu1 %v11214_v21  ;;  %v11306_v26 = vld [vmem:[%s15376_s1 + $0x1b68] ss:$16 sps:$4 sm:$0xff]   ;;  %v11311_v21 = vld [vmem:[%s15376_s1 + $0x1b84] ss:$16 sps:$4 sm:$0xff]  }
 0x334   :  { %7591 = vmatprep.subr.bf16.mxu0 %v11219_v28  ;;  %8329 = vmatprep.subr.bf16.mxu1 %v11222_v29  ;;  %v11314_v28 = vld [vmem:[%s15376_s1 + $0x1b8c] ss:$16 sps:$4 sm:$0xff]   ;;  %v11309_v29 = vld [vmem:[%s15376_s1 + $0x1b80] ss:$16 sps:$4 sm:$0xff]  }
 0x337   :  { %7592 = vmatpush1.bf16.msra.mxu0 %v11217_v24  ;;  %8330 = vmatpush1.bf16.msra.mxu1 %v11220_v31  ;;  %v11312_v24 = vld [vmem:[%s15376_s1 + $0x1b88] ss:$16 sps:$4 sm:$0xff]   ;;  %v11317_v31 = vld [vmem:[%s15376_s1 + $0x1ba4] ss:$16 sps:$4 sm:$0xff]  }
 0x338   :  { %7593 = vmatprep.subr.bf16.mxu0 %v11225_v32  ;;  %8331 = vmatprep.subr.bf16.mxu1 %v11228_v27  ;;  %v11320_v32 = vld [vmem:[%s15376_s1 + $0x1bac] ss:$16 sps:$4 sm:$0xff]   ;;  %v11315_v27 = vld [vmem:[%s15376_s1 + $0x1ba0] ss:$16 sps:$4 sm:$0xff]  }
 0x33b   :  { %7594 = vmatpush1.bf16.msra.mxu0 %v11223_v34  ;;  %8332 = vmatpush1.bf16.msra.mxu1 %v11226_v35  ;;  %v11318_v34 = vld [vmem:[%s15376_s1 + $0x1ba8] ss:$16 sps:$4 sm:$0xff]   ;;  %v11323_v35 = vld [vmem:[%s15376_s1 + $0x1bc4] ss:$16 sps:$4 sm:$0xff]  }
 0x33c   :  { %7595 = vmatprep.subr.bf16.mxu0 %v11231_v36  ;;  %8333 = vmatprep.subr.bf16.mxu1 %v11234_v37  ;;  %v11326_v36 = vld [vmem:[%s15376_s1 + $0x1bcc] ss:$16 sps:$4 sm:$0xff]   ;;  %v11321_v37 = vld [vmem:[%s15376_s1 + $0x1bc0] ss:$16 sps:$4 sm:$0xff]  }
 0x33f   :  { %7596 = vmatpush1.bf16.msra.mxu0 %v11229_v38  ;;  %8334 = vmatpush1.bf16.msra.mxu1 %v11232_v33  ;;  %v11324_v38 = vld [vmem:[%s15376_s1 + $0x1bc8] ss:$16 sps:$4 sm:$0xff]   ;;  %v11329_v33 = vld [vmem:[%s15376_s1 + $0x1be4] ss:$16 sps:$4 sm:$0xff]  }
 0x340   :  { %7606 = vmatprep.subr.bf16.mxu0 %v11239_v40  ;;  %8344 = vmatprep.subr.bf16.mxu1 %v11242_v41  ;;  %v11332_v40 = vld [vmem:[%s15376_s1 + $0x1bec] ss:$16 sps:$4 sm:$0xff]   ;;  %v11327_v41 = vld [vmem:[%s15376_s1 + $0x1be0] ss:$16 sps:$4 sm:$0xff]  }
 0x342   :  { %7598 = vmatmul.mubr.bf16.vlgmr.msra.gmra.mrb[0].mxu0 %v8659_v30  ;;  %8336 = vmatmul.mubr.bf16.vlgmr.msra.gmra.mrb[0].mxu1 %v8659_v30  ;;  %v11330_v30 = vld [vmem:[%s15376_s1 + $0x1be8] ss:$16 sps:$4 sm:$0xff]  }
 0x343   :  { %7607 = vmatpush1.bf16.msra.mxu0 %v11237_v43  ;;  %8345 = vmatpush1.bf16.msra.mxu1 %v11240_v44  ;;  %v11337_v43 = vld [vmem:[%s15376_s1 + $0x1c04] ss:$16 sps:$4 sm:$0xff]   ;;  %v11340_v44 = vld [vmem:[%s15376_s1 + $0x1c0c] ss:$16 sps:$4 sm:$0xff]  }
 0x344   :  { %7608 = vmatprep.subr.bf16.mxu0 %v11245_v39  ;;  %8346 = vmatprep.subr.bf16.mxu1 %v11248_v45  ;;  %v8661_v39 = vcombine.low %v14368_v42, %v14368_v42  ;;  %v14569_v45 = vld [vmem:[%s15377_s0 + $0x70] sm:$0xff] }
 0x345   :  { %7638 = vmatprep.mubr.bf16.mxu0 %v8662_v46  ;;  %8376 = vmatprep.mubr.bf16.mxu1 %v8662_v46  ;;  %v11335_v46 = vld [vmem:[%s15376_s1 + $0x1c00] ss:$16 sps:$4 sm:$0xff]   ;;  %v11343_v42 = vld [vmem:[%s15376_s1 + $0x1c24] ss:$16 sps:$4 sm:$0xff]  }
 0x347   :  { %7609 = vmatpush1.bf16.msra.mxu0 %v11243_v47  ;;  %8347 = vmatpush1.bf16.msra.mxu1 %v11246_v48  ;;  %v11338_v47 = vld [vmem:[%s15376_s1 + $0x1c08] ss:$16 sps:$4 sm:$0xff]   ;;  %v11346_v48 = vld [vmem:[%s15376_s1 + $0x1c2c] ss:$16 sps:$4 sm:$0xff]  }
 0x348   :  { %7610 = vmatprep.subr.bf16.mxu0 %v11251_v49  ;;  %8348 = vmatprep.subr.bf16.mxu1 %v11254_v50  ;;  %v8664_v49 = vcombine.high %v14569_v45, %v14569_v45  ;;  %v11341_v50 = vld [vmem:[%s15376_s1 + $0x1c20] ss:$16 sps:$4 sm:$0xff]  }
 0x34b   :  { %7611 = vmatpush1.bf16.msra.mxu0 %v11249_v51  ;;  %8349 = vmatpush1.bf16.msra.mxu1 %v11252_v52  ;;  %v11344_v51 = vld [vmem:[%s15376_s1 + $0x1c28] ss:$16 sps:$4 sm:$0xff]   ;;  %v11349_v52 = vld [vmem:[%s15376_s1 + $0x1c44] ss:$16 sps:$4 sm:$0xff]  }
 0x34c   :  { %7612 = vmatprep.subr.bf16.mxu0 %v11257_v53  ;;  %8350 = vmatprep.subr.bf16.mxu1 %v11260_v54  ;;  %v11352_v53 = vld [vmem:[%s15376_s1 + $0x1c4c] ss:$16 sps:$4 sm:$0xff]   ;;  %v11347_v54 = vld [vmem:[%s15376_s1 + $0x1c40] ss:$16 sps:$4 sm:$0xff]  }
 0x34f   :  { %7613 = vmatpush1.bf16.msra.mxu0 %v11255_v55  ;;  %8351 = vmatpush1.bf16.msra.mxu1 %v11258_v56  ;;  %v11350_v55 = vld [vmem:[%s15376_s1 + $0x1c48] ss:$16 sps:$4 sm:$0xff]   ;;  %v11355_v56 = vld [vmem:[%s15376_s1 + $0x1c64] ss:$16 sps:$4 sm:$0xff]  }
 0x350   :  { %7614 = vmatprep.subr.bf16.mxu0 %v11263_v57  ;;  %8352 = vmatprep.subr.bf16.mxu1 %v11266_v58  ;;  %v11358_v57 = vld [vmem:[%s15376_s1 + $0x1c6c] ss:$16 sps:$4 sm:$0xff]   ;;  %v11353_v58 = vld [vmem:[%s15376_s1 + $0x1c60] ss:$16 sps:$4 sm:$0xff]  }
 0x353   :  { %7615 = vmatpush1.bf16.msra.mxu0 %v11261_v59  ;;  %8353 = vmatpush1.bf16.msra.mxu1 %v11264_v60  ;;  %v11356_v59 = vld [vmem:[%s15376_s1 + $0x1c68] ss:$16 sps:$4 sm:$0xff]   ;;  %v11361_v60 = vld [vmem:[%s15376_s1 + $0x1c84] ss:$16 sps:$4 sm:$0xff]  }
 0x354   :  { %7616 = vmatprep.subr.bf16.mxu0 %v11269_v61  ;;  %8354 = vmatprep.subr.bf16.mxu1 %v11272_v62  ;;  %v11364_v61 = vld [vmem:[%s15376_s1 + $0x1c8c] ss:$16 sps:$4 sm:$0xff]   ;;  %v11359_v62 = vld [vmem:[%s15376_s1 + $0x1c80] ss:$16 sps:$4 sm:$0xff]  }
 0x357   :  { %7617 = vmatpush1.bf16.msra.mxu0 %v11267_v63  ;;  %8355 = vmatpush1.bf16.msra.mxu1 %v11270_v0  ;;  %v11362_v63 = vld [vmem:[%s15376_s1 + $0x1c88] ss:$16 sps:$4 sm:$0xff]   ;;  %v11367_v0 = vld [vmem:[%s15376_s1 + $0x1ca4] ss:$16 sps:$4 sm:$0xff]  }
 0x358   :  { %7618 = vmatprep.subr.bf16.mxu0 %v11275_v1  ;;  %8356 = vmatprep.subr.bf16.mxu1 %v11278_v2  ;;  %v11370_v1 = vld [vmem:[%s15376_s1 + $0x1cac] ss:$16 sps:$4 sm:$0xff]   ;;  %v11365_v2 = vld [vmem:[%s15376_s1 + $0x1ca0] ss:$16 sps:$4 sm:$0xff]  }
 0x35b   :  { %7619 = vmatpush1.bf16.msra.mxu0 %v11273_v3  ;;  %8357 = vmatpush1.bf16.msra.mxu1 %v11276_v4  ;;  %v11368_v3 = vld [vmem:[%s15376_s1 + $0x1ca8] ss:$16 sps:$4 sm:$0xff]   ;;  %v11373_v4 = vld [vmem:[%s15376_s1 + $0x1cc4] ss:$16 sps:$4 sm:$0xff]  }
 0x35c   :  { %7620 = vmatprep.subr.bf16.mxu0 %v11281_v5  ;;  %8358 = vmatprep.subr.bf16.mxu1 %v11284_v6  ;;  %v11376_v5 = vld [vmem:[%s15376_s1 + $0x1ccc] ss:$16 sps:$4 sm:$0xff]   ;;  %v11371_v6 = vld [vmem:[%s15376_s1 + $0x1cc0] ss:$16 sps:$4 sm:$0xff]  }
 0x35f   :  { %7621 = vmatpush1.bf16.msra.mxu0 %v11279_v7  ;;  %8359 = vmatpush1.bf16.msra.mxu1 %v11282_v8  ;;  %v11374_v7 = vld [vmem:[%s15376_s1 + $0x1cc8] ss:$16 sps:$4 sm:$0xff]   ;;  %v11379_v8 = vld [vmem:[%s15376_s1 + $0x1ce4] ss:$16 sps:$4 sm:$0xff]  }
 0x360   :  { %7622 = vmatprep.subr.bf16.mxu0 %v11287_v9  ;;  %8360 = vmatprep.subr.bf16.mxu1 %v11290_v10  ;;  %v11382_v9 = vld [vmem:[%s15376_s1 + $0x1cec] ss:$16 sps:$4 sm:$0xff]   ;;  %v11377_v10 = vld [vmem:[%s15376_s1 + $0x1ce0] ss:$16 sps:$4 sm:$0xff]  }
 0x363   :  { %7623 = vmatpush1.bf16.msra.mxu0 %v11285_v12  ;;  %8361 = vmatpush1.bf16.msra.mxu1 %v11288_v13  ;;  %v11380_v12 = vld [vmem:[%s15376_s1 + $0x1ce8] ss:$16 sps:$4 sm:$0xff]   ;;  %v11385_v13 = vld [vmem:[%s15376_s1 + $0x1d04] ss:$16 sps:$4 sm:$0xff]  }
 0x364   :  { %7624 = vmatprep.subr.bf16.mxu0 %v11293_v15  ;;  %8362 = vmatprep.subr.bf16.mxu1 %v11296_v11  ;;  %v11388_v15 = vld [vmem:[%s15376_s1 + $0x1d0c] ss:$16 sps:$4 sm:$0xff]   ;;  %v11383_v11 = vld [vmem:[%s15376_s1 + $0x1d00] ss:$16 sps:$4 sm:$0xff]  }
 0x367   :  { %7625 = vmatpush1.bf16.msra.mxu0 %v11291_v17  ;;  %8363 = vmatpush1.bf16.msra.mxu1 %v11294_v14  ;;  %v11386_v17 = vld [vmem:[%s15376_s1 + $0x1d08] ss:$16 sps:$4 sm:$0xff]   ;;  %v11391_v14 = vld [vmem:[%s15376_s1 + $0x1d24] ss:$16 sps:$4 sm:$0xff]  }
 0x368   :  { %7626 = vmatprep.subr.bf16.mxu0 %v11299_v19  ;;  %8364 = vmatprep.subr.bf16.mxu1 %v11302_v20  ;;  %v11394_v19 = vld [vmem:[%s15376_s1 + $0x1d2c] ss:$16 sps:$4 sm:$0xff]   ;;  %v11389_v20 = vld [vmem:[%s15376_s1 + $0x1d20] ss:$16 sps:$4 sm:$0xff]  }
 0x36b   :  { %7627 = vmatpush1.bf16.msra.mxu0 %v11297_v16  ;;  %8365 = vmatpush1.bf16.msra.mxu1 %v11300_v22  ;;  %v11392_v16 = vld [vmem:[%s15376_s1 + $0x1d28] ss:$16 sps:$4 sm:$0xff]   ;;  %v11397_v22 = vld [vmem:[%s15376_s1 + $0x1d44] ss:$16 sps:$4 sm:$0xff]  }
 0x36c   :  { %7628 = vmatprep.subr.bf16.mxu0 %v11305_v23  ;;  %8366 = vmatprep.subr.bf16.mxu1 %v11308_v18  ;;  %v11400_v23 = vld [vmem:[%s15376_s1 + $0x1d4c] ss:$16 sps:$4 sm:$0xff]   ;;  %v11395_v18 = vld [vmem:[%s15376_s1 + $0x1d40] ss:$16 sps:$4 sm:$0xff]  }
 0x36f   :  { %7629 = vmatpush1.bf16.msra.mxu0 %v11303_v25  ;;  %8367 = vmatpush1.bf16.msra.mxu1 %v11306_v26  ;;  %v11398_v25 = vld [vmem:[%s15376_s1 + $0x1d48] ss:$16 sps:$4 sm:$0xff]   ;;  %v11403_v26 = vld [vmem:[%s15376_s1 + $0x1d64] ss:$16 sps:$4 sm:$0xff]  }
 0x370   :  { %7630 = vmatprep.subr.bf16.mxu0 %v11311_v21  ;;  %8368 = vmatprep.subr.bf16.mxu1 %v11314_v28  ;;  %v11406_v21 = vld [vmem:[%s15376_s1 + $0x1d6c] ss:$16 sps:$4 sm:$0xff]   ;;  %v11401_v28 = vld [vmem:[%s15376_s1 + $0x1d60] ss:$16 sps:$4 sm:$0xff]  }
 0x373   :  { %7631 = vmatpush1.bf16.msra.mxu0 %v11309_v29  ;;  %8369 = vmatpush1.bf16.msra.mxu1 %v11312_v24  ;;  %v11404_v29 = vld [vmem:[%s15376_s1 + $0x1d68] ss:$16 sps:$4 sm:$0xff]   ;;  %v11409_v24 = vld [vmem:[%s15376_s1 + $0x1d84] ss:$16 sps:$4 sm:$0xff]  }
 0x374   :  { %7632 = vmatprep.subr.bf16.mxu0 %v11317_v31  ;;  %8370 = vmatprep.subr.bf16.mxu1 %v11320_v32  ;;  %v11412_v31 = vld [vmem:[%s15376_s1 + $0x1d8c] ss:$16 sps:$4 sm:$0xff]   ;;  %v11407_v32 = vld [vmem:[%s15376_s1 + $0x1d80] ss:$16 sps:$4 sm:$0xff]  }
 0x377   :  { %7633 = vmatpush1.bf16.msra.mxu0 %v11315_v27  ;;  %8371 = vmatpush1.bf16.msra.mxu1 %v11318_v34  ;;  %v11410_v27 = vld [vmem:[%s15376_s1 + $0x1d88] ss:$16 sps:$4 sm:$0xff]   ;;  %v11415_v34 = vld [vmem:[%s15376_s1 + $0x1da4] ss:$16 sps:$4 sm:$0xff]  }
 0x378   :  { %7634 = vmatprep.subr.bf16.mxu0 %v11323_v35  ;;  %8372 = vmatprep.subr.bf16.mxu1 %v11326_v36  ;;  %v11418_v35 = vld [vmem:[%s15376_s1 + $0x1dac] ss:$16 sps:$4 sm:$0xff]   ;;  %v11413_v36 = vld [vmem:[%s15376_s1 + $0x1da0] ss:$16 sps:$4 sm:$0xff]  }
 0x37b   :  { %7635 = vmatpush1.bf16.msra.mxu0 %v11321_v37  ;;  %8373 = vmatpush1.bf16.msra.mxu1 %v11324_v38  ;;  %v11416_v37 = vld [vmem:[%s15376_s1 + $0x1da8] ss:$16 sps:$4 sm:$0xff]   ;;  %v11421_v38 = vld [vmem:[%s15376_s1 + $0x1dc4] ss:$16 sps:$4 sm:$0xff]  }
 0x37c   :  { %7636 = vmatprep.subr.bf16.mxu0 %v11329_v33  ;;  %8374 = vmatprep.subr.bf16.mxu1 %v11332_v40  ;;  %v11424_v33 = vld [vmem:[%s15376_s1 + $0x1dcc] ss:$16 sps:$4 sm:$0xff]   ;;  %v11419_v40 = vld [vmem:[%s15376_s1 + $0x1dc0] ss:$16 sps:$4 sm:$0xff]  }
 0x37f   :  { %7637 = vmatpush1.bf16.msra.mxu0 %v11327_v41  ;;  %8375 = vmatpush1.bf16.msra.mxu1 %v11330_v30  ;;  %v11422_v41 = vld [vmem:[%s15376_s1 + $0x1dc8] ss:$16 sps:$4 sm:$0xff]   ;;  %v11427_v30 = vld [vmem:[%s15376_s1 + $0x1de4] ss:$16 sps:$4 sm:$0xff]  }
 0x380   :  { %7647 = vmatprep.subr.bf16.mxu0 %v11337_v43  ;;  %8385 = vmatprep.subr.bf16.mxu1 %v11340_v44  ;;  %v11430_v43 = vld [vmem:[%s15376_s1 + $0x1dec] ss:$16 sps:$4 sm:$0xff]   ;;  %v11425_v44 = vld [vmem:[%s15376_s1 + $0x1de0] ss:$16 sps:$4 sm:$0xff]  }
 0x382   :  { %7639 = vmatmul.mubr.bf16.vlgmr.msra.gmra.mrb[0].mxu0 %v8661_v39  ;;  %8377 = vmatmul.mubr.bf16.vlgmr.msra.gmra.mrb[0].mxu1 %v8661_v39  ;;  %v11428_v39 = vld [vmem:[%s15376_s1 + $0x1de8] ss:$16 sps:$4 sm:$0xff]  }
 0x383   :  { %7648 = vmatpush1.bf16.msra.mxu0 %v11335_v46  ;;  %8386 = vmatpush1.bf16.msra.mxu1 %v11338_v47  ;;  %v11435_v46 = vld [vmem:[%s15376_s1 + $0x1e04] ss:$16 sps:$4 sm:$0xff]   ;;  %v11438_v47 = vld [vmem:[%s15376_s1 + $0x1e0c] ss:$16 sps:$4 sm:$0xff]  }
 0x384   :  { %7649 = vmatprep.subr.bf16.mxu0 %v11343_v42  ;;  %8387 = vmatprep.subr.bf16.mxu1 %v11346_v48  ;;  %v8663_v42 = vcombine.low %v14569_v45, %v14569_v45  ;;  %v14770_v48 = vld [vmem:[%s15377_s0 + $0x78] sm:$0xff]  ;;  %v11441_v45 = vld [vmem:[%s15376_s1 + $0x1e24] ss:$16 sps:$4 sm:$0xff]  }
 0x385   :  { %7679 = vmatprep.mubr.bf16.mxu0 %v8664_v49  ;;  %8417 = vmatprep.mubr.bf16.mxu1 %v8664_v49  ;;  %v11433_v49 = vld [vmem:[%s15376_s1 + $0x1e00] ss:$16 sps:$4 sm:$0xff]  }
 0x387   :  { %7650 = vmatpush1.bf16.msra.mxu0 %v11341_v50  ;;  %8388 = vmatpush1.bf16.msra.mxu1 %v11344_v51  ;;  %v11436_v50 = vld [vmem:[%s15376_s1 + $0x1e08] ss:$16 sps:$4 sm:$0xff]   ;;  %v11444_v51 = vld [vmem:[%s15376_s1 + $0x1e2c] ss:$16 sps:$4 sm:$0xff]  }
 0x388   :  { %7651 = vmatprep.subr.bf16.mxu0 %v11349_v52  ;;  %8389 = vmatprep.subr.bf16.mxu1 %v11352_v53  ;;  %v8666_v52 = vcombine.high %v14770_v48, %v14770_v48  ;;  %v11439_v53 = vld [vmem:[%s15376_s1 + $0x1e20] ss:$16 sps:$4 sm:$0xff]  }
 0x38b   :  { %7652 = vmatpush1.bf16.msra.mxu0 %v11347_v54  ;;  %8390 = vmatpush1.bf16.msra.mxu1 %v11350_v55  ;;  %v11442_v54 = vld [vmem:[%s15376_s1 + $0x1e28] ss:$16 sps:$4 sm:$0xff]   ;;  %v11447_v55 = vld [vmem:[%s15376_s1 + $0x1e44] ss:$16 sps:$4 sm:$0xff]  }
 0x38c   :  { %7653 = vmatprep.subr.bf16.mxu0 %v11355_v56  ;;  %8391 = vmatprep.subr.bf16.mxu1 %v11358_v57  ;;  %v11450_v56 = vld [vmem:[%s15376_s1 + $0x1e4c] ss:$16 sps:$4 sm:$0xff]   ;;  %v11445_v57 = vld [vmem:[%s15376_s1 + $0x1e40] ss:$16 sps:$4 sm:$0xff]  }
 0x38f   :  { %7654 = vmatpush1.bf16.msra.mxu0 %v11353_v58  ;;  %8392 = vmatpush1.bf16.msra.mxu1 %v11356_v59  ;;  %v11448_v58 = vld [vmem:[%s15376_s1 + $0x1e48] ss:$16 sps:$4 sm:$0xff]   ;;  %v11453_v59 = vld [vmem:[%s15376_s1 + $0x1e64] ss:$16 sps:$4 sm:$0xff]  }
 0x390   :  { %7655 = vmatprep.subr.bf16.mxu0 %v11361_v60  ;;  %8393 = vmatprep.subr.bf16.mxu1 %v11364_v61  ;;  %v11456_v60 = vld [vmem:[%s15376_s1 + $0x1e6c] ss:$16 sps:$4 sm:$0xff]   ;;  %v11451_v61 = vld [vmem:[%s15376_s1 + $0x1e60] ss:$16 sps:$4 sm:$0xff]  }
 0x393   :  { %7656 = vmatpush1.bf16.msra.mxu0 %v11359_v62  ;;  %8394 = vmatpush1.bf16.msra.mxu1 %v11362_v63  ;;  %v11454_v62 = vld [vmem:[%s15376_s1 + $0x1e68] ss:$16 sps:$4 sm:$0xff]   ;;  %v11459_v63 = vld [vmem:[%s15376_s1 + $0x1e84] ss:$16 sps:$4 sm:$0xff]  }
 0x394   :  { %7657 = vmatprep.subr.bf16.mxu0 %v11367_v0  ;;  %8395 = vmatprep.subr.bf16.mxu1 %v11370_v1  ;;  %v11462_v0 = vld [vmem:[%s15376_s1 + $0x1e8c] ss:$16 sps:$4 sm:$0xff]   ;;  %v11457_v1 = vld [vmem:[%s15376_s1 + $0x1e80] ss:$16 sps:$4 sm:$0xff]  }
 0x397   :  { %7658 = vmatpush1.bf16.msra.mxu0 %v11365_v2  ;;  %8396 = vmatpush1.bf16.msra.mxu1 %v11368_v3  ;;  %v11460_v2 = vld [vmem:[%s15376_s1 + $0x1e88] ss:$16 sps:$4 sm:$0xff]   ;;  %v11465_v3 = vld [vmem:[%s15376_s1 + $0x1ea4] ss:$16 sps:$4 sm:$0xff]  }
 0x398   :  { %7659 = vmatprep.subr.bf16.mxu0 %v11373_v4  ;;  %8397 = vmatprep.subr.bf16.mxu1 %v11376_v5  ;;  %v11468_v4 = vld [vmem:[%s15376_s1 + $0x1eac] ss:$16 sps:$4 sm:$0xff]   ;;  %v11463_v5 = vld [vmem:[%s15376_s1 + $0x1ea0] ss:$16 sps:$4 sm:$0xff]  }
 0x39b   :  { %7660 = vmatpush1.bf16.msra.mxu0 %v11371_v6  ;;  %8398 = vmatpush1.bf16.msra.mxu1 %v11374_v7  ;;  %v11466_v6 = vld [vmem:[%s15376_s1 + $0x1ea8] ss:$16 sps:$4 sm:$0xff]   ;;  %v11471_v7 = vld [vmem:[%s15376_s1 + $0x1ec4] ss:$16 sps:$4 sm:$0xff]  }
 0x39c   :  { %7661 = vmatprep.subr.bf16.mxu0 %v11379_v8  ;;  %8399 = vmatprep.subr.bf16.mxu1 %v11382_v9  ;;  %v11474_v8 = vld [vmem:[%s15376_s1 + $0x1ecc] ss:$16 sps:$4 sm:$0xff]   ;;  %v11469_v9 = vld [vmem:[%s15376_s1 + $0x1ec0] ss:$16 sps:$4 sm:$0xff]  }
 0x39f   :  { %7662 = vmatpush1.bf16.msra.mxu0 %v11377_v10  ;;  %8400 = vmatpush1.bf16.msra.mxu1 %v11380_v12  ;;  %v11472_v10 = vld [vmem:[%s15376_s1 + $0x1ec8] ss:$16 sps:$4 sm:$0xff]   ;;  %v11477_v12 = vld [vmem:[%s15376_s1 + $0x1ee4] ss:$16 sps:$4 sm:$0xff]  }
 0x3a0   :  { %7663 = vmatprep.subr.bf16.mxu0 %v11385_v13  ;;  %8401 = vmatprep.subr.bf16.mxu1 %v11388_v15  ;;  %v11480_v13 = vld [vmem:[%s15376_s1 + $0x1eec] ss:$16 sps:$4 sm:$0xff]   ;;  %v11475_v15 = vld [vmem:[%s15376_s1 + $0x1ee0] ss:$16 sps:$4 sm:$0xff]  }
 0x3a3   :  { %7664 = vmatpush1.bf16.msra.mxu0 %v11383_v11  ;;  %8402 = vmatpush1.bf16.msra.mxu1 %v11386_v17  ;;  %v11478_v11 = vld [vmem:[%s15376_s1 + $0x1ee8] ss:$16 sps:$4 sm:$0xff]   ;;  %v11483_v17 = vld [vmem:[%s15376_s1 + $0x1f04] ss:$16 sps:$4 sm:$0xff]  }
 0x3a4   :  { %7665 = vmatprep.subr.bf16.mxu0 %v11391_v14  ;;  %8403 = vmatprep.subr.bf16.mxu1 %v11394_v19  ;;  %v11486_v14 = vld [vmem:[%s15376_s1 + $0x1f0c] ss:$16 sps:$4 sm:$0xff]   ;;  %v11481_v19 = vld [vmem:[%s15376_s1 + $0x1f00] ss:$16 sps:$4 sm:$0xff]  }
 0x3a7   :  { %7666 = vmatpush1.bf16.msra.mxu0 %v11389_v20  ;;  %8404 = vmatpush1.bf16.msra.mxu1 %v11392_v16  ;;  %v11484_v20 = vld [vmem:[%s15376_s1 + $0x1f08] ss:$16 sps:$4 sm:$0xff]   ;;  %v11489_v16 = vld [vmem:[%s15376_s1 + $0x1f24] ss:$16 sps:$4 sm:$0xff]  }
 0x3a8   :  { %7667 = vmatprep.subr.bf16.mxu0 %v11397_v22  ;;  %8405 = vmatprep.subr.bf16.mxu1 %v11400_v23  ;;  %v11492_v22 = vld [vmem:[%s15376_s1 + $0x1f2c] ss:$16 sps:$4 sm:$0xff]   ;;  %v11487_v23 = vld [vmem:[%s15376_s1 + $0x1f20] ss:$16 sps:$4 sm:$0xff]  }
 0x3ab   :  { %7668 = vmatpush1.bf16.msra.mxu0 %v11395_v18  ;;  %8406 = vmatpush1.bf16.msra.mxu1 %v11398_v25  ;;  %v11490_v18 = vld [vmem:[%s15376_s1 + $0x1f28] ss:$16 sps:$4 sm:$0xff]   ;;  %v11495_v25 = vld [vmem:[%s15376_s1 + $0x1f44] ss:$16 sps:$4 sm:$0xff]  }
 0x3ac   :  { %7669 = vmatprep.subr.bf16.mxu0 %v11403_v26  ;;  %8407 = vmatprep.subr.bf16.mxu1 %v11406_v21  ;;  %v11498_v26 = vld [vmem:[%s15376_s1 + $0x1f4c] ss:$16 sps:$4 sm:$0xff]   ;;  %v11493_v21 = vld [vmem:[%s15376_s1 + $0x1f40] ss:$16 sps:$4 sm:$0xff]  }
 0x3af   :  { %7670 = vmatpush1.bf16.msra.mxu0 %v11401_v28  ;;  %8408 = vmatpush1.bf16.msra.mxu1 %v11404_v29  ;;  %v11496_v28 = vld [vmem:[%s15376_s1 + $0x1f48] ss:$16 sps:$4 sm:$0xff]   ;;  %v11501_v29 = vld [vmem:[%s15376_s1 + $0x1f64] ss:$16 sps:$4 sm:$0xff]  }
 0x3b0   :  { %7671 = vmatprep.subr.bf16.mxu0 %v11409_v24  ;;  %8409 = vmatprep.subr.bf16.mxu1 %v11412_v31  ;;  %v11504_v24 = vld [vmem:[%s15376_s1 + $0x1f6c] ss:$16 sps:$4 sm:$0xff]   ;;  %v11499_v31 = vld [vmem:[%s15376_s1 + $0x1f60] ss:$16 sps:$4 sm:$0xff]  }
 0x3b3   :  { %7672 = vmatpush1.bf16.msra.mxu0 %v11407_v32  ;;  %8410 = vmatpush1.bf16.msra.mxu1 %v11410_v27  ;;  %v11502_v32 = vld [vmem:[%s15376_s1 + $0x1f68] ss:$16 sps:$4 sm:$0xff]   ;;  %v11507_v27 = vld [vmem:[%s15376_s1 + $0x1f84] ss:$16 sps:$4 sm:$0xff]  }
 0x3b4   :  { %7673 = vmatprep.subr.bf16.mxu0 %v11415_v34  ;;  %8411 = vmatprep.subr.bf16.mxu1 %v11418_v35  ;;  %v11510_v34 = vld [vmem:[%s15376_s1 + $0x1f8c] ss:$16 sps:$4 sm:$0xff]   ;;  %v11505_v35 = vld [vmem:[%s15376_s1 + $0x1f80] ss:$16 sps:$4 sm:$0xff]  }
 0x3b7   :  { %7674 = vmatpush1.bf16.msra.mxu0 %v11413_v36  ;;  %8412 = vmatpush1.bf16.msra.mxu1 %v11416_v37  ;;  %v11508_v36 = vld [vmem:[%s15376_s1 + $0x1f88] ss:$16 sps:$4 sm:$0xff]   ;;  %v11513_v37 = vld [vmem:[%s15376_s1 + $0x1fa4] ss:$16 sps:$4 sm:$0xff]  }
 0x3b8   :  { %7675 = vmatprep.subr.bf16.mxu0 %v11421_v38  ;;  %8413 = vmatprep.subr.bf16.mxu1 %v11424_v33  ;;  %v11516_v38 = vld [vmem:[%s15376_s1 + $0x1fac] ss:$16 sps:$4 sm:$0xff]   ;;  %v11511_v33 = vld [vmem:[%s15376_s1 + $0x1fa0] ss:$16 sps:$4 sm:$0xff]  }
 0x3bb   :  { %7676 = vmatpush1.bf16.msra.mxu0 %v11419_v40  ;;  %8414 = vmatpush1.bf16.msra.mxu1 %v11422_v41  ;;  %v11514_v40 = vld [vmem:[%s15376_s1 + $0x1fa8] ss:$16 sps:$4 sm:$0xff]   ;;  %v11519_v41 = vld [vmem:[%s15376_s1 + $0x1fc4] ss:$16 sps:$4 sm:$0xff]  }
 0x3bc   :  { %7677 = vmatprep.subr.bf16.mxu0 %v11427_v30  ;;  %8415 = vmatprep.subr.bf16.mxu1 %v11430_v43  ;;  %v11522_v30 = vld [vmem:[%s15376_s1 + $0x1fcc] ss:$16 sps:$4 sm:$0xff]   ;;  %v11517_v43 = vld [vmem:[%s15376_s1 + $0x1fc0] ss:$16 sps:$4 sm:$0xff]  }
 0x3bf   :  { %7678 = vmatpush1.bf16.msra.mxu0 %v11425_v44  ;;  %8416 = vmatpush1.bf16.msra.mxu1 %v11428_v39  ;;  %v11520_v44 = vld [vmem:[%s15376_s1 + $0x1fc8] ss:$16 sps:$4 sm:$0xff]   ;;  %v11525_v39 = vld [vmem:[%s15376_s1 + $0x1fe4] ss:$16 sps:$4 sm:$0xff]  }
 0x3c0   :  { %7688 = vmatprep.subr.bf16.mxu0 %v11435_v46  ;;  %8426 = vmatprep.subr.bf16.mxu1 %v11438_v47  ;;  %v11528_v46 = vld [vmem:[%s15376_s1 + $0x1fec] ss:$16 sps:$4 sm:$0xff]   ;;  %v11523_v47 = vld [vmem:[%s15376_s1 + $0x1fe0] ss:$16 sps:$4 sm:$0xff]  }
 0x3c2   :  { %7680 = vmatmul.mubr.bf16.vlgmr.msra.gmra.mrb[0].mxu0 %v8663_v42  ;;  %8418 = vmatmul.mubr.bf16.vlgmr.msra.gmra.mrb[0].mxu1 %v8663_v42  ;;  %v11526_v42 = vld [vmem:[%s15376_s1 + $0x1fe8] ss:$16 sps:$4 sm:$0xff]  }
 0x3c3   :  { %7689 = vmatpush1.bf16.msra.mxu0 %v11433_v49  ;;  %8427 = vmatpush1.bf16.msra.mxu1 %v11436_v50  ;;  %v11533_v49 = vld [vmem:[%s15376_s1 + $0x2004] ss:$16 sps:$4 sm:$0xff]   ;;  %v11536_v50 = vld [vmem:[%s15376_s1 + $0x200c] ss:$16 sps:$4 sm:$0xff]  }
 0x3c4   :  { %7690 = vmatprep.subr.bf16.mxu0 %v11441_v45  ;;  %8428 = vmatprep.subr.bf16.mxu1 %v11444_v51  ;;  %v8665_v45 = vcombine.low %v14770_v48, %v14770_v48  ;;  %v14971_v51 = vld [vmem:[%s15377_s0 + $0x80] sm:$0xff] }
 0x3c5   :  { %7720 = vmatprep.mubr.bf16.mxu0 %v8666_v52  ;;  %8458 = vmatprep.mubr.bf16.mxu1 %v8666_v52  ;;  %v11531_v52 = vld [vmem:[%s15376_s1 + $0x2000] ss:$16 sps:$4 sm:$0xff]   ;;  %v11539_v48 = vld [vmem:[%s15376_s1 + $0x2024] ss:$16 sps:$4 sm:$0xff]  }
 0x3c7   :  { %7691 = vmatpush1.bf16.msra.mxu0 %v11439_v53  ;;  %8429 = vmatpush1.bf16.msra.mxu1 %v11442_v54  ;;  %v11534_v53 = vld [vmem:[%s15376_s1 + $0x2008] ss:$16 sps:$4 sm:$0xff]   ;;  %v11542_v54 = vld [vmem:[%s15376_s1 + $0x202c] ss:$16 sps:$4 sm:$0xff]  }
 0x3c8   :  { %7692 = vmatprep.subr.bf16.mxu0 %v11447_v55  ;;  %8430 = vmatprep.subr.bf16.mxu1 %v11450_v56  ;;  %v8668_v55 = vcombine.high %v14971_v51, %v14971_v51  ;;  %v11537_v56 = vld [vmem:[%s15376_s1 + $0x2020] ss:$16 sps:$4 sm:$0xff]  }
 0x3cb   :  { %7693 = vmatpush1.bf16.msra.mxu0 %v11445_v57  ;;  %8431 = vmatpush1.bf16.msra.mxu1 %v11448_v58  ;;  %v11540_v57 = vld [vmem:[%s15376_s1 + $0x2028] ss:$16 sps:$4 sm:$0xff]   ;;  %v11545_v58 = vld [vmem:[%s15376_s1 + $0x2044] ss:$16 sps:$4 sm:$0xff]  }
 0x3cc   :  { %7694 = vmatprep.subr.bf16.mxu0 %v11453_v59  ;;  %8432 = vmatprep.subr.bf16.mxu1 %v11456_v60  ;;  %v11548_v59 = vld [vmem:[%s15376_s1 + $0x204c] ss:$16 sps:$4 sm:$0xff]   ;;  %v11543_v60 = vld [vmem:[%s15376_s1 + $0x2040] ss:$16 sps:$4 sm:$0xff]  }
 0x3cf   :  { %7695 = vmatpush1.bf16.msra.mxu0 %v11451_v61  ;;  %8433 = vmatpush1.bf16.msra.mxu1 %v11454_v62  ;;  %v11546_v61 = vld [vmem:[%s15376_s1 + $0x2048] ss:$16 sps:$4 sm:$0xff]   ;;  %v11551_v62 = vld [vmem:[%s15376_s1 + $0x2064] ss:$16 sps:$4 sm:$0xff]  }
 0x3d0   :  { %7696 = vmatprep.subr.bf16.mxu0 %v11459_v63  ;;  %8434 = vmatprep.subr.bf16.mxu1 %v11462_v0  ;;  %v11554_v63 = vld [vmem:[%s15376_s1 + $0x206c] ss:$16 sps:$4 sm:$0xff]   ;;  %v11549_v0 = vld [vmem:[%s15376_s1 + $0x2060] ss:$16 sps:$4 sm:$0xff]  }
 0x3d3   :  { %7697 = vmatpush1.bf16.msra.mxu0 %v11457_v1  ;;  %8435 = vmatpush1.bf16.msra.mxu1 %v11460_v2  ;;  %v11552_v1 = vld [vmem:[%s15376_s1 + $0x2068] ss:$16 sps:$4 sm:$0xff]   ;;  %v11557_v2 = vld [vmem:[%s15376_s1 + $0x2084] ss:$16 sps:$4 sm:$0xff]  }
 0x3d4   :  { %7698 = vmatprep.subr.bf16.mxu0 %v11465_v3  ;;  %8436 = vmatprep.subr.bf16.mxu1 %v11468_v4  ;;  %v11560_v3 = vld [vmem:[%s15376_s1 + $0x208c] ss:$16 sps:$4 sm:$0xff]   ;;  %v11555_v4 = vld [vmem:[%s15376_s1 + $0x2080] ss:$16 sps:$4 sm:$0xff]  }
 0x3d7   :  { %7699 = vmatpush1.bf16.msra.mxu0 %v11463_v5  ;;  %8437 = vmatpush1.bf16.msra.mxu1 %v11466_v6  ;;  %v11558_v5 = vld [vmem:[%s15376_s1 + $0x2088] ss:$16 sps:$4 sm:$0xff]   ;;  %v11563_v6 = vld [vmem:[%s15376_s1 + $0x20a4] ss:$16 sps:$4 sm:$0xff]  }
 0x3d8   :  { %7700 = vmatprep.subr.bf16.mxu0 %v11471_v7  ;;  %8438 = vmatprep.subr.bf16.mxu1 %v11474_v8  ;;  %v11566_v7 = vld [vmem:[%s15376_s1 + $0x20ac] ss:$16 sps:$4 sm:$0xff]   ;;  %v11561_v8 = vld [vmem:[%s15376_s1 + $0x20a0] ss:$16 sps:$4 sm:$0xff]  }
 0x3db   :  { %7701 = vmatpush1.bf16.msra.mxu0 %v11469_v9  ;;  %8439 = vmatpush1.bf16.msra.mxu1 %v11472_v10  ;;  %v11564_v9 = vld [vmem:[%s15376_s1 + $0x20a8] ss:$16 sps:$4 sm:$0xff]   ;;  %v11569_v10 = vld [vmem:[%s15376_s1 + $0x20c4] ss:$16 sps:$4 sm:$0xff]  }
 0x3dc   :  { %7702 = vmatprep.subr.bf16.mxu0 %v11477_v12  ;;  %8440 = vmatprep.subr.bf16.mxu1 %v11480_v13  ;;  %v11572_v12 = vld [vmem:[%s15376_s1 + $0x20cc] ss:$16 sps:$4 sm:$0xff]   ;;  %v11567_v13 = vld [vmem:[%s15376_s1 + $0x20c0] ss:$16 sps:$4 sm:$0xff]  }
 0x3df   :  { %7703 = vmatpush1.bf16.msra.mxu0 %v11475_v15  ;;  %8441 = vmatpush1.bf16.msra.mxu1 %v11478_v11  ;;  %v11570_v15 = vld [vmem:[%s15376_s1 + $0x20c8] ss:$16 sps:$4 sm:$0xff]   ;;  %v11575_v11 = vld [vmem:[%s15376_s1 + $0x20e4] ss:$16 sps:$4 sm:$0xff]  }
 0x3e0   :  { %7704 = vmatprep.subr.bf16.mxu0 %v11483_v17  ;;  %8442 = vmatprep.subr.bf16.mxu1 %v11486_v14  ;;  %v11578_v17 = vld [vmem:[%s15376_s1 + $0x20ec] ss:$16 sps:$4 sm:$0xff]   ;;  %v11573_v14 = vld [vmem:[%s15376_s1 + $0x20e0] ss:$16 sps:$4 sm:$0xff]  }
 0x3e3   :  { %7705 = vmatpush1.bf16.msra.mxu0 %v11481_v19  ;;  %8443 = vmatpush1.bf16.msra.mxu1 %v11484_v20  ;;  %v11576_v19 = vld [vmem:[%s15376_s1 + $0x20e8] ss:$16 sps:$4 sm:$0xff]   ;;  %v11581_v20 = vld [vmem:[%s15376_s1 + $0x2104] ss:$16 sps:$4 sm:$0xff]  }
 0x3e4   :  { %7706 = vmatprep.subr.bf16.mxu0 %v11489_v16  ;;  %8444 = vmatprep.subr.bf16.mxu1 %v11492_v22  ;;  %v11584_v16 = vld [vmem:[%s15376_s1 + $0x210c] ss:$16 sps:$4 sm:$0xff]   ;;  %v11579_v22 = vld [vmem:[%s15376_s1 + $0x2100] ss:$16 sps:$4 sm:$0xff]  }
 0x3e7   :  { %7707 = vmatpush1.bf16.msra.mxu0 %v11487_v23  ;;  %8445 = vmatpush1.bf16.msra.mxu1 %v11490_v18  ;;  %v11582_v23 = vld [vmem:[%s15376_s1 + $0x2108] ss:$16 sps:$4 sm:$0xff]   ;;  %v11587_v18 = vld [vmem:[%s15376_s1 + $0x2124] ss:$16 sps:$4 sm:$0xff]  }
 0x3e8   :  { %7708 = vmatprep.subr.bf16.mxu0 %v11495_v25  ;;  %8446 = vmatprep.subr.bf16.mxu1 %v11498_v26  ;;  %v11590_v25 = vld [vmem:[%s15376_s1 + $0x212c] ss:$16 sps:$4 sm:$0xff]   ;;  %v11585_v26 = vld [vmem:[%s15376_s1 + $0x2120] ss:$16 sps:$4 sm:$0xff]  }
 0x3eb   :  { %7709 = vmatpush1.bf16.msra.mxu0 %v11493_v21  ;;  %8447 = vmatpush1.bf16.msra.mxu1 %v11496_v28  ;;  %v11588_v21 = vld [vmem:[%s15376_s1 + $0x2128] ss:$16 sps:$4 sm:$0xff]   ;;  %v11593_v28 = vld [vmem:[%s15376_s1 + $0x2144] ss:$16 sps:$4 sm:$0xff]  }
 0x3ec   :  { %7710 = vmatprep.subr.bf16.mxu0 %v11501_v29  ;;  %8448 = vmatprep.subr.bf16.mxu1 %v11504_v24  ;;  %v11596_v29 = vld [vmem:[%s15376_s1 + $0x214c] ss:$16 sps:$4 sm:$0xff]   ;;  %v11591_v24 = vld [vmem:[%s15376_s1 + $0x2140] ss:$16 sps:$4 sm:$0xff]  }
 0x3ef   :  { %7711 = vmatpush1.bf16.msra.mxu0 %v11499_v31  ;;  %8449 = vmatpush1.bf16.msra.mxu1 %v11502_v32  ;;  %v11594_v31 = vld [vmem:[%s15376_s1 + $0x2148] ss:$16 sps:$4 sm:$0xff]   ;;  %v11599_v32 = vld [vmem:[%s15376_s1 + $0x2164] ss:$16 sps:$4 sm:$0xff]  }
 0x3f0   :  { %7712 = vmatprep.subr.bf16.mxu0 %v11507_v27  ;;  %8450 = vmatprep.subr.bf16.mxu1 %v11510_v34  ;;  %v11602_v27 = vld [vmem:[%s15376_s1 + $0x216c] ss:$16 sps:$4 sm:$0xff]   ;;  %v11597_v34 = vld [vmem:[%s15376_s1 + $0x2160] ss:$16 sps:$4 sm:$0xff]  }
 0x3f3   :  { %7713 = vmatpush1.bf16.msra.mxu0 %v11505_v35  ;;  %8451 = vmatpush1.bf16.msra.mxu1 %v11508_v36  ;;  %v11600_v35 = vld [vmem:[%s15376_s1 + $0x2168] ss:$16 sps:$4 sm:$0xff]   ;;  %v11605_v36 = vld [vmem:[%s15376_s1 + $0x2184] ss:$16 sps:$4 sm:$0xff]  }
 0x3f4   :  { %7714 = vmatprep.subr.bf16.mxu0 %v11513_v37  ;;  %8452 = vmatprep.subr.bf16.mxu1 %v11516_v38  ;;  %v11608_v37 = vld [vmem:[%s15376_s1 + $0x218c] ss:$16 sps:$4 sm:$0xff]   ;;  %v11603_v38 = vld [vmem:[%s15376_s1 + $0x2180] ss:$16 sps:$4 sm:$0xff]  }
 0x3f7   :  { %7715 = vmatpush1.bf16.msra.mxu0 %v11511_v33  ;;  %8453 = vmatpush1.bf16.msra.mxu1 %v11514_v40  ;;  %v11606_v33 = vld [vmem:[%s15376_s1 + $0x2188] ss:$16 sps:$4 sm:$0xff]   ;;  %v11611_v40 = vld [vmem:[%s15376_s1 + $0x21a4] ss:$16 sps:$4 sm:$0xff]  }
 0x3f8   :  { %7716 = vmatprep.subr.bf16.mxu0 %v11519_v41  ;;  %8454 = vmatprep.subr.bf16.mxu1 %v11522_v30  ;;  %v11614_v41 = vld [vmem:[%s15376_s1 + $0x21ac] ss:$16 sps:$4 sm:$0xff]   ;;  %v11609_v30 = vld [vmem:[%s15376_s1 + $0x21a0] ss:$16 sps:$4 sm:$0xff]  }
 0x3fb   :  { %7717 = vmatpush1.bf16.msra.mxu0 %v11517_v43  ;;  %8455 = vmatpush1.bf16.msra.mxu1 %v11520_v44  ;;  %v11612_v43 = vld [vmem:[%s15376_s1 + $0x21a8] ss:$16 sps:$4 sm:$0xff]   ;;  %v11617_v44 = vld [vmem:[%s15376_s1 + $0x21c4] ss:$16 sps:$4 sm:$0xff]  }
 0x3fc   :  { %7718 = vmatprep.subr.bf16.mxu0 %v11525_v39  ;;  %8456 = vmatprep.subr.bf16.mxu1 %v11528_v46  ;;  %v11620_v39 = vld [vmem:[%s15376_s1 + $0x21cc] ss:$16 sps:$4 sm:$0xff]   ;;  %v11615_v46 = vld [vmem:[%s15376_s1 + $0x21c0] ss:$16 sps:$4 sm:$0xff]  }
 0x3ff   :  { %7719 = vmatpush1.bf16.msra.mxu0 %v11523_v47  ;;  %8457 = vmatpush1.bf16.msra.mxu1 %v11526_v42  ;;  %v11618_v47 = vld [vmem:[%s15376_s1 + $0x21c8] ss:$16 sps:$4 sm:$0xff]   ;;  %v11623_v42 = vld [vmem:[%s15376_s1 + $0x21e4] ss:$16 sps:$4 sm:$0xff]  }
 0x400   :  { %7729 = vmatprep.subr.bf16.mxu0 %v11533_v49  ;;  %8467 = vmatprep.subr.bf16.mxu1 %v11536_v50  ;;  %v11626_v49 = vld [vmem:[%s15376_s1 + $0x21ec] ss:$16 sps:$4 sm:$0xff]   ;;  %v11621_v50 = vld [vmem:[%s15376_s1 + $0x21e0] ss:$16 sps:$4 sm:$0xff]  }
 0x402   :  { %7721 = vmatmul.mubr.bf16.vlgmr.msra.gmra.mrb[0].mxu0 %v8665_v45  ;;  %8459 = vmatmul.mubr.bf16.vlgmr.msra.gmra.mrb[0].mxu1 %v8665_v45  ;;  %v11624_v45 = vld [vmem:[%s15376_s1 + $0x21e8] ss:$16 sps:$4 sm:$0xff]  }
 0x403   :  { %7730 = vmatpush1.bf16.msra.mxu0 %v11531_v52  ;;  %8468 = vmatpush1.bf16.msra.mxu1 %v11534_v53  ;;  %v11631_v52 = vld [vmem:[%s15376_s1 + $0x2204] ss:$16 sps:$4 sm:$0xff]   ;;  %v11634_v53 = vld [vmem:[%s15376_s1 + $0x220c] ss:$16 sps:$4 sm:$0xff]  }
 0x404   :  { %7731 = vmatprep.subr.bf16.mxu0 %v11539_v48  ;;  %8469 = vmatprep.subr.bf16.mxu1 %v11542_v54  ;;  %v8667_v48 = vcombine.low %v14971_v51, %v14971_v51  ;;  %v15172_v54 = vld [vmem:[%s15377_s0 + $0x88] sm:$0xff]  ;;  %v11637_v51 = vld [vmem:[%s15376_s1 + $0x2224] ss:$16 sps:$4 sm:$0xff]  }
 0x405   :  { %7761 = vmatprep.mubr.bf16.mxu0 %v8668_v55  ;;  %8499 = vmatprep.mubr.bf16.mxu1 %v8668_v55  ;;  %v11629_v55 = vld [vmem:[%s15376_s1 + $0x2200] ss:$16 sps:$4 sm:$0xff]  }
 0x407   :  { %7732 = vmatpush1.bf16.msra.mxu0 %v11537_v56  ;;  %8470 = vmatpush1.bf16.msra.mxu1 %v11540_v57  ;;  %v11632_v56 = vld [vmem:[%s15376_s1 + $0x2208] ss:$16 sps:$4 sm:$0xff]   ;;  %v11640_v57 = vld [vmem:[%s15376_s1 + $0x222c] ss:$16 sps:$4 sm:$0xff]  }
 0x408   :  { %7733 = vmatprep.subr.bf16.mxu0 %v11545_v58  ;;  %8471 = vmatprep.subr.bf16.mxu1 %v11548_v59  ;;  %v8670_v58 = vcombine.high %v15172_v54, %v15172_v54  ;;  %v11635_v59 = vld [vmem:[%s15376_s1 + $0x2220] ss:$16 sps:$4 sm:$0xff]  }
 0x40b   :  { %7734 = vmatpush1.bf16.msra.mxu0 %v11543_v60  ;;  %8472 = vmatpush1.bf16.msra.mxu1 %v11546_v61  ;;  %v11638_v60 = vld [vmem:[%s15376_s1 + $0x2228] ss:$16 sps:$4 sm:$0xff]   ;;  %v11643_v61 = vld [vmem:[%s15376_s1 + $0x2244] ss:$16 sps:$4 sm:$0xff]  }
 0x40c   :  { %7735 = vmatprep.subr.bf16.mxu0 %v11551_v62  ;;  %8473 = vmatprep.subr.bf16.mxu1 %v11554_v63  ;;  %v11646_v62 = vld [vmem:[%s15376_s1 + $0x224c] ss:$16 sps:$4 sm:$0xff]   ;;  %v11641_v63 = vld [vmem:[%s15376_s1 + $0x2240] ss:$16 sps:$4 sm:$0xff]  }
 0x40f   :  { %7736 = vmatpush1.bf16.msra.mxu0 %v11549_v0  ;;  %8474 = vmatpush1.bf16.msra.mxu1 %v11552_v1  ;;  %v11644_v0 = vld [vmem:[%s15376_s1 + $0x2248] ss:$16 sps:$4 sm:$0xff]   ;;  %v11649_v1 = vld [vmem:[%s15376_s1 + $0x2264] ss:$16 sps:$4 sm:$0xff]  }
 0x410   :  { %7737 = vmatprep.subr.bf16.mxu0 %v11557_v2  ;;  %8475 = vmatprep.subr.bf16.mxu1 %v11560_v3  ;;  %v11652_v2 = vld [vmem:[%s15376_s1 + $0x226c] ss:$16 sps:$4 sm:$0xff]   ;;  %v11647_v3 = vld [vmem:[%s15376_s1 + $0x2260] ss:$16 sps:$4 sm:$0xff]  }
 0x413   :  { %7738 = vmatpush1.bf16.msra.mxu0 %v11555_v4  ;;  %8476 = vmatpush1.bf16.msra.mxu1 %v11558_v5  ;;  %v11650_v4 = vld [vmem:[%s15376_s1 + $0x2268] ss:$16 sps:$4 sm:$0xff]   ;;  %v11655_v5 = vld [vmem:[%s15376_s1 + $0x2284] ss:$16 sps:$4 sm:$0xff]  }
 0x414   :  { %7739 = vmatprep.subr.bf16.mxu0 %v11563_v6  ;;  %8477 = vmatprep.subr.bf16.mxu1 %v11566_v7  ;;  %v11658_v6 = vld [vmem:[%s15376_s1 + $0x228c] ss:$16 sps:$4 sm:$0xff]   ;;  %v11653_v7 = vld [vmem:[%s15376_s1 + $0x2280] ss:$16 sps:$4 sm:$0xff]  }
 0x417   :  { %7740 = vmatpush1.bf16.msra.mxu0 %v11561_v8  ;;  %8478 = vmatpush1.bf16.msra.mxu1 %v11564_v9  ;;  %v11656_v8 = vld [vmem:[%s15376_s1 + $0x2288] ss:$16 sps:$4 sm:$0xff]   ;;  %v11661_v9 = vld [vmem:[%s15376_s1 + $0x22a4] ss:$16 sps:$4 sm:$0xff]  }
 0x418   :  { %7741 = vmatprep.subr.bf16.mxu0 %v11569_v10  ;;  %8479 = vmatprep.subr.bf16.mxu1 %v11572_v12  ;;  %v11664_v10 = vld [vmem:[%s15376_s1 + $0x22ac] ss:$16 sps:$4 sm:$0xff]   ;;  %v11659_v12 = vld [vmem:[%s15376_s1 + $0x22a0] ss:$16 sps:$4 sm:$0xff]  }
 0x41b   :  { %7742 = vmatpush1.bf16.msra.mxu0 %v11567_v13  ;;  %8480 = vmatpush1.bf16.msra.mxu1 %v11570_v15  ;;  %v11662_v13 = vld [vmem:[%s15376_s1 + $0x22a8] ss:$16 sps:$4 sm:$0xff]   ;;  %v11667_v15 = vld [vmem:[%s15376_s1 + $0x22c4] ss:$16 sps:$4 sm:$0xff]  }
 0x41c   :  { %7743 = vmatprep.subr.bf16.mxu0 %v11575_v11  ;;  %8481 = vmatprep.subr.bf16.mxu1 %v11578_v17  ;;  %v11670_v11 = vld [vmem:[%s15376_s1 + $0x22cc] ss:$16 sps:$4 sm:$0xff]   ;;  %v11665_v17 = vld [vmem:[%s15376_s1 + $0x22c0] ss:$16 sps:$4 sm:$0xff]  }
 0x41f   :  { %7744 = vmatpush1.bf16.msra.mxu0 %v11573_v14  ;;  %8482 = vmatpush1.bf16.msra.mxu1 %v11576_v19  ;;  %v11668_v14 = vld [vmem:[%s15376_s1 + $0x22c8] ss:$16 sps:$4 sm:$0xff]   ;;  %v11673_v19 = vld [vmem:[%s15376_s1 + $0x22e4] ss:$16 sps:$4 sm:$0xff]  }
 0x420   :  { %7745 = vmatprep.subr.bf16.mxu0 %v11581_v20  ;;  %8483 = vmatprep.subr.bf16.mxu1 %v11584_v16  ;;  %v11676_v20 = vld [vmem:[%s15376_s1 + $0x22ec] ss:$16 sps:$4 sm:$0xff]   ;;  %v11671_v16 = vld [vmem:[%s15376_s1 + $0x22e0] ss:$16 sps:$4 sm:$0xff]  }
 0x423   :  { %7746 = vmatpush1.bf16.msra.mxu0 %v11579_v22  ;;  %8484 = vmatpush1.bf16.msra.mxu1 %v11582_v23  ;;  %v11674_v22 = vld [vmem:[%s15376_s1 + $0x22e8] ss:$16 sps:$4 sm:$0xff]   ;;  %v11679_v23 = vld [vmem:[%s15376_s1 + $0x2304] ss:$16 sps:$4 sm:$0xff]  }
 0x424   :  { %7747 = vmatprep.subr.bf16.mxu0 %v11587_v18  ;;  %8485 = vmatprep.subr.bf16.mxu1 %v11590_v25  ;;  %v11682_v18 = vld [vmem:[%s15376_s1 + $0x230c] ss:$16 sps:$4 sm:$0xff]   ;;  %v11677_v25 = vld [vmem:[%s15376_s1 + $0x2300] ss:$16 sps:$4 sm:$0xff]  }
 0x427   :  { %7748 = vmatpush1.bf16.msra.mxu0 %v11585_v26  ;;  %8486 = vmatpush1.bf16.msra.mxu1 %v11588_v21  ;;  %v11680_v26 = vld [vmem:[%s15376_s1 + $0x2308] ss:$16 sps:$4 sm:$0xff]   ;;  %v11685_v21 = vld [vmem:[%s15376_s1 + $0x2324] ss:$16 sps:$4 sm:$0xff]  }
 0x428   :  { %7749 = vmatprep.subr.bf16.mxu0 %v11593_v28  ;;  %8487 = vmatprep.subr.bf16.mxu1 %v11596_v29  ;;  %v11688_v28 = vld [vmem:[%s15376_s1 + $0x232c] ss:$16 sps:$4 sm:$0xff]   ;;  %v11683_v29 = vld [vmem:[%s15376_s1 + $0x2320] ss:$16 sps:$4 sm:$0xff]  }
 0x42b   :  { %7750 = vmatpush1.bf16.msra.mxu0 %v11591_v24  ;;  %8488 = vmatpush1.bf16.msra.mxu1 %v11594_v31  ;;  %v11686_v24 = vld [vmem:[%s15376_s1 + $0x2328] ss:$16 sps:$4 sm:$0xff]   ;;  %v11691_v31 = vld [vmem:[%s15376_s1 + $0x2344] ss:$16 sps:$4 sm:$0xff]  }
 0x42c   :  { %7751 = vmatprep.subr.bf16.mxu0 %v11599_v32  ;;  %8489 = vmatprep.subr.bf16.mxu1 %v11602_v27  ;;  %v11694_v32 = vld [vmem:[%s15376_s1 + $0x234c] ss:$16 sps:$4 sm:$0xff]   ;;  %v11689_v27 = vld [vmem:[%s15376_s1 + $0x2340] ss:$16 sps:$4 sm:$0xff]  }
 0x42f   :  { %7752 = vmatpush1.bf16.msra.mxu0 %v11597_v34  ;;  %8490 = vmatpush1.bf16.msra.mxu1 %v11600_v35  ;;  %v11692_v34 = vld [vmem:[%s15376_s1 + $0x2348] ss:$16 sps:$4 sm:$0xff]   ;;  %v11697_v35 = vld [vmem:[%s15376_s1 + $0x2364] ss:$16 sps:$4 sm:$0xff]  }
 0x430   :  { %7753 = vmatprep.subr.bf16.mxu0 %v11605_v36  ;;  %8491 = vmatprep.subr.bf16.mxu1 %v11608_v37  ;;  %v11700_v36 = vld [vmem:[%s15376_s1 + $0x236c] ss:$16 sps:$4 sm:$0xff]   ;;  %v11695_v37 = vld [vmem:[%s15376_s1 + $0x2360] ss:$16 sps:$4 sm:$0xff]  }
 0x433   :  { %7754 = vmatpush1.bf16.msra.mxu0 %v11603_v38  ;;  %8492 = vmatpush1.bf16.msra.mxu1 %v11606_v33  ;;  %v11698_v38 = vld [vmem:[%s15376_s1 + $0x2368] ss:$16 sps:$4 sm:$0xff]   ;;  %v11703_v33 = vld [vmem:[%s15376_s1 + $0x2384] ss:$16 sps:$4 sm:$0xff]  }
 0x434   :  { %7755 = vmatprep.subr.bf16.mxu0 %v11611_v40  ;;  %8493 = vmatprep.subr.bf16.mxu1 %v11614_v41  ;;  %v11706_v40 = vld [vmem:[%s15376_s1 + $0x238c] ss:$16 sps:$4 sm:$0xff]   ;;  %v11701_v41 = vld [vmem:[%s15376_s1 + $0x2380] ss:$16 sps:$4 sm:$0xff]  }
 0x437   :  { %7756 = vmatpush1.bf16.msra.mxu0 %v11609_v30  ;;  %8494 = vmatpush1.bf16.msra.mxu1 %v11612_v43  ;;  %v11704_v30 = vld [vmem:[%s15376_s1 + $0x2388] ss:$16 sps:$4 sm:$0xff]   ;;  %v11709_v43 = vld [vmem:[%s15376_s1 + $0x23a4] ss:$16 sps:$4 sm:$0xff]  }
 0x438   :  { %7757 = vmatprep.subr.bf16.mxu0 %v11617_v44  ;;  %8495 = vmatprep.subr.bf16.mxu1 %v11620_v39  ;;  %v11712_v44 = vld [vmem:[%s15376_s1 + $0x23ac] ss:$16 sps:$4 sm:$0xff]   ;;  %v11707_v39 = vld [vmem:[%s15376_s1 + $0x23a0] ss:$16 sps:$4 sm:$0xff]  }
 0x43b   :  { %7758 = vmatpush1.bf16.msra.mxu0 %v11615_v46  ;;  %8496 = vmatpush1.bf16.msra.mxu1 %v11618_v47  ;;  %v11710_v46 = vld [vmem:[%s15376_s1 + $0x23a8] ss:$16 sps:$4 sm:$0xff]   ;;  %v11715_v47 = vld [vmem:[%s15376_s1 + $0x23c4] ss:$16 sps:$4 sm:$0xff]  }
 0x43c   :  { %7759 = vmatprep.subr.bf16.mxu0 %v11623_v42  ;;  %8497 = vmatprep.subr.bf16.mxu1 %v11626_v49  ;;  %v11718_v42 = vld [vmem:[%s15376_s1 + $0x23cc] ss:$16 sps:$4 sm:$0xff]   ;;  %v11713_v49 = vld [vmem:[%s15376_s1 + $0x23c0] ss:$16 sps:$4 sm:$0xff]  }
 0x43f   :  { %7760 = vmatpush1.bf16.msra.mxu0 %v11621_v50  ;;  %8498 = vmatpush1.bf16.msra.mxu1 %v11624_v45  ;;  %v11716_v50 = vld [vmem:[%s15376_s1 + $0x23c8] ss:$16 sps:$4 sm:$0xff]   ;;  %v11721_v45 = vld [vmem:[%s15376_s1 + $0x23e4] ss:$16 sps:$4 sm:$0xff]  }
 0x440   :  { %7770 = vmatprep.subr.bf16.mxu0 %v11631_v52  ;;  %8508 = vmatprep.subr.bf16.mxu1 %v11634_v53  ;;  %v11724_v52 = vld [vmem:[%s15376_s1 + $0x23ec] ss:$16 sps:$4 sm:$0xff]   ;;  %v11719_v53 = vld [vmem:[%s15376_s1 + $0x23e0] ss:$16 sps:$4 sm:$0xff]  }
 0x442   :  { %7762 = vmatmul.mubr.bf16.vlgmr.msra.gmra.mrb[0].mxu0 %v8667_v48  ;;  %8500 = vmatmul.mubr.bf16.vlgmr.msra.gmra.mrb[0].mxu1 %v8667_v48  ;;  %v11722_v48 = vld [vmem:[%s15376_s1 + $0x23e8] ss:$16 sps:$4 sm:$0xff]  }
 0x443   :  { %7771 = vmatpush1.bf16.msra.mxu0 %v11629_v55  ;;  %8509 = vmatpush1.bf16.msra.mxu1 %v11632_v56  ;;  %v8669_v55 = vcombine.low %v15172_v54, %v15172_v54  ;;  %v8551_v56 = vlaneseq }
 0x444   :  { %7772 = vmatprep.subr.bf16.mxu0 %v11637_v51  ;;  %8510 = vmatprep.subr.bf16.mxu1 %v11640_v57 }
 0x445   :  { %7802 = vmatprep.mubr.bf16.mxu0 %v8670_v58  ;;  %8540 = vmatprep.mubr.bf16.mxu1 %v8670_v58  ;;  %v8552_v51 = vshrl.u32 %v8551_v56, 7 }
 0x447   :  { %7773 = vmatpush1.bf16.msra.mxu0 %v11635_v59  ;;  %8511 = vmatpush1.bf16.msra.mxu1 %v11638_v60  ;;  %v8553_v57 = vsub.s32 0, %v8552_v51  ;;  %v8561_v58 = vsub.s32 2, %v8552_v51  ;;  %v8549_v59 = vld [vmem:[%s15378_s2] sm:$0xf]  ;;  %v8557_v60 = vsub.s32 1, %v8552_v51 }
 0x448   :  { %7774 = vmatprep.subr.bf16.mxu0 %v11643_v61  ;;  %8512 = vmatprep.subr.bf16.mxu1 %v11646_v62  ;;  %v8565_v61 = vsub.s32 3, %v8552_v51  ;;  %v8575_v62 = vld [vmem:[%s15379_s3] sm:$0xf] }
 0x449   :  { %v8562_v54 = vrot.slane %v8549_v59, %v8561_v58 }
 0x44b   :  { %7775 = vmatpush1.bf16.msra.mxu0 %v11641_v63  ;;  %8513 = vmatpush1.bf16.msra.mxu1 %v11644_v0  ;;  %v8554_v63 = vrot.slane %v8549_v59, %v8553_v57  ;;  %v8558_v0 = vrot.slane %v8549_v59, %v8557_v60 }
 0x44c   :  { %7776 = vmatprep.subr.bf16.mxu0 %v11649_v1  ;;  %8514 = vmatprep.subr.bf16.mxu1 %v11652_v2  ;;  %v8566_v1 = vrot.slane %v8549_v59, %v8565_v61  ;;  %v8580_v2 = vrot.slane %v8575_v62, %v8553_v57 }
 0x44f   :  { %7777 = vmatpush1.bf16.msra.mxu0 %v11647_v3  ;;  %8515 = vmatpush1.bf16.msra.mxu1 %v11650_v4  ;;  %v8588_v3 = vrot.slane %v8575_v62, %v8561_v58 }
 0x450   :  { %7778 = vmatprep.subr.bf16.mxu0 %v11655_v5  ;;  %8516 = vmatprep.subr.bf16.mxu1 %v11658_v6  ;;  %v8584_v6 = vrot.slane %v8575_v62, %v8557_v60 }
 0x453   :  { %7779 = vmatpush1.bf16.msra.mxu0 %v11653_v7  ;;  %8517 = vmatpush1.bf16.msra.mxu1 %v11656_v8  ;;  %v8592_v7 = vrot.slane %v8575_v62, %v8565_v61 }
 0x454   :  { %7780 = vmatprep.subr.bf16.mxu0 %v11661_v9  ;;  %8518 = vmatprep.subr.bf16.mxu1 %v11664_v10 }
 0x457   :  { %7781 = vmatpush1.bf16.msra.mxu0 %v11659_v12  ;;  %8519 = vmatpush1.bf16.msra.mxu1 %v11662_v13 }
 0x458   :  { %7782 = vmatprep.subr.bf16.mxu0 %v11667_v15  ;;  %8520 = vmatprep.subr.bf16.mxu1 %v11670_v11 }
 0x45b   :  { %7783 = vmatpush1.bf16.msra.mxu0 %v11665_v17  ;;  %8521 = vmatpush1.bf16.msra.mxu1 %v11668_v14 }
 0x45c   :  { %7784 = vmatprep.subr.bf16.mxu0 %v11673_v19  ;;  %8522 = vmatprep.subr.bf16.mxu1 %v11676_v20 }
 0x45f   :  { %7785 = vmatpush1.bf16.msra.mxu0 %v11671_v16  ;;  %8523 = vmatpush1.bf16.msra.mxu1 %v11674_v22 }
 0x460   :  { %7786 = vmatprep.subr.bf16.mxu0 %v11679_v23  ;;  %8524 = vmatprep.subr.bf16.mxu1 %v11682_v18 }
 0x463   :  { %7787 = vmatpush1.bf16.msra.mxu0 %v11677_v25  ;;  %8525 = vmatpush1.bf16.msra.mxu1 %v11680_v26 }
 0x464   :  { %7788 = vmatprep.subr.bf16.mxu0 %v11685_v21  ;;  %8526 = vmatprep.subr.bf16.mxu1 %v11688_v28 }
 0x467   :  { %7789 = vmatpush1.bf16.msra.mxu0 %v11683_v29  ;;  %8527 = vmatpush1.bf16.msra.mxu1 %v11686_v24 }
 0x468   :  { %7790 = vmatprep.subr.bf16.mxu0 %v11691_v31  ;;  %8528 = vmatprep.subr.bf16.mxu1 %v11694_v32 }
 0x46b   :  { %7791 = vmatpush1.bf16.msra.mxu0 %v11689_v27  ;;  %8529 = vmatpush1.bf16.msra.mxu1 %v11692_v34 }
 0x46c   :  { %7792 = vmatprep.subr.bf16.mxu0 %v11697_v35  ;;  %8530 = vmatprep.subr.bf16.mxu1 %v11700_v36 }
 0x46f   :  { %7793 = vmatpush1.bf16.msra.mxu0 %v11695_v37  ;;  %8531 = vmatpush1.bf16.msra.mxu1 %v11698_v38 }
 0x470   :  { %7794 = vmatprep.subr.bf16.mxu0 %v11703_v33  ;;  %8532 = vmatprep.subr.bf16.mxu1 %v11706_v40 }
 0x473   :  { %7795 = vmatpush1.bf16.msra.mxu0 %v11701_v41  ;;  %8533 = vmatpush1.bf16.msra.mxu1 %v11704_v30 }
 0x474   :  { %7796 = vmatprep.subr.bf16.mxu0 %v11709_v43  ;;  %8534 = vmatprep.subr.bf16.mxu1 %v11712_v44 }
 0x477   :  { %7797 = vmatpush1.bf16.msra.mxu0 %v11707_v39  ;;  %8535 = vmatpush1.bf16.msra.mxu1 %v11710_v46 }
 0x478   :  { %7798 = vmatprep.subr.bf16.mxu0 %v11715_v47  ;;  %8536 = vmatprep.subr.bf16.mxu1 %v11718_v42 }
 0x47b   :  { %7799 = vmatpush1.bf16.msra.mxu0 %v11713_v49  ;;  %8537 = vmatpush1.bf16.msra.mxu1 %v11716_v50 }
 0x47c   :  { %7800 = vmatprep.subr.bf16.mxu0 %v11721_v45  ;;  %8538 = vmatprep.subr.bf16.mxu1 %v11724_v52 }
 0x47f   :  { %7801 = vmatpush1.bf16.msra.mxu0 %v11719_v53  ;;  %8539 = vmatpush1.bf16.msra.mxu1 %v11722_v48 }
 0x482   :  { %7803 = vmatmul.mubr.bf16.vlgmr.msra.gmra.mrb[0].mxu0 %v8669_v55  ;;  %8541 = vmatmul.mubr.bf16.vlgmr.msra.gmra.mrb[0].mxu1 %v8669_v55 }
 0x555   :  { %v7804_v4 = vpop.f32.mrb[0].mxu0  ;;  %v8542_v5 = vpop.f32.mrb[0].mxu1 }
 0x556   :  { %v8571_v8 = vmul.f32 %v8554_v63, %v7804_v4  ;;  %v8573_v9 = vmul.f32 %v8562_v54, %v8542_v5  ;;  %v7806_v10 = vpop.f32.mrb[1].mxu0  ;;  %v8544_v12 = vpop.f32.mrb[1].mxu1 }
 0x557   :  { %v8572_v13 = vmul.f32 %v8558_v0, %v7806_v10  ;;  %v8574_v15 = vmul.f32 %v8566_v1, %v8544_v12  ;;  %v7808_v11 = vpop.f32.mrb[2].mxu0  ;;  %v8546_v17 = vpop.f32.mrb[2].mxu1 }
 0x558   :  { %v8597_v14 = vadd.f32 %v8580_v2, %v8571_v8  ;;  %v8599_v19 = vadd.f32 %v8588_v3, %v8573_v9  ;;  %v7809_v20 = vpop.f32.mrb[3].mxu0  ;;  %v8547_v16 = vpop.f32.mrb[3].mxu1 }
 0x559   :  { %v8598_v22 = vadd.f32 %v8584_v6, %v8572_v13  ;;  %v8600_v23 = vadd.f32 %v8592_v7, %v8574_v15 }
 0x55a   :  { %vm8601_vm0 = vcmp.gt.f32.partialorder %v8597_v14, 0.0  ;;  %v8605_v18 = vmul.f32 0.2, %v8597_v14  ;;  %vm8603_vm1 = vcmp.gt.f32.partialorder %v8599_v19, 0.0  ;;  %v8607_v25 = vmul.f32 0.2, %v8599_v19 }
 0x55b   :  { %vm8602_vm2 = vcmp.gt.f32.partialorder %v8598_v22, 0.0  ;;  %v8606_v26 = vmul.f32 0.2, %v8598_v22  ;;  %vm8604_vm3 = vcmp.gt.f32.partialorder %v8600_v23, 0.0  ;;  %v8608_v21 = vmul.f32 0.2, %v8600_v23 }
 0x55c   :  { %v8609_v28 = vsel %vm8601_vm0, %v8597_v14, %v8605_v18  ;;  %v8611_v29 = vsel %vm8603_vm1, %v8599_v19, %v8607_v25 }
 0x55d   :  { %v8610_v24 = vsel %vm8602_vm2, %v8598_v22, %v8606_v26  ;;  %v8612_v31 = vsel %vm8604_vm3, %v8600_v23, %v8608_v21 }
 0x55e   :  { %v9825_v32 = vpack.c.bf16 %v8610_v24, %v8609_v28  ;;  %v9826_v27 = vpack.c.bf16 %v8612_v31, %v8611_v29 }
 0x560   :  { %8629 = vst [vmem:[%s15380_s4] sm:$0xff] %v9825_v32  ;;  %8630 = vst [vmem:[%s15380_s4 + $0x8] sm:$0xff] %v9826_v27 }

</bundles_post_ra>
